<compile_context>
chip_gen: v7x
topology: tpu7x:2x2x1
jax: 0.10.0
libtpu: 0.0.40
codegen_flags: <defaults>
</compile_context>

<pallas_src>
import functools

import jax
import jax.numpy as jnp
from jax.experimental import pallas as pl
from jax.experimental.pallas import tpu as pltpu


# --------------------------------------------------------------------------- fused kernel
def _cnn_fused_kernel(x1_ref, w1_ref, b1_ref, w2_ref, b2_ref,
                      wf1_ref, bf1_ref, wf2_ref, bf2_ref,
                      o_ref, y1_ref, x2_ref, y2_ref, *, bt):
    """Whole forward pass for a block of `bt` images.

    x1_ref : (bt, 224, 36) bf16   conv1 im2col, rows = (i1, j1) with j1 padded 14->16 (junk=0)
    w1_ref : (36, 128)    bf16    block-diagonal conv1 weight (4 pool positions x 32 cout)
    b1_ref : (1, 32)      f32
    w2_ref : (384, 128)   bf16    conv2 weight, K=(kh,kw',cin), lanes=(dw,cout)
    b2_ref : (1, 64)      f32
    wf1_ref: (3136, 128)  bf16    fc1 weight, rows in NHWC (h, w, c) order
    bf1_ref: (1, 128)     f32
    wf2_ref: (128, 128)   bf16    fc2 weight padded 10 -> 128 output lanes
    bf2_ref: (1, 128)     f32
    o_ref  : (bt, 128)    f32     logits (first 10 lanes valid)
    y1_ref : (bt*272, 32) f32     scratch: pooled conv1 output in padded flat 16x16 row layout
    x2_ref : (112, 384)   bf16    scratch: conv2 im2col staging for one image
    y2_ref : (bt*56, 64)  f32     scratch: pooled conv2 output, rows = (b, i2, j2[0..7], c)
    """
    f32, bf16 = jnp.float32, jnp.bfloat16

    # rows with j1 in {14,15} are zero-padding junk (added so the pooled store is contiguous)
    row = jax.lax.broadcasted_iota(jnp.int32, (224, 1), 0)
    keep = (row % 16) < 14

    for b in range(bt):
        base = b * 272

        # ---- conv1 + maxpool1 + bias + ReLU --------------------------------------------
        # One MXU matmul; output lanes = (pool position d, cout) => pool is a 4-way lane max.
        c1 = jnp.dot(x1_ref[b], w1_ref[...], preferred_element_type=f32)       # (224, 128)
        p1 = jnp.maximum(jnp.maximum(c1[:, 0:32], c1[:, 32:64]),
                         jnp.maximum(c1[:, 64:96], c1[:, 96:128]))             # (224, 32)
        y1b = jnp.where(keep, jnp.maximum(p1 + b1_ref[...], 0.0), 0.0)

        # Store directly in conv2's zero-padded flat layout (row = h*16 + w).  The junk
        # columns hold zeros and land exactly on the padding columns, so the interior is a
        # single contiguous 224-row store; only top/bottom border rows need explicit zeros.
        y1_ref[pl.ds(base, 17), :] = jnp.zeros((17, 32), f32)
        y1_ref[pl.ds(base + 241, 31), :] = jnp.zeros((31, 32), f32)
        y1_ref[pl.ds(base + 17, 224), :] = y1b

        # ---- conv2 + maxpool2 + bias + ReLU --------------------------------------------
        # Single K=384 matmul; output lanes = (dw, cout) => horizontal pool is a lane max.
        for kh in range(3):
            for kwp in range(4):
                tap = y1_ref[pl.ds(base + 16 * kh + kwp, 112, stride=2), :]    # (112, 32)
                x2_ref[:, pl.ds((kh * 4 + kwp) * 32, 32)] = tap.astype(bf16)
        c2 = jnp.dot(x2_ref[...], w2_ref[...], preferred_element_type=f32)     # (112, 128)
        hmax = jnp.maximum(c2[:, 0:64], c2[:, 64:128])                         # (112, 64)
        for i2 in range(7):                                 # vertical half of the pool
            vm = jnp.maximum(hmax[16 * i2:16 * i2 + 8, :],
                             hmax[16 * i2 + 8:16 * i2 + 16, :])                # (8, 64)
            y2_ref[pl.ds(b * 56 + i2 * 8, 8), :] = jnp.maximum(vm + b2_ref[...], 0.0)

    # ---- fc1 + ReLU + fc2 for the whole batch block -------------------------------------
    # fc1 is accumulated per spatial position (weight rows are in matching NHWC order), so no
    # in-kernel flatten/relayout of the feature map is required.  j2 == 7 rows are junk and
    # are simply never read.
    acc = jnp.broadcast_to(bf1_ref[...], (bt, 128))
    for i2 in range(7):
        for j2 in range(7):
            xk = y2_ref[pl.ds(i2 * 8 + j2, bt, stride=56), :].astype(bf16)     # (bt, 64)
            wk = wf1_ref[pl.ds((i2 * 7 + j2) * 64, 64), :]                     # (64, 128)
            acc = acc + jnp.dot(xk, wk, preferred_element_type=f32)
    h = jnp.maximum(acc, 0.0).astype(bf16)
    o_ref[...] = jnp.dot(h, wf2_ref[...], preferred_element_type=f32) + bf2_ref[...]


# --------------------------------------------------------------------------- wrapper
def _conv1_im2col(x):
    """(B, 1, 28, 28) -> (B, 224, 36) bf16 im2col for the fused conv1+pool1 matmul.

    Row r = i1*16 + j1 (pool window), column s = (di*2+dj)*9 + kh*3 + kw holds
    x_pad[2*i1+di+kh, 2*j1+dj+kw]; columns j1 in {14,15} are zero (junk).
    """
    B = x.shape[0]
    xp = jnp.pad(x.reshape(B, 28, 28), ((0, 0), (1, 1), (1, 1)))       # (B, 30, 30)
    cols = []
    for di in range(2):
        for dj in range(2):
            for kh in range(3):
                for kw in range(3):
                    a, c = di + kh, dj + kw
                    cols.append(xp[:, a:a + 28:2, c:c + 28:2])         # (B, 14, 14)
    im = jnp.stack(cols, axis=-1)                                      # (B, 14, 14, 36)
    im = jnp.pad(im, ((0, 0), (0, 0), (0, 2), (0, 0)))                 # (B, 14, 16, 36)
    return im.reshape(B, 224, 36).astype(jnp.bfloat16)


def _batch_blocking(B):
    if B % 8 == 0:
        return 8, B
    if B <= 8:
        return B, B
    return 8, ((B + 7) // 8) * 8


def cnn_forward(x, kp):
    B = x.shape[0]
    assert x.shape[1:] == (1, 28, 28), x.shape          # fc1 expects 7*7*64 features
    bt, Bp = _batch_blocking(B)

    im = _conv1_im2col(x)
    if Bp != B:
        im = jnp.pad(im, ((0, Bp - B), (0, 0), (0, 0)))

    kernel = functools.partial(_cnn_fused_kernel, bt=bt)
    logits = pl.pallas_call(
        kernel,
        out_shape=jax.ShapeDtypeStruct((Bp, 128), jnp.float32),
        grid=(Bp // bt,),
        in_specs=[
            pl.BlockSpec((bt, 224, 36), lambda i: (i, 0, 0)),   # conv1 im2col
            pl.BlockSpec((36, 128), lambda i: (0, 0)),          # w1 (block-diag)
            pl.BlockSpec((1, 32), lambda i: (0, 0)),            # b1
            pl.BlockSpec((384, 128), lambda i: (0, 0)),         # w2 (pool-fused)
            pl.BlockSpec((1, 64), lambda i: (0, 0)),            # b2
            pl.BlockSpec((3136, 128), lambda i: (0, 0)),        # fc1 w
            pl.BlockSpec((1, 128), lambda i: (0, 0)),           # fc1 b
            pl.BlockSpec((128, 128), lambda i: (0, 0)),         # fc2 w (padded)
            pl.BlockSpec((1, 128), lambda i: (0, 0)),           # fc2 b (padded)
        ],
        out_specs=pl.BlockSpec((bt, 128), lambda i: (i, 0)),
        scratch_shapes=[
            pltpu.VMEM((bt * 272, 32), jnp.float32),   # y1 in padded flat 16x16 layout
            pltpu.VMEM((112, 384), jnp.bfloat16),      # conv2 im2col staging
            pltpu.VMEM((bt * 56, 64), jnp.float32),    # pooled conv2 output
        ],
        compiler_params=pltpu.CompilerParams(dimension_semantics=("parallel",)),
    )(im, kp["w1bd"], kp["b1"], kp["w2x"], kp["b2"],
      kp["fc1_w"], kp["fc1_b"], kp["fc2_w"], kp["fc2_b"])
    return logits[:B, :10]


# --------------------------------------------------------------------------- params
def init_params(key):
    """Deterministic synthetic parameters with PyTorch-convention shapes."""
    ks = jax.random.split(key, 8)

    def norm(k, shape, fan_in):
        return jax.random.normal(k, shape, jnp.float32) * (2.0 / fan_in) ** 0.5

    return {
        "conv1_w": norm(ks[0], (32, 1, 3, 3), 9),              # (Cout, Cin, kH, kW)
        "conv1_b": jax.random.normal(ks[1], (32,), jnp.float32) * 0.01,
        "conv2_w": norm(ks[2], (64, 32, 3, 3), 9 * 32),
        "conv2_b": jax.random.normal(ks[3], (64,), jnp.float32) * 0.01,
        "fc1_w": norm(ks[4], (128, 7 * 7 * 64), 7 * 7 * 64),   # (out, in) as in nn.Linear
        "fc1_b": jax.random.normal(ks[5], (128,), jnp.float32) * 0.01,
        "fc2_w": norm(ks[6], (10, 128), 128),
        "fc2_b": jax.random.normal(ks[7], (10,), jnp.float32) * 0.01,
    }


def prepare_params(p):
    """One-time transform of PyTorch-layout params into fused-kernel layouts / dtypes."""
    f32, bf16 = jnp.float32, jnp.bfloat16

    # conv1: block-diagonal weight so the 4 pool-window positions land in lanes (width 128).
    w1tap = jnp.transpose(p["conv1_w"], (2, 3, 1, 0)).reshape(9, 32)        # (kh,kw,cout)
    w1bd = jnp.zeros((4, 9, 4, 32), f32)
    for d in range(4):
        w1bd = w1bd.at[d, :, d, :].set(w1tap)
    w1bd = w1bd.reshape(36, 128).astype(bf16)

    # conv2: single K=384 matmul; K = (kh, kw'=kw+dw, cin), output lanes = (dw, cout) so the
    # horizontal half of maxpool2 is a lane-block max.
    w2t = jnp.transpose(p["conv2_w"], (2, 3, 1, 0))                          # (3,3,32,64)
    w2x = jnp.zeros((3, 4, 32, 2, 64), f32)
    w2x = w2x.at[:, 0:3, :, 0, :].set(w2t)
    w2x = w2x.at[:, 1:4, :, 1, :].set(w2t)
    w2x = w2x.reshape(384, 128).astype(bf16)

    # fc1 columns are NCHW-flattened in torch; permute rows to the NHWC (h, w, c) order the
    # conv2 stage emits, so the forward pass matches x.view(B, -1) with no runtime transpose.
    fc1_w = (p["fc1_w"].reshape(128, 64, 7, 7).transpose(2, 3, 1, 0)
             .reshape(7 * 7 * 64, 128).astype(bf16))
    # fc2 padded to a lane-dense width of 128 (zero cols/bias; sliced back to 10 afterwards).
    fc2_w = jnp.pad(p["fc2_w"].T, ((0, 0), (0, 118))).astype(bf16)
    return {
        "w1bd": w1bd, "b1": p["conv1_b"].reshape(1, 32).astype(f32),
        "w2x": w2x, "b2": p["conv2_b"].reshape(1, 64).astype(f32),
        "fc1_w": fc1_w, "fc1_b": p["fc1_b"].reshape(1, 128).astype(f32),
        "fc2_w": fc2_w, "fc2_b": jnp.pad(p["fc2_b"], (0, 118)).reshape(1, 128).astype(f32),
    }


# --------------------------------------------------------------------------- f32 reference
def reference_forward(x, p):
    B = x.shape[0]
    dn = ("NCHW", "OIHW", "NCHW")
    y = jax.lax.conv_general_dilated(x, p["conv1_w"], (1, 1), ((1, 1), (1, 1)),
                                     dimension_numbers=dn)
    y = jnp.maximum(y + p["conv1_b"][None, :, None, None], 0.0)
    y = y.reshape(B, 32, 14, 2, 14, 2).max(axis=(3, 5))
    y = jax.lax.conv_general_dilated(y, p["conv2_w"], (1, 1), ((1, 1), (1, 1)),
                                     dimension_numbers=dn)
    y = jnp.maximum(y + p["conv2_b"][None, :, None, None], 0.0)
    y = y.reshape(B, 64, 7, 2, 7, 2).max(axis=(3, 5))
    y = y.reshape(B, 64 * 7 * 7)
    y = jnp.maximum(y @ p["fc1_w"].T + p["fc1_b"], 0.0)
    return y @ p["fc2_w"].T + p["fc2_b"]


if __name__ == "__main__":
    key = jax.random.PRNGKey(0)
    k_x, k_p = jax.random.split(key)

    x = jax.random.normal(k_x, (2, 1, 28, 28), jnp.float32)   # MNIST-like input
    params = init_params(k_p)
    kparams = prepare_params(params)       # one-time weight relayout / bf16 cast

    logits = jax.jit(cnn_forward)(x, kparams)
    logits = jax.block_until_ready(logits)

    assert logits.shape == (2, 10), logits.shape
    assert logits.dtype == jnp.float32
    assert bool(jnp.all(jnp.isfinite(logits)))

    # numerical check against a pure-JAX f32 reference (loose tolerance: MXU runs in bf16)
    ref = reference_forward(x, params)
    err = float(jnp.max(jnp.abs(logits - ref)))
    assert err < 0.3, f"mismatch vs f32 reference: max abs err = {err}"

    print("KERNEL_OK")
</pallas_src>

<mosaic_0001>
module attributes {stable_mosaic.version = 11 : i64} {
  func.func @_cnn_fused_kernel(%arg0: i32, %arg1: memref<2x224x36xbf16, #tpu.memory_space<vmem>>, %arg2: memref<36x128xbf16, #tpu.memory_space<vmem>>, %arg3: memref<1x32xf32, #tpu.memory_space<vmem>>, %arg4: memref<384x128xbf16, #tpu.memory_space<vmem>>, %arg5: memref<1x64xf32, #tpu.memory_space<vmem>>, %arg6: memref<3136x128xbf16, #tpu.memory_space<vmem>>, %arg7: memref<1x128xf32, #tpu.memory_space<vmem>>, %arg8: memref<128x128xbf16, #tpu.memory_space<vmem>>, %arg9: memref<1x128xf32, #tpu.memory_space<vmem>>, %arg10: memref<2x128xf32, #tpu.memory_space<vmem>>, %arg11: memref<544x32xf32, #tpu.memory_space<vmem>>, %arg12: memref<112x384xbf16, #tpu.memory_space<vmem>>, %arg13: memref<112x64xf32, #tpu.memory_space<vmem>>) attributes {dimension_semantics = [#tpu.dimension_semantics<parallel>], iteration_bounds = array<i64: 1>, scalar_prefetch = 0 : i64, scratch_operands = 3 : i64, tpu.core_type = #tpu.core_type<tc>, window_params = [{transform_indices = @transform_0, window_bounds = array<i64: 2, 224, 36>}, {pipeline_mode = #tpu.pipeline_mode<synchronous>, transform_indices = @transform_1, window_bounds = array<i64: 36, 128>}, {pipeline_mode = #tpu.pipeline_mode<synchronous>, transform_indices = @transform_2, window_bounds = array<i64: 1, 32>}, {pipeline_mode = #tpu.pipeline_mode<synchronous>, transform_indices = @transform_3, window_bounds = array<i64: 384, 128>}, {pipeline_mode = #tpu.pipeline_mode<synchronous>, transform_indices = @transform_4, window_bounds = array<i64: 1, 64>}, {pipeline_mode = #tpu.pipeline_mode<synchronous>, transform_indices = @transform_5, window_bounds = array<i64: 3136, 128>}, {pipeline_mode = #tpu.pipeline_mode<synchronous>, transform_indices = @transform_6, window_bounds = array<i64: 1, 128>}, {pipeline_mode = #tpu.pipeline_mode<synchronous>, transform_indices = @transform_7, window_bounds = array<i64: 128, 128>}, {pipeline_mode = #tpu.pipeline_mode<synchronous>, transform_indices = @transform_8, window_bounds = array<i64: 1, 128>}, {transform_indices = @transform_9, window_bounds = array<i64: 2, 128>}]} {
    %0 = tpu.iota {dimensions = array<i32: 0>} : vector<224x1xi32>
    %c16_i32 = arith.constant 16 : i32
    %c0_i32 = arith.constant 0 : i32
    %1 = arith.cmpi eq, %c16_i32, %c0_i32 : i32
    %c1_i32 = arith.constant 1 : i32
    %2 = arith.select %1, %c1_i32, %c16_i32 : i32
    %3 = vector.broadcast %2 : i32 to vector<224x1xi32>
    %4 = arith.remsi %0, %3 : vector<224x1xi32>
    %c0_i32_0 = arith.constant 0 : i32
    %5 = vector.broadcast %c0_i32_0 : i32 to vector<224x1xi32>
    %6 = arith.cmpi ne, %4, %5 : vector<224x1xi32>
    %c0_i32_1 = arith.constant 0 : i32
    %7 = vector.broadcast %c0_i32_1 : i32 to vector<224x1xi32>
    %8 = arith.cmpi slt, %4, %7 : vector<224x1xi32>
    %c0_i32_2 = arith.constant 0 : i32
    %9 = arith.cmpi slt, %2, %c0_i32_2 : i32
    %10 = vector.broadcast %9 : i1 to vector<224x1xi1>
    %11 = vector.broadcast %10 : vector<224x1xi1> to vector<224x1xi1>
    %12 = arith.xori %8, %11 : vector<224x1xi1>
    %13 = arith.andi %12, %6 : vector<224x1xi1>
    %14 = vector.broadcast %2 : i32 to vector<224x1xi32>
    %15 = arith.addi %4, %14 : vector<224x1xi32>
    %16 = arith.select %13, %15, %4 : vector<224x1xi1>, vector<224x1xi32>
    %c14_i32 = arith.constant 14 : i32
    %17 = vector.broadcast %c14_i32 : i32 to vector<224x1xi32>
    %18 = arith.cmpi slt, %16, %17 : vector<224x1xi32>
    %c0 = arith.constant 0 : index
    %c0_3 = arith.constant 0 : index
    %c0_4 = arith.constant 0 : index
    %19 = vector.load %arg1[%c0, %c0_3, %c0_4] : memref<2x224x36xbf16, #tpu.memory_space<vmem>>, vector<1x224x36xbf16>
    %20 = vector.shape_cast %19 : vector<1x224x36xbf16> to vector<224x36xbf16>
    %c0_5 = arith.constant 0 : index
    %c0_6 = arith.constant 0 : index
    %21 = vector.load %arg2[%c0_5, %c0_6] : memref<36x128xbf16, #tpu.memory_space<vmem>>, vector<36x128xbf16>
    %cst = arith.constant dense<0.000000e+00> : vector<224x128xf32>
    %22 = tpu.matmul %20, %21, %cst {dimension_numbers = #tpu.dot_dimension_numbers<[1], [0], [0], [1], [0, 0, 1, 1], [], []>} : vector<224x36xbf16>, vector<36x128xbf16>, vector<224x128xf32> -> vector<224x128xf32>
    %23 = vector.extract_strided_slice %22 {offsets = [0, 0], sizes = [224, 32], strides = [1, 1]} : vector<224x128xf32> to vector<224x32xf32>
    %24 = vector.extract_strided_slice %22 {offsets = [0, 32], sizes = [224, 32], strides = [1, 1]} : vector<224x128xf32> to vector<224x32xf32>
    %25 = arith.maximumf %23, %24 : vector<224x32xf32>
    %26 = vector.extract_strided_slice %22 {offsets = [0, 64], sizes = [224, 32], strides = [1, 1]} : vector<224x128xf32> to vector<224x32xf32>
    %27 = vector.extract_strided_slice %22 {offsets = [0, 96], sizes = [224, 32], strides = [1, 1]} : vector<224x128xf32> to vector<224x32xf32>
    %28 = arith.maximumf %26, %27 : vector<224x32xf32>
    %29 = arith.maximumf %25, %28 : vector<224x32xf32>
    %c0_7 = arith.constant 0 : index
    %c0_8 = arith.constant 0 : index
    %30 = vector.load %arg3[%c0_7, %c0_8] : memref<1x32xf32, #tpu.memory_space<vmem>>, vector<1x32xf32>
    %31 = vector.broadcast %30 : vector<1x32xf32> to vector<224x32xf32>
    %32 = arith.addf %29, %31 : vector<224x32xf32>
    %cst_9 = arith.constant 0.000000e+00 : f32
    %33 = vector.broadcast %cst_9 : f32 to vector<224x32xf32>
    %34 = arith.maximumf %32, %33 : vector<224x32xf32>
    %cst_10 = arith.constant 0.000000e+00 : f32
    %35 = vector.shape_cast %18 : vector<224x1xi1> to vector<224x1xi1>
    %36 = vector.broadcast %35 : vector<224x1xi1> to vector<224x32xi1>
    %37 = vector.broadcast %cst_10 : f32 to vector<224x32xf32>
    %38 = arith.select %36, %34, %37 : vector<224x32xi1>, vector<224x32xf32>
    %cst_11 = arith.constant 0.000000e+00 : f32
    %39 = vector.broadcast %cst_11 : f32 to vector<17x32xf32>
    %c0_12 = arith.constant 0 : index
    %c0_13 = arith.constant 0 : index
    %40 = vector.load %arg11[%c0_12, %c0_13] : memref<544x32xf32, #tpu.memory_space<vmem>>, vector<17x32xf32>
    tpu.vector_store %arg11[%c0_12, %c0_13], %39 {strides = array<i32>} : memref<544x32xf32, #tpu.memory_space<vmem>>, vector<17x32xf32>,
    %cst_14 = arith.constant 0.000000e+00 : f32
    %41 = vector.broadcast %cst_14 : f32 to vector<31x32xf32>
    %c241 = arith.constant 241 : index
    %c0_15 = arith.constant 0 : index
    %42 = vector.load %arg11[%c241, %c0_15] : memref<544x32xf32, #tpu.memory_space<vmem>>, vector<31x32xf32>
    tpu.vector_store %arg11[%c241, %c0_15], %41 {strides = array<i32>} : memref<544x32xf32, #tpu.memory_space<vmem>>, vector<31x32xf32>,
    %c17 = arith.constant 17 : index
    %c0_16 = arith.constant 0 : index
    %43 = vector.load %arg11[%c17, %c0_16] : memref<544x32xf32, #tpu.memory_space<vmem>>, vector<224x32xf32>
    tpu.vector_store %arg11[%c17, %c0_16], %38 {strides = array<i32>} : memref<544x32xf32, #tpu.memory_space<vmem>>, vector<224x32xf32>,
    %c0_17 = arith.constant 0 : index
    %c0_18 = arith.constant 0 : index
    %44 = tpu.strided_load %arg11[%c0_17, %c0_18] {strides = array<i32: 2, 1>} : memref<544x32xf32, #tpu.memory_space<vmem>>, vector<112x32xf32>
    %45 = arith.truncf %44 : vector<112x32xf32> to vector<112x32xbf16>
    %c0_19 = arith.constant 0 : index
    %c0_20 = arith.constant 0 : index
    %46 = vector.load %arg12[%c0_19, %c0_20] : memref<112x384xbf16, #tpu.memory_space<vmem>>, vector<112x32xbf16>
    tpu.vector_store %arg12[%c0_19, %c0_20], %45 {strides = array<i32>} : memref<112x384xbf16, #tpu.memory_space<vmem>>, vector<112x32xbf16>,
    %c1 = arith.constant 1 : index
    %c0_21 = arith.constant 0 : index
    %47 = tpu.strided_load %arg11[%c1, %c0_21] {strides = array<i32: 2, 1>} : memref<544x32xf32, #tpu.memory_space<vmem>>, vector<112x32xf32>
    %48 = arith.truncf %47 : vector<112x32xf32> to vector<112x32xbf16>
    %c0_22 = arith.constant 0 : index
    %c32 = arith.constant 32 : index
    %49 = vector.load %arg12[%c0_22, %c32] : memref<112x384xbf16, #tpu.memory_space<vmem>>, vector<112x32xbf16>
    tpu.vector_store %arg12[%c0_22, %c32], %48 {strides = array<i32>} : memref<112x384xbf16, #tpu.memory_space<vmem>>, vector<112x32xbf16>,
    %c2 = arith.constant 2 : index
    %c0_23 = arith.constant 0 : index
    %50 = tpu.strided_load %arg11[%c2, %c0_23] {strides = array<i32: 2, 1>} : memref<544x32xf32, #tpu.memory_space<vmem>>, vector<112x32xf32>
    %51 = arith.truncf %50 : vector<112x32xf32> to vector<112x32xbf16>
    %c0_24 = arith.constant 0 : index
    %c64 = arith.constant 64 : index
    %52 = vector.load %arg12[%c0_24, %c64] : memref<112x384xbf16, #tpu.memory_space<vmem>>, vector<112x32xbf16>
    tpu.vector_store %arg12[%c0_24, %c64], %51 {strides = array<i32>} : memref<112x384xbf16, #tpu.memory_space<vmem>>, vector<112x32xbf16>,
    %c3 = arith.constant 3 : index
    %c0_25 = arith.constant 0 : index
    %53 = tpu.strided_load %arg11[%c3, %c0_25] {strides = array<i32: 2, 1>} : memref<544x32xf32, #tpu.memory_space<vmem>>, vector<112x32xf32>
    %54 = arith.truncf %53 : vector<112x32xf32> to vector<112x32xbf16>
    %c0_26 = arith.constant 0 : index
    %c96 = arith.constant 96 : index
    %55 = vector.load %arg12[%c0_26, %c96] : memref<112x384xbf16, #tpu.memory_space<vmem>>, vector<112x32xbf16>
    tpu.vector_store %arg12[%c0_26, %c96], %54 {strides = array<i32>} : memref<112x384xbf16, #tpu.memory_space<vmem>>, vector<112x32xbf16>,
    %c16 = arith.constant 16 : index
    %c0_27 = arith.constant 0 : index
    %56 = tpu.strided_load %arg11[%c16, %c0_27] {strides = array<i32: 2, 1>} : memref<544x32xf32, #tpu.memory_space<vmem>>, vector<112x32xf32>
    %57 = arith.truncf %56 : vector<112x32xf32> to vector<112x32xbf16>
    %c0_28 = arith.constant 0 : index
    %c128 = arith.constant 128 : index
    %58 = vector.load %arg12[%c0_28, %c128] : memref<112x384xbf16, #tpu.memory_space<vmem>>, vector<112x32xbf16>
    tpu.vector_store %arg12[%c0_28, %c128], %57 {strides = array<i32>} : memref<112x384xbf16, #tpu.memory_space<vmem>>, vector<112x32xbf16>,
    %c17_29 = arith.constant 17 : index
    %c0_30 = arith.constant 0 : index
    %59 = tpu.strided_load %arg11[%c17_29, %c0_30] {strides = array<i32: 2, 1>} : memref<544x32xf32, #tpu.memory_space<vmem>>, vector<112x32xf32>
    %60 = arith.truncf %59 : vector<112x32xf32> to vector<112x32xbf16>
    %c0_31 = arith.constant 0 : index
    %c160 = arith.constant 160 : index
    %61 = vector.load %arg12[%c0_31, %c160] : memref<112x384xbf16, #tpu.memory_space<vmem>>, vector<112x32xbf16>
    tpu.vector_store %arg12[%c0_31, %c160], %60 {strides = array<i32>} : memref<112x384xbf16, #tpu.memory_space<vmem>>, vector<112x32xbf16>,
    %c18 = arith.constant 18 : index
    %c0_32 = arith.constant 0 : index
    %62 = tpu.strided_load %arg11[%c18, %c0_32] {strides = array<i32: 2, 1>} : memref<544x32xf32, #tpu.memory_space<vmem>>, vector<112x32xf32>
    %63 = arith.truncf %62 : vector<112x32xf32> to vector<112x32xbf16>
    %c0_33 = arith.constant 0 : index
    %c192 = arith.constant 192 : index
    %64 = vector.load %arg12[%c0_33, %c192] : memref<112x384xbf16, #tpu.memory_space<vmem>>, vector<112x32xbf16>
    tpu.vector_store %arg12[%c0_33, %c192], %63 {strides = array<i32>} : memref<112x384xbf16, #tpu.memory_space<vmem>>, vector<112x32xbf16>,
    %c19 = arith.constant 19 : index
    %c0_34 = arith.constant 0 : index
    %65 = tpu.strided_load %arg11[%c19, %c0_34] {strides = array<i32: 2, 1>} : memref<544x32xf32, #tpu.memory_space<vmem>>, vector<112x32xf32>
    %66 = arith.truncf %65 : vector<112x32xf32> to vector<112x32xbf16>
    %c0_35 = arith.constant 0 : index
    %c224 = arith.constant 224 : index
    %67 = vector.load %arg12[%c0_35, %c224] : memref<112x384xbf16, #tpu.memory_space<vmem>>, vector<112x32xbf16>
    tpu.vector_store %arg12[%c0_35, %c224], %66 {strides = array<i32>} : memref<112x384xbf16, #tpu.memory_space<vmem>>, vector<112x32xbf16>,
    %c32_36 = arith.constant 32 : index
    %c0_37 = arith.constant 0 : index
    %68 = tpu.strided_load %arg11[%c32_36, %c0_37] {strides = array<i32: 2, 1>} : memref<544x32xf32, #tpu.memory_space<vmem>>, vector<112x32xf32>
    %69 = arith.truncf %68 : vector<112x32xf32> to vector<112x32xbf16>
    %c0_38 = arith.constant 0 : index
    %c256 = arith.constant 256 : index
    %70 = vector.load %arg12[%c0_38, %c256] : memref<112x384xbf16, #tpu.memory_space<vmem>>, vector<112x32xbf16>
    tpu.vector_store %arg12[%c0_38, %c256], %69 {strides = array<i32>} : memref<112x384xbf16, #tpu.memory_space<vmem>>, vector<112x32xbf16>,
    %c33 = arith.constant 33 : index
    %c0_39 = arith.constant 0 : index
    %71 = tpu.strided_load %arg11[%c33, %c0_39] {strides = array<i32: 2, 1>} : memref<544x32xf32, #tpu.memory_space<vmem>>, vector<112x32xf32>
    %72 = arith.truncf %71 : vector<112x32xf32> to vector<112x32xbf16>
    %c0_40 = arith.constant 0 : index
    %c288 = arith.constant 288 : index
    %73 = vector.load %arg12[%c0_40, %c288] : memref<112x384xbf16, #tpu.memory_space<vmem>>, vector<112x32xbf16>
    tpu.vector_store %arg12[%c0_40, %c288], %72 {strides = array<i32>} : memref<112x384xbf16, #tpu.memory_space<vmem>>, vector<112x32xbf16>,
    %c34 = arith.constant 34 : index
    %c0_41 = arith.constant 0 : index
    %74 = tpu.strided_load %arg11[%c34, %c0_41] {strides = array<i32: 2, 1>} : memref<544x32xf32, #tpu.memory_space<vmem>>, vector<112x32xf32>
    %75 = arith.truncf %74 : vector<112x32xf32> to vector<112x32xbf16>
    %c0_42 = arith.constant 0 : index
    %c320 = arith.constant 320 : index
    %76 = vector.load %arg12[%c0_42, %c320] : memref<112x384xbf16, #tpu.memory_space<vmem>>, vector<112x32xbf16>
    tpu.vector_store %arg12[%c0_42, %c320], %75 {strides = array<i32>} : memref<112x384xbf16, #tpu.memory_space<vmem>>, vector<112x32xbf16>,
    %c35 = arith.constant 35 : index
    %c0_43 = arith.constant 0 : index
    %77 = tpu.strided_load %arg11[%c35, %c0_43] {strides = array<i32: 2, 1>} : memref<544x32xf32, #tpu.memory_space<vmem>>, vector<112x32xf32>
    %78 = arith.truncf %77 : vector<112x32xf32> to vector<112x32xbf16>
    %c0_44 = arith.constant 0 : index
    %c352 = arith.constant 352 : index
    %79 = vector.load %arg12[%c0_44, %c352] : memref<112x384xbf16, #tpu.memory_space<vmem>>, vector<112x32xbf16>
    tpu.vector_store %arg12[%c0_44, %c352], %78 {strides = array<i32>} : memref<112x384xbf16, #tpu.memory_space<vmem>>, vector<112x32xbf16>,
    %c0_45 = arith.constant 0 : index
    %c0_46 = arith.constant 0 : index
    %80 = vector.load %arg12[%c0_45, %c0_46] : memref<112x384xbf16, #tpu.memory_space<vmem>>, vector<112x384xbf16>
    %c0_47 = arith.constant 0 : index
    %c0_48 = arith.constant 0 : index
    %81 = vector.load %arg4[%c0_47, %c0_48] : memref<384x128xbf16, #tpu.memory_space<vmem>>, vector<384x128xbf16>
    %cst_49 = arith.constant dense<0.000000e+00> : vector<112x128xf32>
    %82 = tpu.matmul %80, %81, %cst_49 {dimension_numbers = #tpu.dot_dimension_numbers<[1], [0], [0], [1], [0, 0, 1, 1], [], []>} : vector<112x384xbf16>, vector<384x128xbf16>, vector<112x128xf32> -> vector<112x128xf32>
    %83 = vector.extract_strided_slice %82 {offsets = [0, 0], sizes = [112, 64], strides = [1, 1]} : vector<112x128xf32> to vector<112x64xf32>
    %84 = vector.extract_strided_slice %82 {offsets = [0, 64], sizes = [112, 64], strides = [1, 1]} : vector<112x128xf32> to vector<112x64xf32>
    %85 = arith.maximumf %83, %84 : vector<112x64xf32>
    %86 = vector.extract_strided_slice %85 {offsets = [0, 0], sizes = [8, 64], strides = [1, 1]} : vector<112x64xf32> to vector<8x64xf32>
    %87 = vector.extract_strided_slice %85 {offsets = [8, 0], sizes = [8, 64], strides = [1, 1]} : vector<112x64xf32> to vector<8x64xf32>
    %88 = arith.maximumf %86, %87 : vector<8x64xf32>
    %c0_50 = arith.constant 0 : index
    %c0_51 = arith.constant 0 : index
    %89 = vector.load %arg5[%c0_50, %c0_51] : memref<1x64xf32, #tpu.memory_space<vmem>>, vector<1x64xf32>
    %90 = vector.broadcast %89 : vector<1x64xf32> to vector<8x64xf32>
    %91 = arith.addf %88, %90 : vector<8x64xf32>
    %cst_52 = arith.constant 0.000000e+00 : f32
    %92 = vector.broadcast %cst_52 : f32 to vector<8x64xf32>
    %93 = arith.maximumf %91, %92 : vector<8x64xf32>
    %c0_53 = arith.constant 0 : index
    %c0_54 = arith.constant 0 : index
    %94 = vector.load %arg13[%c0_53, %c0_54] : memref<112x64xf32, #tpu.memory_space<vmem>>, vector<8x64xf32>
    tpu.vector_store %arg13[%c0_53, %c0_54], %93 {strides = array<i32>} : memref<112x64xf32, #tpu.memory_space<vmem>>, vector<8x64xf32>,
    %95 = vector.extract_strided_slice %85 {offsets = [16, 0], sizes = [8, 64], strides = [1, 1]} : vector<112x64xf32> to vector<8x64xf32>
    %96 = vector.extract_strided_slice %85 {offsets = [24, 0], sizes = [8, 64], strides = [1, 1]} : vector<112x64xf32> to vector<8x64xf32>
    %97 = arith.maximumf %95, %96 : vector<8x64xf32>
    %c0_55 = arith.constant 0 : index
    %c0_56 = arith.constant 0 : index
    %98 = vector.load %arg5[%c0_55, %c0_56] : memref<1x64xf32, #tpu.memory_space<vmem>>, vector<1x64xf32>
    %99 = vector.broadcast %98 : vector<1x64xf32> to vector<8x64xf32>
    %100 = arith.addf %97, %99 : vector<8x64xf32>
    %cst_57 = arith.constant 0.000000e+00 : f32
    %101 = vector.broadcast %cst_57 : f32 to vector<8x64xf32>
    %102 = arith.maximumf %100, %101 : vector<8x64xf32>
    %c8 = arith.constant 8 : index
    %c0_58 = arith.constant 0 : index
    %103 = vector.load %arg13[%c8, %c0_58] : memref<112x64xf32, #tpu.memory_space<vmem>>, vector<8x64xf32>
    tpu.vector_store %arg13[%c8, %c0_58], %102 {strides = array<i32>} : memref<112x64xf32, #tpu.memory_space<vmem>>, vector<8x64xf32>,
    %104 = vector.extract_strided_slice %85 {offsets = [32, 0], sizes = [8, 64], strides = [1, 1]} : vector<112x64xf32> to vector<8x64xf32>
    %105 = vector.extract_strided_slice %85 {offsets = [40, 0], sizes = [8, 64], strides = [1, 1]} : vector<112x64xf32> to vector<8x64xf32>
    %106 = arith.maximumf %104, %105 : vector<8x64xf32>
    %c0_59 = arith.constant 0 : index
    %c0_60 = arith.constant 0 : index
    %107 = vector.load %arg5[%c0_59, %c0_60] : memref<1x64xf32, #tpu.memory_space<vmem>>, vector<1x64xf32>
    %108 = vector.broadcast %107 : vector<1x64xf32> to vector<8x64xf32>
    %109 = arith.addf %106, %108 : vector<8x64xf32>
    %cst_61 = arith.constant 0.000000e+00 : f32
    %110 = vector.broadcast %cst_61 : f32 to vector<8x64xf32>
    %111 = arith.maximumf %109, %110 : vector<8x64xf32>
    %c16_62 = arith.constant 16 : index
    %c0_63 = arith.constant 0 : index
    %112 = vector.load %arg13[%c16_62, %c0_63] : memref<112x64xf32, #tpu.memory_space<vmem>>, vector<8x64xf32>
    tpu.vector_store %arg13[%c16_62, %c0_63], %111 {strides = array<i32>} : memref<112x64xf32, #tpu.memory_space<vmem>>, vector<8x64xf32>,
    %113 = vector.extract_strided_slice %85 {offsets = [48, 0], sizes = [8, 64], strides = [1, 1]} : vector<112x64xf32> to vector<8x64xf32>
    %114 = vector.extract_strided_slice %85 {offsets = [56, 0], sizes = [8, 64], strides = [1, 1]} : vector<112x64xf32> to vector<8x64xf32>
    %115 = arith.maximumf %113, %114 : vector<8x64xf32>
    %c0_64 = arith.constant 0 : index
    %c0_65 = arith.constant 0 : index
    %116 = vector.load %arg5[%c0_64, %c0_65] : memref<1x64xf32, #tpu.memory_space<vmem>>, vector<1x64xf32>
    %117 = vector.broadcast %116 : vector<1x64xf32> to vector<8x64xf32>
    %118 = arith.addf %115, %117 : vector<8x64xf32>
    %cst_66 = arith.constant 0.000000e+00 : f32
    %119 = vector.broadcast %cst_66 : f32 to vector<8x64xf32>
    %120 = arith.maximumf %118, %119 : vector<8x64xf32>
    %c24 = arith.constant 24 : index
    %c0_67 = arith.constant 0 : index
    %121 = vector.load %arg13[%c24, %c0_67] : memref<112x64xf32, #tpu.memory_space<vmem>>, vector<8x64xf32>
    tpu.vector_store %arg13[%c24, %c0_67], %120 {strides = array<i32>} : memref<112x64xf32, #tpu.memory_space<vmem>>, vector<8x64xf32>,
    %122 = vector.extract_strided_slice %85 {offsets = [64, 0], sizes = [8, 64], strides = [1, 1]} : vector<112x64xf32> to vector<8x64xf32>
    %123 = vector.extract_strided_slice %85 {offsets = [72, 0], sizes = [8, 64], strides = [1, 1]} : vector<112x64xf32> to vector<8x64xf32>
    %124 = arith.maximumf %122, %123 : vector<8x64xf32>
    %c0_68 = arith.constant 0 : index
    %c0_69 = arith.constant 0 : index
    %125 = vector.load %arg5[%c0_68, %c0_69] : memref<1x64xf32, #tpu.memory_space<vmem>>, vector<1x64xf32>
    %126 = vector.broadcast %125 : vector<1x64xf32> to vector<8x64xf32>
    %127 = arith.addf %124, %126 : vector<8x64xf32>
    %cst_70 = arith.constant 0.000000e+00 : f32
    %128 = vector.broadcast %cst_70 : f32 to vector<8x64xf32>
    %129 = arith.maximumf %127, %128 : vector<8x64xf32>
    %c32_71 = arith.constant 32 : index
    %c0_72 = arith.constant 0 : index
    %130 = vector.load %arg13[%c32_71, %c0_72] : memref<112x64xf32, #tpu.memory_space<vmem>>, vector<8x64xf32>
    tpu.vector_store %arg13[%c32_71, %c0_72], %129 {strides = array<i32>} : memref<112x64xf32, #tpu.memory_space<vmem>>, vector<8x64xf32>,
    %131 = vector.extract_strided_slice %85 {offsets = [80, 0], sizes = [8, 64], strides = [1, 1]} : vector<112x64xf32> to vector<8x64xf32>
    %132 = vector.extract_strided_slice %85 {offsets = [88, 0], sizes = [8, 64], strides = [1, 1]} : vector<112x64xf32> to vector<8x64xf32>
    %133 = arith.maximumf %131, %132 : vector<8x64xf32>
    %c0_73 = arith.constant 0 : index
    %c0_74 = arith.constant 0 : index
    %134 = vector.load %arg5[%c0_73, %c0_74] : memref<1x64xf32, #tpu.memory_space<vmem>>, vector<1x64xf32>
    %135 = vector.broadcast %134 : vector<1x64xf32> to vector<8x64xf32>
    %136 = arith.addf %133, %135 : vector<8x64xf32>
    %cst_75 = arith.constant 0.000000e+00 : f32
    %137 = vector.broadcast %cst_75 : f32 to vector<8x64xf32>
    %138 = arith.maximumf %136, %137 : vector<8x64xf32>
    %c40 = arith.constant 40 : index
    %c0_76 = arith.constant 0 : index
    %139 = vector.load %arg13[%c40, %c0_76] : memref<112x64xf32, #tpu.memory_space<vmem>>, vector<8x64xf32>
    tpu.vector_store %arg13[%c40, %c0_76], %138 {strides = array<i32>} : memref<112x64xf32, #tpu.memory_space<vmem>>, vector<8x64xf32>,
    %140 = vector.extract_strided_slice %85 {offsets = [96, 0], sizes = [8, 64], strides = [1, 1]} : vector<112x64xf32> to vector<8x64xf32>
    %141 = vector.extract_strided_slice %85 {offsets = [104, 0], sizes = [8, 64], strides = [1, 1]} : vector<112x64xf32> to vector<8x64xf32>
    %142 = arith.maximumf %140, %141 : vector<8x64xf32>
    %c0_77 = arith.constant 0 : index
    %c0_78 = arith.constant 0 : index
    %143 = vector.load %arg5[%c0_77, %c0_78] : memref<1x64xf32, #tpu.memory_space<vmem>>, vector<1x64xf32>
    %144 = vector.broadcast %143 : vector<1x64xf32> to vector<8x64xf32>
    %145 = arith.addf %142, %144 : vector<8x64xf32>
    %cst_79 = arith.constant 0.000000e+00 : f32
    %146 = vector.broadcast %cst_79 : f32 to vector<8x64xf32>
    %147 = arith.maximumf %145, %146 : vector<8x64xf32>
    %c48 = arith.constant 48 : index
    %c0_80 = arith.constant 0 : index
    %148 = vector.load %arg13[%c48, %c0_80] : memref<112x64xf32, #tpu.memory_space<vmem>>, vector<8x64xf32>
    tpu.vector_store %arg13[%c48, %c0_80], %147 {strides = array<i32>} : memref<112x64xf32, #tpu.memory_space<vmem>>, vector<8x64xf32>,
    %c1_81 = arith.constant 1 : index
    %c0_82 = arith.constant 0 : index
    %c0_83 = arith.constant 0 : index
    %149 = vector.load %arg1[%c1_81, %c0_82, %c0_83] : memref<2x224x36xbf16, #tpu.memory_space<vmem>>, vector<1x224x36xbf16>
    %150 = vector.shape_cast %149 : vector<1x224x36xbf16> to vector<224x36xbf16>
    %c0_84 = arith.constant 0 : index
    %c0_85 = arith.constant 0 : index
    %151 = vector.load %arg2[%c0_84, %c0_85] : memref<36x128xbf16, #tpu.memory_space<vmem>>, vector<36x128xbf16>
    %cst_86 = arith.constant dense<0.000000e+00> : vector<224x128xf32>
    %152 = tpu.matmul %150, %151, %cst_86 {dimension_numbers = #tpu.dot_dimension_numbers<[1], [0], [0], [1], [0, 0, 1, 1], [], []>} : vector<224x36xbf16>, vector<36x128xbf16>, vector<224x128xf32> -> vector<224x128xf32>
    %153 = vector.extract_strided_slice %152 {offsets = [0, 0], sizes = [224, 32], strides = [1, 1]} : vector<224x128xf32> to vector<224x32xf32>
    %154 = vector.extract_strided_slice %152 {offsets = [0, 32], sizes = [224, 32], strides = [1, 1]} : vector<224x128xf32> to vector<224x32xf32>
    %155 = arith.maximumf %153, %154 : vector<224x32xf32>
    %156 = vector.extract_strided_slice %152 {offsets = [0, 64], sizes = [224, 32], strides = [1, 1]} : vector<224x128xf32> to vector<224x32xf32>
    %157 = vector.extract_strided_slice %152 {offsets = [0, 96], sizes = [224, 32], strides = [1, 1]} : vector<224x128xf32> to vector<224x32xf32>
    %158 = arith.maximumf %156, %157 : vector<224x32xf32>
    %159 = arith.maximumf %155, %158 : vector<224x32xf32>
    %c0_87 = arith.constant 0 : index
    %c0_88 = arith.constant 0 : index
    %160 = vector.load %arg3[%c0_87, %c0_88] : memref<1x32xf32, #tpu.memory_space<vmem>>, vector<1x32xf32>
    %161 = vector.broadcast %160 : vector<1x32xf32> to vector<224x32xf32>
    %162 = arith.addf %159, %161 : vector<224x32xf32>
    %cst_89 = arith.constant 0.000000e+00 : f32
    %163 = vector.broadcast %cst_89 : f32 to vector<224x32xf32>
    %164 = arith.maximumf %162, %163 : vector<224x32xf32>
    %cst_90 = arith.constant 0.000000e+00 : f32
    %165 = vector.shape_cast %18 : vector<224x1xi1> to vector<224x1xi1>
    %166 = vector.broadcast %165 : vector<224x1xi1> to vector<224x32xi1>
    %167 = vector.broadcast %cst_90 : f32 to vector<224x32xf32>
    %168 = arith.select %166, %164, %167 : vector<224x32xi1>, vector<224x32xf32>
    %cst_91 = arith.constant 0.000000e+00 : f32
    %169 = vector.broadcast %cst_91 : f32 to vector<17x32xf32>
    %c272 = arith.constant 272 : index
    %c0_92 = arith.constant 0 : index
    %170 = vector.load %arg11[%c272, %c0_92] : memref<544x32xf32, #tpu.memory_space<vmem>>, vector<17x32xf32>
    tpu.vector_store %arg11[%c272, %c0_92], %169 {strides = array<i32>} : memref<544x32xf32, #tpu.memory_space<vmem>>, vector<17x32xf32>,
    %cst_93 = arith.constant 0.000000e+00 : f32
    %171 = vector.broadcast %cst_93 : f32 to vector<31x32xf32>
    %c513 = arith.constant 513 : index
    %c0_94 = arith.constant 0 : index
    %172 = vector.load %arg11[%c513, %c0_94] : memref<544x32xf32, #tpu.memory_space<vmem>>, vector<31x32xf32>
    tpu.vector_store %arg11[%c513, %c0_94], %171 {strides = array<i32>} : memref<544x32xf32, #tpu.memory_space<vmem>>, vector<31x32xf32>,
    %c289 = arith.constant 289 : index
    %c0_95 = arith.constant 0 : index
    %173 = vector.load %arg11[%c289, %c0_95] : memref<544x32xf32, #tpu.memory_space<vmem>>, vector<224x32xf32>
    tpu.vector_store %arg11[%c289, %c0_95], %168 {strides = array<i32>} : memref<544x32xf32, #tpu.memory_space<vmem>>, vector<224x32xf32>,
    %c272_96 = arith.constant 272 : index
    %c0_97 = arith.constant 0 : index
    %174 = tpu.strided_load %arg11[%c272_96, %c0_97] {strides = array<i32: 2, 1>} : memref<544x32xf32, #tpu.memory_space<vmem>>, vector<112x32xf32>
    %175 = arith.truncf %174 : vector<112x32xf32> to vector<112x32xbf16>
    %c0_98 = arith.constant 0 : index
    %c0_99 = arith.constant 0 : index
    %176 = vector.load %arg12[%c0_98, %c0_99] : memref<112x384xbf16, #tpu.memory_space<vmem>>, vector<112x32xbf16>
    tpu.vector_store %arg12[%c0_98, %c0_99], %175 {strides = array<i32>} : memref<112x384xbf16, #tpu.memory_space<vmem>>, vector<112x32xbf16>,
    %c273 = arith.constant 273 : index
    %c0_100 = arith.constant 0 : index
    %177 = tpu.strided_load %arg11[%c273, %c0_100] {strides = array<i32: 2, 1>} : memref<544x32xf32, #tpu.memory_space<vmem>>, vector<112x32xf32>
    %178 = arith.truncf %177 : vector<112x32xf32> to vector<112x32xbf16>
    %c0_101 = arith.constant 0 : index
    %c32_102 = arith.constant 32 : index
    %179 = vector.load %arg12[%c0_101, %c32_102] : memref<112x384xbf16, #tpu.memory_space<vmem>>, vector<112x32xbf16>
    tpu.vector_store %arg12[%c0_101, %c32_102], %178 {strides = array<i32>} : memref<112x384xbf16, #tpu.memory_space<vmem>>, vector<112x32xbf16>,
    %c274 = arith.constant 274 : index
    %c0_103 = arith.constant 0 : index
    %180 = tpu.strided_load %arg11[%c274, %c0_103] {strides = array<i32: 2, 1>} : memref<544x32xf32, #tpu.memory_space<vmem>>, vector<112x32xf32>
    %181 = arith.truncf %180 : vector<112x32xf32> to vector<112x32xbf16>
    %c0_104 = arith.constant 0 : index
    %c64_105 = arith.constant 64 : index
    %182 = vector.load %arg12[%c0_104, %c64_105] : memref<112x384xbf16, #tpu.memory_space<vmem>>, vector<112x32xbf16>
    tpu.vector_store %arg12[%c0_104, %c64_105], %181 {strides = array<i32>} : memref<112x384xbf16, #tpu.memory_space<vmem>>, vector<112x32xbf16>,
    %c275 = arith.constant 275 : index
    %c0_106 = arith.constant 0 : index
    %183 = tpu.strided_load %arg11[%c275, %c0_106] {strides = array<i32: 2, 1>} : memref<544x32xf32, #tpu.memory_space<vmem>>, vector<112x32xf32>
    %184 = arith.truncf %183 : vector<112x32xf32> to vector<112x32xbf16>
    %c0_107 = arith.constant 0 : index
    %c96_108 = arith.constant 96 : index
    %185 = vector.load %arg12[%c0_107, %c96_108] : memref<112x384xbf16, #tpu.memory_space<vmem>>, vector<112x32xbf16>
    tpu.vector_store %arg12[%c0_107, %c96_108], %184 {strides = array<i32>} : memref<112x384xbf16, #tpu.memory_space<vmem>>, vector<112x32xbf16>,
    %c288_109 = arith.constant 288 : index
    %c0_110 = arith.constant 0 : index
    %186 = tpu.strided_load %arg11[%c288_109, %c0_110] {strides = array<i32: 2, 1>} : memref<544x32xf32, #tpu.memory_space<vmem>>, vector<112x32xf32>
    %187 = arith.truncf %186 : vector<112x32xf32> to vector<112x32xbf16>
    %c0_111 = arith.constant 0 : index
    %c128_112 = arith.constant 128 : index
    %188 = vector.load %arg12[%c0_111, %c128_112] : memref<112x384xbf16, #tpu.memory_space<vmem>>, vector<112x32xbf16>
    tpu.vector_store %arg12[%c0_111, %c128_112], %187 {strides = array<i32>} : memref<112x384xbf16, #tpu.memory_space<vmem>>, vector<112x32xbf16>,
    %c289_113 = arith.constant 289 : index
    %c0_114 = arith.constant 0 : index
    %189 = tpu.strided_load %arg11[%c289_113, %c0_114] {strides = array<i32: 2, 1>} : memref<544x32xf32, #tpu.memory_space<vmem>>, vector<112x32xf32>
    %190 = arith.truncf %189 : vector<112x32xf32> to vector<112x32xbf16>
    %c0_115 = arith.constant 0 : index
    %c160_116 = arith.constant 160 : index
    %191 = vector.load %arg12[%c0_115, %c160_116] : memref<112x384xbf16, #tpu.memory_space<vmem>>, vector<112x32xbf16>
    tpu.vector_store %arg12[%c0_115, %c160_116], %190 {strides = array<i32>} : memref<112x384xbf16, #tpu.memory_space<vmem>>, vector<112x32xbf16>,
    %c290 = arith.constant 290 : index
    %c0_117 = arith.constant 0 : index
    %192 = tpu.strided_load %arg11[%c290, %c0_117] {strides = array<i32: 2, 1>} : memref<544x32xf32, #tpu.memory_space<vmem>>, vector<112x32xf32>
    %193 = arith.truncf %192 : vector<112x32xf32> to vector<112x32xbf16>
    %c0_118 = arith.constant 0 : index
    %c192_119 = arith.constant 192 : index
    %194 = vector.load %arg12[%c0_118, %c192_119] : memref<112x384xbf16, #tpu.memory_space<vmem>>, vector<112x32xbf16>
    tpu.vector_store %arg12[%c0_118, %c192_119], %193 {strides = array<i32>} : memref<112x384xbf16, #tpu.memory_space<vmem>>, vector<112x32xbf16>,
    %c291 = arith.constant 291 : index
    %c0_120 = arith.constant 0 : index
    %195 = tpu.strided_load %arg11[%c291, %c0_120] {strides = array<i32: 2, 1>} : memref<544x32xf32, #tpu.memory_space<vmem>>, vector<112x32xf32>
    %196 = arith.truncf %195 : vector<112x32xf32> to vector<112x32xbf16>
    %c0_121 = arith.constant 0 : index
    %c224_122 = arith.constant 224 : index
    %197 = vector.load %arg12[%c0_121, %c224_122] : memref<112x384xbf16, #tpu.memory_space<vmem>>, vector<112x32xbf16>
    tpu.vector_store %arg12[%c0_121, %c224_122], %196 {strides = array<i32>} : memref<112x384xbf16, #tpu.memory_space<vmem>>, vector<112x32xbf16>,
    %c304 = arith.constant 304 : index
    %c0_123 = arith.constant 0 : index
    %198 = tpu.strided_load %arg11[%c304, %c0_123] {strides = array<i32: 2, 1>} : memref<544x32xf32, #tpu.memory_space<vmem>>, vector<112x32xf32>
    %199 = arith.truncf %198 : vector<112x32xf32> to vector<112x32xbf16>
    %c0_124 = arith.constant 0 : index
    %c256_125 = arith.constant 256 : index
    %200 = vector.load %arg12[%c0_124, %c256_125] : memref<112x384xbf16, #tpu.memory_space<vmem>>, vector<112x32xbf16>
    tpu.vector_store %arg12[%c0_124, %c256_125], %199 {strides = array<i32>} : memref<112x384xbf16, #tpu.memory_space<vmem>>, vector<112x32xbf16>,
    %c305 = arith.constant 305 : index
    %c0_126 = arith.constant 0 : index
    %201 = tpu.strided_load %arg11[%c305, %c0_126] {strides = array<i32: 2, 1>} : memref<544x32xf32, #tpu.memory_space<vmem>>, vector<112x32xf32>
    %202 = arith.truncf %201 : vector<112x32xf32> to vector<112x32xbf16>
    %c0_127 = arith.constant 0 : index
    %c288_128 = arith.constant 288 : index
    %203 = vector.load %arg12[%c0_127, %c288_128] : memref<112x384xbf16, #tpu.memory_space<vmem>>, vector<112x32xbf16>
    tpu.vector_store %arg12[%c0_127, %c288_128], %202 {strides = array<i32>} : memref<112x384xbf16, #tpu.memory_space<vmem>>, vector<112x32xbf16>,
    %c306 = arith.constant 306 : index
    %c0_129 = arith.constant 0 : index
    %204 = tpu.strided_load %arg11[%c306, %c0_129] {strides = array<i32: 2, 1>} : memref<544x32xf32, #tpu.memory_space<vmem>>, vector<112x32xf32>
    %205 = arith.truncf %204 : vector<112x32xf32> to vector<112x32xbf16>
    %c0_130 = arith.constant 0 : index
    %c320_131 = arith.constant 320 : index
    %206 = vector.load %arg12[%c0_130, %c320_131] : memref<112x384xbf16, #tpu.memory_space<vmem>>, vector<112x32xbf16>
    tpu.vector_store %arg12[%c0_130, %c320_131], %205 {strides = array<i32>} : memref<112x384xbf16, #tpu.memory_space<vmem>>, vector<112x32xbf16>,
    %c307 = arith.constant 307 : index
    %c0_132 = arith.constant 0 : index
    %207 = tpu.strided_load %arg11[%c307, %c0_132] {strides = array<i32: 2, 1>} : memref<544x32xf32, #tpu.memory_space<vmem>>, vector<112x32xf32>
    %208 = arith.truncf %207 : vector<112x32xf32> to vector<112x32xbf16>
    %c0_133 = arith.constant 0 : index
    %c352_134 = arith.constant 352 : index
    %209 = vector.load %arg12[%c0_133, %c352_134] : memref<112x384xbf16, #tpu.memory_space<vmem>>, vector<112x32xbf16>
    tpu.vector_store %arg12[%c0_133, %c352_134], %208 {strides = array<i32>} : memref<112x384xbf16, #tpu.memory_space<vmem>>, vector<112x32xbf16>,
    %c0_135 = arith.constant 0 : index
    %c0_136 = arith.constant 0 : index
    %210 = vector.load %arg12[%c0_135, %c0_136] : memref<112x384xbf16, #tpu.memory_space<vmem>>, vector<112x384xbf16>
    %c0_137 = arith.constant 0 : index
    %c0_138 = arith.constant 0 : index
    %211 = vector.load %arg4[%c0_137, %c0_138] : memref<384x128xbf16, #tpu.memory_space<vmem>>, vector<384x128xbf16>
    %cst_139 = arith.constant dense<0.000000e+00> : vector<112x128xf32>
    %212 = tpu.matmul %210, %211, %cst_139 {dimension_numbers = #tpu.dot_dimension_numbers<[1], [0], [0], [1], [0, 0, 1, 1], [], []>} : vector<112x384xbf16>, vector<384x128xbf16>, vector<112x128xf32> -> vector<112x128xf32>
    %213 = vector.extract_strided_slice %212 {offsets = [0, 0], sizes = [112, 64], strides = [1, 1]} : vector<112x128xf32> to vector<112x64xf32>
    %214 = vector.extract_strided_slice %212 {offsets = [0, 64], sizes = [112, 64], strides = [1, 1]} : vector<112x128xf32> to vector<112x64xf32>
    %215 = arith.maximumf %213, %214 : vector<112x64xf32>
    %216 = vector.extract_strided_slice %215 {offsets = [0, 0], sizes = [8, 64], strides = [1, 1]} : vector<112x64xf32> to vector<8x64xf32>
    %217 = vector.extract_strided_slice %215 {offsets = [8, 0], sizes = [8, 64], strides = [1, 1]} : vector<112x64xf32> to vector<8x64xf32>
    %218 = arith.maximumf %216, %217 : vector<8x64xf32>
    %c0_140 = arith.constant 0 : index
    %c0_141 = arith.constant 0 : index
    %219 = vector.load %arg5[%c0_140, %c0_141] : memref<1x64xf32, #tpu.memory_space<vmem>>, vector<1x64xf32>
    %220 = vector.broadcast %219 : vector<1x64xf32> to vector<8x64xf32>
    %221 = arith.addf %218, %220 : vector<8x64xf32>
    %cst_142 = arith.constant 0.000000e+00 : f32
    %222 = vector.broadcast %cst_142 : f32 to vector<8x64xf32>
    %223 = arith.maximumf %221, %222 : vector<8x64xf32>
    %c56 = arith.constant 56 : index
    %c0_143 = arith.constant 0 : index
    %224 = vector.load %arg13[%c56, %c0_143] : memref<112x64xf32, #tpu.memory_space<vmem>>, vector<8x64xf32>
    tpu.vector_store %arg13[%c56, %c0_143], %223 {strides = array<i32>} : memref<112x64xf32, #tpu.memory_space<vmem>>, vector<8x64xf32>,
    %225 = vector.extract_strided_slice %215 {offsets = [16, 0], sizes = [8, 64], strides = [1, 1]} : vector<112x64xf32> to vector<8x64xf32>
    %226 = vector.extract_strided_slice %215 {offsets = [24, 0], sizes = [8, 64], strides = [1, 1]} : vector<112x64xf32> to vector<8x64xf32>
    %227 = arith.maximumf %225, %226 : vector<8x64xf32>
    %c0_144 = arith.constant 0 : index
    %c0_145 = arith.constant 0 : index
    %228 = vector.load %arg5[%c0_144, %c0_145] : memref<1x64xf32, #tpu.memory_space<vmem>>, vector<1x64xf32>
    %229 = vector.broadcast %228 : vector<1x64xf32> to vector<8x64xf32>
    %230 = arith.addf %227, %229 : vector<8x64xf32>
    %cst_146 = arith.constant 0.000000e+00 : f32
    %231 = vector.broadcast %cst_146 : f32 to vector<8x64xf32>
    %232 = arith.maximumf %230, %231 : vector<8x64xf32>
    %c64_147 = arith.constant 64 : index
    %c0_148 = arith.constant 0 : index
    %233 = vector.load %arg13[%c64_147, %c0_148] : memref<112x64xf32, #tpu.memory_space<vmem>>, vector<8x64xf32>
    tpu.vector_store %arg13[%c64_147, %c0_148], %232 {strides = array<i32>} : memref<112x64xf32, #tpu.memory_space<vmem>>, vector<8x64xf32>,
    %234 = vector.extract_strided_slice %215 {offsets = [32, 0], sizes = [8, 64], strides = [1, 1]} : vector<112x64xf32> to vector<8x64xf32>
    %235 = vector.extract_strided_slice %215 {offsets = [40, 0], sizes = [8, 64], strides = [1, 1]} : vector<112x64xf32> to vector<8x64xf32>
    %236 = arith.maximumf %234, %235 : vector<8x64xf32>
    %c0_149 = arith.constant 0 : index
    %c0_150 = arith.constant 0 : index
    %237 = vector.load %arg5[%c0_149, %c0_150] : memref<1x64xf32, #tpu.memory_space<vmem>>, vector<1x64xf32>
    %238 = vector.broadcast %237 : vector<1x64xf32> to vector<8x64xf32>
    %239 = arith.addf %236, %238 : vector<8x64xf32>
    %cst_151 = arith.constant 0.000000e+00 : f32
    %240 = vector.broadcast %cst_151 : f32 to vector<8x64xf32>
    %241 = arith.maximumf %239, %240 : vector<8x64xf32>
    %c72 = arith.constant 72 : index
    %c0_152 = arith.constant 0 : index
    %242 = vector.load %arg13[%c72, %c0_152] : memref<112x64xf32, #tpu.memory_space<vmem>>, vector<8x64xf32>
    tpu.vector_store %arg13[%c72, %c0_152], %241 {strides = array<i32>} : memref<112x64xf32, #tpu.memory_space<vmem>>, vector<8x64xf32>,
    %243 = vector.extract_strided_slice %215 {offsets = [48, 0], sizes = [8, 64], strides = [1, 1]} : vector<112x64xf32> to vector<8x64xf32>
    %244 = vector.extract_strided_slice %215 {offsets = [56, 0], sizes = [8, 64], strides = [1, 1]} : vector<112x64xf32> to vector<8x64xf32>
    %245 = arith.maximumf %243, %244 : vector<8x64xf32>
    %c0_153 = arith.constant 0 : index
    %c0_154 = arith.constant 0 : index
    %246 = vector.load %arg5[%c0_153, %c0_154] : memref<1x64xf32, #tpu.memory_space<vmem>>, vector<1x64xf32>
    %247 = vector.broadcast %246 : vector<1x64xf32> to vector<8x64xf32>
    %248 = arith.addf %245, %247 : vector<8x64xf32>
    %cst_155 = arith.constant 0.000000e+00 : f32
    %249 = vector.broadcast %cst_155 : f32 to vector<8x64xf32>
    %250 = arith.maximumf %248, %249 : vector<8x64xf32>
    %c80 = arith.constant 80 : index
    %c0_156 = arith.constant 0 : index
    %251 = vector.load %arg13[%c80, %c0_156] : memref<112x64xf32, #tpu.memory_space<vmem>>, vector<8x64xf32>
    tpu.vector_store %arg13[%c80, %c0_156], %250 {strides = array<i32>} : memref<112x64xf32, #tpu.memory_space<vmem>>, vector<8x64xf32>,
    %252 = vector.extract_strided_slice %215 {offsets = [64, 0], sizes = [8, 64], strides = [1, 1]} : vector<112x64xf32> to vector<8x64xf32>
    %253 = vector.extract_strided_slice %215 {offsets = [72, 0], sizes = [8, 64], strides = [1, 1]} : vector<112x64xf32> to vector<8x64xf32>
    %254 = arith.maximumf %252, %253 : vector<8x64xf32>
    %c0_157 = arith.constant 0 : index
    %c0_158 = arith.constant 0 : index
    %255 = vector.load %arg5[%c0_157, %c0_158] : memref<1x64xf32, #tpu.memory_space<vmem>>, vector<1x64xf32>
    %256 = vector.broadcast %255 : vector<1x64xf32> to vector<8x64xf32>
    %257 = arith.addf %254, %256 : vector<8x64xf32>
    %cst_159 = arith.constant 0.000000e+00 : f32
    %258 = vector.broadcast %cst_159 : f32 to vector<8x64xf32>
    %259 = arith.maximumf %257, %258 : vector<8x64xf32>
    %c88 = arith.constant 88 : index
    %c0_160 = arith.constant 0 : index
    %260 = vector.load %arg13[%c88, %c0_160] : memref<112x64xf32, #tpu.memory_space<vmem>>, vector<8x64xf32>
    tpu.vector_store %arg13[%c88, %c0_160], %259 {strides = array<i32>} : memref<112x64xf32, #tpu.memory_space<vmem>>, vector<8x64xf32>,
    %261 = vector.extract_strided_slice %215 {offsets = [80, 0], sizes = [8, 64], strides = [1, 1]} : vector<112x64xf32> to vector<8x64xf32>
    %262 = vector.extract_strided_slice %215 {offsets = [88, 0], sizes = [8, 64], strides = [1, 1]} : vector<112x64xf32> to vector<8x64xf32>
    %263 = arith.maximumf %261, %262 : vector<8x64xf32>
    %c0_161 = arith.constant 0 : index
    %c0_162 = arith.constant 0 : index
    %264 = vector.load %arg5[%c0_161, %c0_162] : memref<1x64xf32, #tpu.memory_space<vmem>>, vector<1x64xf32>
    %265 = vector.broadcast %264 : vector<1x64xf32> to vector<8x64xf32>
    %266 = arith.addf %263, %265 : vector<8x64xf32>
    %cst_163 = arith.constant 0.000000e+00 : f32
    %267 = vector.broadcast %cst_163 : f32 to vector<8x64xf32>
    %268 = arith.maximumf %266, %267 : vector<8x64xf32>
    %c96_164 = arith.constant 96 : index
    %c0_165 = arith.constant 0 : index
    %269 = vector.load %arg13[%c96_164, %c0_165] : memref<112x64xf32, #tpu.memory_space<vmem>>, vector<8x64xf32>
    tpu.vector_store %arg13[%c96_164, %c0_165], %268 {strides = array<i32>} : memref<112x64xf32, #tpu.memory_space<vmem>>, vector<8x64xf32>,
    %270 = vector.extract_strided_slice %215 {offsets = [96, 0], sizes = [8, 64], strides = [1, 1]} : vector<112x64xf32> to vector<8x64xf32>
    %271 = vector.extract_strided_slice %215 {offsets = [104, 0], sizes = [8, 64], strides = [1, 1]} : vector<112x64xf32> to vector<8x64xf32>
    %272 = arith.maximumf %270, %271 : vector<8x64xf32>
    %c0_166 = arith.constant 0 : index
    %c0_167 = arith.constant 0 : index
    %273 = vector.load %arg5[%c0_166, %c0_167] : memref<1x64xf32, #tpu.memory_space<vmem>>, vector<1x64xf32>
    %274 = vector.broadcast %273 : vector<1x64xf32> to vector<8x64xf32>
    %275 = arith.addf %272, %274 : vector<8x64xf32>
    %cst_168 = arith.constant 0.000000e+00 : f32
    %276 = vector.broadcast %cst_168 : f32 to vector<8x64xf32>
    %277 = arith.maximumf %275, %276 : vector<8x64xf32>
    %c104 = arith.constant 104 : index
    %c0_169 = arith.constant 0 : index
    %278 = vector.load %arg13[%c104, %c0_169] : memref<112x64xf32, #tpu.memory_space<vmem>>, vector<8x64xf32>
    tpu.vector_store %arg13[%c104, %c0_169], %277 {strides = array<i32>} : memref<112x64xf32, #tpu.memory_space<vmem>>, vector<8x64xf32>,
    %c0_170 = arith.constant 0 : index
    %c0_171 = arith.constant 0 : index
    %279 = vector.load %arg7[%c0_170, %c0_171] : memref<1x128xf32, #tpu.memory_space<vmem>>, vector<1x128xf32>
    %280 = vector.shape_cast %279 : vector<1x128xf32> to vector<1x128xf32>
    %281 = vector.broadcast %280 : vector<1x128xf32> to vector<2x128xf32>
    %c0_172 = arith.constant 0 : index
    %c0_173 = arith.constant 0 : index
    %282 = tpu.strided_load %arg13[%c0_172, %c0_173] {strides = array<i32: 56, 1>} : memref<112x64xf32, #tpu.memory_space<vmem>>, vector<2x64xf32>
    %283 = arith.truncf %282 : vector<2x64xf32> to vector<2x64xbf16>
    %c0_174 = arith.constant 0 : index
    %c0_175 = arith.constant 0 : index
    %284 = vector.load %arg6[%c0_174, %c0_175] : memref<3136x128xbf16, #tpu.memory_space<vmem>>, vector<64x128xbf16>
    %cst_176 = arith.constant dense<0.000000e+00> : vector<2x128xf32>
    %285 = tpu.matmul %283, %284, %cst_176 {dimension_numbers = #tpu.dot_dimension_numbers<[1], [0], [0], [1], [0, 0, 1, 1], [], []>} : vector<2x64xbf16>, vector<64x128xbf16>, vector<2x128xf32> -> vector<2x128xf32>
    %286 = arith.addf %281, %285 : vector<2x128xf32>
    %c1_177 = arith.constant 1 : index
    %c0_178 = arith.constant 0 : index
    %287 = tpu.strided_load %arg13[%c1_177, %c0_178] {strides = array<i32: 56, 1>} : memref<112x64xf32, #tpu.memory_space<vmem>>, vector<2x64xf32>
    %288 = arith.truncf %287 : vector<2x64xf32> to vector<2x64xbf16>
    %c64_179 = arith.constant 64 : index
    %c0_180 = arith.constant 0 : index
    %289 = vector.load %arg6[%c64_179, %c0_180] : memref<3136x128xbf16, #tpu.memory_space<vmem>>, vector<64x128xbf16>
    %cst_181 = arith.constant dense<0.000000e+00> : vector<2x128xf32>
    %290 = tpu.matmul %288, %289, %cst_181 {dimension_numbers = #tpu.dot_dimension_numbers<[1], [0], [0], [1], [0, 0, 1, 1], [], []>} : vector<2x64xbf16>, vector<64x128xbf16>, vector<2x128xf32> -> vector<2x128xf32>
    %291 = arith.addf %286, %290 : vector<2x128xf32>
    %c2_182 = arith.constant 2 : index
    %c0_183 = arith.constant 0 : index
    %292 = tpu.strided_load %arg13[%c2_182, %c0_183] {strides = array<i32: 56, 1>} : memref<112x64xf32, #tpu.memory_space<vmem>>, vector<2x64xf32>
    %293 = arith.truncf %292 : vector<2x64xf32> to vector<2x64xbf16>
    %c128_184 = arith.constant 128 : index
    %c0_185 = arith.constant 0 : index
    %294 = vector.load %arg6[%c128_184, %c0_185] : memref<3136x128xbf16, #tpu.memory_space<vmem>>, vector<64x128xbf16>
    %cst_186 = arith.constant dense<0.000000e+00> : vector<2x128xf32>
    %295 = tpu.matmul %293, %294, %cst_186 {dimension_numbers = #tpu.dot_dimension_numbers<[1], [0], [0], [1], [0, 0, 1, 1], [], []>} : vector<2x64xbf16>, vector<64x128xbf16>, vector<2x128xf32> -> vector<2x128xf32>
    %296 = arith.addf %291, %295 : vector<2x128xf32>
    %c3_187 = arith.constant 3 : index
    %c0_188 = arith.constant 0 : index
    %297 = tpu.strided_load %arg13[%c3_187, %c0_188] {strides = array<i32: 56, 1>} : memref<112x64xf32, #tpu.memory_space<vmem>>, vector<2x64xf32>
    %298 = arith.truncf %297 : vector<2x64xf32> to vector<2x64xbf16>
    %c192_189 = arith.constant 192 : index
    %c0_190 = arith.constant 0 : index
    %299 = vector.load %arg6[%c192_189, %c0_190] : memref<3136x128xbf16, #tpu.memory_space<vmem>>, vector<64x128xbf16>
    %cst_191 = arith.constant dense<0.000000e+00> : vector<2x128xf32>
    %300 = tpu.matmul %298, %299, %cst_191 {dimension_numbers = #tpu.dot_dimension_numbers<[1], [0], [0], [1], [0, 0, 1, 1], [], []>} : vector<2x64xbf16>, vector<64x128xbf16>, vector<2x128xf32> -> vector<2x128xf32>
    %301 = arith.addf %296, %300 : vector<2x128xf32>
    %c4 = arith.constant 4 : index
    %c0_192 = arith.constant 0 : index
    %302 = tpu.strided_load %arg13[%c4, %c0_192] {strides = array<i32: 56, 1>} : memref<112x64xf32, #tpu.memory_space<vmem>>, vector<2x64xf32>
    %303 = arith.truncf %302 : vector<2x64xf32> to vector<2x64xbf16>
    %c256_193 = arith.constant 256 : index
    %c0_194 = arith.constant 0 : index
    %304 = vector.load %arg6[%c256_193, %c0_194] : memref<3136x128xbf16, #tpu.memory_space<vmem>>, vector<64x128xbf16>
    %cst_195 = arith.constant dense<0.000000e+00> : vector<2x128xf32>
    %305 = tpu.matmul %303, %304, %cst_195 {dimension_numbers = #tpu.dot_dimension_numbers<[1], [0], [0], [1], [0, 0, 1, 1], [], []>} : vector<2x64xbf16>, vector<64x128xbf16>, vector<2x128xf32> -> vector<2x128xf32>
    %306 = arith.addf %301, %305 : vector<2x128xf32>
    %c5 = arith.constant 5 : index
    %c0_196 = arith.constant 0 : index
    %307 = tpu.strided_load %arg13[%c5, %c0_196] {strides = array<i32: 56, 1>} : memref<112x64xf32, #tpu.memory_space<vmem>>, vector<2x64xf32>
    %308 = arith.truncf %307 : vector<2x64xf32> to vector<2x64xbf16>
    %c320_197 = arith.constant 320 : index
    %c0_198 = arith.constant 0 : index
    %309 = vector.load %arg6[%c320_197, %c0_198] : memref<3136x128xbf16, #tpu.memory_space<vmem>>, vector<64x128xbf16>
    %cst_199 = arith.constant dense<0.000000e+00> : vector<2x128xf32>
    %310 = tpu.matmul %308, %309, %cst_199 {dimension_numbers = #tpu.dot_dimension_numbers<[1], [0], [0], [1], [0, 0, 1, 1], [], []>} : vector<2x64xbf16>, vector<64x128xbf16>, vector<2x128xf32> -> vector<2x128xf32>
    %311 = arith.addf %306, %310 : vector<2x128xf32>
    %c6 = arith.constant 6 : index
    %c0_200 = arith.constant 0 : index
    %312 = tpu.strided_load %arg13[%c6, %c0_200] {strides = array<i32: 56, 1>} : memref<112x64xf32, #tpu.memory_space<vmem>>, vector<2x64xf32>
    %313 = arith.truncf %312 : vector<2x64xf32> to vector<2x64xbf16>
    %c384 = arith.constant 384 : index
    %c0_201 = arith.constant 0 : index
    %314 = vector.load %arg6[%c384, %c0_201] : memref<3136x128xbf16, #tpu.memory_space<vmem>>, vector<64x128xbf16>
    %cst_202 = arith.constant dense<0.000000e+00> : vector<2x128xf32>
    %315 = tpu.matmul %313, %314, %cst_202 {dimension_numbers = #tpu.dot_dimension_numbers<[1], [0], [0], [1], [0, 0, 1, 1], [], []>} : vector<2x64xbf16>, vector<64x128xbf16>, vector<2x128xf32> -> vector<2x128xf32>
    %316 = arith.addf %311, %315 : vector<2x128xf32>
    %c8_203 = arith.constant 8 : index
    %c0_204 = arith.constant 0 : index
    %317 = tpu.strided_load %arg13[%c8_203, %c0_204] {strides = array<i32: 56, 1>} : memref<112x64xf32, #tpu.memory_space<vmem>>, vector<2x64xf32>
    %318 = arith.truncf %317 : vector<2x64xf32> to vector<2x64xbf16>
    %c448 = arith.constant 448 : index
    %c0_205 = arith.constant 0 : index
    %319 = vector.load %arg6[%c448, %c0_205] : memref<3136x128xbf16, #tpu.memory_space<vmem>>, vector<64x128xbf16>
    %cst_206 = arith.constant dense<0.000000e+00> : vector<2x128xf32>
    %320 = tpu.matmul %318, %319, %cst_206 {dimension_numbers = #tpu.dot_dimension_numbers<[1], [0], [0], [1], [0, 0, 1, 1], [], []>} : vector<2x64xbf16>, vector<64x128xbf16>, vector<2x128xf32> -> vector<2x128xf32>
    %321 = arith.addf %316, %320 : vector<2x128xf32>
    %c9 = arith.constant 9 : index
    %c0_207 = arith.constant 0 : index
    %322 = tpu.strided_load %arg13[%c9, %c0_207] {strides = array<i32: 56, 1>} : memref<112x64xf32, #tpu.memory_space<vmem>>, vector<2x64xf32>
    %323 = arith.truncf %322 : vector<2x64xf32> to vector<2x64xbf16>
    %c512 = arith.constant 512 : index
    %c0_208 = arith.constant 0 : index
    %324 = vector.load %arg6[%c512, %c0_208] : memref<3136x128xbf16, #tpu.memory_space<vmem>>, vector<64x128xbf16>
    %cst_209 = arith.constant dense<0.000000e+00> : vector<2x128xf32>
    %325 = tpu.matmul %323, %324, %cst_209 {dimension_numbers = #tpu.dot_dimension_numbers<[1], [0], [0], [1], [0, 0, 1, 1], [], []>} : vector<2x64xbf16>, vector<64x128xbf16>, vector<2x128xf32> -> vector<2x128xf32>
    %326 = arith.addf %321, %325 : vector<2x128xf32>
    %c10 = arith.constant 10 : index
    %c0_210 = arith.constant 0 : index
    %327 = tpu.strided_load %arg13[%c10, %c0_210] {strides = array<i32: 56, 1>} : memref<112x64xf32, #tpu.memory_space<vmem>>, vector<2x64xf32>
    %328 = arith.truncf %327 : vector<2x64xf32> to vector<2x64xbf16>
    %c576 = arith.constant 576 : index
    %c0_211 = arith.constant 0 : index
    %329 = vector.load %arg6[%c576, %c0_211] : memref<3136x128xbf16, #tpu.memory_space<vmem>>, vector<64x128xbf16>
    %cst_212 = arith.constant dense<0.000000e+00> : vector<2x128xf32>
    %330 = tpu.matmul %328, %329, %cst_212 {dimension_numbers = #tpu.dot_dimension_numbers<[1], [0], [0], [1], [0, 0, 1, 1], [], []>} : vector<2x64xbf16>, vector<64x128xbf16>, vector<2x128xf32> -> vector<2x128xf32>
    %331 = arith.addf %326, %330 : vector<2x128xf32>
    %c11 = arith.constant 11 : index
    %c0_213 = arith.constant 0 : index
    %332 = tpu.strided_load %arg13[%c11, %c0_213] {strides = array<i32: 56, 1>} : memref<112x64xf32, #tpu.memory_space<vmem>>, vector<2x64xf32>
    %333 = arith.truncf %332 : vector<2x64xf32> to vector<2x64xbf16>
    %c640 = arith.constant 640 : index
    %c0_214 = arith.constant 0 : index
    %334 = vector.load %arg6[%c640, %c0_214] : memref<3136x128xbf16, #tpu.memory_space<vmem>>, vector<64x128xbf16>
    %cst_215 = arith.constant dense<0.000000e+00> : vector<2x128xf32>
    %335 = tpu.matmul %333, %334, %cst_215 {dimension_numbers = #tpu.dot_dimension_numbers<[1], [0], [0], [1], [0, 0, 1, 1], [], []>} : vector<2x64xbf16>, vector<64x128xbf16>, vector<2x128xf32> -> vector<2x128xf32>
    %336 = arith.addf %331, %335 : vector<2x128xf32>
    %c12 = arith.constant 12 : index
    %c0_216 = arith.constant 0 : index
    %337 = tpu.strided_load %arg13[%c12, %c0_216] {strides = array<i32: 56, 1>} : memref<112x64xf32, #tpu.memory_space<vmem>>, vector<2x64xf32>
    %338 = arith.truncf %337 : vector<2x64xf32> to vector<2x64xbf16>
    %c704 = arith.constant 704 : index
    %c0_217 = arith.constant 0 : index
    %339 = vector.load %arg6[%c704, %c0_217] : memref<3136x128xbf16, #tpu.memory_space<vmem>>, vector<64x128xbf16>
    %cst_218 = arith.constant dense<0.000000e+00> : vector<2x128xf32>
    %340 = tpu.matmul %338, %339, %cst_218 {dimension_numbers = #tpu.dot_dimension_numbers<[1], [0], [0], [1], [0, 0, 1, 1], [], []>} : vector<2x64xbf16>, vector<64x128xbf16>, vector<2x128xf32> -> vector<2x128xf32>
    %341 = arith.addf %336, %340 : vector<2x128xf32>
    %c13 = arith.constant 13 : index
    %c0_219 = arith.constant 0 : index
    %342 = tpu.strided_load %arg13[%c13, %c0_219] {strides = array<i32: 56, 1>} : memref<112x64xf32, #tpu.memory_space<vmem>>, vector<2x64xf32>
    %343 = arith.truncf %342 : vector<2x64xf32> to vector<2x64xbf16>
    %c768 = arith.constant 768 : index
    %c0_220 = arith.constant 0 : index
    %344 = vector.load %arg6[%c768, %c0_220] : memref<3136x128xbf16, #tpu.memory_space<vmem>>, vector<64x128xbf16>
    %cst_221 = arith.constant dense<0.000000e+00> : vector<2x128xf32>
    %345 = tpu.matmul %343, %344, %cst_221 {dimension_numbers = #tpu.dot_dimension_numbers<[1], [0], [0], [1], [0, 0, 1, 1], [], []>} : vector<2x64xbf16>, vector<64x128xbf16>, vector<2x128xf32> -> vector<2x128xf32>
    %346 = arith.addf %341, %345 : vector<2x128xf32>
    %c14 = arith.constant 14 : index
    %c0_222 = arith.constant 0 : index
    %347 = tpu.strided_load %arg13[%c14, %c0_222] {strides = array<i32: 56, 1>} : memref<112x64xf32, #tpu.memory_space<vmem>>, vector<2x64xf32>
    %348 = arith.truncf %347 : vector<2x64xf32> to vector<2x64xbf16>
    %c832 = arith.constant 832 : index
    %c0_223 = arith.constant 0 : index
    %349 = vector.load %arg6[%c832, %c0_223] : memref<3136x128xbf16, #tpu.memory_space<vmem>>, vector<64x128xbf16>
    %cst_224 = arith.constant dense<0.000000e+00> : vector<2x128xf32>
    %350 = tpu.matmul %348, %349, %cst_224 {dimension_numbers = #tpu.dot_dimension_numbers<[1], [0], [0], [1], [0, 0, 1, 1], [], []>} : vector<2x64xbf16>, vector<64x128xbf16>, vector<2x128xf32> -> vector<2x128xf32>
    %351 = arith.addf %346, %350 : vector<2x128xf32>
    %c16_225 = arith.constant 16 : index
    %c0_226 = arith.constant 0 : index
    %352 = tpu.strided_load %arg13[%c16_225, %c0_226] {strides = array<i32: 56, 1>} : memref<112x64xf32, #tpu.memory_space<vmem>>, vector<2x64xf32>
    %353 = arith.truncf %352 : vector<2x64xf32> to vector<2x64xbf16>
    %c896 = arith.constant 896 : index
    %c0_227 = arith.constant 0 : index
    %354 = vector.load %arg6[%c896, %c0_227] : memref<3136x128xbf16, #tpu.memory_space<vmem>>, vector<64x128xbf16>
    %cst_228 = arith.constant dense<0.000000e+00> : vector<2x128xf32>
    %355 = tpu.matmul %353, %354, %cst_228 {dimension_numbers = #tpu.dot_dimension_numbers<[1], [0], [0], [1], [0, 0, 1, 1], [], []>} : vector<2x64xbf16>, vector<64x128xbf16>, vector<2x128xf32> -> vector<2x128xf32>
    %356 = arith.addf %351, %355 : vector<2x128xf32>
    %c17_229 = arith.constant 17 : index
    %c0_230 = arith.constant 0 : index
    %357 = tpu.strided_load %arg13[%c17_229, %c0_230] {strides = array<i32: 56, 1>} : memref<112x64xf32, #tpu.memory_space<vmem>>, vector<2x64xf32>
    %358 = arith.truncf %357 : vector<2x64xf32> to vector<2x64xbf16>
    %c960 = arith.constant 960 : index
    %c0_231 = arith.constant 0 : index
    %359 = vector.load %arg6[%c960, %c0_231] : memref<3136x128xbf16, #tpu.memory_space<vmem>>, vector<64x128xbf16>
    %cst_232 = arith.constant dense<0.000000e+00> : vector<2x128xf32>
    %360 = tpu.matmul %358, %359, %cst_232 {dimension_numbers = #tpu.dot_dimension_numbers<[1], [0], [0], [1], [0, 0, 1, 1], [], []>} : vector<2x64xbf16>, vector<64x128xbf16>, vector<2x128xf32> -> vector<2x128xf32>
    %361 = arith.addf %356, %360 : vector<2x128xf32>
    %c18_233 = arith.constant 18 : index
    %c0_234 = arith.constant 0 : index
    %362 = tpu.strided_load %arg13[%c18_233, %c0_234] {strides = array<i32: 56, 1>} : memref<112x64xf32, #tpu.memory_space<vmem>>, vector<2x64xf32>
    %363 = arith.truncf %362 : vector<2x64xf32> to vector<2x64xbf16>
    %c1024 = arith.constant 1024 : index
    %c0_235 = arith.constant 0 : index
    %364 = vector.load %arg6[%c1024, %c0_235] : memref<3136x128xbf16, #tpu.memory_space<vmem>>, vector<64x128xbf16>
    %cst_236 = arith.constant dense<0.000000e+00> : vector<2x128xf32>
    %365 = tpu.matmul %363, %364, %cst_236 {dimension_numbers = #tpu.dot_dimension_numbers<[1], [0], [0], [1], [0, 0, 1, 1], [], []>} : vector<2x64xbf16>, vector<64x128xbf16>, vector<2x128xf32> -> vector<2x128xf32>
    %366 = arith.addf %361, %365 : vector<2x128xf32>
    %c19_237 = arith.constant 19 : index
    %c0_238 = arith.constant 0 : index
    %367 = tpu.strided_load %arg13[%c19_237, %c0_238] {strides = array<i32: 56, 1>} : memref<112x64xf32, #tpu.memory_space<vmem>>, vector<2x64xf32>
    %368 = arith.truncf %367 : vector<2x64xf32> to vector<2x64xbf16>
    %c1088 = arith.constant 1088 : index
    %c0_239 = arith.constant 0 : index
    %369 = vector.load %arg6[%c1088, %c0_239] : memref<3136x128xbf16, #tpu.memory_space<vmem>>, vector<64x128xbf16>
    %cst_240 = arith.constant dense<0.000000e+00> : vector<2x128xf32>
    %370 = tpu.matmul %368, %369, %cst_240 {dimension_numbers = #tpu.dot_dimension_numbers<[1], [0], [0], [1], [0, 0, 1, 1], [], []>} : vector<2x64xbf16>, vector<64x128xbf16>, vector<2x128xf32> -> vector<2x128xf32>
    %371 = arith.addf %366, %370 : vector<2x128xf32>
    %c20 = arith.constant 20 : index
    %c0_241 = arith.constant 0 : index
    %372 = tpu.strided_load %arg13[%c20, %c0_241] {strides = array<i32: 56, 1>} : memref<112x64xf32, #tpu.memory_space<vmem>>, vector<2x64xf32>
    %373 = arith.truncf %372 : vector<2x64xf32> to vector<2x64xbf16>
    %c1152 = arith.constant 1152 : index
    %c0_242 = arith.constant 0 : index
    %374 = vector.load %arg6[%c1152, %c0_242] : memref<3136x128xbf16, #tpu.memory_space<vmem>>, vector<64x128xbf16>
    %cst_243 = arith.constant dense<0.000000e+00> : vector<2x128xf32>
    %375 = tpu.matmul %373, %374, %cst_243 {dimension_numbers = #tpu.dot_dimension_numbers<[1], [0], [0], [1], [0, 0, 1, 1], [], []>} : vector<2x64xbf16>, vector<64x128xbf16>, vector<2x128xf32> -> vector<2x128xf32>
    %376 = arith.addf %371, %375 : vector<2x128xf32>
    %c21 = arith.constant 21 : index
    %c0_244 = arith.constant 0 : index
    %377 = tpu.strided_load %arg13[%c21, %c0_244] {strides = array<i32: 56, 1>} : memref<112x64xf32, #tpu.memory_space<vmem>>, vector<2x64xf32>
    %378 = arith.truncf %377 : vector<2x64xf32> to vector<2x64xbf16>
    %c1216 = arith.constant 1216 : index
    %c0_245 = arith.constant 0 : index
    %379 = vector.load %arg6[%c1216, %c0_245] : memref<3136x128xbf16, #tpu.memory_space<vmem>>, vector<64x128xbf16>
    %cst_246 = arith.constant dense<0.000000e+00> : vector<2x128xf32>
    %380 = tpu.matmul %378, %379, %cst_246 {dimension_numbers = #tpu.dot_dimension_numbers<[1], [0], [0], [1], [0, 0, 1, 1], [], []>} : vector<2x64xbf16>, vector<64x128xbf16>, vector<2x128xf32> -> vector<2x128xf32>
    %381 = arith.addf %376, %380 : vector<2x128xf32>
    %c22 = arith.constant 22 : index
    %c0_247 = arith.constant 0 : index
    %382 = tpu.strided_load %arg13[%c22, %c0_247] {strides = array<i32: 56, 1>} : memref<112x64xf32, #tpu.memory_space<vmem>>, vector<2x64xf32>
    %383 = arith.truncf %382 : vector<2x64xf32> to vector<2x64xbf16>
    %c1280 = arith.constant 1280 : index
    %c0_248 = arith.constant 0 : index
    %384 = vector.load %arg6[%c1280, %c0_248] : memref<3136x128xbf16, #tpu.memory_space<vmem>>, vector<64x128xbf16>
    %cst_249 = arith.constant dense<0.000000e+00> : vector<2x128xf32>
    %385 = tpu.matmul %383, %384, %cst_249 {dimension_numbers = #tpu.dot_dimension_numbers<[1], [0], [0], [1], [0, 0, 1, 1], [], []>} : vector<2x64xbf16>, vector<64x128xbf16>, vector<2x128xf32> -> vector<2x128xf32>
    %386 = arith.addf %381, %385 : vector<2x128xf32>
    %c24_250 = arith.constant 24 : index
    %c0_251 = arith.constant 0 : index
    %387 = tpu.strided_load %arg13[%c24_250, %c0_251] {strides = array<i32: 56, 1>} : memref<112x64xf32, #tpu.memory_space<vmem>>, vector<2x64xf32>
    %388 = arith.truncf %387 : vector<2x64xf32> to vector<2x64xbf16>
    %c1344 = arith.constant 1344 : index
    %c0_252 = arith.constant 0 : index
    %389 = vector.load %arg6[%c1344, %c0_252] : memref<3136x128xbf16, #tpu.memory_space<vmem>>, vector<64x128xbf16>
    %cst_253 = arith.constant dense<0.000000e+00> : vector<2x128xf32>
    %390 = tpu.matmul %388, %389, %cst_253 {dimension_numbers = #tpu.dot_dimension_numbers<[1], [0], [0], [1], [0, 0, 1, 1], [], []>} : vector<2x64xbf16>, vector<64x128xbf16>, vector<2x128xf32> -> vector<2x128xf32>
    %391 = arith.addf %386, %390 : vector<2x128xf32>
    %c25 = arith.constant 25 : index
    %c0_254 = arith.constant 0 : index
    %392 = tpu.strided_load %arg13[%c25, %c0_254] {strides = array<i32: 56, 1>} : memref<112x64xf32, #tpu.memory_space<vmem>>, vector<2x64xf32>
    %393 = arith.truncf %392 : vector<2x64xf32> to vector<2x64xbf16>
    %c1408 = arith.constant 1408 : index
    %c0_255 = arith.constant 0 : index
    %394 = vector.load %arg6[%c1408, %c0_255] : memref<3136x128xbf16, #tpu.memory_space<vmem>>, vector<64x128xbf16>
    %cst_256 = arith.constant dense<0.000000e+00> : vector<2x128xf32>
    %395 = tpu.matmul %393, %394, %cst_256 {dimension_numbers = #tpu.dot_dimension_numbers<[1], [0], [0], [1], [0, 0, 1, 1], [], []>} : vector<2x64xbf16>, vector<64x128xbf16>, vector<2x128xf32> -> vector<2x128xf32>
    %396 = arith.addf %391, %395 : vector<2x128xf32>
    %c26 = arith.constant 26 : index
    %c0_257 = arith.constant 0 : index
    %397 = tpu.strided_load %arg13[%c26, %c0_257] {strides = array<i32: 56, 1>} : memref<112x64xf32, #tpu.memory_space<vmem>>, vector<2x64xf32>
    %398 = arith.truncf %397 : vector<2x64xf32> to vector<2x64xbf16>
    %c1472 = arith.constant 1472 : index
    %c0_258 = arith.constant 0 : index
    %399 = vector.load %arg6[%c1472, %c0_258] : memref<3136x128xbf16, #tpu.memory_space<vmem>>, vector<64x128xbf16>
    %cst_259 = arith.constant dense<0.000000e+00> : vector<2x128xf32>
    %400 = tpu.matmul %398, %399, %cst_259 {dimension_numbers = #tpu.dot_dimension_numbers<[1], [0], [0], [1], [0, 0, 1, 1], [], []>} : vector<2x64xbf16>, vector<64x128xbf16>, vector<2x128xf32> -> vector<2x128xf32>
    %401 = arith.addf %396, %400 : vector<2x128xf32>
    %c27 = arith.constant 27 : index
    %c0_260 = arith.constant 0 : index
    %402 = tpu.strided_load %arg13[%c27, %c0_260] {strides = array<i32: 56, 1>} : memref<112x64xf32, #tpu.memory_space<vmem>>, vector<2x64xf32>
    %403 = arith.truncf %402 : vector<2x64xf32> to vector<2x64xbf16>
    %c1536 = arith.constant 1536 : index
    %c0_261 = arith.constant 0 : index
    %404 = vector.load %arg6[%c1536, %c0_261] : memref<3136x128xbf16, #tpu.memory_space<vmem>>, vector<64x128xbf16>
    %cst_262 = arith.constant dense<0.000000e+00> : vector<2x128xf32>
    %405 = tpu.matmul %403, %404, %cst_262 {dimension_numbers = #tpu.dot_dimension_numbers<[1], [0], [0], [1], [0, 0, 1, 1], [], []>} : vector<2x64xbf16>, vector<64x128xbf16>, vector<2x128xf32> -> vector<2x128xf32>
    %406 = arith.addf %401, %405 : vector<2x128xf32>
    %c28 = arith.constant 28 : index
    %c0_263 = arith.constant 0 : index
    %407 = tpu.strided_load %arg13[%c28, %c0_263] {strides = array<i32: 56, 1>} : memref<112x64xf32, #tpu.memory_space<vmem>>, vector<2x64xf32>
    %408 = arith.truncf %407 : vector<2x64xf32> to vector<2x64xbf16>
    %c1600 = arith.constant 1600 : index
    %c0_264 = arith.constant 0 : index
    %409 = vector.load %arg6[%c1600, %c0_264] : memref<3136x128xbf16, #tpu.memory_space<vmem>>, vector<64x128xbf16>
    %cst_265 = arith.constant dense<0.000000e+00> : vector<2x128xf32>
    %410 = tpu.matmul %408, %409, %cst_265 {dimension_numbers = #tpu.dot_dimension_numbers<[1], [0], [0], [1], [0, 0, 1, 1], [], []>} : vector<2x64xbf16>, vector<64x128xbf16>, vector<2x128xf32> -> vector<2x128xf32>
    %411 = arith.addf %406, %410 : vector<2x128xf32>
    %c29 = arith.constant 29 : index
    %c0_266 = arith.constant 0 : index
    %412 = tpu.strided_load %arg13[%c29, %c0_266] {strides = array<i32: 56, 1>} : memref<112x64xf32, #tpu.memory_space<vmem>>, vector<2x64xf32>
    %413 = arith.truncf %412 : vector<2x64xf32> to vector<2x64xbf16>
    %c1664 = arith.constant 1664 : index
    %c0_267 = arith.constant 0 : index
    %414 = vector.load %arg6[%c1664, %c0_267] : memref<3136x128xbf16, #tpu.memory_space<vmem>>, vector<64x128xbf16>
    %cst_268 = arith.constant dense<0.000000e+00> : vector<2x128xf32>
    %415 = tpu.matmul %413, %414, %cst_268 {dimension_numbers = #tpu.dot_dimension_numbers<[1], [0], [0], [1], [0, 0, 1, 1], [], []>} : vector<2x64xbf16>, vector<64x128xbf16>, vector<2x128xf32> -> vector<2x128xf32>
    %416 = arith.addf %411, %415 : vector<2x128xf32>
    %c30 = arith.constant 30 : index
    %c0_269 = arith.constant 0 : index
    %417 = tpu.strided_load %arg13[%c30, %c0_269] {strides = array<i32: 56, 1>} : memref<112x64xf32, #tpu.memory_space<vmem>>, vector<2x64xf32>
    %418 = arith.truncf %417 : vector<2x64xf32> to vector<2x64xbf16>
    %c1728 = arith.constant 1728 : index
    %c0_270 = arith.constant 0 : index
    %419 = vector.load %arg6[%c1728, %c0_270] : memref<3136x128xbf16, #tpu.memory_space<vmem>>, vector<64x128xbf16>
    %cst_271 = arith.constant dense<0.000000e+00> : vector<2x128xf32>
    %420 = tpu.matmul %418, %419, %cst_271 {dimension_numbers = #tpu.dot_dimension_numbers<[1], [0], [0], [1], [0, 0, 1, 1], [], []>} : vector<2x64xbf16>, vector<64x128xbf16>, vector<2x128xf32> -> vector<2x128xf32>
    %421 = arith.addf %416, %420 : vector<2x128xf32>
    %c32_272 = arith.constant 32 : index
    %c0_273 = arith.constant 0 : index
    %422 = tpu.strided_load %arg13[%c32_272, %c0_273] {strides = array<i32: 56, 1>} : memref<112x64xf32, #tpu.memory_space<vmem>>, vector<2x64xf32>
    %423 = arith.truncf %422 : vector<2x64xf32> to vector<2x64xbf16>
    %c1792 = arith.constant 1792 : index
    %c0_274 = arith.constant 0 : index
    %424 = vector.load %arg6[%c1792, %c0_274] : memref<3136x128xbf16, #tpu.memory_space<vmem>>, vector<64x128xbf16>
    %cst_275 = arith.constant dense<0.000000e+00> : vector<2x128xf32>
    %425 = tpu.matmul %423, %424, %cst_275 {dimension_numbers = #tpu.dot_dimension_numbers<[1], [0], [0], [1], [0, 0, 1, 1], [], []>} : vector<2x64xbf16>, vector<64x128xbf16>, vector<2x128xf32> -> vector<2x128xf32>
    %426 = arith.addf %421, %425 : vector<2x128xf32>
    %c33_276 = arith.constant 33 : index
    %c0_277 = arith.constant 0 : index
    %427 = tpu.strided_load %arg13[%c33_276, %c0_277] {strides = array<i32: 56, 1>} : memref<112x64xf32, #tpu.memory_space<vmem>>, vector<2x64xf32>
    %428 = arith.truncf %427 : vector<2x64xf32> to vector<2x64xbf16>
    %c1856 = arith.constant 1856 : index
    %c0_278 = arith.constant 0 : index
    %429 = vector.load %arg6[%c1856, %c0_278] : memref<3136x128xbf16, #tpu.memory_space<vmem>>, vector<64x128xbf16>
    %cst_279 = arith.constant dense<0.000000e+00> : vector<2x128xf32>
    %430 = tpu.matmul %428, %429, %cst_279 {dimension_numbers = #tpu.dot_dimension_numbers<[1], [0], [0], [1], [0, 0, 1, 1], [], []>} : vector<2x64xbf16>, vector<64x128xbf16>, vector<2x128xf32> -> vector<2x128xf32>
    %431 = arith.addf %426, %430 : vector<2x128xf32>
    %c34_280 = arith.constant 34 : index
    %c0_281 = arith.constant 0 : index
    %432 = tpu.strided_load %arg13[%c34_280, %c0_281] {strides = array<i32: 56, 1>} : memref<112x64xf32, #tpu.memory_space<vmem>>, vector<2x64xf32>
    %433 = arith.truncf %432 : vector<2x64xf32> to vector<2x64xbf16>
    %c1920 = arith.constant 1920 : index
    %c0_282 = arith.constant 0 : index
    %434 = vector.load %arg6[%c1920, %c0_282] : memref<3136x128xbf16, #tpu.memory_space<vmem>>, vector<64x128xbf16>
    %cst_283 = arith.constant dense<0.000000e+00> : vector<2x128xf32>
    %435 = tpu.matmul %433, %434, %cst_283 {dimension_numbers = #tpu.dot_dimension_numbers<[1], [0], [0], [1], [0, 0, 1, 1], [], []>} : vector<2x64xbf16>, vector<64x128xbf16>, vector<2x128xf32> -> vector<2x128xf32>
    %436 = arith.addf %431, %435 : vector<2x128xf32>
    %c35_284 = arith.constant 35 : index
    %c0_285 = arith.constant 0 : index
    %437 = tpu.strided_load %arg13[%c35_284, %c0_285] {strides = array<i32: 56, 1>} : memref<112x64xf32, #tpu.memory_space<vmem>>, vector<2x64xf32>
    %438 = arith.truncf %437 : vector<2x64xf32> to vector<2x64xbf16>
    %c1984 = arith.constant 1984 : index
    %c0_286 = arith.constant 0 : index
    %439 = vector.load %arg6[%c1984, %c0_286] : memref<3136x128xbf16, #tpu.memory_space<vmem>>, vector<64x128xbf16>
    %cst_287 = arith.constant dense<0.000000e+00> : vector<2x128xf32>
    %440 = tpu.matmul %438, %439, %cst_287 {dimension_numbers = #tpu.dot_dimension_numbers<[1], [0], [0], [1], [0, 0, 1, 1], [], []>} : vector<2x64xbf16>, vector<64x128xbf16>, vector<2x128xf32> -> vector<2x128xf32>
    %441 = arith.addf %436, %440 : vector<2x128xf32>
    %c36 = arith.constant 36 : index
    %c0_288 = arith.constant 0 : index
    %442 = tpu.strided_load %arg13[%c36, %c0_288] {strides = array<i32: 56, 1>} : memref<112x64xf32, #tpu.memory_space<vmem>>, vector<2x64xf32>
    %443 = arith.truncf %442 : vector<2x64xf32> to vector<2x64xbf16>
    %c2048 = arith.constant 2048 : index
    %c0_289 = arith.constant 0 : index
    %444 = vector.load %arg6[%c2048, %c0_289] : memref<3136x128xbf16, #tpu.memory_space<vmem>>, vector<64x128xbf16>
    %cst_290 = arith.constant dense<0.000000e+00> : vector<2x128xf32>
    %445 = tpu.matmul %443, %444, %cst_290 {dimension_numbers = #tpu.dot_dimension_numbers<[1], [0], [0], [1], [0, 0, 1, 1], [], []>} : vector<2x64xbf16>, vector<64x128xbf16>, vector<2x128xf32> -> vector<2x128xf32>
    %446 = arith.addf %441, %445 : vector<2x128xf32>
    %c37 = arith.constant 37 : index
    %c0_291 = arith.constant 0 : index
    %447 = tpu.strided_load %arg13[%c37, %c0_291] {strides = array<i32: 56, 1>} : memref<112x64xf32, #tpu.memory_space<vmem>>, vector<2x64xf32>
    %448 = arith.truncf %447 : vector<2x64xf32> to vector<2x64xbf16>
    %c2112 = arith.constant 2112 : index
    %c0_292 = arith.constant 0 : index
    %449 = vector.load %arg6[%c2112, %c0_292] : memref<3136x128xbf16, #tpu.memory_space<vmem>>, vector<64x128xbf16>
    %cst_293 = arith.constant dense<0.000000e+00> : vector<2x128xf32>
    %450 = tpu.matmul %448, %449, %cst_293 {dimension_numbers = #tpu.dot_dimension_numbers<[1], [0], [0], [1], [0, 0, 1, 1], [], []>} : vector<2x64xbf16>, vector<64x128xbf16>, vector<2x128xf32> -> vector<2x128xf32>
    %451 = arith.addf %446, %450 : vector<2x128xf32>
    %c38 = arith.constant 38 : index
    %c0_294 = arith.constant 0 : index
    %452 = tpu.strided_load %arg13[%c38, %c0_294] {strides = array<i32: 56, 1>} : memref<112x64xf32, #tpu.memory_space<vmem>>, vector<2x64xf32>
    %453 = arith.truncf %452 : vector<2x64xf32> to vector<2x64xbf16>
    %c2176 = arith.constant 2176 : index
    %c0_295 = arith.constant 0 : index
    %454 = vector.load %arg6[%c2176, %c0_295] : memref<3136x128xbf16, #tpu.memory_space<vmem>>, vector<64x128xbf16>
    %cst_296 = arith.constant dense<0.000000e+00> : vector<2x128xf32>
    %455 = tpu.matmul %453, %454, %cst_296 {dimension_numbers = #tpu.dot_dimension_numbers<[1], [0], [0], [1], [0, 0, 1, 1], [], []>} : vector<2x64xbf16>, vector<64x128xbf16>, vector<2x128xf32> -> vector<2x128xf32>
    %456 = arith.addf %451, %455 : vector<2x128xf32>
    %c40_297 = arith.constant 40 : index
    %c0_298 = arith.constant 0 : index
    %457 = tpu.strided_load %arg13[%c40_297, %c0_298] {strides = array<i32: 56, 1>} : memref<112x64xf32, #tpu.memory_space<vmem>>, vector<2x64xf32>
    %458 = arith.truncf %457 : vector<2x64xf32> to vector<2x64xbf16>
    %c2240 = arith.constant 2240 : index
    %c0_299 = arith.constant 0 : index
    %459 = vector.load %arg6[%c2240, %c0_299] : memref<3136x128xbf16, #tpu.memory_space<vmem>>, vector<64x128xbf16>
    %cst_300 = arith.constant dense<0.000000e+00> : vector<2x128xf32>
    %460 = tpu.matmul %458, %459, %cst_300 {dimension_numbers = #tpu.dot_dimension_numbers<[1], [0], [0], [1], [0, 0, 1, 1], [], []>} : vector<2x64xbf16>, vector<64x128xbf16>, vector<2x128xf32> -> vector<2x128xf32>
    %461 = arith.addf %456, %460 : vector<2x128xf32>
    %c41 = arith.constant 41 : index
    %c0_301 = arith.constant 0 : index
    %462 = tpu.strided_load %arg13[%c41, %c0_301] {strides = array<i32: 56, 1>} : memref<112x64xf32, #tpu.memory_space<vmem>>, vector<2x64xf32>
    %463 = arith.truncf %462 : vector<2x64xf32> to vector<2x64xbf16>
    %c2304 = arith.constant 2304 : index
    %c0_302 = arith.constant 0 : index
    %464 = vector.load %arg6[%c2304, %c0_302] : memref<3136x128xbf16, #tpu.memory_space<vmem>>, vector<64x128xbf16>
    %cst_303 = arith.constant dense<0.000000e+00> : vector<2x128xf32>
    %465 = tpu.matmul %463, %464, %cst_303 {dimension_numbers = #tpu.dot_dimension_numbers<[1], [0], [0], [1], [0, 0, 1, 1], [], []>} : vector<2x64xbf16>, vector<64x128xbf16>, vector<2x128xf32> -> vector<2x128xf32>
    %466 = arith.addf %461, %465 : vector<2x128xf32>
    %c42 = arith.constant 42 : index
    %c0_304 = arith.constant 0 : index
    %467 = tpu.strided_load %arg13[%c42, %c0_304] {strides = array<i32: 56, 1>} : memref<112x64xf32, #tpu.memory_space<vmem>>, vector<2x64xf32>
    %468 = arith.truncf %467 : vector<2x64xf32> to vector<2x64xbf16>
    %c2368 = arith.constant 2368 : index
    %c0_305 = arith.constant 0 : index
    %469 = vector.load %arg6[%c2368, %c0_305] : memref<3136x128xbf16, #tpu.memory_space<vmem>>, vector<64x128xbf16>
    %cst_306 = arith.constant dense<0.000000e+00> : vector<2x128xf32>
    %470 = tpu.matmul %468, %469, %cst_306 {dimension_numbers = #tpu.dot_dimension_numbers<[1], [0], [0], [1], [0, 0, 1, 1], [], []>} : vector<2x64xbf16>, vector<64x128xbf16>, vector<2x128xf32> -> vector<2x128xf32>
    %471 = arith.addf %466, %470 : vector<2x128xf32>
    %c43 = arith.constant 43 : index
    %c0_307 = arith.constant 0 : index
    %472 = tpu.strided_load %arg13[%c43, %c0_307] {strides = array<i32: 56, 1>} : memref<112x64xf32, #tpu.memory_space<vmem>>, vector<2x64xf32>
    %473 = arith.truncf %472 : vector<2x64xf32> to vector<2x64xbf16>
    %c2432 = arith.constant 2432 : index
    %c0_308 = arith.constant 0 : index
    %474 = vector.load %arg6[%c2432, %c0_308] : memref<3136x128xbf16, #tpu.memory_space<vmem>>, vector<64x128xbf16>
    %cst_309 = arith.constant dense<0.000000e+00> : vector<2x128xf32>
    %475 = tpu.matmul %473, %474, %cst_309 {dimension_numbers = #tpu.dot_dimension_numbers<[1], [0], [0], [1], [0, 0, 1, 1], [], []>} : vector<2x64xbf16>, vector<64x128xbf16>, vector<2x128xf32> -> vector<2x128xf32>
    %476 = arith.addf %471, %475 : vector<2x128xf32>
    %c44 = arith.constant 44 : index
    %c0_310 = arith.constant 0 : index
    %477 = tpu.strided_load %arg13[%c44, %c0_310] {strides = array<i32: 56, 1>} : memref<112x64xf32, #tpu.memory_space<vmem>>, vector<2x64xf32>
    %478 = arith.truncf %477 : vector<2x64xf32> to vector<2x64xbf16>
    %c2496 = arith.constant 2496 : index
    %c0_311 = arith.constant 0 : index
    %479 = vector.load %arg6[%c2496, %c0_311] : memref<3136x128xbf16, #tpu.memory_space<vmem>>, vector<64x128xbf16>
    %cst_312 = arith.constant dense<0.000000e+00> : vector<2x128xf32>
    %480 = tpu.matmul %478, %479, %cst_312 {dimension_numbers = #tpu.dot_dimension_numbers<[1], [0], [0], [1], [0, 0, 1, 1], [], []>} : vector<2x64xbf16>, vector<64x128xbf16>, vector<2x128xf32> -> vector<2x128xf32>
    %481 = arith.addf %476, %480 : vector<2x128xf32>
    %c45 = arith.constant 45 : index
    %c0_313 = arith.constant 0 : index
    %482 = tpu.strided_load %arg13[%c45, %c0_313] {strides = array<i32: 56, 1>} : memref<112x64xf32, #tpu.memory_space<vmem>>, vector<2x64xf32>
    %483 = arith.truncf %482 : vector<2x64xf32> to vector<2x64xbf16>
    %c2560 = arith.constant 2560 : index
    %c0_314 = arith.constant 0 : index
    %484 = vector.load %arg6[%c2560, %c0_314] : memref<3136x128xbf16, #tpu.memory_space<vmem>>, vector<64x128xbf16>
    %cst_315 = arith.constant dense<0.000000e+00> : vector<2x128xf32>
    %485 = tpu.matmul %483, %484, %cst_315 {dimension_numbers = #tpu.dot_dimension_numbers<[1], [0], [0], [1], [0, 0, 1, 1], [], []>} : vector<2x64xbf16>, vector<64x128xbf16>, vector<2x128xf32> -> vector<2x128xf32>
    %486 = arith.addf %481, %485 : vector<2x128xf32>
    %c46 = arith.constant 46 : index
    %c0_316 = arith.constant 0 : index
    %487 = tpu.strided_load %arg13[%c46, %c0_316] {strides = array<i32: 56, 1>} : memref<112x64xf32, #tpu.memory_space<vmem>>, vector<2x64xf32>
    %488 = arith.truncf %487 : vector<2x64xf32> to vector<2x64xbf16>
    %c2624 = arith.constant 2624 : index
    %c0_317 = arith.constant 0 : index
    %489 = vector.load %arg6[%c2624, %c0_317] : memref<3136x128xbf16, #tpu.memory_space<vmem>>, vector<64x128xbf16>
    %cst_318 = arith.constant dense<0.000000e+00> : vector<2x128xf32>
    %490 = tpu.matmul %488, %489, %cst_318 {dimension_numbers = #tpu.dot_dimension_numbers<[1], [0], [0], [1], [0, 0, 1, 1], [], []>} : vector<2x64xbf16>, vector<64x128xbf16>, vector<2x128xf32> -> vector<2x128xf32>
    %491 = arith.addf %486, %490 : vector<2x128xf32>
    %c48_319 = arith.constant 48 : index
    %c0_320 = arith.constant 0 : index
    %492 = tpu.strided_load %arg13[%c48_319, %c0_320] {strides = array<i32: 56, 1>} : memref<112x64xf32, #tpu.memory_space<vmem>>, vector<2x64xf32>
    %493 = arith.truncf %492 : vector<2x64xf32> to vector<2x64xbf16>
    %c2688 = arith.constant 2688 : index
    %c0_321 = arith.constant 0 : index
    %494 = vector.load %arg6[%c2688, %c0_321] : memref<3136x128xbf16, #tpu.memory_space<vmem>>, vector<64x128xbf16>
    %cst_322 = arith.constant dense<0.000000e+00> : vector<2x128xf32>
    %495 = tpu.matmul %493, %494, %cst_322 {dimension_numbers = #tpu.dot_dimension_numbers<[1], [0], [0], [1], [0, 0, 1, 1], [], []>} : vector<2x64xbf16>, vector<64x128xbf16>, vector<2x128xf32> -> vector<2x128xf32>
    %496 = arith.addf %491, %495 : vector<2x128xf32>
    %c49 = arith.constant 49 : index
    %c0_323 = arith.constant 0 : index
    %497 = tpu.strided_load %arg13[%c49, %c0_323] {strides = array<i32: 56, 1>} : memref<112x64xf32, #tpu.memory_space<vmem>>, vector<2x64xf32>
    %498 = arith.truncf %497 : vector<2x64xf32> to vector<2x64xbf16>
    %c2752 = arith.constant 2752 : index
    %c0_324 = arith.constant 0 : index
    %499 = vector.load %arg6[%c2752, %c0_324] : memref<3136x128xbf16, #tpu.memory_space<vmem>>, vector<64x128xbf16>
    %cst_325 = arith.constant dense<0.000000e+00> : vector<2x128xf32>
    %500 = tpu.matmul %498, %499, %cst_325 {dimension_numbers = #tpu.dot_dimension_numbers<[1], [0], [0], [1], [0, 0, 1, 1], [], []>} : vector<2x64xbf16>, vector<64x128xbf16>, vector<2x128xf32> -> vector<2x128xf32>
    %501 = arith.addf %496, %500 : vector<2x128xf32>
    %c50 = arith.constant 50 : index
    %c0_326 = arith.constant 0 : index
    %502 = tpu.strided_load %arg13[%c50, %c0_326] {strides = array<i32: 56, 1>} : memref<112x64xf32, #tpu.memory_space<vmem>>, vector<2x64xf32>
    %503 = arith.truncf %502 : vector<2x64xf32> to vector<2x64xbf16>
    %c2816 = arith.constant 2816 : index
    %c0_327 = arith.constant 0 : index
    %504 = vector.load %arg6[%c2816, %c0_327] : memref<3136x128xbf16, #tpu.memory_space<vmem>>, vector<64x128xbf16>
    %cst_328 = arith.constant dense<0.000000e+00> : vector<2x128xf32>
    %505 = tpu.matmul %503, %504, %cst_328 {dimension_numbers = #tpu.dot_dimension_numbers<[1], [0], [0], [1], [0, 0, 1, 1], [], []>} : vector<2x64xbf16>, vector<64x128xbf16>, vector<2x128xf32> -> vector<2x128xf32>
    %506 = arith.addf %501, %505 : vector<2x128xf32>
    %c51 = arith.constant 51 : index
    %c0_329 = arith.constant 0 : index
    %507 = tpu.strided_load %arg13[%c51, %c0_329] {strides = array<i32: 56, 1>} : memref<112x64xf32, #tpu.memory_space<vmem>>, vector<2x64xf32>
    %508 = arith.truncf %507 : vector<2x64xf32> to vector<2x64xbf16>
    %c2880 = arith.constant 2880 : index
    %c0_330 = arith.constant 0 : index
    %509 = vector.load %arg6[%c2880, %c0_330] : memref<3136x128xbf16, #tpu.memory_space<vmem>>, vector<64x128xbf16>
    %cst_331 = arith.constant dense<0.000000e+00> : vector<2x128xf32>
    %510 = tpu.matmul %508, %509, %cst_331 {dimension_numbers = #tpu.dot_dimension_numbers<[1], [0], [0], [1], [0, 0, 1, 1], [], []>} : vector<2x64xbf16>, vector<64x128xbf16>, vector<2x128xf32> -> vector<2x128xf32>
    %511 = arith.addf %506, %510 : vector<2x128xf32>
    %c52 = arith.constant 52 : index
    %c0_332 = arith.constant 0 : index
    %512 = tpu.strided_load %arg13[%c52, %c0_332] {strides = array<i32: 56, 1>} : memref<112x64xf32, #tpu.memory_space<vmem>>, vector<2x64xf32>
    %513 = arith.truncf %512 : vector<2x64xf32> to vector<2x64xbf16>
    %c2944 = arith.constant 2944 : index
    %c0_333 = arith.constant 0 : index
    %514 = vector.load %arg6[%c2944, %c0_333] : memref<3136x128xbf16, #tpu.memory_space<vmem>>, vector<64x128xbf16>
    %cst_334 = arith.constant dense<0.000000e+00> : vector<2x128xf32>
    %515 = tpu.matmul %513, %514, %cst_334 {dimension_numbers = #tpu.dot_dimension_numbers<[1], [0], [0], [1], [0, 0, 1, 1], [], []>} : vector<2x64xbf16>, vector<64x128xbf16>, vector<2x128xf32> -> vector<2x128xf32>
    %516 = arith.addf %511, %515 : vector<2x128xf32>
    %c53 = arith.constant 53 : index
    %c0_335 = arith.constant 0 : index
    %517 = tpu.strided_load %arg13[%c53, %c0_335] {strides = array<i32: 56, 1>} : memref<112x64xf32, #tpu.memory_space<vmem>>, vector<2x64xf32>
    %518 = arith.truncf %517 : vector<2x64xf32> to vector<2x64xbf16>
    %c3008 = arith.constant 3008 : index
    %c0_336 = arith.constant 0 : index
    %519 = vector.load %arg6[%c3008, %c0_336] : memref<3136x128xbf16, #tpu.memory_space<vmem>>, vector<64x128xbf16>
    %cst_337 = arith.constant dense<0.000000e+00> : vector<2x128xf32>
    %520 = tpu.matmul %518, %519, %cst_337 {dimension_numbers = #tpu.dot_dimension_numbers<[1], [0], [0], [1], [0, 0, 1, 1], [], []>} : vector<2x64xbf16>, vector<64x128xbf16>, vector<2x128xf32> -> vector<2x128xf32>
    %521 = arith.addf %516, %520 : vector<2x128xf32>
    %c54 = arith.constant 54 : index
    %c0_338 = arith.constant 0 : index
    %522 = tpu.strided_load %arg13[%c54, %c0_338] {strides = array<i32: 56, 1>} : memref<112x64xf32, #tpu.memory_space<vmem>>, vector<2x64xf32>
    %523 = arith.truncf %522 : vector<2x64xf32> to vector<2x64xbf16>
    %c3072 = arith.constant 3072 : index
    %c0_339 = arith.constant 0 : index
    %524 = vector.load %arg6[%c3072, %c0_339] : memref<3136x128xbf16, #tpu.memory_space<vmem>>, vector<64x128xbf16>
    %cst_340 = arith.constant dense<0.000000e+00> : vector<2x128xf32>
    %525 = tpu.matmul %523, %524, %cst_340 {dimension_numbers = #tpu.dot_dimension_numbers<[1], [0], [0], [1], [0, 0, 1, 1], [], []>} : vector<2x64xbf16>, vector<64x128xbf16>, vector<2x128xf32> -> vector<2x128xf32>
    %526 = arith.addf %521, %525 : vector<2x128xf32>
    %cst_341 = arith.constant 0.000000e+00 : f32
    %527 = vector.broadcast %cst_341 : f32 to vector<2x128xf32>
    %528 = arith.maximumf %526, %527 : vector<2x128xf32>
    %529 = arith.truncf %528 : vector<2x128xf32> to vector<2x128xbf16>
    %c0_342 = arith.constant 0 : index
    %c0_343 = arith.constant 0 : index
    %530 = vector.load %arg8[%c0_342, %c0_343] : memref<128x128xbf16, #tpu.memory_space<vmem>>, vector<128x128xbf16>
    %cst_344 = arith.constant dense<0.000000e+00> : vector<2x128xf32>
    %531 = tpu.matmul %529, %530, %cst_344 {dimension_numbers = #tpu.dot_dimension_numbers<[1], [0], [0], [1], [0, 0, 1, 1], [], []>} : vector<2x128xbf16>, vector<128x128xbf16>, vector<2x128xf32> -> vector<2x128xf32>
    %c0_345 = arith.constant 0 : index
    %c0_346 = arith.constant 0 : index
    %532 = vector.load %arg9[%c0_345, %c0_346] : memref<1x128xf32, #tpu.memory_space<vmem>>, vector<1x128xf32>
    %533 = vector.broadcast %532 : vector<1x128xf32> to vector<2x128xf32>
    %534 = arith.addf %531, %533 : vector<2x128xf32>
    %c0_347 = arith.constant 0 : index
    %c0_348 = arith.constant 0 : index
    %535 = vector.load %arg10[%c0_347, %c0_348] : memref<2x128xf32, #tpu.memory_space<vmem>>, vector<2x128xf32>
    tpu.vector_store %arg10[%c0_347, %c0_348], %534 {strides = array<i32>} : memref<2x128xf32, #tpu.memory_space<vmem>>, vector<2x128xf32>,
    return
  }
  func.func @transform_0(%arg0: i32) -> (i32, i32, i32) {
    %c0_i32 = arith.constant 0 : i32
    %c0_i32_0 = arith.constant 0 : i32
    %c0_i32_1 = arith.constant 0 : i32
    return %arg0, %c0_i32, %c0_i32_0 : i32, i32, i32
  }
  func.func @transform_1(%arg0: i32) -> (i32, i32) {
    %c0_i32 = arith.constant 0 : i32
    %c0_i32_0 = arith.constant 0 : i32
    %c0_i32_1 = arith.constant 0 : i32
    return %c0_i32, %c0_i32_0 : i32, i32
  }
  func.func @transform_2(%arg0: i32) -> (i32, i32) {
    %c0_i32 = arith.constant 0 : i32
    %c0_i32_0 = arith.constant 0 : i32
    %c0_i32_1 = arith.constant 0 : i32
    return %c0_i32, %c0_i32_0 : i32, i32
  }
  func.func @transform_3(%arg0: i32) -> (i32, i32) {
    %c0_i32 = arith.constant 0 : i32
    %c0_i32_0 = arith.constant 0 : i32
    %c0_i32_1 = arith.constant 0 : i32
    return %c0_i32, %c0_i32_0 : i32, i32
  }
  func.func @transform_4(%arg0: i32) -> (i32, i32) {
    %c0_i32 = arith.constant 0 : i32
    %c0_i32_0 = arith.constant 0 : i32
    %c0_i32_1 = arith.constant 0 : i32
    return %c0_i32, %c0_i32_0 : i32, i32
  }
  func.func @transform_5(%arg0: i32) -> (i32, i32) {
    %c0_i32 = arith.constant 0 : i32
    %c0_i32_0 = arith.constant 0 : i32
    %c0_i32_1 = arith.constant 0 : i32
    return %c0_i32, %c0_i32_0 : i32, i32
  }
  func.func @transform_6(%arg0: i32) -> (i32, i32) {
    %c0_i32 = arith.constant 0 : i32
    %c0_i32_0 = arith.constant 0 : i32
    %c0_i32_1 = arith.constant 0 : i32
    return %c0_i32, %c0_i32_0 : i32, i32
  }
  func.func @transform_7(%arg0: i32) -> (i32, i32) {
    %c0_i32 = arith.constant 0 : i32
    %c0_i32_0 = arith.constant 0 : i32
    %c0_i32_1 = arith.constant 0 : i32
    return %c0_i32, %c0_i32_0 : i32, i32
  }
  func.func @transform_8(%arg0: i32) -> (i32, i32) {
    %c0_i32 = arith.constant 0 : i32
    %c0_i32_0 = arith.constant 0 : i32
    %c0_i32_1 = arith.constant 0 : i32
    return %c0_i32, %c0_i32_0 : i32, i32
  }
  func.func @transform_9(%arg0: i32) -> (i32, i32) {
    %c0_i32 = arith.constant 0 : i32
    %c0_i32_0 = arith.constant 0 : i32
    return %arg0, %c0_i32 : i32, i32
  }
}

</mosaic_0001>

<bundles_post_ra>
// kernel: cnn_forward.1
= control target key start
LH: loop header
LB: loop body
LE: loop exit
PB: predicated region body
PF: predicated region fallthrough
CT: control target
= control target key end

     0   :  { %vm13088_vm0 = vcmask 293888   ;;  %vm13090_vm1 = vcmask 1041408   ;;  %s13078_s0 = inlined_call_operand.vmem [shape: bf16[2,224,36], index: 0, kind: input, shape index: {}]   ;;  %s13079_s1 = inlined_call_operand.vmem [shape: bf16[36,128], index: 1, kind: input, shape index: {}]   ;;  %s13080_s2 = inlined_call_operand.vmem [shape: f32[1,32], index: 2, kind: input, shape index: {}]   ;;  %s13081_s3 = inlined_call_operand.vmem [shape: bf16[384,128], index: 3, kind: input, shape index: {}]   ;;  %s13082_s4 = inlined_call_operand.vmem [shape: f32[1,64], index: 4, kind: input, shape index: {}]   ;;  %s13083_s5 = inlined_call_operand.vmem [shape: bf16[3136,128], index: 5, kind: input, shape index: {}]   ;;  %s13084_s6 = inlined_call_operand.vmem [shape: f32[1,128], index: 6, kind: input, shape index: {}]   ;;  %s13085_s7 = inlined_call_operand.vmem [shape: bf16[128,128], index: 7, kind: input, shape index: {}]   ;;  %s13086_s8 = inlined_call_operand.vmem [shape: f32[1,128], index: 8, kind: input, shape index: {}]   ;;  %s13087_s9 = inlined_call_operand.hbm [shape: f32[2,128], index: 9, kind: output, shape index: {}]  }
   0x1   :  { %v10110_v0 = vld [vmem:[%s13079_s1] sm:$0xff]   ;;  %v10111_v1 = vld [vmem:[%s13079_s1 + $0x8] sm:$0xff]   ;;  %v10112_v2 = vld [vmem:[%s13079_s1 + $0x10] ss:$0 sps:$4 sm:$0x33]  }
   0x2   :  { %9148 = vmatprep.subr.bf16.mxu1 %v10110_v0  ;;  %v10113_v3 = vld [vmem:[%s13078_s0] sm:$0xff]   ;;  %v590_v4 = vsel %vm13090_vm1, %v10112_v2, 0  ;;  %v10114_v5 = vld [vmem:[%s13078_s0 + $0x8] sm:$0xff]   ;;  %v10115_v6 = vld [vmem:[%s13078_s0 + $0x10] sm:$0xff]  }
   0x3   :  { %9149 = vmatpush3.bf16.msra.mxu1 %v10110_v0  ;;  %9154 = vmatprep.mubr.msk.bf16.mxu1 %vm13088_vm0, %v10113_v3  ;;  %v10116_v7 = vld [vmem:[%s13078_s0 + $0x18] sm:$0xff]   ;;  %v10117_v8 = vld [vmem:[%s13078_s0 + $0x20] sm:$0xff]   ;;  %v10118_v9 = vld [vmem:[%s13078_s0 + $0x28] sm:$0xff]  }
   0x4   :  { %9150 = vmatprep.subr.bf16.mxu1 %v10111_v1  ;;  %v10119_v10 = vld [vmem:[%s13078_s0 + $0x30] sm:$0xff]   ;;  %v10120_v11 = vld [vmem:[%s13078_s0 + $0x38] sm:$0xff]   ;;  %v10121_v12 = vld [vmem:[%s13078_s0 + $0x40] sm:$0xff]  }
   0x5   :  { %v10122_v13 = vld [vmem:[%s13078_s0 + $0x48] sm:$0xff]   ;;  %v10123_v14 = vld [vmem:[%s13078_s0 + $0x50] sm:$0xff]   ;;  %v10124_v15 = vld [vmem:[%s13078_s0 + $0x58] sm:$0xff]  }
   0x6   :  { %v10125_v16 = vld [vmem:[%s13078_s0 + $0x60] sm:$0xff]   ;;  %v10126_v17 = vld [vmem:[%s13078_s0 + $0x68] sm:$0xff]  }
   0x7   :  { %9151 = vmatpush3.bf16.msra.mxu1 %v10111_v1 }
   0x8   :  { %10102 = vmatprep.subr.msk.bf16.mxu1 %vm13090_vm1, %v10112_v2 }
   0xb   :  { %9153 = vmatpush3.bf16.msra.mxu1 %v590_v4 }
   0xe   :  { %9155 = vmatmul.mubr.msk.bf16.vlgmr.msra.gmra.mrb[0].mxu1 %vm13088_vm0, %v10114_v5 }
   0xf   :  { %9158 = vmatprep.mubr.msk.bf16.mxu1 %vm13088_vm0, %v10115_v6 }
  0x16   :  { %9159 = vmatmul.mubr.msk.bf16.gmra.mrb[4].mxu1 %vm13088_vm0, %v10116_v7 }
  0x17   :  { %9162 = vmatprep.mubr.msk.bf16.mxu1 %vm13088_vm0, %v10117_v8 }
  0x1e   :  { %9163 = vmatmul.mubr.msk.bf16.gmra.mrb[8].mxu1 %vm13088_vm0, %v10118_v9 }
  0x1f   :  { %9166 = vmatprep.mubr.msk.bf16.mxu1 %vm13088_vm0, %v10119_v10 }
  0x26   :  { %9167 = vmatmul.mubr.msk.bf16.gmra.mrb[12].mxu1 %vm13088_vm0, %v10120_v11 }
  0x27   :  { %9170 = vmatprep.mubr.msk.bf16.mxu1 %vm13088_vm0, %v10121_v12 }
  0x2e   :  { %9171 = vmatmul.mubr.msk.bf16.gmra.mrb[16].mxu1 %vm13088_vm0, %v10122_v13 }
  0x2f   :  { %9174 = vmatprep.mubr.msk.bf16.mxu1 %vm13088_vm0, %v10123_v14 }
  0x36   :  { %9175 = vmatmul.mubr.msk.bf16.gmra.mrb[20].mxu1 %vm13088_vm0, %v10124_v15 }
  0x37   :  { %9178 = vmatprep.mubr.msk.bf16.mxu1 %vm13088_vm0, %v10125_v16 }
  0x3e   :  { %9179 = vmatmul.mubr.msk.bf16.gmra.mrb[24].mxu1 %vm13088_vm0, %v10126_v17 }
  0x3f   :  { %14 = vsyncpa [#allocation6], 0  ;;  %s10420_s22 = smov 96   ;;  %vm13089_vm2 = vcmask 261120   ;;  %v13100_v47 = vmov 0.0   ;;  %s10422_s23 = smov 64  }
  0x40   :  { %1165 = vst.msk [vmem:[#allocation2] sm:$0xff] %vm13089_vm2, %v13100_v47  ;;  %1166 = vst.msk [vmem:[#allocation2 + $0x8] sm:$0xff] %vm13089_vm2, %v13100_v47  ;;  %9460 = vmatprep.subr.bf16.mxu0 %v13100_v47  ;;  %vm1167_vm3 = vcmask 253952   ;;  %s10423_s14 = smov 32   ;;  %vm13093_vm1 = vcmask 523520  }
  0x41   :  { %1169 = vst.msk [vmem:[#allocation2 + $0xf1] sm:$0xff] %vm13089_vm2, %v13100_v47  ;;  %1170 = vst.msk [vmem:[#allocation2 + $0xf9] sm:$0xff] %vm13089_vm2, %v13100_v47 }
  0x42   :  { %1171 = vst.msk [vmem:[#allocation2 + $0x101] sm:$0xff] %vm13089_vm2, %v13100_v47  ;;  %3075 = vst.msk [vmem:[#allocation2 + $0x110] sm:$0xff] %vm13089_vm2, %v13100_v47 }
  0x43   :  { %3076 = vst.msk [vmem:[#allocation2 + $0x118] sm:$0xff] %vm13089_vm2, %v13100_v47  ;;  %3078 = vst.msk [vmem:[#allocation2 + $0x201] sm:$0xff] %vm13089_vm2, %v13100_v47 }
  0x44   :  { %3079 = vst.msk [vmem:[#allocation2 + $0x209] sm:$0xff] %vm13089_vm2, %v13100_v47  ;;  %3080 = vst.msk [vmem:[#allocation2 + $0x211] sm:$0xff] %vm13089_vm2, %v13100_v47 }
  0x45   :  { %1168 = vst.msk [vmem:[#allocation2 + $0x10] sm:$0x1] %vm1167_vm3, %v13100_v47  ;;  %3077 = vst.msk [vmem:[#allocation2 + $0x120] sm:$0x1] %vm1167_vm3, %v13100_v47 }
  0xe1   :  { %v10543_v18 = vpop.f32.mrb[0].mxu1 }
  0xe2   :  { %769 = vrot.lane.b32.xlu1 %v10543_v18, %s10420_s22  ;;  %v10547_v19 = vpop.f32.mrb[1].mxu1 }
  0xe3   :  { %v10549_v20 = vpop.f32.mrb[2].mxu1 }
  0xe4   :  { %771 = vrot.lane.b32.xlu0 %v10549_v20, %s10420_s22  ;;  %v10553_v21 = vpop.f32.mrb[3].mxu1 }
  0xe6   :  { %765 = vrot.lane.b32.xlu1 %v10547_v19, %s10420_s22 }
  0xe8   :  { %767 = vrot.lane.b32.xlu0 %v10553_v21, %s10420_s22 }
  0xe9   :  { %v10559_v22 = vpop.f32.mrb[4].mxu1 }
  0xea   :  { %777 = vrot.lane.b32.xlu1 %v10559_v22, %s10420_s22  ;;  %v10563_v23 = vpop.f32.mrb[5].mxu1 }
  0xeb   :  { %v10565_v24 = vpop.f32.mrb[6].mxu1 }
  0xec   :  { %773 = vrot.lane.b32.xlu0 %v10563_v23, %s10420_s22  ;;  %v10569_v25 = vpop.f32.mrb[7].mxu1 }
  0xee   :  { %775 = vrot.lane.b32.xlu1 %v10569_v25, %s10420_s22 }
  0xf0   :  { %779 = vrot.lane.b32.xlu0 %v10565_v24, %s10420_s22 }
  0xf1   :  { %v10575_v26 = vpop.f32.mrb[8].mxu1 }
  0xf2   :  { %785 = vrot.lane.b32.xlu1 %v10575_v26, %s10420_s22  ;;  %v10579_v27 = vpop.f32.mrb[9].mxu1 }
  0xf3   :  { %v10581_v28 = vpop.f32.mrb[10].mxu1 }
  0xf4   :  { %781 = vrot.lane.b32.xlu0 %v10579_v27, %s10420_s22  ;;  %v10585_v29 = vpop.f32.mrb[11].mxu1 }
  0xf6   :  { %783 = vrot.lane.b32.xlu1 %v10585_v29, %s10420_s22 }
  0xf8   :  { %787 = vrot.lane.b32.xlu0 %v10581_v28, %s10420_s22 }
  0xf9   :  { %v10591_v30 = vpop.f32.mrb[12].mxu1 }
  0xfa   :  { %793 = vrot.lane.b32.xlu1 %v10591_v30, %s10420_s22  ;;  %v10595_v31 = vpop.f32.mrb[13].mxu1 }
  0xfb   :  { %v10597_v32 = vpop.f32.mrb[14].mxu1 }
  0xfc   :  { %789 = vrot.lane.b32.xlu0 %v10595_v31, %s10420_s22  ;;  %v10601_v33 = vpop.f32.mrb[15].mxu1 }
  0xfe   :  { %791 = vrot.lane.b32.xlu1 %v10601_v33, %s10420_s22 }
 0x100   :  { %795 = vrot.lane.b32.xlu0 %v10597_v32, %s10420_s22 }
 0x101   :  { %v10607_v34 = vpop.f32.mrb[16].mxu1 }
 0x102   :  { %801 = vrot.lane.b32.xlu1 %v10607_v34, %s10420_s22  ;;  %v10611_v35 = vpop.f32.mrb[17].mxu1 }
 0x103   :  { %v10613_v36 = vpop.f32.mrb[18].mxu1 }
 0x104   :  { %797 = vrot.lane.b32.xlu0 %v10611_v35, %s10420_s22  ;;  %v10617_v37 = vpop.f32.mrb[19].mxu1 }
 0x106   :  { %799 = vrot.lane.b32.xlu1 %v10617_v37, %s10420_s22 }
 0x108   :  { %803 = vrot.lane.b32.xlu0 %v10613_v36, %s10420_s22 }
 0x109   :  { %v10623_v38 = vpop.f32.mrb[20].mxu1 }
 0x10a   :  { %809 = vrot.lane.b32.xlu1 %v10623_v38, %s10420_s22  ;;  %v10627_v39 = vpop.f32.mrb[21].mxu1 }
 0x10b   :  { %v10629_v40 = vpop.f32.mrb[22].mxu1 }
 0x10c   :  { %805 = vrot.lane.b32.xlu0 %v10627_v39, %s10420_s22  ;;  %v10633_v41 = vpop.f32.mrb[23].mxu1 }
 0x10e   :  { %807 = vrot.lane.b32.xlu1 %v10633_v41, %s10420_s22 }
 0x110   :  { %811 = vrot.lane.b32.xlu0 %v10629_v40, %s10420_s22 }
 0x111   :  { %v10639_v42 = vpop.f32.mrb[24].mxu1 }
 0x112   :  { %817 = vrot.lane.b32.xlu1 %v10639_v42, %s10420_s22  ;;  %v10643_v43 = vpop.f32.mrb[25].mxu1 }
 0x113   :  { %v10645_v44 = vpop.f32.mrb[26].mxu1 }
 0x114   :  { %813 = vrot.lane.b32.xlu0 %v10643_v43, %s10420_s22  ;;  %v10649_v45 = vpop.f32.mrb[27].mxu1 }
 0x116   :  { %815 = vrot.lane.b32.xlu1 %v10649_v45, %s10420_s22 }
 0x118   :  { %819 = vrot.lane.b32.xlu0 %v10645_v44, %s10420_s22 }
 0x154   :  { %v770_v46 = vpop.permute.xlu1 %769 }
 0x155   :  { %v10677_v48 = vmax.f32 %v10543_v18, %v770_v46 }
 0x156   :  { %v772_v49 = vpop.permute.xlu0 %771 }
 0x157   :  { %909 = vrot.lane.b32.xlu1 %v10677_v48, %s10422_s23  ;;  %v10682_v51 = vmax.f32 %v10549_v20, %v772_v49 }
 0x158   :  { %v766_v50 = vpop.permute.xlu1 %765 }
 0x159   :  { %v10685_v52 = vmax.f32 %v10547_v19, %v766_v50  ;;  %v10130_v50 = vld [vmem:[%s13081_s3 + $0x8] sm:$0xff]  }
 0x15a   :  { %v768_v53 = vpop.permute.xlu0 %767 }
 0x15b   :  { %905 = vrot.lane.b32.xlu0 %v10685_v52, %s10422_s23  ;;  %911 = vrot.lane.b32.xlu1 %v10682_v51, %s10422_s23  ;;  %v10694_v55 = vmax.f32 %v10553_v21, %v768_v53  ;;  %v10131_v53 = vld [vmem:[%s13081_s3 + $0x50] sm:$0xff]  }
 0x15c   :  { %v778_v54 = vpop.permute.xlu1 %777 }
 0x15d   :  { %v10697_v56 = vmax.f32 %v10559_v22, %v778_v54 }
 0x15e   :  { %v774_v57 = vpop.permute.xlu0 %773 }
 0x15f   :  { %907 = vrot.lane.b32.xlu0 %v10694_v55, %s10422_s23  ;;  %917 = vrot.lane.b32.xlu1 %v10697_v56, %s10422_s23  ;;  %v10704_v59 = vmax.f32 %v10563_v23, %v774_v57 }
 0x160   :  { %v776_v58 = vpop.permute.xlu1 %775 }
 0x161   :  { %v10707_v60 = vmax.f32 %v10569_v25, %v776_v58 }
 0x162   :  { %v780_v61 = vpop.permute.xlu0 %779 }
 0x163   :  { %913 = vrot.lane.b32.xlu0 %v10704_v59, %s10422_s23  ;;  %915 = vrot.lane.b32.xlu1 %v10707_v60, %s10422_s23  ;;  %v10714_v63 = vmax.f32 %v10565_v24, %v780_v61 }
 0x164   :  { %v786_v62 = vpop.permute.xlu1 %785 }
 0x165   :  { %v10717_v0 = vmax.f32 %v10575_v26, %v786_v62 }
 0x166   :  { %v782_v1 = vpop.permute.xlu0 %781 }
 0x167   :  { %919 = vrot.lane.b32.xlu0 %v10714_v63, %s10422_s23  ;;  %925 = vrot.lane.b32.xlu1 %v10717_v0, %s10422_s23  ;;  %v10724_v3 = vmax.f32 %v10579_v27, %v782_v1 }
 0x168   :  { %v784_v2 = vpop.permute.xlu1 %783 }
 0x169   :  { %v10727_v4 = vmax.f32 %v10585_v29, %v784_v2 }
 0x16a   :  { %v788_v5 = vpop.permute.xlu0 %787 }
 0x16b   :  { %921 = vrot.lane.b32.xlu0 %v10724_v3, %s10422_s23  ;;  %923 = vrot.lane.b32.xlu1 %v10727_v4, %s10422_s23  ;;  %v10734_v7 = vmax.f32 %v10581_v28, %v788_v5  ;;  %v10132_v5 = vld [vmem:[%s13081_s3 + $0x10] sm:$0xff]  }
 0x16c   :  { %v794_v6 = vpop.permute.xlu1 %793 }
 0x16d   :  { %v10737_v8 = vmax.f32 %v10591_v30, %v794_v6  ;;  %v10133_v6 = vld [vmem:[%s13081_s3 + $0x58] sm:$0xff]  }
 0x16e   :  { %v790_v9 = vpop.permute.xlu0 %789 }
 0x16f   :  { %927 = vrot.lane.b32.xlu0 %v10734_v7, %s10422_s23  ;;  %933 = vrot.lane.b32.xlu1 %v10737_v8, %s10422_s23  ;;  %v10744_v11 = vmax.f32 %v10595_v31, %v790_v9 }
 0x170   :  { %v792_v10 = vpop.permute.xlu1 %791 }
 0x171   :  { %v10747_v12 = vmax.f32 %v10601_v33, %v792_v10 }
 0x172   :  { %v796_v13 = vpop.permute.xlu0 %795 }
 0x173   :  { %929 = vrot.lane.b32.xlu0 %v10744_v11, %s10422_s23  ;;  %931 = vrot.lane.b32.xlu1 %v10747_v12, %s10422_s23  ;;  %v10754_v15 = vmax.f32 %v10597_v32, %v796_v13 }
 0x174   :  { %v802_v14 = vpop.permute.xlu1 %801 }
 0x175   :  { %v10757_v16 = vmax.f32 %v10607_v34, %v802_v14 }
 0x176   :  { %v798_v17 = vpop.permute.xlu0 %797 }
 0x177   :  { %935 = vrot.lane.b32.xlu0 %v10754_v15, %s10422_s23  ;;  %941 = vrot.lane.b32.xlu1 %v10757_v16, %s10422_s23  ;;  %v10764_v19 = vmax.f32 %v10611_v35, %v798_v17 }
 0x178   :  { %v800_v18 = vpop.permute.xlu1 %799 }
 0x179   :  { %v10767_v20 = vmax.f32 %v10617_v37, %v800_v18 }
 0x17a   :  { %v804_v21 = vpop.permute.xlu0 %803 }
 0x17b   :  { %937 = vrot.lane.b32.xlu0 %v10764_v19, %s10422_s23  ;;  %939 = vrot.lane.b32.xlu1 %v10767_v20, %s10422_s23  ;;  %v10774_v23 = vmax.f32 %v10613_v36, %v804_v21 }
 0x17c   :  { %v810_v22 = vpop.permute.xlu1 %809 }
 0x17d   :  { %v10777_v24 = vmax.f32 %v10623_v38, %v810_v22 }
 0x17e   :  { %v806_v25 = vpop.permute.xlu0 %805 }
 0x17f   :  { %943 = vrot.lane.b32.xlu0 %v10774_v23, %s10422_s23  ;;  %949 = vrot.lane.b32.xlu1 %v10777_v24, %s10422_s23  ;;  %v10784_v27 = vmax.f32 %v10627_v39, %v806_v25  ;;  %v34_v39 = vlaneseq }
 0x180   :  { %v808_v26 = vpop.permute.xlu1 %807 }
 0x181   :  { %v10787_v28 = vmax.f32 %v10633_v41, %v808_v26  ;;  %v10128_v41 = vld [vmem:[%s13081_s3] sm:$0xff]   ;;  %v10134_v26 = vld [vmem:[%s13081_s3 + $0x18] sm:$0xff]  }
 0x182   :  { %v812_v29 = vpop.permute.xlu0 %811 }
 0x183   :  { %945 = vrot.lane.b32.xlu0 %v10784_v27, %s10422_s23  ;;  %947 = vrot.lane.b32.xlu1 %v10787_v28, %s10422_s23  ;;  %v10794_v31 = vmax.f32 %v10629_v40, %v812_v29  ;;  %v10127_v40 = vld [vmem:[%s13081_s3 + $0x40] sm:$0xff]  }
 0x184   :  { %v818_v30 = vpop.permute.xlu1 %817  ;;  %8731 = vmatprep.subr.bf16.mxu1 %v10127_v40 }
 0x185   :  { %v10797_v32 = vmax.f32 %v10639_v42, %v818_v30  ;;  %v10824_v42 = vshrl.u32 %v34_v39, 7  ;;  %8732 = vmatpush3.bf16.msra.mxu1 %v10128_v41 }
 0x186   :  { %v814_v33 = vpop.permute.xlu0 %813 }
 0x187   :  { %951 = vrot.lane.b32.xlu0 %v10794_v31, %s10422_s23  ;;  %957 = vrot.lane.b32.xlu1 %v10797_v32, %s10422_s23  ;;  %v10804_v35 = vmax.f32 %v10643_v43, %v814_v33  ;;  %v10129_v43 = vld [vmem:[%s13081_s3 + $0x48] sm:$0xff]   ;;  %v38_v46 = vadd.s32 24, %v10824_v42  ;;  %v36_v62 = vadd.s32 8, %v10824_v42  ;;  %v40_v17 = vadd.s32 40, %v10824_v42 }
 0x188   :  { %v816_v34 = vpop.permute.xlu1 %815  ;;  %8733 = vmatprep.subr.bf16.mxu1 %v10129_v43  ;;  %v42_v39 = vadd.s32 56, %v10824_v42 }
 0x189   :  { %v10807_v36 = vmax.f32 %v10649_v45, %v816_v34  ;;  %v88_v61 = vand.u32 15, %v38_v46  ;;  %8734 = vmatpush3.bf16.msra.mxu1 %v10130_v50  ;;  %v10135_v46 = vld [vmem:[%s13081_s3 + $0x60] sm:$0xff]  }
 0x18a   :  { %v820_v37 = vpop.permute.xlu0 %819  ;;  %8735 = vmatprep.subr.bf16.mxu1 %v10131_v53 }
 0x18b   :  { %953 = vrot.lane.b32.xlu0 %v10804_v35, %s10422_s23  ;;  %955 = vrot.lane.b32.xlu1 %v10807_v36, %s10422_s23  ;;  %v10814_v38 = vmax.f32 %v10645_v44, %v820_v37  ;;  %v10832_v44 = vld [vmem:[%s13080_s2] ss:$0 sm:$0xff]  ;;  %vm10855_vm4 = vcmp.lt.s32.totalorder %v88_v61, 14  ;;  %v102_v37 = vand.u32 15, %v40_v17  ;;  %v44_v61 = vadd.s32 72, %v10824_v42 }
 0x18c   :  { %v46_v17 = vadd.s32 88, %v10824_v42 }
 0x18d   :  { %8736 = vmatpush3.bf16.msra.mxu1 %v10132_v5  ;;  %vm10890_vm6 = vcmp.lt.s32.totalorder %v102_v37, 14  ;;  %v10137_v5 = vld [vmem:[%s13081_s3 + $0x68] sm:$0xff]  }
 0x18e   :  { %8737 = vmatprep.subr.bf16.mxu1 %v10133_v6  ;;  %v10138_v6 = vld [vmem:[%s13081_s3 + $0x28] sm:$0xff]  }
 0x18f   :  { %959 = vrot.lane.b32.xlu0 %v10814_v38, %s10422_s23 }
 0x191   :  { %8738 = vmatpush3.bf16.msra.mxu1 %v10134_v26  ;;  %v1244_v26 = vld [vmem:[#allocation2 + $0x1] ss:$2 sm:$0xff] }
 0x192   :  { %8739 = vmatprep.subr.bf16.mxu1 %v10135_v46 }
 0x1c9   :  { %v910_v45 = vpop.permute.xlu1 %909 }
 0x1ca   :  { %v991_v49 = vmax.f32 %v10677_v48, %v910_v45 }
 0x1cc   :  { %v1026_v54 = vadd.f32 %v10832_v44, %v991_v49  ;;  %v10136_v49 = vld [vmem:[%s13081_s3 + $0x20] sm:$0xff]  }
 0x1cd   :  { %v906_v57 = vpop.permute.xlu0 %905  ;;  %v912_v58 = vpop.permute.xlu1 %911  ;;  %8740 = vmatpush3.bf16.msra.mxu1 %v10136_v49 }
 0x1ce   :  { %v1054_v1 = vmax.f32 %v1026_v54, 0.0  ;;  %v989_v2 = vmax.f32 %v10685_v52, %v906_v57  ;;  %v992_v48 = vmax.f32 %v10682_v51, %v912_v58  ;;  %v74_v52 = vand.u32 15, %v36_v62  ;;  %8741 = vmatprep.subr.bf16.mxu1 %v10137_v5 }
 0x1cf   :  { %v116_v57 = vand.u32 15, %v42_v39  ;;  %v13191_v5 = vmov 0.0  }
 0x1d0   :  { %1176 = vst.msk [vmem:[#allocation2 + $0x21] sm:$0xff] %vm13089_vm2, %v1054_v1  ;;  %v1024_v9 = vadd.f32 %v10832_v44, %v989_v2  ;;  %v1027_v10 = vadd.f32 %v10832_v44, %v992_v48  ;;  %vm10871_vm5 = vcmp.lt.s32.totalorder %v74_v52, 14 }
 0x1d1   :  { %v908_v51 = vpop.permute.xlu0 %907  ;;  %v918_v14 = vpop.permute.xlu1 %917  ;;  %vm10909_vm7 = vcmp.lt.s32.totalorder %v116_v57, 14  ;;  %8742 = vmatpush3.bf16.msra.mxu1 %v10138_v6 }
 0x1d2   :  { %v1052_v18 = vmax.f32 %v1024_v9, 0.0  ;;  %v1055_v21 = vmax.f32 %v1027_v10, 0.0  ;;  %v990_v22 = vmax.f32 %v10694_v55, %v908_v51  ;;  %v995_v25 = vmax.f32 %v10697_v56, %v918_v14  ;;  %v10179_v55 = vld [vmem:[%s13081_s3 + $0x28] sm:$0xff]  }
 0x1d3   :  { %v130_v14 = vand.u32 15, %v44_v61 }
 0x1d4   :  { %1174 = vst.msk [vmem:[#allocation2 + $0x11] sm:$0xff] %vm13089_vm2, %v1052_v18  ;;  %v1139_v29 = vsel %vm10855_vm4, %v1055_v21, 0.0  ;;  %v1025_v30 = vadd.f32 %v10832_v44, %v990_v22  ;;  %v1030_v33 = vadd.f32 %v10832_v44, %v995_v25 }
 0x1d5   :  { %1177 = vst.msk [vmem:[#allocation2 + $0x29] sm:$0xff] %vm13089_vm2, %v1139_v29  ;;  %v914_v56 = vpop.permute.xlu0 %913  ;;  %v916_v34 = vpop.permute.xlu1 %915  ;;  %v10139_v29 = vld [vmem:[%s13081_s3 + $0x70] sm:$0xff]   ;;  %vm10929_vm8 = vcmp.lt.s32.totalorder %v130_v14, 14 }
 0x1d6   :  { %v1053_v40 = vmax.f32 %v1025_v30, 0.0  ;;  %v1058_v41 = vmax.f32 %v1030_v33, 0.0  ;;  %v993_v43 = vmax.f32 %v10704_v59, %v914_v56  ;;  %v994_v45 = vmax.f32 %v10707_v60, %v916_v34  ;;  %v10140_v56 = vld [vmem:[%s13081_s3 + $0x30] sm:$0xff]   ;;  %8743 = vmatprep.subr.bf16.mxu1 %v10139_v29 }
 0x1d7   :  { %v48_v33 = vadd.s32 104, %v10824_v42  ;;  %8744 = vmatpush3.bf16.msra.mxu1 %v10140_v56  ;;  %v52_v29 = vadd.s32 136, %v10824_v42 }
 0x1d8   :  { %v1137_v50 = vsel %vm10871_vm5, %v1053_v40, 0.0  ;;  %1180 = vst.msk [vmem:[#allocation2 + $0x41] sm:$0xff] %vm13089_vm2, %v1058_v41  ;;  %v1028_v53 = vadd.f32 %v10832_v44, %v993_v43  ;;  %v1029_v54 = vadd.f32 %v10832_v44, %v994_v45  ;;  %v144_v43 = vand.u32 15, %v46_v17 }
 0x1d9   :  { %1175 = vst.msk [vmem:[#allocation2 + $0x19] sm:$0xff] %vm13089_vm2, %v1137_v50  ;;  %v920_v60 = vpop.permute.xlu0 %919  ;;  %v926_v58 = vpop.permute.xlu1 %925  ;;  %v1315_v50 = vld [vmem:[#allocation2 + $0x2] ss:$2 sm:$0xff] }
 0x1da   :  { %v1056_v62 = vmax.f32 %v1028_v53, 0.0  ;;  %v1057_v1 = vmax.f32 %v1029_v54, 0.0  ;;  %v996_v2 = vmax.f32 %v10714_v63, %v920_v60  ;;  %v999_v48 = vmax.f32 %v10717_v0, %v926_v58 }
 0x1db   :  { %vm10946_vm9 = vcmp.lt.s32.totalorder %v144_v43, 14 }
 0x1dc   :  { %1178 = vst.msk [vmem:[#allocation2 + $0x31] sm:$0xff] %vm13089_vm2, %v1056_v62  ;;  %v1141_v9 = vsel %vm10890_vm6, %v1057_v1, 0.0  ;;  %v1031_v10 = vadd.f32 %v10832_v44, %v996_v2  ;;  %v1034_v51 = vadd.f32 %v10832_v44, %v999_v48  ;;  %v1486_v30 = vld [vmem:[#allocation2 + $0x21] ss:$2 sm:$0xff]  ;;  %v158_v62 = vand.u32 15, %v48_v33 }
 0x1dd   :  { %1179 = vst.msk [vmem:[#allocation2 + $0x39] sm:$0xff] %vm13089_vm2, %v1141_v9  ;;  %v922_v0 = vpop.permute.xlu0 %921  ;;  %v924_v52 = vpop.permute.xlu1 %923  ;;  %v1202_v33 = vld [vmem:[#allocation2] ss:$2 sm:$0xff] }
 0x1de   :  { %v1059_v18 = vmax.f32 %v1031_v10, 0.0  ;;  %v1062_v21 = vmax.f32 %v1034_v51, 0.0  ;;  %v997_v22 = vmax.f32 %v10724_v3, %v922_v0  ;;  %v998_v25 = vmax.f32 %v10727_v4, %v924_v52 }
 0x1df   :  { %v50_v0 = vadd.s32 120, %v10824_v42  ;;  %vm10953_vm10 = vcmp.lt.s32.totalorder %v158_v62, 14  ;;  %v54_v62 = vadd.s32 152, %v10824_v42 }
 0x1e0   :  { %v1143_v34 = vsel %vm10909_vm7, %v1059_v18, 0.0  ;;  %1184 = vst.msk [vmem:[#allocation2 + $0x61] sm:$0xff] %vm13089_vm2, %v1062_v21  ;;  %v1032_v3 = vadd.f32 %v10832_v44, %v997_v22  ;;  %v1033_v4 = vadd.f32 %v10832_v44, %v998_v25  ;;  %v1485_v37 = vld [vmem:[#allocation2 + $0x11] ss:$2 sm:$0xff]  ;;  %v1542_v58 = vld [vmem:[#allocation2 + $0x12] ss:$2 sm:$0xff] }
 0x1e1   :  { %v1246_v39 = vld [vmem:[#allocation2 + $0x11] ss:$2 sm:$0xff]  ;;  %1181 = vst.msk [vmem:[#allocation2 + $0x49] sm:$0xff] %vm13089_vm2, %v1143_v34  ;;  %v928_v41 = vpop.permute.xlu0 %927  ;;  %v934_v45 = vpop.permute.xlu1 %933  ;;  %v1500_v46 = vpack.c.bf16 %v1486_v30, %v1485_v37  ;;  %v1317_v61 = vld [vmem:[#allocation2 + $0x12] ss:$2 sm:$0xff] }
 0x1e2   :  { %v1271_v49 = vpack.c.bf16 %v1246_v39, %v1244_v26  ;;  %v1060_v53 = vmax.f32 %v1032_v3, 0.0  ;;  %v1061_v54 = vmax.f32 %v1033_v4, 0.0  ;;  %v1000_v60 = vmax.f32 %v10734_v7, %v928_v41  ;;  %v1543_v7 = vld [vmem:[#allocation2 + $0x22] ss:$2 sm:$0xff]  ;;  %v1388_v52 = vld [vmem:[#allocation2 + $0x13] ss:$2 sm:$0xff] }
 0x1e3   :  { %v1003_v57 = vmax.f32 %v10737_v8, %v934_v45  ;;  %1514 = vrot.lane.b32.xlu0 %v1500_v46, %s10423_s14  ;;  %v10141_v8 = vld [vmem:[%s13081_s3 + $0x78] sm:$0xff]   ;;  %v1557_v10 = vpack.c.bf16 %v1543_v7, %v1542_v58  ;;  %v1342_v51 = vpack.c.bf16 %v1317_v61, %v1315_v50  ;;  %v1600_v22 = vld [vmem:[#allocation2 + $0x23] ss:$2 sm:$0xff]  ;;  %v1457_v30 = vld [vmem:[#allocation2 + $0x20] ss:$2 sm:$0xff]  ;;  %v172_v39 = vand.u32 15, %v50_v0 }
 0x1e4   :  { %1285 = vrot.lane.b32.xlu1 %v1271_v49, %s10423_s14  ;;  %1182 = vst.msk [vmem:[#allocation2 + $0x51] sm:$0xff] %vm13089_vm2, %v1060_v53  ;;  %v1145_v1 = vsel %vm10929_vm8, %v1061_v54, 0.0  ;;  %v1035_v2 = vadd.f32 %v10832_v44, %v1000_v60  ;;  %v1456_v25 = vld [vmem:[#allocation2 + $0x10] ss:$2 sm:$0xff]  ;;  %8745 = vmatprep.subr.bf16.mxu1 %v10141_v8  ;;  %v1599_v34 = vld [vmem:[#allocation2 + $0x13] ss:$2 sm:$0xff] }
 0x1e5   :  { %v1038_v48 = vadd.f32 %v10832_v44, %v1003_v57  ;;  %1183 = vst.msk [vmem:[#allocation2 + $0x59] sm:$0xff] %vm13089_vm2, %v1145_v1  ;;  %v930_v6 = vpop.permute.xlu0 %929  ;;  %v932_v9 = vpop.permute.xlu1 %931  ;;  %v1386_v3 = vld [vmem:[#allocation2 + $0x3] ss:$2 sm:$0xff]  ;;  %v10142_v4 = vld [vmem:[%s13081_s3 + $0x38] sm:$0xff]   ;;  %v1614_v43 = vpack.c.bf16 %v1600_v22, %v1599_v34  ;;  %v1471_v49 = vpack.c.bf16 %v1457_v30, %v1456_v25  ;;  %v186_v61 = vand.u32 15, %v52_v29 }
 0x1e6   :  { %v1063_v14 = vmax.f32 %v1035_v2, 0.0  ;;  %v1001_v18 = vmax.f32 %v10744_v11, %v930_v6  ;;  %v1002_v21 = vmax.f32 %v10747_v12, %v932_v9  ;;  %v1413_v45 = vpack.c.bf16 %v1388_v52, %v1386_v3  ;;  %v1250_v46 = vld [vmem:[#allocation2 + $0x31] ss:$2 sm:$0xff]  ;;  %v1204_v58 = vld [vmem:[#allocation2 + $0x10] ss:$2 sm:$0xff]  ;;  %8746 = vmatpush3.bf16.msra.mxu1 %v10142_v4 }
 0x1e7   :  { %v1066_v17 = vmax.f32 %v1038_v48, 0.0  ;;  %1571 = vrot.lane.b32.xlu0 %v1557_v10, %s10422_s23  ;;  %1478 = vst.msk [vmem:[#allocation3 + $0x8] sm:$0xff] %vm13089_vm2, %v1471_v49  ;;  %v1229_v1 = vpack.c.bf16 %v1204_v58, %v1202_v33  ;;  %v1487_v48 = vld [vmem:[#allocation2 + $0x31] ss:$2 sm:$0xff]  ;;  %v1248_v7 = vld [vmem:[#allocation2 + $0x21] ss:$2 sm:$0xff]  ;;  %9182 = vmatprep.subr.bf16.mxu1 %v13100_v47 }
 0x1e8   :  { %1356 = vrot.lane.b32.xlu1 %v1342_v51, %s10422_s23  ;;  %v1147_v11 = vsel %vm10946_vm9, %v1063_v14, 0.0  ;;  %v1036_v12 = vadd.f32 %v10832_v44, %v1001_v18  ;;  %v1037_v56 = vadd.f32 %v10832_v44, %v1002_v21  ;;  %v1488_v57 = vld [vmem:[#allocation2 + $0x41] ss:$2 sm:$0xff]  ;;  %vm10982_vm11 = vcmp.lt.s32.totalorder %v172_v39, 14  ;;  %v1545_v18 = vld [vmem:[#allocation2 + $0x42] ss:$2 sm:$0xff] }
 0x1e9   :  { %1188 = vst.msk [vmem:[#allocation2 + $0x81] sm:$0xff] %vm13089_vm2, %v1066_v17  ;;  %1185 = vst.msk [vmem:[#allocation2 + $0x69] sm:$0xff] %vm13089_vm2, %v1147_v11  ;;  %v936_v37 = vpop.permute.xlu0 %935  ;;  %v942_v41 = vpop.permute.xlu1 %941  ;;  %v1501_v10 = vpack.c.bf16 %v1488_v57, %v1487_v48  ;;  %v1272_v51 = vpack.c.bf16 %v1250_v46, %v1248_v7  ;;  %v1321_v21 = vld [vmem:[#allocation2 + $0x32] ss:$2 sm:$0xff]  ;;  %vm10989_vm12 = vcmp.lt.s32.totalorder %v186_v61, 14  ;;  %v200_v25 = vand.u32 15, %v54_v62 }
 0x1ea   :  { %v1064_v50 = vmax.f32 %v1036_v12, 0.0  ;;  %v1065_v53 = vmax.f32 %v1037_v56, 0.0  ;;  %v1004_v54 = vmax.f32 %v10754_v15, %v936_v37  ;;  %v1007_v60 = vmax.f32 %v10757_v16, %v942_v41  ;;  %1236 = vst.msk [vmem:[#allocation3] sm:$0xff] %vm13089_vm2, %v1229_v1  ;;  %v1544_v30 = vld [vmem:[#allocation2 + $0x32] ss:$2 sm:$0xff] }
 0x1eb   :  { %1628 = vrot.lane.b32.xlu0 %v1614_v43, %s10420_s22  ;;  %v1319_v33 = vld [vmem:[#allocation2 + $0x22] ss:$2 sm:$0xff]  ;;  %v56_v11 = vadd.s32 168, %v10824_v42  ;;  %v1558_v34 = vpack.c.bf16 %v1545_v18, %v1544_v30  ;;  %v1602_v4 = vld [vmem:[#allocation2 + $0x43] ss:$2 sm:$0xff]  ;;  %vm11013_vm13 = vcmp.lt.s32.totalorder %v200_v25, 14 }
 0x1ec   :  { %1427 = vrot.lane.b32.xlu1 %v1413_v45, %s10420_s22  ;;  %1186 = vst.msk [vmem:[#allocation2 + $0x71] sm:$0xff] %vm13089_vm2, %v1064_v50  ;;  %v1149_v15 = vsel %vm10953_vm10, %v1065_v53, 0.0  ;;  %v1039_v16 = vadd.f32 %v10832_v44, %v1004_v54  ;;  %v1042_v2 = vadd.f32 %v10832_v44, %v1007_v60  ;;  %v1343_v3 = vpack.c.bf16 %v1321_v21, %v1319_v33  ;;  %v1390_v37 = vld [vmem:[#allocation2 + $0x23] ss:$2 sm:$0xff]  ;;  %v1392_v39 = vld [vmem:[#allocation2 + $0x33] ss:$2 sm:$0xff] }
 0x1ed   :  { %1187 = vst.msk [vmem:[#allocation2 + $0x79] sm:$0xff] %vm13089_vm2, %v1149_v15  ;;  %v938_v6 = vpop.permute.xlu0 %937  ;;  %v940_v9 = vpop.permute.xlu1 %939  ;;  %v1458_v49 = vld [vmem:[#allocation2 + $0x30] ss:$2 sm:$0xff]  ;;  %v1459_v50 = vld [vmem:[#allocation2 + $0x40] ss:$2 sm:$0xff]  ;;  %v214_v1 = vand.u32 15, %v56_v11 }
 0x1ee   :  { %v1067_v0 = vmax.f32 %v1039_v16, 0.0  ;;  %v1070_v52 = vmax.f32 %v1042_v2, 0.0  ;;  %v1005_v14 = vmax.f32 %v10764_v19, %v938_v6  ;;  %v1006_v17 = vmax.f32 %v10767_v20, %v940_v9  ;;  %v1601_v58 = vld [vmem:[#allocation2 + $0x33] ss:$2 sm:$0xff]  ;;  %v1208_v18 = vld [vmem:[#allocation2 + $0x30] ss:$2 sm:$0xff] }
 0x1ef   :  { %1516 = vrot.lane.b32.xlu0 %v1501_v10, %s10423_s14  ;;  %v1472_v53 = vpack.c.bf16 %v1459_v50, %v1458_v49  ;;  %v1615_v15 = vpack.c.bf16 %v1602_v4, %v1601_v58  ;;  %v1414_v16 = vpack.c.bf16 %v1392_v39, %v1390_v37  ;;  %v1254_v10 = vld [vmem:[#allocation2 + $0x51] ss:$2 sm:$0xff]  ;;  %vm11028_vm14 = vcmp.lt.s32.totalorder %v214_v1, 14  ;;  %v1325_v30 = vld [vmem:[#allocation2 + $0x52] ss:$2 sm:$0xff] }
 0x1f0   :  { %1287 = vrot.lane.b32.xlu1 %v1272_v51, %s10423_s14  ;;  %v1151_v29 = vsel %vm10982_vm11, %v1067_v0, 0.0  ;;  %1192 = vst.msk [vmem:[#allocation2 + $0xa1] sm:$0xff] %vm13089_vm2, %v1070_v52  ;;  %v1040_v19 = vadd.f32 %v10832_v44, %v1005_v14  ;;  %v1041_v20 = vadd.f32 %v10832_v44, %v1006_v17  ;;  %v1490_v9 = vld [vmem:[#allocation2 + $0x61] ss:$2 sm:$0xff]  ;;  %v13129_v39 = vmov 0 }
 0x1f1   :  { %1189 = vst.msk [vmem:[#allocation2 + $0x89] sm:$0xff] %vm13089_vm2, %v1151_v29  ;;  %v944_v12 = vpop.permute.xlu0 %943  ;;  %v950_v56 = vpop.permute.xlu1 %949  ;;  %1479 = vst.msk [vmem:[#allocation3 + $0x20] sm:$0xff] %vm13089_vm2, %v1472_v53  ;;  %v1252_v51 = vld [vmem:[#allocation2 + $0x41] ss:$2 sm:$0xff] }
 0x1f2   :  { %v1068_v41 = vmax.f32 %v1040_v19, 0.0  ;;  %v1069_v43 = vmax.f32 %v1041_v20, 0.0  ;;  %v1008_v45 = vmax.f32 %v10774_v23, %v944_v12  ;;  %v1011_v46 = vmax.f32 %v10777_v24, %v950_v56  ;;  %v1396_v1 = vld [vmem:[#allocation2 + $0x53] ss:$2 sm:$0xff] }
 0x1f3   :  { %1573 = vrot.lane.b32.xlu0 %v1558_v34, %s10422_s23  ;;  %v58_v23 = vadd.s32 184, %v10824_v42  ;;  %v13125_v24 = vmov 0  ;;  %v1273_v19 = vpack.c.bf16 %v1254_v10, %v1252_v51  ;;  %v60_v20 = vadd.s32 200, %v10824_v42  ;;  %v1547_v34 = vld [vmem:[#allocation2 + $0x62] ss:$2 sm:$0xff] }
 0x1f4   :  { %1358 = vrot.lane.b32.xlu1 %v1343_v3, %s10422_s23  ;;  %1190 = vst.msk [vmem:[#allocation2 + $0x91] sm:$0xff] %vm13089_vm2, %v1068_v41  ;;  %v1153_v54 = vsel %vm10989_vm12, %v1069_v43, 0.0  ;;  %v1043_v60 = vadd.f32 %v10832_v44, %v1008_v45  ;;  %v1046_v57 = vadd.f32 %v10832_v44, %v1011_v46  ;;  %v13126_v24 = vsel %vm11013_vm13, 4294967295, %v13125_v24  ;;  %v1206_v3 = vld [vmem:[#allocation2 + $0x20] ss:$2 sm:$0xff] }
 0x1f5   :  { %1191 = vst.msk [vmem:[#allocation2 + $0x99] sm:$0xff] %vm13089_vm2, %v1153_v54  ;;  %v946_v61 = vpop.permute.xlu0 %945  ;;  %v948_v62 = vpop.permute.xlu1 %947  ;;  %v228_v17 = vand.u32 15, %v58_v23  ;;  %v1230_v4 = vpack.c.bf16 %v1208_v18, %v1206_v3  ;;  %v1546_v41 = vld [vmem:[#allocation2 + $0x52] ss:$2 sm:$0xff]  ;;  %v1323_v43 = vld [vmem:[#allocation2 + $0x42] ss:$2 sm:$0xff] }
 0x1f6   :  { %v1071_v2 = vmax.f32 %v1043_v60, 0.0  ;;  %v1074_v48 = vmax.f32 %v1046_v57, 0.0  ;;  %v1009_v7 = vmax.f32 %v10784_v27, %v946_v61  ;;  %v1010_v6 = vmax.f32 %v10787_v28, %v948_v62  ;;  %v1489_v27 = vld [vmem:[#allocation2 + $0x51] ss:$2 sm:$0xff] }
 0x1f7   :  { %1630 = vrot.lane.b32.xlu0 %v1615_v15, %s10420_s22  ;;  %v13127_v28 = vmov 0  ;;  %v1502_v29 = vpack.c.bf16 %v1490_v9, %v1489_v27  ;;  %vm11040_vm15 = vcmp.lt.s32.totalorder %v228_v17, 14  ;;  %v242_v49 = vand.u32 15, %v60_v20  ;;  %v1394_v60 = vld [vmem:[#allocation2 + $0x43] ss:$2 sm:$0xff]  ;;  %1237 = vst.msk [vmem:[#allocation3 + $0x18] sm:$0xff] %vm13089_vm2, %v1230_v4 }
 0x1f8   :  { %1429 = vrot.lane.b32.xlu1 %v1414_v16, %s10420_s22  ;;  %v1155_v0 = vsel %vm11013_vm13, %v1071_v2, 0.0  ;;  %1196 = vst.msk [vmem:[#allocation2 + $0xc1] sm:$0xff] %vm13089_vm2, %v1074_v48  ;;  %v1044_v52 = vadd.f32 %v10832_v44, %v1009_v7  ;;  %v1045_v14 = vadd.f32 %v10832_v44, %v1010_v6  ;;  %v13128_v28 = vsel %vm11028_vm14, 4294967295, %v13127_v28  ;;  %v1604_v62 = vld [vmem:[#allocation2 + $0x63] ss:$2 sm:$0xff] }
 0x1f9   :  { %1193 = vst.msk [vmem:[#allocation2 + $0xa9] sm:$0xff] %vm13089_vm2, %v1155_v0  ;;  %v952_v21 = vpop.permute.xlu0 %951  ;;  %v958_v25 = vpop.permute.xlu1 %957  ;;  %v13130_v39 = vsel %vm11040_vm15, 4294967295, %v13129_v39  ;;  %v1559_v50 = vpack.c.bf16 %v1547_v34, %v1546_v41  ;;  %v1344_v53 = vpack.c.bf16 %v1325_v30, %v1323_v43  ;;  %v62_v54 = vadd.s32 216, %v10824_v42  ;;  %v1603_v2 = vld [vmem:[#allocation2 + $0x53] ss:$2 sm:$0xff] }
 0x1fa   :  { %v1072_v33 = vmax.f32 %v1044_v52, 0.0  ;;  %v1073_v11 = vmax.f32 %v1045_v14, 0.0  ;;  %v1012_v12 = vmax.f32 %v10794_v31, %v952_v21  ;;  %v1015_v56 = vmax.f32 %v10797_v32, %v958_v25  ;;  %v1492_v9 = vld [vmem:[#allocation2 + $0x81] ss:$2 sm:$0xff]  ;;  %v1258_v10 = vld [vmem:[#allocation2 + $0x71] ss:$2 sm:$0xff] }
 0x1fb   :  { %1518 = vrot.lane.b32.xlu0 %v1502_v29, %s10423_s14  ;;  %vm11059_vm3 = vcmp.lt.s32.totalorder %v242_v49, 14  ;;  %v256_v48 = vand.u32 15, %v62_v54  ;;  %v1616_v7 = vpack.c.bf16 %v1604_v62, %v1603_v2  ;;  %v1415_v6 = vpack.c.bf16 %v1396_v1, %v1394_v60  ;;  %v1460_v14 = vld [vmem:[#allocation2 + $0x50] ss:$2 sm:$0xff]  ;;  %v1461_v17 = vld [vmem:[#allocation2 + $0x60] ss:$2 sm:$0xff] }
 0x1fc   :  { %1289 = vrot.lane.b32.xlu1 %v1273_v19, %s10423_s14  ;;  %1194 = vst.msk [vmem:[#allocation2 + $0xb1] sm:$0xff] %vm13089_vm2, %v1072_v33  ;;  %v1157_v37 = vsel %vm11028_vm14, %v1073_v11, 0.0  ;;  %v1047_v31 = vadd.f32 %v10832_v44, %v1012_v12  ;;  %v1050_v32 = vadd.f32 %v10832_v44, %v1015_v56  ;;  %v1473_v27 = vpack.c.bf16 %v1461_v17, %v1460_v14  ;;  %v1491_v25 = vld [vmem:[#allocation2 + $0x71] ss:$2 sm:$0xff]  ;;  %v1256_v29 = vld [vmem:[#allocation2 + $0x61] ss:$2 sm:$0xff] }
 0x1fd   :  { %1195 = vst.msk [vmem:[#allocation2 + $0xb9] sm:$0xff] %vm13089_vm2, %v1157_v37  ;;  %v954_v45 = vpop.permute.xlu0 %953  ;;  %v956_v46 = vpop.permute.xlu1 %955  ;;  %vm11071_vm0 = vcmp.lt.s32.totalorder %v256_v48, 14  ;;  %v1503_v19 = vpack.c.bf16 %v1492_v9, %v1491_v25  ;;  %v1274_v20 = vpack.c.bf16 %v1258_v10, %v1256_v29  ;;  %v1549_v33 = vld [vmem:[#allocation2 + $0x82] ss:$2 sm:$0xff]  ;;  %v1329_v11 = vld [vmem:[#allocation2 + $0x72] ss:$2 sm:$0xff] }
 0x1fe   :  { %v1075_v57 = vmax.f32 %v1047_v31, 0.0  ;;  %v1078_v58 = vmax.f32 %v1050_v32, 0.0  ;;  %v1013_v23 = vmax.f32 %v10804_v35, %v954_v45  ;;  %v1014_v61 = vmax.f32 %v10807_v36, %v956_v46  ;;  %1480 = vst.msk [vmem:[#allocation3 + $0x38] sm:$0xff] %vm13089_vm2, %v1473_v27  ;;  %v1548_v12 = vld [vmem:[#allocation2 + $0x72] ss:$2 sm:$0xff] }
 0x1ff   :  { %1575 = vrot.lane.b32.xlu0 %v1559_v50, %s10422_s23  ;;  %v13131_v35 = vmov 0  ;;  %v1327_v56 = vld [vmem:[#allocation2 + $0x62] ss:$2 sm:$0xff]  ;;  %v1560_v34 = vpack.c.bf16 %v1549_v33, %v1548_v12  ;;  %v1398_v4 = vld [vmem:[#allocation2 + $0x63] ss:$2 sm:$0xff] }
 0x200   :  { %1360 = vrot.lane.b32.xlu1 %v1344_v53, %s10422_s23  ;;  %v1159_v15 = vsel %vm11040_vm15, %v1075_v57, 0.0  ;;  %1200 = vst.msk [vmem:[#allocation2 + $0xe1] sm:$0xff] %vm13089_vm2, %v1078_v58  ;;  %v1048_v42 = vadd.f32 %v10832_v44, %v1013_v23  ;;  %v1049_v16 = vadd.f32 %v10832_v44, %v1014_v61  ;;  %v13132_v35 = vsel %vm11059_vm3, 4294967295, %v13131_v35  ;;  %v1400_v37 = vld [vmem:[#allocation2 + $0x73] ss:$2 sm:$0xff] }
 0x201   :  { %1197 = vst.msk [vmem:[#allocation2 + $0xc9] sm:$0xff] %vm13089_vm2, %v1159_v15  ;;  %v960_v36 = vpop.permute.xlu0 %959  ;;  %v1345_v3 = vpack.c.bf16 %v1329_v11, %v1327_v56  ;;  %v1606_v31 = vld [vmem:[#allocation2 + $0x83] ss:$2 sm:$0xff]  ;;  %v1210_v32 = vld [vmem:[#allocation2 + $0x40] ss:$2 sm:$0xff]  ;;  %v1416_v49 = vpack.c.bf16 %v1400_v37, %v1398_v4 }
 0x202   :  { %v1076_v51 = vmax.f32 %v1048_v42, 0.0  ;;  %v1077_v0 = vmax.f32 %v1049_v16, 0.0  ;;  %v1016_v52 = vmax.f32 %v10814_v38, %v960_v36  ;;  %v13133_v38 = vmov 0  ;;  %v1212_v41 = vld [vmem:[#allocation2 + $0x50] ss:$2 sm:$0xff] }
 0x203   :  { %1632 = vrot.lane.b32.xlu0 %v1616_v7, %s10420_s22  ;;  %v13134_v38 = vsel %vm11071_vm0, 4294967295, %v13133_v38  ;;  %v1231_v43 = vpack.c.bf16 %v1212_v41, %v1210_v32  ;;  %v1605_v45 = vld [vmem:[#allocation2 + $0x73] ss:$2 sm:$0xff]  ;;  %v1462_v54 = vld [vmem:[#allocation2 + $0x70] ss:$2 sm:$0xff] }
 0x204   :  { %1431 = vrot.lane.b32.xlu1 %v1415_v6, %s10420_s22  ;;  %1198 = vst.msk [vmem:[#allocation2 + $0xd1] sm:$0xff] %vm13089_vm2, %v1076_v51  ;;  %v1161_v18 = vsel %vm11059_vm3, %v1077_v0, 0.0  ;;  %v1051_v21 = vadd.f32 %v10832_v44, %v1016_v52  ;;  %v1617_v46 = vpack.c.bf16 %v1606_v31, %v1605_v45  ;;  %v1494_v50 = vld [vmem:[#allocation2 + $0xa1] ss:$2 sm:$0xff]  ;;  %v1262_v53 = vld [vmem:[#allocation2 + $0x91] ss:$2 sm:$0xff] }
 0x205   :  { %1199 = vst.msk [vmem:[#allocation2 + $0xd9] sm:$0xff] %vm13089_vm2, %v1161_v18  ;;  %1238 = vst.msk [vmem:[#allocation3 + $0x30] sm:$0xff] %vm13089_vm2, %v1231_v43  ;;  %v1463_v60 = vld [vmem:[#allocation2 + $0x80] ss:$2 sm:$0xff]  ;;  %v1216_v58 = vld [vmem:[#allocation2 + $0x70] ss:$2 sm:$0xff] }
 0x206   :  { %v1079_v30 = vmax.f32 %v1051_v21, 0.0  ;;  %v1214_v57 = vld [vmem:[#allocation2 + $0x60] ss:$2 sm:$0xff]  ;;  %v1493_v23 = vld [vmem:[#allocation2 + $0x91] ss:$2 sm:$0xff]  ;;  %v1474_v62 = vpack.c.bf16 %v1463_v60, %v1462_v54  ;;  %vm13137_vm3 = vcmask 785920  }
 0x207   :  { %1520 = vrot.lane.b32.xlu0 %v1503_v19, %s10423_s14  ;;  %v1260_v61 = vld [vmem:[#allocation2 + $0x81] ss:$2 sm:$0xff]  ;;  %v1232_v1 = vpack.c.bf16 %v1216_v58, %v1214_v57  ;;  %v1504_v15 = vpack.c.bf16 %v1494_v50, %v1493_v23  ;;  %v1333_v16 = vld [vmem:[#allocation2 + $0x92] ss:$2 sm:$0xff]  ;;  %v1551_v36 = vld [vmem:[#allocation2 + $0xa2] ss:$2 sm:$0xff] }
 0x208   :  { %1291 = vrot.lane.b32.xlu1 %v1274_v20, %s10423_s14  ;;  %v1163_v44 = vsel %vm11071_vm0, %v1079_v30, 0.0  ;;  %v1275_v42 = vpack.c.bf16 %v1262_v53, %v1260_v61  ;;  %v1550_v2 = vld [vmem:[#allocation2 + $0x92] ss:$2 sm:$0xff]  ;;  %v1331_v48 = vld [vmem:[#allocation2 + $0x82] ss:$2 sm:$0xff]  ;;  %1481 = vst.msk [vmem:[#allocation3 + $0x50] sm:$0xff] %vm13089_vm2, %v1474_v62  ;;  %vm13138_vm15 = vmmov %vm13137_vm3 }
 0x209   :  { %1201 = vst.msk [vmem:[#allocation2 + $0xe9] sm:$0xff] %vm13089_vm2, %v1163_v44  ;;  %1239 = vst.msk [vmem:[#allocation3 + $0x48] sm:$0xff] %vm13089_vm2, %v1232_v1  ;;  %v1464_v7 = vld [vmem:[#allocation2 + $0x90] ss:$2 sm:$0xff]  ;;  %v1465_v6 = vld [vmem:[#allocation2 + $0xa0] ss:$2 sm:$0xff]  ;;  %v1561_v25 = vpack.c.bf16 %v1551_v36, %v1550_v2  ;;  %v1346_v29 = vpack.c.bf16 %v1333_v16, %v1331_v48 }
 0x20a   :  { %v1475_v9 = vpack.c.bf16 %v1465_v6, %v1464_v7  ;;  %v1218_v10 = vld [vmem:[#allocation2 + $0x80] ss:$2 sm:$0xff]  ;;  %v1220_v51 = vld [vmem:[#allocation2 + $0x90] ss:$2 sm:$0xff]  ;;  %v1402_v52 = vld [vmem:[#allocation2 + $0x83] ss:$2 sm:$0xff] }
 0x20b   :  { %1577 = vrot.lane.b32.xlu0 %v1560_v34, %s10422_s23  ;;  %v1466_v0 = vld [vmem:[#allocation2 + $0xb0] ss:$2 sm:$0xff]  ;;  %v1404_v14 = vld [vmem:[#allocation2 + $0x93] ss:$2 sm:$0xff]  ;;  %v1233_v17 = vpack.c.bf16 %v1220_v51, %v1218_v10  ;;  %v1467_v27 = vld [vmem:[#allocation2 + $0xc0] ss:$2 sm:$0xff] }
 0x20c   :  { %1362 = vrot.lane.b32.xlu1 %v1345_v3, %s10422_s23  ;;  %v1222_v18 = vld [vmem:[#allocation2 + $0xa0] ss:$2 sm:$0xff]  ;;  %v1224_v21 = vld [vmem:[#allocation2 + $0xb0] ss:$2 sm:$0xff]  ;;  %v1608_v19 = vld [vmem:[#allocation2 + $0xa3] ss:$2 sm:$0xff]  ;;  %v1476_v20 = vpack.c.bf16 %v1467_v27, %v1466_v0  ;;  %v1417_v54 = vpack.c.bf16 %v1404_v14, %v1402_v52 }
 0x20d   :  { %1482 = vst.msk [vmem:[#allocation3 + $0x68] sm:$0xff] %vm13089_vm2, %v1475_v9  ;;  %v1234_v30 = vpack.c.bf16 %v1224_v21, %v1222_v18  ;;  %v1468_v33 = vld [vmem:[#allocation2 + $0xd0] ss:$2 sm:$0xff]  ;;  %v1607_v44 = vld [vmem:[#allocation2 + $0x93] ss:$2 sm:$0xff]  ;;  %1240 = vst.msk [vmem:[#allocation3 + $0x60] sm:$0xff] %vm13089_vm2, %v1233_v17 }
 0x20e   :  { %v1226_v56 = vld [vmem:[#allocation2 + $0xc0] ss:$2 sm:$0xff]  ;;  %v1228_v34 = vld [vmem:[#allocation2 + $0xd0] ss:$2 sm:$0xff]  ;;  %1483 = vst.msk [vmem:[#allocation3 + $0x80] sm:$0xff] %vm13089_vm2, %v1476_v20  ;;  %v1618_v53 = vpack.c.bf16 %v1608_v19, %v1607_v44  ;;  %vm13135_vm0 = vcmask 523520  }
 0x20f   :  { %1634 = vrot.lane.b32.xlu0 %v1617_v46, %s10420_s22  ;;  %v1656_v3 = vld [vmem:[#allocation2 + $0x20] ss:$2 sm:$0xff]  ;;  %1241 = vst.msk [vmem:[#allocation3 + $0x78] sm:$0xff] %vm13089_vm2, %v1234_v30  ;;  %v1235_v4 = vpack.c.bf16 %v1228_v34, %v1226_v56  ;;  %v1657_v37 = vld [vmem:[#allocation2 + $0x30] ss:$2 sm:$0xff] }
 0x210   :  { %1433 = vrot.lane.b32.xlu1 %v1416_v49, %s10420_s22  ;;  %v1470_v11 = vld [vmem:[#allocation2 + $0xe0] ss:$2 sm:$0xff]  ;;  %v1659_v32 = vld [vmem:[#allocation2 + $0x50] ss:$2 sm:$0xff]  ;;  %v1266_v41 = vld [vmem:[#allocation2 + $0xb1] ss:$2 sm:$0xff]  ;;  %v1671_v43 = vpack.c.bf16 %v1657_v37, %v1656_v3 }
 0x211   :  { %v1477_v12 = vpack.c.bf16 %v1470_v11, %v1468_v33  ;;  %v1658_v31 = vld [vmem:[#allocation2 + $0x40] ss:$2 sm:$0xff]  ;;  %v1661_v49 = vld [vmem:[#allocation2 + $0x70] ss:$2 sm:$0xff]  ;;  %1242 = vst.msk [vmem:[#allocation3 + $0x90] sm:$0xff] %vm13089_vm2, %v1235_v4 }
 0x212   :  { %v1672_v45 = vpack.c.bf16 %v1659_v32, %v1658_v31  ;;  %v1660_v46 = vld [vmem:[#allocation2 + $0x60] ss:$2 sm:$0xff]  ;;  %v1663_v57 = vld [vmem:[#allocation2 + $0x90] ss:$2 sm:$0xff]  ;;  %v1496_v61 = vld [vmem:[#allocation2 + $0xc1] ss:$2 sm:$0xff] }
 0x213   :  { %1522 = vrot.lane.b32.xlu0 %v1504_v15, %s10423_s14  ;;  %1484 = vst.msk [vmem:[#allocation3 + $0x98] sm:$0xff] %vm13089_vm2, %v1477_v12  ;;  %v1662_v50 = vld [vmem:[#allocation2 + $0x80] ss:$2 sm:$0xff]  ;;  %v1673_v60 = vpack.c.bf16 %v1661_v49, %v1660_v46  ;;  %v1665_v23 = vld [vmem:[#allocation2 + $0xb0] ss:$2 sm:$0xff]  ;;  %1678 = vst.msk [vmem:[#allocation3 + $0x10] sm:$0xff] %vm13089_vm2, %v1671_v43 }
 0x214   :  { %1293 = vrot.lane.b32.xlu1 %v1275_v42, %s10423_s14  ;;  %v1664_v58 = vld [vmem:[#allocation2 + $0xa0] ss:$2 sm:$0xff]  ;;  %1679 = vst.msk [vmem:[#allocation3 + $0x28] sm:$0xff] %vm13089_vm2, %v1672_v45  ;;  %v1674_v62 = vpack.c.bf16 %v1663_v57, %v1662_v50  ;;  %v1667_v42 = vld [vmem:[#allocation2 + $0xd0] ss:$2 sm:$0xff] }
 0x215   :  { %v1675_v1 = vpack.c.bf16 %v1665_v23, %v1664_v58  ;;  %v1666_v15 = vld [vmem:[#allocation2 + $0xc0] ss:$2 sm:$0xff]  ;;  %1680 = vst.msk [vmem:[#allocation3 + $0x40] sm:$0xff] %vm13089_vm2, %v1673_v60  ;;  %v1670_v36 = vld [vmem:[#allocation2 + $0xf0] ss:$2 sm:$0xff] }
 0x216   :  { %v1676_v16 = vpack.c.bf16 %v1667_v42, %v1666_v15  ;;  %v1668_v2 = vld [vmem:[#allocation2 + $0xe0] ss:$2 sm:$0xff]  ;;  %v1495_v48 = vld [vmem:[#allocation2 + $0xb1] ss:$2 sm:$0xff]  ;;  %v1264_v7 = vld [vmem:[#allocation2 + $0xa1] ss:$2 sm:$0xff] }
 0x217   :  { %1579 = vrot.lane.b32.xlu0 %v1561_v25, %s10422_s23  ;;  %1681 = vst.msk [vmem:[#allocation3 + $0x58] sm:$0xff] %vm13089_vm2, %v1674_v62  ;;  %1682 = vst.msk [vmem:[#allocation3 + $0x70] sm:$0xff] %vm13089_vm2, %v1675_v1  ;;  %v1677_v6 = vpack.c.bf16 %v1670_v36, %v1668_v2  ;;  %v1505_v9 = vpack.c.bf16 %v1496_v61, %v1495_v48  ;;  %v1276_v10 = vpack.c.bf16 %v1266_v41, %v1264_v7  ;;  %v1553_v51 = vld [vmem:[#allocation2 + $0xc2] ss:$2 sm:$0xff]  ;;  %v1337_v0 = vld [vmem:[#allocation2 + $0xb2] ss:$2 sm:$0xff] }
 0x218   :  { %1364 = vrot.lane.b32.xlu1 %v1346_v29, %s10422_s23  ;;  %1683 = vst.msk [vmem:[#allocation3 + $0x88] sm:$0xff] %vm13089_vm2, %v1676_v16  ;;  %v1552_v52 = vld [vmem:[#allocation2 + $0xb2] ss:$2 sm:$0xff]  ;;  %v1335_v14 = vld [vmem:[#allocation2 + $0xa2] ss:$2 sm:$0xff] }
 0x219   :  { %1684 = vst.msk [vmem:[#allocation3 + $0xa0] sm:$0xff] %vm13089_vm2, %v1677_v6  ;;  %v1562_v17 = vpack.c.bf16 %v1553_v51, %v1552_v52  ;;  %v1347_v27 = vpack.c.bf16 %v1337_v0, %v1335_v14  ;;  %v1610_v18 = vld [vmem:[#allocation2 + $0xc3] ss:$2 sm:$0xff]  ;;  %v1408_v25 = vld [vmem:[#allocation2 + $0xb3] ss:$2 sm:$0xff]  ;;  %vm13091_vm2 = vmmov 0  }
 0x21a   :  { %v1406_v21 = vld [vmem:[#allocation2 + $0xa3] ss:$2 sm:$0xff]  ;;  %v1609_v29 = vld [vmem:[#allocation2 + $0xb3] ss:$2 sm:$0xff]  ;;  %v1556_v34 = vld [vmem:[#allocation2 + $0xe2] ss:$2 sm:$0xff]  ;;  %9468 = vmatprep.mubr.msk.bf16.mxu0 %vm13091_vm2, %v13100_v47 }
 0x21b   :  { %1636 = vrot.lane.b32.xlu0 %v1618_v53, %s10420_s22  ;;  %v1619_v19 = vpack.c.bf16 %v1610_v18, %v1609_v29  ;;  %v1418_v20 = vpack.c.bf16 %v1408_v25, %v1406_v21  ;;  %v1499_v30 = vld [vmem:[#allocation2 + $0xe1] ss:$2 sm:$0xff]  ;;  %v1270_v33 = vld [vmem:[#allocation2 + $0xd1] ss:$2 sm:$0xff]  ;;  %v1341_v3 = vld [vmem:[#allocation2 + $0xd2] ss:$2 sm:$0xff] }
 0x21c   :  { %1435 = vrot.lane.b32.xlu1 %v1417_v54, %s10420_s22  ;;  %v1497_v11 = vld [vmem:[#allocation2 + $0xd1] ss:$2 sm:$0xff]  ;;  %v1268_v44 = vld [vmem:[#allocation2 + $0xc1] ss:$2 sm:$0xff]  ;;  %v1554_v4 = vld [vmem:[#allocation2 + $0xd2] ss:$2 sm:$0xff] }
 0x21d   :  { %v1506_v12 = vpack.c.bf16 %v1499_v30, %v1497_v11  ;;  %v1277_v56 = vpack.c.bf16 %v1270_v33, %v1268_v44  ;;  %v1339_v37 = vld [vmem:[#allocation2 + $0xc2] ss:$2 sm:$0xff]  ;;  %v1563_v31 = vpack.c.bf16 %v1556_v34, %v1554_v4  ;;  %v1613_v41 = vld [vmem:[#allocation2 + $0xe3] ss:$2 sm:$0xff]  ;;  %v1412_v45 = vld [vmem:[#allocation2 + $0xd3] ss:$2 sm:$0xff] }
 0x21e   :  { %v1348_v32 = vpack.c.bf16 %v1341_v3, %v1339_v37  ;;  %v1410_v43 = vld [vmem:[#allocation2 + $0xc3] ss:$2 sm:$0xff]  ;;  %v1611_v46 = vld [vmem:[#allocation2 + $0xd3] ss:$2 sm:$0xff]  ;;  %v1743_v54 = vld [vmem:[#allocation2 + $0x32] ss:$2 sm:$0xff] }
 0x21f   :  { %1524 = vrot.lane.b32.xlu0 %v1505_v9, %s10423_s14  ;;  %v1620_v49 = vpack.c.bf16 %v1613_v41, %v1611_v46  ;;  %v1419_v50 = vpack.c.bf16 %v1412_v45, %v1410_v43  ;;  %v1686_v53 = vld [vmem:[#allocation2 + $0x31] ss:$2 sm:$0xff]  ;;  %v1685_v60 = vld [vmem:[#allocation2 + $0x21] ss:$2 sm:$0xff]  ;;  %v1742_v57 = vld [vmem:[#allocation2 + $0x22] ss:$2 sm:$0xff] }
 0x220   :  { %1295 = vrot.lane.b32.xlu1 %v1276_v10, %s10423_s14  ;;  %v1700_v58 = vpack.c.bf16 %v1686_v53, %v1685_v60  ;;  %v1757_v23 = vpack.c.bf16 %v1743_v54, %v1742_v57  ;;  %v1799_v61 = vld [vmem:[#allocation2 + $0x23] ss:$2 sm:$0xff]  ;;  %v1800_v62 = vld [vmem:[#allocation2 + $0x33] ss:$2 sm:$0xff]  ;;  %v1745_v2 = vld [vmem:[#allocation2 + $0x52] ss:$2 sm:$0xff] }
 0x221   :  { %v1688_v1 = vld [vmem:[#allocation2 + $0x51] ss:$2 sm:$0xff]  ;;  %v1687_v15 = vld [vmem:[#allocation2 + $0x41] ss:$2 sm:$0xff]  ;;  %v1814_v42 = vpack.c.bf16 %v1800_v62, %v1799_v61  ;;  %v1744_v7 = vld [vmem:[#allocation2 + $0x42] ss:$2 sm:$0xff] }
 0x222   :  { %v1701_v16 = vpack.c.bf16 %v1688_v1, %v1687_v15  ;;  %v1801_v36 = vld [vmem:[#allocation2 + $0x43] ss:$2 sm:$0xff]  ;;  %v1802_v48 = vld [vmem:[#allocation2 + $0x53] ss:$2 sm:$0xff]  ;;  %v1758_v6 = vpack.c.bf16 %v1745_v2, %v1744_v7  ;;  %v1747_v51 = vld [vmem:[#allocation2 + $0x72] ss:$2 sm:$0xff] }
 0x223   :  { %1581 = vrot.lane.b32.xlu0 %v1562_v17, %s10422_s23  ;;  %v1815_v9 = vpack.c.bf16 %v1802_v48, %v1801_v36  ;;  %v1690_v10 = vld [vmem:[#allocation2 + $0x71] ss:$2 sm:$0xff]  ;;  %v1689_v0 = vld [vmem:[#allocation2 + $0x61] ss:$2 sm:$0xff]  ;;  %v1746_v52 = vld [vmem:[#allocation2 + $0x62] ss:$2 sm:$0xff] }
 0x224   :  { %1366 = vrot.lane.b32.xlu1 %v1347_v27, %s10422_s23  ;;  %v1702_v14 = vpack.c.bf16 %v1690_v10, %v1689_v0  ;;  %v1759_v17 = vpack.c.bf16 %v1747_v51, %v1746_v52  ;;  %v1803_v27 = vld [vmem:[#allocation2 + $0x63] ss:$2 sm:$0xff]  ;;  %v1804_v18 = vld [vmem:[#allocation2 + $0x73] ss:$2 sm:$0xff]  ;;  %v1748_v11 = vld [vmem:[#allocation2 + $0x82] ss:$2 sm:$0xff] }
 0x225   :  { %v1692_v21 = vld [vmem:[#allocation2 + $0x91] ss:$2 sm:$0xff]  ;;  %v1691_v25 = vld [vmem:[#allocation2 + $0x81] ss:$2 sm:$0xff]  ;;  %v1816_v29 = vpack.c.bf16 %v1804_v18, %v1803_v27  ;;  %v1751_v34 = vld [vmem:[#allocation2 + $0xb2] ss:$2 sm:$0xff] }
 0x226   :  { %v1805_v30 = vld [vmem:[#allocation2 + $0x83] ss:$2 sm:$0xff]  ;;  %v1806_v33 = vld [vmem:[#allocation2 + $0x93] ss:$2 sm:$0xff]  ;;  %v1750_v4 = vld [vmem:[#allocation2 + $0xa2] ss:$2 sm:$0xff] }
 0x227   :  { %1638 = vrot.lane.b32.xlu0 %v1619_v19, %s10420_s22  ;;  %v1703_v19 = vpack.c.bf16 %v1692_v21, %v1691_v25  ;;  %v1693_v3 = vld [vmem:[#allocation2 + $0xa1] ss:$2 sm:$0xff]  ;;  %v1696_v43 = vld [vmem:[#allocation2 + $0xd1] ss:$2 sm:$0xff]  ;;  %v1752_v60 = vld [vmem:[#allocation2 + $0xc2] ss:$2 sm:$0xff] }
 0x228   :  { %1437 = vrot.lane.b32.xlu1 %v1418_v20, %s10420_s22  ;;  %v1749_v20 = vld [vmem:[#allocation2 + $0x92] ss:$2 sm:$0xff]  ;;  %v1808_v41 = vld [vmem:[#allocation2 + $0xb3] ss:$2 sm:$0xff]  ;;  %v1809_v53 = vld [vmem:[#allocation2 + $0xc3] ss:$2 sm:$0xff] }
 0x229   :  { %v1760_v44 = vpack.c.bf16 %v1749_v20, %v1748_v11  ;;  %v1695_v45 = vld [vmem:[#allocation2 + $0xc1] ss:$2 sm:$0xff]  ;;  %v1699_v62 = vld [vmem:[#allocation2 + $0xf1] ss:$2 sm:$0xff]  ;;  %v1754_v15 = vld [vmem:[#allocation2 + $0xe2] ss:$2 sm:$0xff] }
 0x22a   :  { %v1810_v54 = vld [vmem:[#allocation2 + $0xd3] ss:$2 sm:$0xff]  ;;  %vm13095_vm2 = vcmask 785920   ;;  %v1811_v7 = vld [vmem:[#allocation2 + $0xe3] ss:$2 sm:$0xff] }
 0x22b   :  { %1526 = vrot.lane.b32.xlu0 %v1506_v12, %s10423_s14  ;;  %v1817_v12 = vpack.c.bf16 %v1806_v33, %v1805_v30  ;;  %v1819_v61 = vpack.c.bf16 %v1810_v54, %v1809_v53  ;;  %v1697_v1 = vld [vmem:[#allocation2 + $0xe1] ss:$2 sm:$0xff]  ;;  %v10145_v20 = vld [vmem:[%s13081_s3 + $0x90] sm:$0xff]   ;;  %v10146_v11 = vld [vmem:[%s13081_s3 + $0x98] sm:$0xff]  }
 0x22c   :  { %1297 = vrot.lane.b32.xlu1 %v1277_v56, %s10423_s14  ;;  %v1694_v56 = vld [vmem:[#allocation2 + $0xb1] ss:$2 sm:$0xff]  ;;  %v1706_v36 = vpack.c.bf16 %v1699_v62, %v1697_v1  ;;  %v10144_v25 = vld [vmem:[%s13081_s3 + $0x88] sm:$0xff]  }
 0x22d   :  { %v1704_v37 = vpack.c.bf16 %v1694_v56, %v1693_v3  ;;  %v10147_v3 = vld [vmem:[%s13081_s3 + $0xa0] sm:$0xff]   ;;  %v10150_v53 = vld [vmem:[%s13081_s3 + $0xb8] sm:$0xff]  }
 0x22f   :  { %1583 = vrot.lane.b32.xlu0 %v1563_v31, %s10422_s23  ;;  %v1761_v31 = vpack.c.bf16 %v1751_v34, %v1750_v4 }
 0x230   :  { %1368 = vrot.lane.b32.xlu1 %v1348_v32, %s10422_s23  ;;  %v1807_v32 = vld [vmem:[#allocation2 + $0xa3] ss:$2 sm:$0xff] }
 0x231   :  { %v1818_v46 = vpack.c.bf16 %v1808_v41, %v1807_v32 }
 0x233   :  { %1640 = vrot.lane.b32.xlu0 %v1620_v49, %s10420_s22  ;;  %v1705_v49 = vpack.c.bf16 %v1696_v43, %v1695_v45  ;;  %v10149_v43 = vld [vmem:[%s13081_s3 + $0xb0] sm:$0xff]  }
 0x234   :  { %1439 = vrot.lane.b32.xlu1 %v1419_v50, %s10420_s22  ;;  %v1753_v50 = vld [vmem:[#allocation2 + $0xd2] ss:$2 sm:$0xff] }
 0x237   :  { %1714 = vrot.lane.b32.xlu0 %v1700_v58, %s10423_s14 }
 0x238   :  { %1771 = vrot.lane.b32.xlu1 %v1757_v23, %s10422_s23  ;;  %v1762_v23 = vpack.c.bf16 %v1753_v50, %v1752_v60 }
 0x23b   :  { %1828 = vrot.lane.b32.xlu0 %v1814_v42, %s10420_s22  ;;  %v1756_v42 = vld [vmem:[#allocation2 + $0xf2] ss:$2 sm:$0xff] }
 0x23c   :  { %1716 = vrot.lane.b32.xlu1 %v1701_v16, %s10423_s14  ;;  %v1763_v48 = vpack.c.bf16 %v1756_v42, %v1754_v15 }
 0x23f   :  { %1773 = vrot.lane.b32.xlu0 %v1758_v6, %s10422_s23  ;;  %v1813_v6 = vld [vmem:[#allocation2 + $0xf3] ss:$2 sm:$0xff] }
 0x240   :  { %1830 = vrot.lane.b32.xlu1 %v1815_v9, %s10420_s22  ;;  %v1820_v51 = vpack.c.bf16 %v1813_v6, %v1811_v7 }
 0x243   :  { %1718 = vrot.lane.b32.xlu0 %v1702_v14, %s10423_s14  ;;  %v10143_v14 = vld [vmem:[%s13081_s3 + $0x80] sm:$0xff]  }
 0x244   :  { %1775 = vrot.lane.b32.xlu1 %v1759_v17, %s10422_s23 }
 0x247   :  { %1832 = vrot.lane.b32.xlu0 %v1816_v29, %s10420_s22 }
 0x248   :  { %1720 = vrot.lane.b32.xlu1 %v1703_v19, %s10423_s14 }
 0x24b   :  { %1777 = vrot.lane.b32.xlu0 %v1760_v44, %s10422_s23 }
 0x24c   :  { %1834 = vrot.lane.b32.xlu1 %v1817_v12, %s10420_s22 }
 0x24f   :  { %1722 = vrot.lane.b32.xlu0 %v1704_v37, %s10423_s14 }
 0x250   :  { %1779 = vrot.lane.b32.xlu1 %v1761_v31, %s10422_s23  ;;  %v10148_v31 = vld [vmem:[%s13081_s3 + $0xa8] sm:$0xff]  }
 0x253   :  { %1836 = vrot.lane.b32.xlu0 %v1818_v46, %s10420_s22 }
 0x254   :  { %1724 = vrot.lane.b32.xlu1 %v1705_v49, %s10423_s14 }
 0x255   :  { %v1515_v57 = vpop.permute.xlu0 %1514 }
 0x256   :  { %v1286_v58 = vpop.permute.xlu1 %1285  ;;  %1535 = vst.msk [vmem:[#allocation3 + $0x8] sm:$0xff] %vm13093_vm1, %v1515_v57  ;;  %v11198_v57 = vld [vmem:[%s13079_s1] sm:$0xff]  }
 0x257   :  { %1307 = vst.msk [vmem:[#allocation3] sm:$0xff] %vm13093_vm1, %v1286_v58  ;;  %1781 = vrot.lane.b32.xlu0 %v1762_v23, %s10422_s23  ;;  %vm1448_vm1 = vcmask 1048320  }
 0x258   :  { %1838 = vrot.lane.b32.xlu1 %v1819_v61, %s10420_s22 }
 0x259   :  { %v1572_v16 = vpop.permute.xlu0 %1571 }
 0x25a   :  { %v1357_v2 = vpop.permute.xlu1 %1356  ;;  %1592 = vst.msk [vmem:[#allocation3 + $0x8] sm:$0xff] %vm13095_vm2, %v1572_v16 }
 0x25b   :  { %1378 = vst.msk [vmem:[#allocation3] sm:$0xff] %vm13095_vm2, %v1357_v2  ;;  %1726 = vrot.lane.b32.xlu0 %v1706_v36, %s10423_s14  ;;  %vm13136_vm2 = vmmov %vm13135_vm0 }
 0x25c   :  { %1783 = vrot.lane.b32.xlu1 %v1763_v48, %s10422_s23 }
 0x25d   :  { %v1629_v9 = vpop.permute.xlu0 %1628 }
 0x25e   :  { %v1428_v10 = vpop.permute.xlu1 %1427  ;;  %1649 = vst.msk [vmem:[#allocation3 + $0x8] sm:$0xff] %vm1448_vm1, %v1629_v9 }
 0x25f   :  { %1449 = vst.msk [vmem:[#allocation3] sm:$0xff] %vm1448_vm1, %v1428_v10  ;;  %1840 = vrot.lane.b32.xlu0 %v1820_v51, %s10420_s22 }
 0x261   :  { %v1517_v0 = vpop.permute.xlu0 %1516 }
 0x262   :  { %v1288_v52 = vpop.permute.xlu1 %1287  ;;  %1536 = vst.msk [vmem:[#allocation3 + $0x20] sm:$0xff] %vm13135_vm0, %v1517_v0 }
 0x263   :  { %1308 = vst.msk [vmem:[#allocation3 + $0x18] sm:$0xff] %vm13136_vm2, %v1288_v52  ;;  %vm13139_vm2 = vmmov %vm13135_vm0 }
 0x265   :  { %v1574_v17 = vpop.permute.xlu0 %1573  ;;  %v1857_v18 = vld [vmem:[#allocation3 + $0x8] sm:$0xff] }
 0x266   :  { %v1359_v27 = vpop.permute.xlu1 %1358  ;;  %v1856_v21 = vld [vmem:[#allocation3] sm:$0xff]  ;;  %1593 = vst.msk [vmem:[#allocation3 + $0x20] sm:$0xff] %vm13137_vm3, %v1574_v17  ;;  %2101 = vmatprep.mubr.bf16.mxu1 %v1857_v18 }
 0x267   :  { %1379 = vst.msk [vmem:[#allocation3 + $0x18] sm:$0xff] %vm13138_vm15, %v1359_v27  ;;  %2102 = vmatmul.mubr.bf16.vlgmr.msra.gmra.mrb[28].mxu1 %v1856_v21  ;;  %vm13140_vm15 = vmmov %vm13137_vm3 }
 0x268   :  { %9183 = vmatpush3.bf16.msra.mxu1 %v10143_v14 }
 0x269   :  { %v1631_v29 = vpop.permute.xlu0 %1630  ;;  %9184 = vmatprep.subr.bf16.mxu1 %v13100_v47 }
 0x26a   :  { %v1430_v19 = vpop.permute.xlu1 %1429  ;;  %1650 = vst.msk [vmem:[#allocation3 + $0x20] sm:$0xff] %vm1448_vm1, %v1631_v29 }
 0x26b   :  { %1450 = vst.msk [vmem:[#allocation3 + $0x18] sm:$0xff] %vm1448_vm1, %v1430_v19 }
 0x26c   :  { %9185 = vmatpush3.bf16.msra.mxu1 %v10144_v25 }
 0x26d   :  { %v1519_v30 = vpop.permute.xlu0 %1518  ;;  %9186 = vmatprep.subr.bf16.mxu1 %v13100_v47 }
 0x26e   :  { %v1290_v33 = vpop.permute.xlu1 %1289  ;;  %1537 = vst.msk [vmem:[#allocation3 + $0x38] sm:$0xff] %vm13135_vm0, %v1519_v30 }
 0x26f   :  { %1309 = vst.msk [vmem:[#allocation3 + $0x30] sm:$0xff] %vm13139_vm2, %v1290_v33  ;;  %vm13141_vm2 = vmmov %vm13135_vm0 }
 0x270   :  { %9187 = vmatpush3.bf16.msra.mxu1 %v10145_v20 }
 0x271   :  { %v1576_v44 = vpop.permute.xlu0 %1575  ;;  %v1860_v56 = vld [vmem:[#allocation3 + $0x20] sm:$0xff]  ;;  %9188 = vmatprep.subr.bf16.mxu1 %v13100_v47 }
 0x272   :  { %v1361_v12 = vpop.permute.xlu1 %1360  ;;  %v1859_v34 = vld [vmem:[#allocation3 + $0x18] sm:$0xff]  ;;  %1594 = vst.msk [vmem:[#allocation3 + $0x38] sm:$0xff] %vm13140_vm15, %v1576_v44  ;;  %2109 = vmatprep.mubr.bf16.mxu1 %v1860_v56  ;;  %vm13142_vm15 = vmmov %vm13137_vm3 }
 0x273   :  { %1380 = vst.msk [vmem:[#allocation3 + $0x30] sm:$0xff] %vm13137_vm3, %v1361_v12  ;;  %2110 = vmatmul.mubr.bf16.gmra.mrb[32].mxu1 %v1859_v34 }
 0x274   :  { %9189 = vmatpush3.bf16.msra.mxu1 %v10146_v11 }
 0x275   :  { %v1633_v4 = vpop.permute.xlu0 %1632  ;;  %9190 = vmatprep.subr.bf16.mxu1 %v13100_v47 }
 0x276   :  { %v1432_v37 = vpop.permute.xlu1 %1431  ;;  %1651 = vst.msk [vmem:[#allocation3 + $0x38] sm:$0xff] %vm1448_vm1, %v1633_v4  ;;  %v10152_v4 = vld [vmem:[%s13079_s1 + $0x8] sm:$0xff]  }
 0x277   :  { %1451 = vst.msk [vmem:[#allocation3 + $0x30] sm:$0xff] %vm1448_vm1, %v1432_v37 }
 0x278   :  { %9191 = vmatpush3.bf16.msra.mxu1 %v10147_v3 }
 0x279   :  { %v1521_v32 = vpop.permute.xlu0 %1520  ;;  %9192 = vmatprep.subr.bf16.mxu1 %v13100_v47 }
 0x27a   :  { %v1292_v41 = vpop.permute.xlu1 %1291  ;;  %1538 = vst.msk [vmem:[#allocation3 + $0x50] sm:$0xff] %vm13135_vm0, %v1521_v32  ;;  %v10153_v32 = vld [vmem:[%s13079_s1 + $0x10] ss:$0 sps:$4 sm:$0x33]  }
 0x27b   :  { %1310 = vst.msk [vmem:[#allocation3 + $0x48] sm:$0xff] %vm13141_vm2, %v1292_v41  ;;  %vm13143_vm2 = vmmov %vm13135_vm0 }
 0x27c   :  { %9193 = vmatpush3.bf16.msra.mxu1 %v10148_v31 }
 0x27d   :  { %v1578_v45 = vpop.permute.xlu0 %1577  ;;  %v1863_v49 = vld [vmem:[#allocation3 + $0x38] sm:$0xff]  ;;  %9194 = vmatprep.subr.bf16.mxu1 %v13100_v47 }
 0x27e   :  { %v1363_v46 = vpop.permute.xlu1 %1362  ;;  %v1862_v50 = vld [vmem:[#allocation3 + $0x30] sm:$0xff]  ;;  %1595 = vst.msk [vmem:[#allocation3 + $0x50] sm:$0xff] %vm13142_vm15, %v1578_v45  ;;  %2117 = vmatprep.mubr.bf16.mxu1 %v1863_v49  ;;  %vm13144_vm15 = vmmov %vm13137_vm3 }
 0x27f   :  { %1381 = vst.msk [vmem:[#allocation3 + $0x48] sm:$0xff] %vm13137_vm3, %v1363_v46  ;;  %2118 = vmatmul.mubr.bf16.gmra.mrb[36].mxu1 %v1862_v50 }
 0x280   :  { %9195 = vmatpush3.bf16.msra.mxu1 %v10149_v43 }
 0x281   :  { %v1635_v54 = vpop.permute.xlu0 %1634  ;;  %9196 = vmatprep.subr.bf16.mxu1 %v13100_v47 }
 0x282   :  { %v1434_v60 = vpop.permute.xlu1 %1433  ;;  %1652 = vst.msk [vmem:[#allocation3 + $0x50] sm:$0xff] %vm1448_vm1, %v1635_v54 }
 0x283   :  { %1452 = vst.msk [vmem:[#allocation3 + $0x48] sm:$0xff] %vm1448_vm1, %v1434_v60 }
 0x284   :  { %9197 = vmatpush3.bf16.msra.mxu1 %v10150_v53 }
 0x285   :  { %v1523_v58 = vpop.permute.xlu0 %1522  ;;  %9226 = vmatprep.subr.bf16.mxu1 %v11198_v57 }
 0x286   :  { %v1294_v23 = vpop.permute.xlu1 %1293  ;;  %1539 = vst.msk [vmem:[#allocation3 + $0x68] sm:$0xff] %vm13135_vm0, %v1523_v58 }
 0x287   :  { %1311 = vst.msk [vmem:[#allocation3 + $0x60] sm:$0xff] %vm13143_vm2, %v1294_v23  ;;  %vm13145_vm2 = vmmov %vm13135_vm0 }
 0x289   :  { %v1580_v61 = vpop.permute.xlu0 %1579  ;;  %v1866_v1 = vld [vmem:[#allocation3 + $0x50] sm:$0xff] }
 0x28a   :  { %v1365_v62 = vpop.permute.xlu1 %1364  ;;  %v1865_v15 = vld [vmem:[#allocation3 + $0x48] sm:$0xff]  ;;  %1596 = vst.msk [vmem:[#allocation3 + $0x68] sm:$0xff] %vm13144_vm15, %v1580_v61  ;;  %2125 = vmatprep.mubr.bf16.mxu1 %v1866_v1  ;;  %vm13146_vm15 = vmmov %vm13137_vm3 }
 0x28b   :  { %1382 = vst.msk [vmem:[#allocation3 + $0x60] sm:$0xff] %vm13137_vm3, %v1365_v62  ;;  %2126 = vmatmul.mubr.bf16.gmra.mrb[40].mxu1 %v1865_v15 }
 0x28d   :  { %v1637_v42 = vpop.permute.xlu0 %1636 }
 0x28e   :  { %v1436_v16 = vpop.permute.xlu1 %1435  ;;  %1653 = vst.msk [vmem:[#allocation3 + $0x68] sm:$0xff] %vm1448_vm1, %v1637_v42 }
 0x28f   :  { %1453 = vst.msk [vmem:[#allocation3 + $0x60] sm:$0xff] %vm1448_vm1, %v1436_v16  ;;  %v10154_v16 = vld [vmem:[%s13078_s0 + $0x70] sm:$0xff]  }
 0x291   :  { %v1525_v2 = vpop.permute.xlu0 %1524 }
 0x292   :  { %v1296_v36 = vpop.permute.xlu1 %1295  ;;  %1540 = vst.msk [vmem:[#allocation3 + $0x80] sm:$0xff] %vm13135_vm0, %v1525_v2 }
 0x293   :  { %1312 = vst.msk [vmem:[#allocation3 + $0x78] sm:$0xff] %vm13145_vm2, %v1296_v36  ;;  %vm13147_vm2 = vmmov %vm13135_vm0  ;;  %v10155_v36 = vld [vmem:[%s13078_s0 + $0x78] sm:$0xff]  }
 0x295   :  { %v1582_v48 = vpop.permute.xlu0 %1581  ;;  %v1869_v6 = vld [vmem:[#allocation3 + $0x68] sm:$0xff] }
 0x296   :  { %v1367_v7 = vpop.permute.xlu1 %1366  ;;  %v1868_v9 = vld [vmem:[#allocation3 + $0x60] sm:$0xff]  ;;  %1597 = vst.msk [vmem:[#allocation3 + $0x80] sm:$0xff] %vm13146_vm15, %v1582_v48  ;;  %2133 = vmatprep.mubr.bf16.mxu1 %v1869_v6  ;;  %vm13148_vm15 = vmmov %vm13137_vm3  ;;  %v10158_v6 = vld [vmem:[%s13078_s0 + $0x90] sm:$0xff]  }
 0x297   :  { %1383 = vst.msk [vmem:[#allocation3 + $0x78] sm:$0xff] %vm13137_vm3, %v1367_v7  ;;  %2134 = vmatmul.mubr.bf16.gmra.mrb[44].mxu1 %v1868_v9  ;;  %v10156_v48 = vld [vmem:[%s13078_s0 + $0x80] sm:$0xff]   ;;  %v10157_v7 = vld [vmem:[%s13078_s0 + $0x88] sm:$0xff]   ;;  %v10159_v9 = vld [vmem:[%s13078_s0 + $0x98] sm:$0xff]  }
 0x299   :  { %v1639_v10 = vpop.permute.xlu0 %1638 }
 0x29a   :  { %v1438_v51 = vpop.permute.xlu1 %1437  ;;  %1654 = vst.msk [vmem:[#allocation3 + $0x80] sm:$0xff] %vm1448_vm1, %v1639_v10  ;;  %v10160_v10 = vld [vmem:[%s13078_s0 + $0xa0] sm:$0xff]  }
 0x29b   :  { %1454 = vst.msk [vmem:[#allocation3 + $0x78] sm:$0xff] %vm1448_vm1, %v1438_v51  ;;  %v10161_v51 = vld [vmem:[%s13078_s0 + $0xa8] sm:$0xff]  }
 0x29d   :  { %v1527_v0 = vpop.permute.xlu0 %1526 }
 0x29e   :  { %v1298_v52 = vpop.permute.xlu1 %1297  ;;  %1541 = vst.msk [vmem:[#allocation3 + $0x98] sm:$0xff] %vm13135_vm0, %v1527_v0  ;;  %v10162_v0 = vld [vmem:[%s13078_s0 + $0xb0] sm:$0xff]  }
 0x29f   :  { %1313 = vst.msk [vmem:[#allocation3 + $0x90] sm:$0xff] %vm13147_vm2, %v1298_v52  ;;  %vm13149_vm2 = vmmov %vm13137_vm3  ;;  %v10163_v52 = vld [vmem:[%s13078_s0 + $0xb8] sm:$0xff]  }
 0x2a0   :  { %vm13152_vm14 = vmmov %vm13149_vm2 }
 0x2a1   :  { %v1584_v14 = vpop.permute.xlu0 %1583  ;;  %v1872_v27 = vld [vmem:[#allocation3 + $0x80] sm:$0xff]  ;;  %vm13156_vm13 = vmmov %vm13149_vm2 }
 0x2a2   :  { %v1369_v17 = vpop.permute.xlu1 %1368  ;;  %v1871_v18 = vld [vmem:[#allocation3 + $0x78] sm:$0xff]  ;;  %1598 = vst.msk [vmem:[#allocation3 + $0x98] sm:$0xff] %vm13148_vm15, %v1584_v14  ;;  %2141 = vmatprep.mubr.bf16.mxu1 %v1872_v27  ;;  %vm13150_vm15 = vmmov %vm13135_vm0  ;;  %v10164_v14 = vld [vmem:[%s13078_s0 + $0xc0] sm:$0xff]  }
 0x2a3   :  { %1384 = vst.msk [vmem:[#allocation3 + $0x90] sm:$0xff] %vm13137_vm3, %v1369_v17  ;;  %2142 = vmatmul.mubr.bf16.gmra.mrb[48].mxu1 %v1871_v18  ;;  %vm13151_vm3 = vmmov 0   ;;  %v10165_v17 = vld [vmem:[%s13078_s0 + $0xc8] sm:$0xff]   ;;  %v10166_v27 = vld [vmem:[%s13078_s0 + $0xd0] sm:$0xff]   ;;  %v10167_v18 = vld [vmem:[%s13078_s0 + $0xd8] sm:$0xff]  }
 0x2a5   :  { %v1641_v21 = vpop.permute.xlu0 %1640 }
 0x2a6   :  { %v1440_v25 = vpop.permute.xlu1 %1439  ;;  %1655 = vst.msk [vmem:[#allocation3 + $0x98] sm:$0xff] %vm1448_vm1, %v1641_v21 }
 0x2a7   :  { %1455 = vst.msk [vmem:[#allocation3 + $0x90] sm:$0xff] %vm1448_vm1, %v1440_v25 }
 0x2a9   :  { %v1715_v29 = vpop.permute.xlu0 %1714 }
 0x2aa   :  { %v1772_v19 = vpop.permute.xlu1 %1771  ;;  %1735 = vst.msk [vmem:[#allocation3 + $0x10] sm:$0xff] %vm13135_vm0, %v1715_v29 }
 0x2ab   :  { %1792 = vst.msk [vmem:[#allocation3 + $0x10] sm:$0xff] %vm13149_vm2, %v1772_v19 }
 0x2ad   :  { %v1829_v20 = vpop.permute.xlu0 %1828  ;;  %v1875_v33 = vld [vmem:[#allocation3 + $0x98] sm:$0xff] }
 0x2ae   :  { %v1717_v30 = vpop.permute.xlu1 %1716  ;;  %v1874_v11 = vld [vmem:[#allocation3 + $0x90] sm:$0xff]  ;;  %1849 = vst.msk [vmem:[#allocation3 + $0x10] sm:$0xff] %vm1448_vm1, %v1829_v20  ;;  %2149 = vmatprep.mubr.bf16.mxu1 %v1875_v33 }
 0x2af   :  { %1736 = vst.msk [vmem:[#allocation3 + $0x28] sm:$0xff] %vm13150_vm15, %v1717_v30  ;;  %2150 = vmatmul.mubr.bf16.gmra.mrb[52].mxu1 %v1874_v11  ;;  %vm13154_vm15 = vcmask 1041408  }
 0x2b0   :  { %9198 = vmatprep.mubr.msk.bf16.mxu1 %vm13151_vm3, %v13100_v47 }
 0x2b1   :  { %v1774_v44 = vpop.permute.xlu0 %1773 }
 0x2b2   :  { %v1831_v12 = vpop.permute.xlu1 %1830  ;;  %1793 = vst.msk [vmem:[#allocation3 + $0x28] sm:$0xff] %vm13152_vm14, %v1774_v44  ;;  %vm13153_vm14 = vmmov %vm13135_vm0 }
 0x2b3   :  { %1850 = vst.msk [vmem:[#allocation3 + $0x28] sm:$0xff] %vm1448_vm1, %v1831_v12 }
 0x2b5   :  { %v1719_v56 = vpop.permute.xlu0 %1718  ;;  %v1858_v3 = vld [vmem:[#allocation3 + $0x10] sm:$0xff] }
 0x2b6   :  { %v1776_v34 = vpop.permute.xlu1 %1775  ;;  %1737 = vst.msk [vmem:[#allocation3 + $0x40] sm:$0xff] %vm13135_vm0, %v1719_v56  ;;  %vm13155_vm0 = vmmov %vm13154_vm15 }
 0x2b7   :  { %1794 = vst.msk [vmem:[#allocation3 + $0x40] sm:$0xff] %vm13149_vm2, %v1776_v34  ;;  %9199 = vmatmul.mubr.bf16.vlgmr.msra.gmra.mrb[56].mxu1 %v1858_v3  ;;  %v2557_v45 = vsel %vm13155_vm0, %v10153_v32, 0  ;;  %vm13158_vm0 = vmmov %vm13149_vm2 }
 0x2b8   :  { %9227 = vmatpush3.bf16.msra.mxu1 %v11198_v57  ;;  %9202 = vmatprep.mubr.msk.bf16.mxu1 %vm13151_vm3, %v13100_v47 }
 0x2b9   :  { %v1833_v37 = vpop.permute.xlu0 %1832  ;;  %9228 = vmatprep.subr.bf16.mxu1 %v10152_v4 }
 0x2ba   :  { %v1721_v31 = vpop.permute.xlu1 %1720  ;;  %1851 = vst.msk [vmem:[#allocation3 + $0x40] sm:$0xff] %vm1448_vm1, %v1833_v37  ;;  %v1861_v46 = vld [vmem:[#allocation3 + $0x28] sm:$0xff] }
 0x2bb   :  { %1738 = vst.msk [vmem:[#allocation3 + $0x58] sm:$0xff] %vm13153_vm14, %v1721_v31 }
 0x2bc   :  { %9229 = vmatpush3.bf16.msra.mxu1 %v10152_v4 }
 0x2bd   :  { %v1778_v41 = vpop.permute.xlu0 %1777  ;;  %10103 = vmatprep.subr.msk.bf16.mxu1 %vm13154_vm15, %v10153_v32  ;;  %vm13157_vm15 = vmmov %vm13153_vm14 }
 0x2be   :  { %v1835_v43 = vpop.permute.xlu1 %1834  ;;  %1795 = vst.msk [vmem:[#allocation3 + $0x58] sm:$0xff] %vm13149_vm2, %v1778_v41  ;;  %vm13160_vm2 = vmmov %vm13158_vm0 }
 0x2bf   :  { %1852 = vst.msk [vmem:[#allocation3 + $0x58] sm:$0xff] %vm1448_vm1, %v1835_v43  ;;  %9203 = vmatmul.mubr.bf16.gmra.mrb[60].mxu1 %v1861_v46 }
 0x2c0   :  { %9206 = vmatprep.mubr.msk.bf16.mxu1 %vm13151_vm3, %v13100_v47  ;;  %9231 = vmatpush3.bf16.msra.mxu1 %v2557_v45 }
 0x2c1   :  { %v1723_v49 = vpop.permute.xlu0 %1722  ;;  %v1864_v60 = vld [vmem:[#allocation3 + $0x40] sm:$0xff] }
 0x2c2   :  { %v1780_v50 = vpop.permute.xlu1 %1779  ;;  %1739 = vst.msk [vmem:[#allocation3 + $0x70] sm:$0xff] %vm13153_vm14, %v1723_v49 }
 0x2c3   :  { %1796 = vst.msk [vmem:[#allocation3 + $0x70] sm:$0xff] %vm13156_vm13, %v1780_v50  ;;  %vm13159_vm13 = vmmov %vm13153_vm14  ;;  %vm13161_vm14 = vcmask 293888  }
 0x2c5   :  { %v1837_v53 = vpop.permute.xlu0 %1836 }
 0x2c6   :  { %v1725_v54 = vpop.permute.xlu1 %1724  ;;  %1853 = vst.msk [vmem:[#allocation3 + $0x70] sm:$0xff] %vm1448_vm1, %v1837_v53  ;;  %v1867_v62 = vld [vmem:[#allocation3 + $0x58] sm:$0xff] }
 0x2c7   :  { %1740 = vst.msk [vmem:[#allocation3 + $0x88] sm:$0xff] %vm13157_vm15, %v1725_v54  ;;  %9207 = vmatmul.mubr.bf16.gmra.mrb[64].mxu1 %v1864_v60  ;;  %vm13162_vm15 = vmmov %vm13161_vm14 }
 0x2c8   :  { %9210 = vmatprep.mubr.msk.bf16.mxu1 %vm13151_vm3, %v13100_v47 }
 0x2c9   :  { %v1782_v57 = vpop.permute.xlu0 %1781 }
 0x2ca   :  { %v1839_v58 = vpop.permute.xlu1 %1838  ;;  %1797 = vst.msk [vmem:[#allocation3 + $0x88] sm:$0xff] %vm13158_vm0, %v1782_v57  ;;  %vm13163_vm0 = vmmov %vm13161_vm14 }
 0x2cb   :  { %1854 = vst.msk [vmem:[#allocation3 + $0x88] sm:$0xff] %vm1448_vm1, %v1839_v58 }
 0x2cd   :  { %v1727_v23 = vpop.permute.xlu0 %1726  ;;  %v1870_v15 = vld [vmem:[#allocation3 + $0x70] sm:$0xff] }
 0x2ce   :  { %v1784_v61 = vpop.permute.xlu1 %1783  ;;  %1741 = vst.msk [vmem:[#allocation3 + $0xa0] sm:$0xff] %vm13159_vm13, %v1727_v23  ;;  %vm13164_vm13 = vmmov %vm13163_vm0 }
 0x2cf   :  { %1798 = vst.msk [vmem:[#allocation3 + $0xa0] sm:$0xff] %vm13160_vm2, %v1784_v61  ;;  %9211 = vmatmul.mubr.bf16.gmra.mrb[68].mxu1 %v1867_v62  ;;  %vm13165_vm2 = vmmov %vm13163_vm0 }
 0x2d0   :  { %9214 = vmatprep.mubr.msk.bf16.mxu1 %vm13151_vm3, %v13100_v47 }
 0x2d1   :  { %v1841_v1 = vpop.permute.xlu0 %1840 }
 0x2d2   :  { %1855 = vst.msk [vmem:[#allocation3 + $0xa0] sm:$0xff] %vm1448_vm1, %v1841_v1  ;;  %v1873_v42 = vld [vmem:[#allocation3 + $0x88] sm:$0xff] }
 0x2d7   :  { %9215 = vmatmul.mubr.bf16.gmra.mrb[72].mxu1 %v1870_v15 }
 0x2d8   :  { %9218 = vmatprep.mubr.msk.bf16.mxu1 %vm13151_vm3, %v13100_v47 }
 0x2d9   :  { %v1876_v2 = vld [vmem:[#allocation3 + $0xa0] sm:$0xff] }
 0x2df   :  { %9219 = vmatmul.mubr.bf16.gmra.mrb[76].mxu1 %v1873_v42 }
 0x2e0   :  { %9222 = vmatprep.mubr.msk.bf16.mxu1 %vm13151_vm3, %v13100_v47 }
 0x2e7   :  { %9223 = vmatmul.mubr.bf16.gmra.mrb[80].mxu1 %v1876_v2 }
 0x2e8   :  { %9232 = vmatprep.mubr.msk.bf16.mxu1 %vm13161_vm14, %v10154_v16  ;;  %vm13166_vm14 = vmmov %vm13163_vm0 }
 0x2ef   :  { %9233 = vmatmul.mubr.msk.bf16.vlgmr.msra.gmra.mrb[84].mxu1 %vm13162_vm15, %v10155_v36  ;;  %vm13167_vm15 = vmmov %vm13163_vm0 }
 0x2f0   :  { %9236 = vmatprep.mubr.msk.bf16.mxu1 %vm13163_vm0, %v10156_v48 }
 0x2f7   :  { %9237 = vmatmul.mubr.msk.bf16.gmra.mrb[88].mxu1 %vm13164_vm13, %v10157_v7  ;;  %vm13168_vm13 = vmmov %vm13163_vm0 }
 0x2f8   :  { %9240 = vmatprep.mubr.msk.bf16.mxu1 %vm13165_vm2, %v10158_v6  ;;  %vm13169_vm2 = vmmov %vm13163_vm0 }
 0x2ff   :  { %9241 = vmatmul.mubr.msk.bf16.gmra.mrb[92].mxu1 %vm13166_vm14, %v10159_v9  ;;  %vm13170_vm14 = vmmov %vm13163_vm0 }
 0x300   :  { %9244 = vmatprep.mubr.msk.bf16.mxu1 %vm13167_vm15, %v10160_v10  ;;  %vm13171_vm15 = vmmov %vm13163_vm0 }
 0x307   :  { %9245 = vmatmul.mubr.msk.bf16.gmra.mrb[96].mxu1 %vm13163_vm0, %v10161_v51 }
 0x308   :  { %9248 = vmatprep.mubr.msk.bf16.mxu1 %vm13168_vm13, %v10162_v0  ;;  %vm13172_vm13 = vmmov %vm13163_vm0 }
 0x30f   :  { %9249 = vmatmul.mubr.msk.bf16.gmra.mrb[100].mxu1 %vm13169_vm2, %v10163_v52  ;;  %vm13178_vm2 = vcmask 261120  }
 0x310   :  { %9252 = vmatprep.mubr.msk.bf16.mxu1 %vm13170_vm14, %v10164_v14  ;;  %vm13179_vm14 = vmmov %vm13178_vm2 }
 0x317   :  { %9253 = vmatmul.mubr.msk.bf16.gmra.mrb[104].mxu1 %vm13171_vm15, %v10165_v17  ;;  %vm13180_vm15 = vmmov %vm13178_vm2 }
 0x318   :  { %9256 = vmatprep.mubr.msk.bf16.mxu1 %vm13163_vm0, %v10166_v27  ;;  %vm13181_vm0 = vmmov %vm13178_vm2 }
 0x31f   :  { %9257 = vmatmul.mubr.msk.bf16.gmra.mrb[108].mxu1 %vm13172_vm13, %v10167_v18  ;;  %vm13184_vm13 = vmmov %vm13181_vm0 }
 0x33a   :  { %v8747_v21 = vpop.f32.mrb[28].mxu1 }
 0x33b   :  { %v8748_v25 = vpop.f32.mrb[29].mxu1 }
 0x33c   :  { %v8749_v29 = vadd.f32 %v8748_v25, %v8747_v21  ;;  %v8750_v19 = vpop.f32.mrb[30].mxu1 }
 0x33d   :  { %v8751_v20 = vpop.f32.mrb[31].mxu1 }
 0x33e   :  { %v8752_v30 = vadd.f32 %v8751_v20, %v8750_v19 }
 0x346   :  { %v8753_v33 = vpop.f32.mrb[32].mxu1 }
 0x347   :  { %v8754_v11 = vpop.f32.mrb[33].mxu1 }
 0x348   :  { %v8755_v44 = vadd.f32 %v8754_v11, %v8753_v33  ;;  %v8756_v12 = vpop.f32.mrb[34].mxu1 }
 0x349   :  { %v8757_v56 = vpop.f32.mrb[35].mxu1 }
 0x34a   :  { %v8758_v34 = vadd.f32 %v8757_v56, %v8756_v12 }
 0x352   :  { %v8759_v3 = vpop.f32.mrb[36].mxu1 }
 0x353   :  { %v8760_v4 = vpop.f32.mrb[37].mxu1 }
 0x354   :  { %v8761_v37 = vadd.f32 %v8760_v4, %v8759_v3  ;;  %v8762_v31 = vpop.f32.mrb[38].mxu1 }
 0x355   :  { %v8763_v32 = vpop.f32.mrb[39].mxu1 }
 0x356   :  { %v8764_v41 = vadd.f32 %v8763_v32, %v8762_v31 }
 0x35e   :  { %v8765_v43 = vpop.f32.mrb[40].mxu1 }
 0x35f   :  { %v8766_v45 = vpop.f32.mrb[41].mxu1 }
 0x360   :  { %v8767_v46 = vadd.f32 %v8766_v45, %v8765_v43  ;;  %v8768_v49 = vpop.f32.mrb[42].mxu1 }
 0x361   :  { %v8769_v50 = vpop.f32.mrb[43].mxu1 }
 0x362   :  { %v8770_v53 = vadd.f32 %v8769_v50, %v8768_v49 }
 0x36a   :  { %v8771_v54 = vpop.f32.mrb[44].mxu1 }
 0x36b   :  { %v8772_v60 = vpop.f32.mrb[45].mxu1 }
 0x36c   :  { %v8773_v57 = vadd.f32 %v8772_v60, %v8771_v54  ;;  %v8774_v58 = vpop.f32.mrb[46].mxu1 }
 0x36d   :  { %v8775_v23 = vpop.f32.mrb[47].mxu1 }
 0x36e   :  { %v8776_v61 = vadd.f32 %v8775_v23, %v8774_v58 }
 0x376   :  { %v8777_v62 = vpop.f32.mrb[48].mxu1 }
 0x377   :  { %v8778_v1 = vpop.f32.mrb[49].mxu1 }
 0x378   :  { %v8779_v15 = vadd.f32 %v8778_v1, %v8777_v62  ;;  %v8780_v42 = vpop.f32.mrb[50].mxu1 }
 0x379   :  { %v8781_v16 = vpop.f32.mrb[51].mxu1 }
 0x37a   :  { %v8782_v2 = vadd.f32 %v8781_v16, %v8780_v42 }
 0x382   :  { %v8783_v36 = vpop.f32.mrb[52].mxu1 }
 0x383   :  { %v8784_v48 = vpop.f32.mrb[53].mxu1 }
 0x384   :  { %v8785_v7 = vadd.f32 %v8784_v48, %v8783_v36  ;;  %v8786_v6 = vpop.f32.mrb[54].mxu1 }
 0x385   :  { %v8787_v9 = vpop.f32.mrb[55].mxu1 }
 0x386   :  { %v8788_v10 = vadd.f32 %v8787_v9, %v8786_v6 }
 0x38a   :  { %v2192_v51 = vpop.f32.mrb[56].mxu1 }
 0x38b   :  { %v11321_v0 = vadd.f32 %v8749_v29, %v2192_v51  ;;  %v9200_v52 = vpop.f32.mrb[57].mxu1 }
 0x38c   :  { %v2195_v14 = vpop.f32.mrb[58].mxu1 }
 0x38d   :  { %13173 = vst [vmem:[#allocation8_spill] sm:$0xff] %v11321_v0  ;;  %v11323_v17 = vadd.f32 %v8752_v30, %v2195_v14  ;;  %v9201_v27 = vpop.f32.mrb[59].mxu1 }
 0x38f   :  { %13174 = vst [vmem:[#allocation9_spill] sm:$0xff] %v11323_v17 }
 0x392   :  { %v2200_v18 = vpop.f32.mrb[60].mxu1 }
 0x393   :  { %v11325_v21 = vadd.f32 %v8755_v44, %v2200_v18  ;;  %v9204_v25 = vpop.f32.mrb[61].mxu1 }
 0x394   :  { %v2203_v19 = vpop.f32.mrb[62].mxu1 }
 0x395   :  { %v11327_v20 = vadd.f32 %v8758_v34, %v2203_v19  ;;  %v9205_v33 = vpop.f32.mrb[63].mxu1 }
 0x39a   :  { %v2208_v11 = vpop.f32.mrb[64].mxu1 }
 0x39b   :  { %v11329_v12 = vadd.f32 %v8761_v37, %v2208_v11  ;;  %v9208_v56 = vpop.f32.mrb[65].mxu1 }
 0x39c   :  { %v2211_v3 = vpop.f32.mrb[66].mxu1 }
 0x39d   :  { %v11331_v29 = vadd.f32 %v8764_v41, %v2211_v3  ;;  %v9209_v4 = vpop.f32.mrb[67].mxu1 }
 0x3a2   :  { %v2216_v31 = vpop.f32.mrb[68].mxu1 }
 0x3a3   :  { %v11333_v30 = vadd.f32 %v8767_v46, %v2216_v31  ;;  %v9212_v32 = vpop.f32.mrb[69].mxu1 }
 0x3a4   :  { %v2219_v43 = vpop.f32.mrb[70].mxu1 }
 0x3a5   :  { %v11335_v44 = vadd.f32 %v8770_v53, %v2219_v43  ;;  %v9213_v45 = vpop.f32.mrb[71].mxu1 }
 0x3aa   :  { %v2224_v49 = vpop.f32.mrb[72].mxu1 }
 0x3ab   :  { %v11337_v34 = vadd.f32 %v8773_v57, %v2224_v49  ;;  %v9216_v50 = vpop.f32.mrb[73].mxu1 }
 0x3ac   :  { %v2227_v54 = vpop.f32.mrb[74].mxu1 }
 0x3ad   :  { %v11339_v37 = vadd.f32 %v8776_v61, %v2227_v54  ;;  %v9217_v60 = vpop.f32.mrb[75].mxu1 }
 0x3b2   :  { %v2232_v58 = vpop.f32.mrb[76].mxu1 }
 0x3b3   :  { %v11341_v41 = vadd.f32 %v8779_v15, %v2232_v58  ;;  %v9220_v23 = vpop.f32.mrb[77].mxu1 }
 0x3b4   :  { %v2235_v62 = vpop.f32.mrb[78].mxu1 }
 0x3b5   :  { %v11343_v46 = vadd.f32 %v8782_v2, %v2235_v62  ;;  %v9221_v1 = vpop.f32.mrb[79].mxu1 }
 0x3b7   :  { %13175 = vst [vmem:[#allocation10_spill] sm:$0xff] %v11343_v46 }
 0x3ba   :  { %v2240_v42 = vpop.f32.mrb[80].mxu1 }
 0x3bb   :  { %v11345_v53 = vadd.f32 %v8785_v7, %v2240_v42  ;;  %v9224_v16 = vpop.f32.mrb[81].mxu1 }
 0x3bc   :  { %v2243_v36 = vpop.f32.mrb[82].mxu1 }
 0x3bd   :  { %13176 = vst [vmem:[#allocation11_spill] sm:$0xff] %v11345_v53  ;;  %v11347_v57 = vadd.f32 %v8788_v10, %v2243_v36  ;;  %v9225_v48 = vpop.f32.mrb[83].mxu1  ;;  %v10174_v53 = vld [vmem:[%s13081_s3 + $0x58] sm:$0xff]  }
 0x3bf   :  { %13177 = vst [vmem:[#allocation12_spill] sm:$0xff] %v11347_v57  ;;  %v10173_v57 = vld [vmem:[%s13081_s3 + $0x10] sm:$0xff]  }
 0x3c2   :  { %v9234_v6 = vpop.f32.mrb[84].mxu1 }
 0x3c3   :  { %2736 = vrot.lane.b32.xlu0 %v9234_v6, %s10420_s22  ;;  %v2593_v61 = vpop.f32.mrb[85].mxu1 }
 0x3c4   :  { %2732 = vrot.lane.b32.xlu1 %v2593_v61, %s10420_s22  ;;  %v9235_v15 = vpop.f32.mrb[86].mxu1 }
 0x3c5   :  { %v2596_v9 = vpop.f32.mrb[87].mxu1 }
 0x3c7   :  { %2738 = vrot.lane.b32.xlu0 %v9235_v15, %s10420_s22 }
 0x3c8   :  { %2734 = vrot.lane.b32.xlu1 %v2596_v9, %s10420_s22 }
 0x3ca   :  { %v9238_v2 = vpop.f32.mrb[88].mxu1 }
 0x3cb   :  { %2744 = vrot.lane.b32.xlu0 %v9238_v2, %s10420_s22  ;;  %v2609_v7 = vpop.f32.mrb[89].mxu1 }
 0x3cc   :  { %2740 = vrot.lane.b32.xlu1 %v2609_v7, %s10420_s22  ;;  %v11355_v10 = vpop.f32.mrb[90].mxu1 }
 0x3cd   :  { %v2612_v51 = vpop.f32.mrb[91].mxu1 }
 0x3cf   :  { %2742 = vrot.lane.b32.xlu0 %v2612_v51, %s10420_s22 }
 0x3d0   :  { %2746 = vrot.lane.b32.xlu1 %v11355_v10, %s10420_s22 }
 0x3d2   :  { %v11360_v52 = vpop.f32.mrb[92].mxu1 }
 0x3d3   :  { %2752 = vrot.lane.b32.xlu0 %v11360_v52, %s10420_s22  ;;  %v11364_v14 = vpop.f32.mrb[93].mxu1 }
 0x3d4   :  { %2748 = vrot.lane.b32.xlu1 %v11364_v14, %s10420_s22  ;;  %v11368_v27 = vpop.f32.mrb[94].mxu1 }
 0x3d5   :  { %v11370_v18 = vpop.f32.mrb[95].mxu1 }
 0x3d7   :  { %2750 = vrot.lane.b32.xlu0 %v11370_v18, %s10420_s22 }
 0x3d8   :  { %2754 = vrot.lane.b32.xlu1 %v11368_v27, %s10420_s22 }
 0x3da   :  { %v11376_v25 = vpop.f32.mrb[96].mxu1 }
 0x3db   :  { %2760 = vrot.lane.b32.xlu0 %v11376_v25, %s10420_s22  ;;  %v11380_v19 = vpop.f32.mrb[97].mxu1 }
 0x3dc   :  { %2756 = vrot.lane.b32.xlu1 %v11380_v19, %s10420_s22  ;;  %v11384_v33 = vpop.f32.mrb[98].mxu1 }
 0x3dd   :  { %v11386_v11 = vpop.f32.mrb[99].mxu1 }
 0x3df   :  { %2758 = vrot.lane.b32.xlu0 %v11386_v11, %s10420_s22 }
 0x3e0   :  { %2762 = vrot.lane.b32.xlu1 %v11384_v33, %s10420_s22 }
 0x3e2   :  { %v11392_v56 = vpop.f32.mrb[100].mxu1 }
 0x3e3   :  { %2768 = vrot.lane.b32.xlu0 %v11392_v56, %s10420_s22  ;;  %v11396_v3 = vpop.f32.mrb[101].mxu1 }
 0x3e4   :  { %2764 = vrot.lane.b32.xlu1 %v11396_v3, %s10420_s22  ;;  %v11400_v4 = vpop.f32.mrb[102].mxu1 }
 0x3e5   :  { %v11402_v31 = vpop.f32.mrb[103].mxu1 }
 0x3e7   :  { %2766 = vrot.lane.b32.xlu0 %v11402_v31, %s10420_s22 }
 0x3e8   :  { %2770 = vrot.lane.b32.xlu1 %v11400_v4, %s10420_s22 }
 0x3ea   :  { %v11408_v32 = vpop.f32.mrb[104].mxu1 }
 0x3eb   :  { %2776 = vrot.lane.b32.xlu0 %v11408_v32, %s10420_s22  ;;  %v11412_v43 = vpop.f32.mrb[105].mxu1 }
 0x3ec   :  { %2772 = vrot.lane.b32.xlu1 %v11412_v43, %s10420_s22  ;;  %v11416_v45 = vpop.f32.mrb[106].mxu1 }
 0x3ed   :  { %v11418_v49 = vpop.f32.mrb[107].mxu1 }
 0x3ef   :  { %2774 = vrot.lane.b32.xlu0 %v11418_v49, %s10420_s22 }
 0x3f0   :  { %2778 = vrot.lane.b32.xlu1 %v11416_v45, %s10420_s22 }
 0x3f2   :  { %v11424_v50 = vpop.f32.mrb[108].mxu1 }
 0x3f3   :  { %2784 = vrot.lane.b32.xlu0 %v11424_v50, %s10420_s22  ;;  %v11428_v54 = vpop.f32.mrb[109].mxu1 }
 0x3f4   :  { %2780 = vrot.lane.b32.xlu1 %v11428_v54, %s10420_s22  ;;  %v11432_v60 = vpop.f32.mrb[110].mxu1 }
 0x3f5   :  { %v11434_v58 = vpop.f32.mrb[111].mxu1 }
 0x3f7   :  { %2782 = vrot.lane.b32.xlu0 %v11434_v58, %s10420_s22 }
 0x3f8   :  { %2786 = vrot.lane.b32.xlu1 %v11432_v60, %s10420_s22 }
 0x435   :  { %v2737_v23 = vpop.permute.xlu0 %2736 }
 0x436   :  { %v11440_v62 = vmax.f32 %v9234_v6, %v2737_v23  ;;  %v2733_v1 = vpop.permute.xlu1 %2732 }
 0x437   :  { %v11442_v42 = vmax.f32 %v2593_v61, %v2733_v1 }
 0x438   :  { %2876 = vrot.lane.b32.xlu0 %v11440_v62, %s10422_s23 }
 0x439   :  { %v2739_v16 = vpop.permute.xlu0 %2738  ;;  %2872 = vrot.lane.b32.xlu1 %v11442_v42, %s10422_s23 }
 0x43a   :  { %v11448_v36 = vmax.f32 %v9235_v15, %v2739_v16  ;;  %v2735_v48 = vpop.permute.xlu1 %2734 }
 0x43b   :  { %v11450_v47 = vmax.f32 %v2596_v9, %v2735_v48 }
 0x43c   :  { %2878 = vrot.lane.b32.xlu0 %v11448_v36, %s10422_s23 }
 0x43d   :  { %v2745_v6 = vpop.permute.xlu0 %2744  ;;  %2874 = vrot.lane.b32.xlu1 %v11450_v47, %s10422_s23 }
 0x43e   :  { %v11456_v61 = vmax.f32 %v9238_v2, %v2745_v6  ;;  %v2741_v23 = vpop.permute.xlu1 %2740 }
 0x43f   :  { %v11458_v1 = vmax.f32 %v2609_v7, %v2741_v23 }
 0x440   :  { %2884 = vrot.lane.b32.xlu0 %v11456_v61, %s10422_s23 }
 0x441   :  { %v2743_v15 = vpop.permute.xlu0 %2742  ;;  %2880 = vrot.lane.b32.xlu1 %v11458_v1, %s10422_s23 }
 0x442   :  { %v11464_v9 = vmax.f32 %v2612_v51, %v2743_v15  ;;  %v2747_v16 = vpop.permute.xlu1 %2746 }
 0x443   :  { %v11467_v48 = vmax.f32 %v11355_v10, %v2747_v16 }
 0x444   :  { %2882 = vrot.lane.b32.xlu0 %v11464_v9, %s10422_s23 }
 0x445   :  { %v2753_v2 = vpop.permute.xlu0 %2752  ;;  %2886 = vrot.lane.b32.xlu1 %v11467_v48, %s10422_s23 }
 0x446   :  { %v11474_v7 = vmax.f32 %v11360_v52, %v2753_v2  ;;  %v2749_v6 = vpop.permute.xlu1 %2748 }
 0x447   :  { %v11477_v23 = vmax.f32 %v11364_v14, %v2749_v6 }
 0x448   :  { %2892 = vrot.lane.b32.xlu0 %v11474_v7, %s10422_s23 }
 0x449   :  { %v2751_v51 = vpop.permute.xlu0 %2750  ;;  %2888 = vrot.lane.b32.xlu1 %v11477_v23, %s10422_s23 }
 0x44a   :  { %v11484_v10 = vmax.f32 %v11370_v18, %v2751_v51  ;;  %v2755_v15 = vpop.permute.xlu1 %2754 }
 0x44b   :  { %v11487_v16 = vmax.f32 %v11368_v27, %v2755_v15 }
 0x44c   :  { %2890 = vrot.lane.b32.xlu0 %v11484_v10, %s10422_s23 }
 0x44d   :  { %v2761_v52 = vpop.permute.xlu0 %2760  ;;  %2894 = vrot.lane.b32.xlu1 %v11487_v16, %s10422_s23 }
 0x44e   :  { %v11494_v14 = vmax.f32 %v11376_v25, %v2761_v52  ;;  %v2757_v2 = vpop.permute.xlu1 %2756 }
 0x44f   :  { %v11497_v6 = vmax.f32 %v11380_v19, %v2757_v2 }
 0x450   :  { %2900 = vrot.lane.b32.xlu0 %v11494_v14, %s10422_s23 }
 0x451   :  { %v2759_v18 = vpop.permute.xlu0 %2758  ;;  %2896 = vrot.lane.b32.xlu1 %v11497_v6, %s10422_s23 }
 0x452   :  { %v11504_v27 = vmax.f32 %v11386_v11, %v2759_v18  ;;  %v2763_v51 = vpop.permute.xlu1 %2762 }
 0x453   :  { %v11507_v15 = vmax.f32 %v11384_v33, %v2763_v51 }
 0x454   :  { %2898 = vrot.lane.b32.xlu0 %v11504_v27, %s10422_s23 }
 0x455   :  { %v2769_v25 = vpop.permute.xlu0 %2768  ;;  %2902 = vrot.lane.b32.xlu1 %v11507_v15, %s10422_s23 }
 0x456   :  { %v11514_v19 = vmax.f32 %v11392_v56, %v2769_v25  ;;  %v2765_v52 = vpop.permute.xlu1 %2764 }
 0x457   :  { %v11517_v2 = vmax.f32 %v11396_v3, %v2765_v52 }
 0x458   :  { %2908 = vrot.lane.b32.xlu0 %v11514_v19, %s10422_s23 }
 0x459   :  { %v2767_v11 = vpop.permute.xlu0 %2766  ;;  %2904 = vrot.lane.b32.xlu1 %v11517_v2, %s10422_s23 }
 0x45a   :  { %v11524_v33 = vmax.f32 %v11402_v31, %v2767_v11  ;;  %v2771_v18 = vpop.permute.xlu1 %2770 }
 0x45b   :  { %v11527_v51 = vmax.f32 %v11400_v4, %v2771_v18 }
 0x45c   :  { %2906 = vrot.lane.b32.xlu0 %v11524_v33, %s10422_s23 }
 0x45d   :  { %v2777_v56 = vpop.permute.xlu0 %2776  ;;  %2910 = vrot.lane.b32.xlu1 %v11527_v51, %s10422_s23 }
 0x45e   :  { %v11534_v3 = vmax.f32 %v11408_v32, %v2777_v56  ;;  %v2773_v25 = vpop.permute.xlu1 %2772 }
 0x45f   :  { %v11537_v52 = vmax.f32 %v11412_v43, %v2773_v25 }
 0x460   :  { %2916 = vrot.lane.b32.xlu0 %v11534_v3, %s10422_s23 }
 0x461   :  { %v2775_v31 = vpop.permute.xlu0 %2774  ;;  %2912 = vrot.lane.b32.xlu1 %v11537_v52, %s10422_s23 }
 0x462   :  { %v11544_v4 = vmax.f32 %v11418_v49, %v2775_v31  ;;  %v2779_v11 = vpop.permute.xlu1 %2778 }
 0x463   :  { %v11547_v18 = vmax.f32 %v11416_v45, %v2779_v11 }
 0x464   :  { %2914 = vrot.lane.b32.xlu0 %v11544_v4, %s10422_s23 }
 0x465   :  { %v2785_v32 = vpop.permute.xlu0 %2784  ;;  %2918 = vrot.lane.b32.xlu1 %v11547_v18, %s10422_s23 }
 0x466   :  { %v11554_v43 = vmax.f32 %v11424_v50, %v2785_v32  ;;  %v2781_v56 = vpop.permute.xlu1 %2780  ;;  %v10168_v50 = vld [vmem:[%s13081_s3 + $0x40] sm:$0xff]   ;;  %v10172_v32 = vld [vmem:[%s13081_s3 + $0x50] sm:$0xff]  }
 0x467   :  { %v11557_v25 = vmax.f32 %v11428_v54, %v2781_v56  ;;  %v10169_v54 = vld [vmem:[%s13081_s3] sm:$0xff]   ;;  %8821 = vmatprep.subr.bf16.mxu1 %v10168_v50 }
 0x468   :  { %2924 = vrot.lane.b32.xlu0 %v11554_v43, %s10422_s23  ;;  %8822 = vmatpush3.bf16.msra.mxu1 %v10169_v54  ;;  %v11591_v56 = vld [vmem:[%s13080_s2] ss:$0 sm:$0xff] }
 0x469   :  { %2920 = vrot.lane.b32.xlu1 %v11557_v25, %s10422_s23  ;;  %v2783_v45 = vpop.permute.xlu0 %2782 }
 0x46a   :  { %v11564_v49 = vmax.f32 %v11434_v58, %v2783_v45  ;;  %v2787_v31 = vpop.permute.xlu1 %2786  ;;  %v10171_v58 = vld [vmem:[%s13081_s3 + $0x8] sm:$0xff]  }
 0x46b   :  { %v11567_v11 = vmax.f32 %v11432_v60, %v2787_v31  ;;  %v10170_v60 = vld [vmem:[%s13081_s3 + $0x48] sm:$0xff]  }
 0x46c   :  { %2922 = vrot.lane.b32.xlu0 %v11564_v49, %s10422_s23  ;;  %8823 = vmatprep.subr.bf16.mxu1 %v10170_v60 }
 0x46d   :  { %2926 = vrot.lane.b32.xlu1 %v11567_v11, %s10422_s23  ;;  %8824 = vmatpush3.bf16.msra.mxu1 %v10171_v58 }
 0x46e   :  { %8825 = vmatprep.subr.bf16.mxu1 %v10172_v32 }
 0x471   :  { %8826 = vmatpush3.bf16.msra.mxu1 %v10173_v57 }
 0x472   :  { %8827 = vmatprep.subr.bf16.mxu1 %v10174_v53 }
 0x4aa   :  { %v2877_v45 = vpop.permute.xlu0 %2876 }
 0x4ab   :  { %v2958_v31 = vmax.f32 %v11440_v62, %v2877_v45  ;;  %v2873_v50 = vpop.permute.xlu1 %2872 }
 0x4ac   :  { %v2956_v54 = vmax.f32 %v11442_v42, %v2873_v50 }
 0x4ad   :  { %v2993_v60 = vadd.f32 %v11591_v56, %v2958_v31  ;;  %v10175_v31 = vld [vmem:[%s13081_s3 + $0x18] sm:$0xff]  }
 0x4ae   :  { %v2991_v17 = vadd.f32 %v11591_v56, %v2956_v54  ;;  %v2879_v0 = vpop.permute.xlu0 %2878  ;;  %8828 = vmatpush3.bf16.msra.mxu1 %v10175_v31 }
 0x4af   :  { %v3021_v46 = vmax.f32 %v2993_v60, 0.0  ;;  %v2959_v62 = vmax.f32 %v11448_v36, %v2879_v0  ;;  %v2875_v58 = vpop.permute.xlu1 %2874 }
 0x4b0   :  { %v3019_v42 = vmax.f32 %v2991_v17, 0.0  ;;  %v2957_v32 = vmax.f32 %v11450_v47, %v2875_v58 }
 0x4b1   :  { %3084 = vst.msk [vmem:[#allocation2 + $0x131] sm:$0xff] %vm13178_vm2, %v3021_v46  ;;  %v2994_v45 = vadd.f32 %v11591_v56, %v2959_v62  ;;  %v10176_v46 = vld [vmem:[%s13081_s3 + $0x60] sm:$0xff]   ;;  %vm13185_vm2 = vmmov %vm13181_vm0 }
 0x4b2   :  { %3082 = vst.msk [vmem:[#allocation2 + $0x121] sm:$0xff] %vm13179_vm14, %v3019_v42  ;;  %v2992_v50 = vadd.f32 %v11591_v56, %v2957_v32  ;;  %v2885_v54 = vpop.permute.xlu0 %2884  ;;  %v10177_v62 = vld [vmem:[%s13081_s3 + $0x20] sm:$0xff]   ;;  %8829 = vmatprep.subr.bf16.mxu1 %v10176_v46  ;;  %v3153_v46 = vld [vmem:[#allocation2 + $0x111] ss:$2 sm:$0xff]  ;;  %vm13188_vm14 = vmmov %vm13181_vm0 }
 0x4b3   :  { %v3022_v0 = vmax.f32 %v2994_v45, 0.0  ;;  %v2962_v57 = vmax.f32 %v11456_v61, %v2885_v54  ;;  %v2881_v17 = vpop.permute.xlu1 %2880  ;;  %8830 = vmatpush3.bf16.msra.mxu1 %v10177_v62 }
 0x4b4   :  { %v3020_v47 = vmax.f32 %v2992_v50, 0.0  ;;  %v2960_v53 = vmax.f32 %v11458_v1, %v2881_v17  ;;  %v10178_v50 = vld [vmem:[%s13081_s3 + $0x68] sm:$0xff]  }
 0x4b5   :  { %v3050_v36 = vsel %vm10855_vm4, %v3022_v0, 0.0  ;;  %v2997_v60 = vadd.f32 %v11591_v56, %v2962_v57  ;;  %vm13182_vm4 = vmmov %vm13181_vm0  ;;  %8831 = vmatprep.subr.bf16.mxu1 %v10178_v50 }
 0x4b6   :  { %3085 = vst.msk [vmem:[#allocation2 + $0x139] sm:$0xff] %vm13180_vm15, %v3050_v36  ;;  %v3048_v61 = vsel %vm10871_vm5, %v3020_v47, 0.0  ;;  %v2995_v1 = vadd.f32 %v11591_v56, %v2960_v53  ;;  %v2883_v58 = vpop.permute.xlu0 %2882  ;;  %vm13183_vm5 = vmmov %vm13181_vm0  ;;  %v10180_v36 = vld [vmem:[%s13081_s3 + $0x70] sm:$0xff]  }
 0x4b7   :  { %3083 = vst.msk [vmem:[#allocation2 + $0x129] sm:$0xff] %vm13181_vm0, %v3048_v61  ;;  %v3025_v42 = vmax.f32 %v2997_v60, 0.0  ;;  %v2961_v13 = vmax.f32 %v11464_v9, %v2883_v58  ;;  %v2887_v32 = vpop.permute.xlu1 %2886  ;;  %8832 = vmatpush3.bf16.msra.mxu1 %v10179_v55  ;;  %v10181_v60 = vld [vmem:[%s13081_s3 + $0x30] sm:$0xff]   ;;  %vm13190_vm15 = vmmov %vm13181_vm0 }
 0x4b8   :  { %v3023_v45 = vmax.f32 %v2995_v1, 0.0  ;;  %v2963_v31 = vmax.f32 %v11467_v48, %v2887_v32  ;;  %8833 = vmatprep.subr.bf16.mxu1 %v10180_v36  ;;  %v3223_v55 = vld [vmem:[#allocation2 + $0x112] ss:$2 sm:$0xff] }
 0x4b9   :  { %3088 = vst.msk [vmem:[#allocation2 + $0x151] sm:$0xff] %vm13182_vm4, %v3025_v42  ;;  %v2996_v54 = vadd.f32 %v11591_v56, %v2961_v13  ;;  %vm13193_vm4 = vmmov %vm13181_vm0 }
 0x4ba   :  { %3086 = vst.msk [vmem:[#allocation2 + $0x141] sm:$0xff] %vm13183_vm5, %v3023_v45  ;;  %v2998_v9 = vadd.f32 %v11591_v56, %v2963_v31  ;;  %v2893_v0 = vpop.permute.xlu0 %2892  ;;  %vm13194_vm5 = vmmov %vm13181_vm0 }
 0x4bb   :  { %v3024_v57 = vmax.f32 %v2996_v54, 0.0  ;;  %v2966_v48 = vmax.f32 %v11474_v7, %v2893_v0  ;;  %v2889_v17 = vpop.permute.xlu1 %2888  ;;  %8834 = vmatpush3.bf16.msra.mxu1 %v10181_v60 }
 0x4bc   :  { %v3026_v47 = vmax.f32 %v2998_v9, 0.0  ;;  %v2964_v53 = vmax.f32 %v11477_v23, %v2889_v17 }
 0x4bd   :  { %v3052_v62 = vsel %vm10890_vm6, %v3024_v57, 0.0  ;;  %v3001_v61 = vadd.f32 %v11591_v56, %v2966_v48  ;;  %v3392_v7 = vld [vmem:[#allocation2 + $0x131] ss:$2 sm:$0xff]  ;;  %v3449_v54 = vld [vmem:[#allocation2 + $0x132] ss:$2 sm:$0xff]  ;;  %vm13186_vm6 = vmmov %vm13181_vm0 }
 0x4be   :  { %3087 = vst.msk [vmem:[#allocation2 + $0x149] sm:$0xff] %vm13184_vm13, %v3052_v62  ;;  %v3054_v23 = vsel %vm10909_vm7, %v3026_v47, 0.0  ;;  %v2999_v1 = vadd.f32 %v11591_v56, %v2964_v53  ;;  %v2891_v58 = vpop.permute.xlu0 %2890  ;;  %v3155_v42 = vld [vmem:[#allocation2 + $0x121] ss:$2 sm:$0xff]  ;;  %v3225_v0 = vld [vmem:[#allocation2 + $0x122] ss:$2 sm:$0xff]  ;;  %vm13187_vm7 = vmmov %vm13181_vm0 }
 0x4bf   :  { %v3391_v13 = vld [vmem:[#allocation2 + $0x121] ss:$2 sm:$0xff]  ;;  %3089 = vst.msk [vmem:[#allocation2 + $0x159] sm:$0xff] %vm13185_vm2, %v3054_v23  ;;  %v3029_v32 = vmax.f32 %v3001_v61, 0.0  ;;  %v2965_v59 = vmax.f32 %v11484_v10, %v2891_v58  ;;  %v2895_v45 = vpop.permute.xlu1 %2894  ;;  %v3180_v31 = vpack.c.bf16 %v3155_v42, %v3153_v46  ;;  %v3448_v57 = vld [vmem:[#allocation2 + $0x122] ss:$2 sm:$0xff]  ;;  %v3250_v62 = vpack.c.bf16 %v3225_v0, %v3223_v55  ;;  %vm13195_vm13 = vmmov %vm13181_vm0 }
 0x4c0   :  { %v3406_v50 = vpack.c.bf16 %v3392_v7, %v3391_v13  ;;  %v3027_v9 = vmax.f32 %v2999_v1, 0.0  ;;  %v2967_v63 = vmax.f32 %v11487_v16, %v2895_v45  ;;  %v10182_v48 = vld [vmem:[%s13081_s3 + $0x78] sm:$0xff]   ;;  %v3295_v16 = vld [vmem:[#allocation2 + $0x123] ss:$2 sm:$0xff]  ;;  %v3463_v61 = vpack.c.bf16 %v3449_v54, %v3448_v57  ;;  %v3362_v23 = vld [vmem:[#allocation2 + $0x120] ss:$2 sm:$0xff] }
 0x4c1   :  { %3092 = vst.msk [vmem:[#allocation2 + $0x171] sm:$0xff] %vm13186_vm6, %v3029_v32  ;;  %v3000_v17 = vadd.f32 %v11591_v56, %v2965_v59  ;;  %3194 = vrot.lane.b32.xlu0 %v3180_v31, %s10423_s14  ;;  %v3111_v53 = vld [vmem:[#allocation2 + $0x110] ss:$2 sm:$0xff]  ;;  %8835 = vmatprep.subr.bf16.mxu1 %v10182_v48  ;;  %v3506_v7 = vld [vmem:[#allocation2 + $0x133] ss:$2 sm:$0xff]  ;;  %vm13198_vm2 = vmmov %vm13181_vm0  ;;  %vm13199_vm6 = vnez %v13126_v24 }
 0x4c2   :  { %3420 = vrot.lane.b32.xlu1 %v3406_v50, %s10423_s14  ;;  %3090 = vst.msk [vmem:[#allocation2 + $0x161] sm:$0xff] %vm13187_vm7, %v3027_v9  ;;  %v3002_v10 = vadd.f32 %v11591_v56, %v2967_v63  ;;  %v2901_v47 = vpop.permute.xlu0 %2900  ;;  %v10183_v1 = vld [vmem:[%s13081_s3 + $0x38] sm:$0xff]   ;;  %v3113_v32 = vld [vmem:[#allocation2 + $0x120] ss:$2 sm:$0xff]  ;;  %v3505_v9 = vld [vmem:[#allocation2 + $0x123] ss:$2 sm:$0xff] }
 0x4c3   :  { %v3028_v46 = vmax.f32 %v3000_v17, 0.0  ;;  %v2970_v36 = vmax.f32 %v11494_v14, %v2901_v47  ;;  %v2897_v60 = vpop.permute.xlu1 %2896  ;;  %v3363_v13 = vld [vmem:[#allocation2 + $0x130] ss:$2 sm:$0xff]  ;;  %v3138_v31 = vpack.c.bf16 %v3113_v32, %v3111_v53  ;;  %v3293_v54 = vld [vmem:[#allocation2 + $0x113] ss:$2 sm:$0xff]  ;;  %8836 = vmatpush3.bf16.msra.mxu1 %v10183_v1  ;;  %v3520_v48 = vpack.c.bf16 %v3506_v7, %v3505_v9  ;;  %vm13200_vm7 = vmmov %vm13181_vm0 }
 0x4c4   :  { %v3030_v58 = vmax.f32 %v3002_v10, 0.0  ;;  %v2968_v42 = vmax.f32 %v11497_v6, %v2897_v60  ;;  %v3377_v14 = vpack.c.bf16 %v3363_v13, %v3362_v23  ;;  %v3320_v57 = vpack.c.bf16 %v3295_v16, %v3293_v54  ;;  %9260 = vmatprep.subr.bf16.mxu1 %v13191_v5  ;;  %v3157_v60 = vld [vmem:[#allocation2 + $0x131] ss:$2 sm:$0xff] }
 0x4c5   :  { %v3056_v59 = vsel %vm10929_vm8, %v3028_v46, 0.0  ;;  %v3005_v45 = vadd.f32 %v11591_v56, %v2970_v36  ;;  %3264 = vrot.lane.b32.xlu0 %v3250_v62, %s10422_s23  ;;  %vm13189_vm8 = vmmov %vm13181_vm0  ;;  %v3393_v17 = vld [vmem:[#allocation2 + $0x141] ss:$2 sm:$0xff]  ;;  %3145 = vst.msk [vmem:[#allocation3] sm:$0xff] %vm13181_vm0, %v3138_v31  ;;  %v3450_v1 = vld [vmem:[#allocation2 + $0x142] ss:$2 sm:$0xff] }
 0x4c6   :  { %3477 = vrot.lane.b32.xlu1 %v3463_v61, %s10422_s23  ;;  %3091 = vst.msk [vmem:[#allocation2 + $0x169] sm:$0xff] %vm13188_vm14, %v3056_v59  ;;  %v3058_v50 = vsel %vm10946_vm9, %v3030_v58, 0.0  ;;  %v3003_v6 = vadd.f32 %v11591_v56, %v2968_v42  ;;  %v2899_v55 = vpop.permute.xlu0 %2898  ;;  %v3394_v53 = vld [vmem:[#allocation2 + $0x151] ss:$2 sm:$0xff]  ;;  %v3159_v46 = vld [vmem:[#allocation2 + $0x141] ss:$2 sm:$0xff]  ;;  %vm13192_vm9 = vmmov %vm13181_vm0 }
 0x4c7   :  { %3093 = vst.msk [vmem:[#allocation2 + $0x179] sm:$0xff] %vm13189_vm8, %v3058_v50  ;;  %v3033_v40 = vmax.f32 %v3005_v45, 0.0  ;;  %v2969_v63 = vmax.f32 %v11504_v27, %v2899_v55  ;;  %v2903_v0 = vpop.permute.xlu1 %2902  ;;  %v3407_v7 = vpack.c.bf16 %v3394_v53, %v3393_v17  ;;  %v3181_v23 = vpack.c.bf16 %v3159_v46, %v3157_v60  ;;  %v3451_v13 = vld [vmem:[#allocation2 + $0x152] ss:$2 sm:$0xff]  ;;  %v3229_v32 = vld [vmem:[#allocation2 + $0x142] ss:$2 sm:$0xff]  ;;  %vm13202_vm14 = vmmov %vm13181_vm0 }
 0x4c8   :  { %3384 = vst.msk [vmem:[#allocation3 + $0x8] sm:$0xff] %vm13190_vm15, %v3377_v14  ;;  %v3031_v10 = vmax.f32 %v3003_v6, 0.0  ;;  %v2971_v47 = vmax.f32 %v11507_v15, %v2903_v0  ;;  %v3464_v55 = vpack.c.bf16 %v3451_v13, %v3450_v1  ;;  %v3299_v0 = vld [vmem:[#allocation2 + $0x143] ss:$2 sm:$0xff]  ;;  %v3297_v17 = vld [vmem:[#allocation2 + $0x133] ss:$2 sm:$0xff]  ;;  %vm13203_vm8 = vnez %v13128_v28  ;;  %vm13204_vm15 = vmmov %vm13181_vm0 }
 0x4c9   :  { %3096 = vst.msk [vmem:[#allocation2 + $0x191] sm:$0xff] %vm13192_vm9, %v3033_v40  ;;  %v3004_v36 = vadd.f32 %v11591_v56, %v2969_v63  ;;  %3334 = vrot.lane.b32.xlu0 %v3320_v57, %s10420_s22  ;;  %v3508_v63 = vld [vmem:[#allocation2 + $0x153] ss:$2 sm:$0xff]  ;;  %v3321_v46 = vpack.c.bf16 %v3299_v0, %v3297_v17  ;;  %vm13206_vm9 = vmmov %vm13198_vm2 }
 0x4ca   :  { %3534 = vrot.lane.b32.xlu1 %v3520_v48, %s10420_s22  ;;  %3094 = vst.msk [vmem:[#allocation2 + $0x181] sm:$0xff] %vm13193_vm4, %v3031_v10  ;;  %v3006_v27 = vadd.f32 %v11591_v56, %v2971_v47  ;;  %v2909_v16 = vpop.permute.xlu0 %2908  ;;  %v3507_v48 = vld [vmem:[#allocation2 + $0x143] ss:$2 sm:$0xff]  ;;  %vm13207_vm4 = vmmov %vm13198_vm2 }
 0x4cb   :  { %v3032_v62 = vmax.f32 %v3004_v36, 0.0  ;;  %v2974_v61 = vmax.f32 %v11514_v19, %v2909_v16  ;;  %v2905_v15 = vpop.permute.xlu1 %2904  ;;  %v3521_v53 = vpack.c.bf16 %v3508_v63, %v3507_v48  ;;  %v3301_v48 = vld [vmem:[#allocation2 + $0x153] ss:$2 sm:$0xff] }
 0x4cc   :  { %v3034_v58 = vmax.f32 %v3006_v27, 0.0  ;;  %v2972_v42 = vmax.f32 %v11517_v2, %v2905_v15  ;;  %v3227_v2 = vld [vmem:[#allocation2 + $0x132] ss:$2 sm:$0xff] }
 0x4cd   :  { %v3060_v59 = vsel %vm10953_vm10, %v3032_v62, 0.0  ;;  %v3009_v45 = vadd.f32 %v11591_v56, %v2974_v61  ;;  %3196 = vrot.lane.b32.xlu0 %v3181_v23, %s10423_s14  ;;  %v3251_v54 = vpack.c.bf16 %v3229_v32, %v3227_v2  ;;  %vm13196_vm10 = vmmov %vm13181_vm0  ;;  %v3395_v36 = vld [vmem:[#allocation2 + $0x161] ss:$2 sm:$0xff]  ;;  %v3452_v32 = vld [vmem:[#allocation2 + $0x162] ss:$2 sm:$0xff] }
 0x4ce   :  { %3422 = vrot.lane.b32.xlu1 %v3407_v7, %s10423_s14  ;;  %3095 = vst.msk [vmem:[#allocation2 + $0x189] sm:$0xff] %vm13194_vm5, %v3060_v59  ;;  %v3062_v19 = vsel %vm10982_vm11, %v3034_v58, 0.0  ;;  %v3007_v14 = vadd.f32 %v11591_v56, %v2972_v42  ;;  %v2907_v31 = vpop.permute.xlu0 %2906  ;;  %vm13197_vm11 = vmmov %vm13181_vm0  ;;  %v3396_v60 = vld [vmem:[#allocation2 + $0x171] ss:$2 sm:$0xff]  ;;  %v3163_v62 = vld [vmem:[#allocation2 + $0x161] ss:$2 sm:$0xff] }
 0x4cf   :  { %3097 = vst.msk [vmem:[#allocation2 + $0x199] sm:$0xff] %vm13195_vm13, %v3062_v19  ;;  %v3037_v50 = vmax.f32 %v3009_v45, 0.0  ;;  %v2973_v26 = vmax.f32 %v11524_v33, %v2907_v31  ;;  %v2911_v6 = vpop.permute.xlu1 %2910  ;;  %v3408_v42 = vpack.c.bf16 %v3396_v60, %v3395_v36  ;;  %v3453_v19 = vld [vmem:[#allocation2 + $0x172] ss:$2 sm:$0xff]  ;;  %v3303_v63 = vld [vmem:[#allocation2 + $0x163] ss:$2 sm:$0xff]  ;;  %vm13208_vm5 = vmmov %vm13198_vm2  ;;  %vm13209_vm13 = vnez %v13132_v35 }
 0x4d0   :  { %v3035_v9 = vmax.f32 %v3007_v14, 0.0  ;;  %v2975_v40 = vmax.f32 %v11527_v51, %v2911_v6  ;;  %v3233_v14 = vld [vmem:[#allocation2 + $0x162] ss:$2 sm:$0xff]  ;;  %v3231_v2 = vld [vmem:[#allocation2 + $0x152] ss:$2 sm:$0xff]  ;;  %v3465_v6 = vpack.c.bf16 %v3453_v19, %v3452_v32 }
 0x4d1   :  { %3100 = vst.msk [vmem:[#allocation2 + $0x1b1] sm:$0xff] %vm13196_vm10, %v3037_v50  ;;  %v3008_v8 = vadd.f32 %v11591_v56, %v2973_v26  ;;  %3266 = vrot.lane.b32.xlu0 %v3251_v54, %s10422_s23  ;;  %v3165_v60 = vld [vmem:[#allocation2 + $0x171] ss:$2 sm:$0xff]  ;;  %vm13210_vm10 = vmmov %vm13198_vm2  ;;  %v3364_v19 = vld [vmem:[#allocation2 + $0x140] ss:$2 sm:$0xff] }
 0x4d2   :  { %3479 = vrot.lane.b32.xlu1 %v3464_v55, %s10422_s23  ;;  %3098 = vst.msk [vmem:[#allocation2 + $0x1a1] sm:$0xff] %vm13197_vm11, %v3035_v9  ;;  %v3010_v33 = vadd.f32 %v11591_v56, %v2975_v40  ;;  %v2917_v57 = vpop.permute.xlu0 %2916  ;;  %v3252_v55 = vpack.c.bf16 %v3233_v14, %v3231_v2  ;;  %v3510_v40 = vld [vmem:[#allocation2 + $0x173] ss:$2 sm:$0xff]  ;;  %vm13211_vm11 = vnez %v13134_v38  ;;  %v3365_v38 = vld [vmem:[#allocation2 + $0x150] ss:$2 sm:$0xff] }
 0x4d3   :  { %v3036_v10 = vmax.f32 %v3008_v8, 0.0  ;;  %v2978_v51 = vmax.f32 %v11534_v3, %v2917_v57  ;;  %v2913_v47 = vpop.permute.xlu1 %2912  ;;  %v3305_v32 = vld [vmem:[#allocation2 + $0x173] ss:$2 sm:$0xff] }
 0x4d4   :  { %v3038_v27 = vmax.f32 %v3010_v33, 0.0  ;;  %v2976_v16 = vmax.f32 %v11537_v52, %v2913_v47  ;;  %v3161_v52 = vld [vmem:[#allocation2 + $0x151] ss:$2 sm:$0xff]  ;;  %v3322_v47 = vpack.c.bf16 %v3303_v63, %v3301_v48 }
 0x4d5   :  { %v3064_v61 = vsel %vm10989_vm12, %v3036_v10, 0.0  ;;  %v3013_v15 = vadd.f32 %v11591_v56, %v2978_v51  ;;  %3336 = vrot.lane.b32.xlu0 %v3321_v46, %s10420_s22  ;;  %v3182_v13 = vpack.c.bf16 %v3163_v62, %v3161_v52  ;;  %vm13201_vm12 = vmmov %vm13181_vm0  ;;  %vm13205_vm0 = vnez %v13130_v39  ;;  %v3167_v39 = vld [vmem:[#allocation2 + $0x181] ss:$2 sm:$0xff] }
 0x4d6   :  { %3536 = vrot.lane.b32.xlu1 %v3521_v53, %s10420_s22  ;;  %3099 = vst.msk [vmem:[#allocation2 + $0x1a9] sm:$0xff] %vm13198_vm2, %v3064_v61  ;;  %v3066_v3 = vsel %vm13199_vm6, %v3038_v27, 0.0  ;;  %v3011_v7 = vadd.f32 %v11591_v56, %v2976_v16  ;;  %v2915_v23 = vpop.permute.xlu0 %2914  ;;  %v3397_v53 = vld [vmem:[#allocation2 + $0x181] ss:$2 sm:$0xff]  ;;  %v3398_v27 = vld [vmem:[#allocation2 + $0x191] ss:$2 sm:$0xff]  ;;  %vm13212_vm6 = vmmov %vm13198_vm2 }
 0x4d7   :  { %3101 = vst.msk [vmem:[#allocation2 + $0x1b9] sm:$0xff] %vm13200_vm7, %v3066_v3  ;;  %v3041_v1 = vmax.f32 %v3013_v15, 0.0  ;;  %v2977_v22 = vmax.f32 %v11544_v4, %v2915_v23  ;;  %v2919_v58 = vpop.permute.xlu1 %2918  ;;  %v3409_v61 = vpack.c.bf16 %v3398_v27, %v3397_v53  ;;  %v3183_v15 = vpack.c.bf16 %v3167_v39, %v3165_v60  ;;  %v3454_v3 = vld [vmem:[#allocation2 + $0x182] ss:$2 sm:$0xff]  ;;  %v3511_v35 = vld [vmem:[#allocation2 + $0x183] ss:$2 sm:$0xff]  ;;  %vm13213_vm7 = vmmov %vm13198_vm2 }
 0x4d8   :  { %v3039_v59 = vmax.f32 %v3011_v7, 0.0  ;;  %v2979_v45 = vmax.f32 %v11547_v18, %v2919_v58  ;;  %v3455_v7 = vld [vmem:[#allocation2 + $0x192] ss:$2 sm:$0xff]  ;;  %v3237_v23 = vld [vmem:[#allocation2 + $0x182] ss:$2 sm:$0xff] }
 0x4d9   :  { %3104 = vst.msk [vmem:[#allocation2 + $0x1d1] sm:$0xff] %vm13201_vm12, %v3041_v1  ;;  %v3012_v24 = vadd.f32 %v11591_v56, %v2977_v22  ;;  %3198 = vrot.lane.b32.xlu0 %v3182_v13, %s10423_s14  ;;  %v3235_v1 = vld [vmem:[#allocation2 + $0x172] ss:$2 sm:$0xff]  ;;  %v3466_v22 = vpack.c.bf16 %v3455_v7, %v3454_v3  ;;  %v3307_v13 = vld [vmem:[#allocation2 + $0x183] ss:$2 sm:$0xff]  ;;  %vm13214_vm12 = vmmov %vm13198_vm2 }
 0x4da   :  { %3424 = vrot.lane.b32.xlu1 %v3408_v42, %s10423_s14  ;;  %3102 = vst.msk [vmem:[#allocation2 + $0x1c1] sm:$0xff] %vm13202_vm14, %v3039_v59  ;;  %v3014_v4 = vadd.f32 %v11591_v56, %v2979_v45  ;;  %v2925_v31 = vpop.permute.xlu0 %2924  ;;  %v3253_v58 = vpack.c.bf16 %v3237_v23, %v3235_v1  ;;  %v3512_v42 = vld [vmem:[#allocation2 + $0x193] ss:$2 sm:$0xff]  ;;  %v3369_v48 = vld [vmem:[#allocation2 + $0x190] ss:$2 sm:$0xff]  ;;  %vm13215_vm14 = vmmov %vm13198_vm2 }
 0x4db   :  { %v3040_v50 = vmax.f32 %v3012_v24, 0.0  ;;  %v2982_v26 = vmax.f32 %v11554_v43, %v2925_v31  ;;  %v2921_v18 = vpop.permute.xlu1 %2920  ;;  %v3523_v14 = vpack.c.bf16 %v3512_v42, %v3511_v35  ;;  %v3323_v24 = vpack.c.bf16 %v3307_v13, %v3305_v32  ;;  %v3117_v31 = vld [vmem:[#allocation2 + $0x140] ss:$2 sm:$0xff]  ;;  %v3309_v7 = vld [vmem:[#allocation2 + $0x193] ss:$2 sm:$0xff] }
 0x4dc   :  { %v3042_v54 = vmax.f32 %v3014_v4, 0.0  ;;  %v2980_v9 = vmax.f32 %v11557_v25, %v2921_v18  ;;  %v3509_v25 = vld [vmem:[#allocation2 + $0x163] ss:$2 sm:$0xff]  ;;  %v3115_v4 = vld [vmem:[#allocation2 + $0x130] ss:$2 sm:$0xff] }
 0x4dd   :  { %v3068_v0 = vsel %vm13203_vm8, %v3040_v50, 0.0  ;;  %v3017_v8 = vadd.f32 %v11591_v56, %v2982_v26  ;;  %3268 = vrot.lane.b32.xlu0 %v3252_v55, %s10422_s23  ;;  %v3522_v51 = vpack.c.bf16 %v3510_v40, %v3509_v25  ;;  %v3399_v59 = vld [vmem:[#allocation2 + $0x1a1] ss:$2 sm:$0xff]  ;;  %v3378_v50 = vpack.c.bf16 %v3365_v38, %v3364_v19  ;;  %v3366_v18 = vld [vmem:[#allocation2 + $0x160] ss:$2 sm:$0xff]  ;;  %vm13216_vm8 = vmmov %vm13198_vm2 }
 0x4de   :  { %3481 = vrot.lane.b32.xlu1 %v3465_v6, %s10422_s23  ;;  %3103 = vst.msk [vmem:[#allocation2 + $0x1c9] sm:$0xff] %vm13204_vm15, %v3068_v0  ;;  %v3070_v43 = vsel %vm13205_vm0, %v3042_v54, 0.0  ;;  %v3015_v33 = vadd.f32 %v11591_v56, %v2980_v9  ;;  %v2923_v57 = vpop.permute.xlu0 %2922  ;;  %v3171_v45 = vld [vmem:[#allocation2 + $0x1a1] ss:$2 sm:$0xff]  ;;  %v3400_v2 = vld [vmem:[#allocation2 + $0x1b1] ss:$2 sm:$0xff]  ;;  %v3139_v26 = vpack.c.bf16 %v3117_v31, %v3115_v4  ;;  %vm13217_vm15 = vmmov %vm13198_vm2 }
 0x4df   :  { %3105 = vst.msk [vmem:[#allocation2 + $0x1d9] sm:$0xff] %vm13206_vm9, %v3070_v43  ;;  %v3045_v28 = vmax.f32 %v3017_v8, 0.0  ;;  %v2981_v17 = vmax.f32 %v11564_v49, %v2923_v57  ;;  %v2927_v10 = vpop.permute.xlu1 %2926  ;;  %v3367_v6 = vld [vmem:[#allocation2 + $0x170] ss:$2 sm:$0xff]  ;;  %v3169_v54 = vld [vmem:[#allocation2 + $0x191] ss:$2 sm:$0xff]  ;;  %v3410_v40 = vpack.c.bf16 %v3400_v2, %v3399_v59  ;;  %vm13218_vm0 = vmmov %vm13198_vm2 }
 0x4e0   :  { %v3043_v46 = vmax.f32 %v3015_v33, 0.0  ;;  %v2983_v36 = vmax.f32 %v11567_v11, %v2927_v10  ;;  %v3379_v55 = vpack.c.bf16 %v3367_v6, %v3366_v18  ;;  %v3456_v9 = vld [vmem:[#allocation2 + $0x1a2] ss:$2 sm:$0xff]  ;;  %3385 = vst.msk [vmem:[#allocation3 + $0x20] sm:$0xff] %vm13212_vm6, %v3378_v50  ;;  %v3184_v63 = vpack.c.bf16 %v3171_v45, %v3169_v54  ;;  %v3457_v0 = vld [vmem:[#allocation2 + $0x1b2] ss:$2 sm:$0xff]  ;;  %vm13219_vm9 = vmmov %vm13218_vm0 }
 0x4e1   :  { %3108 = vst.msk [vmem:[#allocation2 + $0x1f1] sm:$0xff] %vm13207_vm4, %v3045_v28  ;;  %v3016_v16 = vadd.f32 %v11591_v56, %v2981_v17  ;;  %3338 = vrot.lane.b32.xlu0 %v3322_v47, %s10420_s22  ;;  %v3241_v8 = vld [vmem:[#allocation2 + $0x1a2] ss:$2 sm:$0xff]  ;;  %v3239_v33 = vld [vmem:[#allocation2 + $0x192] ss:$2 sm:$0xff]  ;;  %v3467_v39 = vpack.c.bf16 %v3457_v0, %v3456_v9  ;;  %vm13220_vm4 = vmmov %vm13218_vm0 }
 0x4e2   :  { %3538 = vrot.lane.b32.xlu1 %v3522_v51, %s10420_s22  ;;  %3106 = vst.msk [vmem:[#allocation2 + $0x1e1] sm:$0xff] %vm13208_vm5, %v3043_v46  ;;  %v3018_v49 = vadd.f32 %v11591_v56, %v2983_v36  ;;  %v3119_v43 = vld [vmem:[#allocation2 + $0x150] ss:$2 sm:$0xff]  ;;  %v3121_v57 = vld [vmem:[#allocation2 + $0x160] ss:$2 sm:$0xff]  ;;  %vm13221_vm5 = vmmov %vm13218_vm0 }
 0x4e3   :  { %v3044_v62 = vmax.f32 %v3016_v16, 0.0  ;;  %3146 = vst.msk [vmem:[#allocation3 + $0x18] sm:$0xff] %vm13213_vm7, %v3139_v26  ;;  %v3368_v25 = vld [vmem:[#allocation2 + $0x180] ss:$2 sm:$0xff]  ;;  %v3140_v28 = vpack.c.bf16 %v3121_v57, %v3119_v43  ;;  %v3123_v10 = vld [vmem:[#allocation2 + $0x170] ss:$2 sm:$0xff]  ;;  %v3254_v16 = vpack.c.bf16 %v3241_v8, %v3239_v33  ;;  %vm13226_vm6 = vmmov %vm13218_vm0 }
 0x4e4   :  { %v3046_v11 = vmax.f32 %v3018_v49, 0.0  ;;  %3386 = vst.msk [vmem:[#allocation3 + $0x38] sm:$0xff] %vm13214_vm12, %v3379_v55  ;;  %v3380_v17 = vpack.c.bf16 %v3369_v48, %v3368_v25  ;;  %v3125_v51 = vld [vmem:[#allocation2 + $0x180] ss:$2 sm:$0xff]  ;;  %v3371_v46 = vld [vmem:[#allocation2 + $0x1b0] ss:$2 sm:$0xff]  ;;  %vm13227_vm7 = vmmov %vm13218_vm0 }
 0x4e5   :  { %v3072_v52 = vsel %vm13209_vm13, %v3044_v62, 0.0  ;;  %3200 = vrot.lane.b32.xlu0 %v3183_v15, %s10423_s14  ;;  %v3370_v47 = vld [vmem:[#allocation2 + $0x1a0] ss:$2 sm:$0xff]  ;;  %v3141_v53 = vpack.c.bf16 %v3125_v51, %v3123_v10  ;;  %v3127_v36 = vld [vmem:[#allocation2 + $0x190] ss:$2 sm:$0xff]  ;;  %3147 = vst.msk [vmem:[#allocation3 + $0x30] sm:$0xff] %vm13215_vm14, %v3140_v28  ;;  %vm13222_vm13 = vmmov %vm13218_vm0 }
 0x4e6   :  { %3426 = vrot.lane.b32.xlu1 %v3409_v61, %s10423_s14  ;;  %3107 = vst.msk [vmem:[#allocation2 + $0x1e9] sm:$0xff] %vm13210_vm10, %v3072_v52  ;;  %v3074_v56 = vsel %vm13211_vm11, %v3046_v11, 0.0  ;;  %v3129_v27 = vld [vmem:[#allocation2 + $0x1a0] ss:$2 sm:$0xff]  ;;  %v3311_v49 = vld [vmem:[#allocation2 + $0x1a3] ss:$2 sm:$0xff]  ;;  %v3381_v60 = vpack.c.bf16 %v3371_v46, %v3370_v47  ;;  %vm13223_vm10 = vmmov %vm13218_vm0 }
 0x4e7   :  { %3109 = vst.msk [vmem:[#allocation2 + $0x1f9] sm:$0xff] %vm13198_vm2, %v3074_v56  ;;  %v3142_v62 = vpack.c.bf16 %v3129_v27, %v3127_v36  ;;  %v3372_v61 = vld [vmem:[#allocation2 + $0x1c0] ss:$2 sm:$0xff]  ;;  %v3373_v15 = vld [vmem:[#allocation2 + $0x1d0] ss:$2 sm:$0xff]  ;;  %vm13224_vm11 = vmmov %vm13218_vm0 }
 0x4e8   :  { %3387 = vst.msk [vmem:[#allocation3 + $0x50] sm:$0xff] %vm13216_vm8, %v3380_v17  ;;  %v3513_v3 = vld [vmem:[#allocation2 + $0x1a3] ss:$2 sm:$0xff]  ;;  %v3514_v11 = vld [vmem:[#allocation2 + $0x1b3] ss:$2 sm:$0xff]  ;;  %v3382_v23 = vpack.c.bf16 %v3373_v15, %v3372_v61  ;;  %vm13225_vm2 = vmmov %vm13218_vm0 }
 0x4e9   :  { %3270 = vrot.lane.b32.xlu0 %v3253_v58, %s10422_s23  ;;  %3148 = vst.msk [vmem:[#allocation3 + $0x48] sm:$0xff] %vm13217_vm15, %v3141_v53  ;;  %v3131_v52 = vld [vmem:[#allocation2 + $0x1b0] ss:$2 sm:$0xff]  ;;  %v3133_v56 = vld [vmem:[#allocation2 + $0x1c0] ss:$2 sm:$0xff]  ;;  %vm13228_vm12 = vmmov %vm13218_vm0  ;;  %vm13231_vm15 = vcmask 523520  }
 0x4ea   :  { %3483 = vrot.lane.b32.xlu1 %v3466_v22, %s10422_s23  ;;  %3388 = vst.msk [vmem:[#allocation3 + $0x68] sm:$0xff] %vm13218_vm0, %v3381_v60  ;;  %v3143_v1 = vpack.c.bf16 %v3133_v56, %v3131_v52  ;;  %v3135_v42 = vld [vmem:[#allocation2 + $0x1d0] ss:$2 sm:$0xff]  ;;  %v3401_v13 = vld [vmem:[#allocation2 + $0x1c1] ss:$2 sm:$0xff]  ;;  %vm13229_vm14 = vmmov %vm13218_vm0 }
 0x4eb   :  { %3149 = vst.msk [vmem:[#allocation3 + $0x60] sm:$0xff] %vm13219_vm9, %v3142_v62  ;;  %v3175_v35 = vld [vmem:[#allocation2 + $0x1c1] ss:$2 sm:$0xff]  ;;  %v3562_v45 = vld [vmem:[#allocation2 + $0x130] ss:$2 sm:$0xff]  ;;  %vm13230_vm8 = vmmov %vm13218_vm0  ;;  %vm13233_vm9 = vcmask 785920  }
 0x4ec   :  { %3389 = vst.msk [vmem:[#allocation3 + $0x80] sm:$0xff] %vm13220_vm4, %v3382_v23  ;;  %v3563_v19 = vld [vmem:[#allocation2 + $0x140] ss:$2 sm:$0xff]  ;;  %v3402_v38 = vld [vmem:[#allocation2 + $0x1d1] ss:$2 sm:$0xff]  ;;  %vm13232_vm0 = vmmov %vm13231_vm15 }
 0x4ed   :  { %3340 = vrot.lane.b32.xlu0 %v3323_v24, %s10420_s22  ;;  %v3374_v22 = vld [vmem:[#allocation2 + $0x1e0] ss:$2 sm:$0xff]  ;;  %v3324_v24 = vpack.c.bf16 %v3311_v49, %v3309_v7  ;;  %3150 = vst.msk [vmem:[#allocation3 + $0x78] sm:$0xff] %vm13221_vm5, %v3143_v1  ;;  %v3577_v31 = vpack.c.bf16 %v3563_v19, %v3562_v45  ;;  %v3564_v2 = vld [vmem:[#allocation2 + $0x150] ss:$2 sm:$0xff]  ;;  %v3411_v33 = vpack.c.bf16 %v3402_v38, %v3401_v13  ;;  %vm13234_vm4 = vmmov %vm13233_vm9 }
 0x4ee   :  { %3540 = vrot.lane.b32.xlu1 %v3523_v14, %s10420_s22  ;;  %v3376_v58 = vld [vmem:[#allocation2 + $0x1f0] ss:$2 sm:$0xff]  ;;  %v3137_v59 = vld [vmem:[#allocation2 + $0x1e0] ss:$2 sm:$0xff]  ;;  %v3524_v14 = vpack.c.bf16 %v3514_v11, %v3513_v3  ;;  %v3173_v0 = vld [vmem:[#allocation2 + $0x1b1] ss:$2 sm:$0xff] }
 0x4ef   :  { %v3383_v32 = vpack.c.bf16 %v3376_v58, %v3374_v22  ;;  %v3144_v4 = vpack.c.bf16 %v3137_v59, %v3135_v42  ;;  %v3565_v50 = vld [vmem:[#allocation2 + $0x160] ss:$2 sm:$0xff]  ;;  %v3566_v18 = vld [vmem:[#allocation2 + $0x170] ss:$2 sm:$0xff]  ;;  %3584 = vst.msk [vmem:[#allocation3 + $0x10] sm:$0xff] %vm13224_vm11, %v3577_v31  ;;  %v3185_v57 = vpack.c.bf16 %v3175_v35, %v3173_v0  ;;  %vm13235_vm5 = vmmov %vm13232_vm0 }
 0x4f0   :  { %v3578_v26 = vpack.c.bf16 %v3565_v50, %v3564_v2  ;;  %v3567_v6 = vld [vmem:[#allocation2 + $0x180] ss:$2 sm:$0xff]  ;;  %v3568_v55 = vld [vmem:[#allocation2 + $0x190] ss:$2 sm:$0xff]  ;;  %v3315_v49 = vld [vmem:[#allocation2 + $0x1c3] ss:$2 sm:$0xff] }
 0x4f1   :  { %3202 = vrot.lane.b32.xlu0 %v3184_v63, %s10423_s14  ;;  %3390 = vst.msk [vmem:[#allocation3 + $0x98] sm:$0xff] %vm13222_vm13, %v3383_v32  ;;  %v3579_v54 = vpack.c.bf16 %v3567_v6, %v3566_v18  ;;  %v3569_v9 = vld [vmem:[#allocation2 + $0x1a0] ss:$2 sm:$0xff]  ;;  %v3572_v17 = vld [vmem:[#allocation2 + $0x1d0] ss:$2 sm:$0xff]  ;;  %vm13236_vm13 = vmmov %vm13232_vm0 }
 0x4f2   :  { %3428 = vrot.lane.b32.xlu1 %v3410_v40, %s10423_s14  ;;  %3151 = vst.msk [vmem:[#allocation3 + $0x90] sm:$0xff] %vm13223_vm10, %v3144_v4  ;;  %v3570_v40 = vld [vmem:[#allocation2 + $0x1b0] ss:$2 sm:$0xff]  ;;  %v3571_v63 = vld [vmem:[#allocation2 + $0x1c0] ss:$2 sm:$0xff]  ;;  %v3580_v8 = vpack.c.bf16 %v3569_v9, %v3568_v55  ;;  %vm13237_vm10 = vmmov %vm13234_vm4 }
 0x4f3   :  { %3585 = vst.msk [vmem:[#allocation3 + $0x28] sm:$0xff] %vm13225_vm2, %v3578_v26  ;;  %v3581_v43 = vpack.c.bf16 %v3571_v63, %v3570_v40  ;;  %v3458_v25 = vld [vmem:[#allocation2 + $0x1c2] ss:$2 sm:$0xff]  ;;  %v3459_v48 = vld [vmem:[#allocation2 + $0x1d2] ss:$2 sm:$0xff]  ;;  %vm13238_vm11 = vmmov %vm13234_vm4 }
 0x4f4   :  { %3586 = vst.msk [vmem:[#allocation3 + $0x40] sm:$0xff] %vm13226_vm6, %v3579_v54  ;;  %v3245_v28 = vld [vmem:[#allocation2 + $0x1c2] ss:$2 sm:$0xff]  ;;  %v3243_v47 = vld [vmem:[#allocation2 + $0x1b2] ss:$2 sm:$0xff]  ;;  %v3468_v36 = vpack.c.bf16 %v3459_v48, %v3458_v25  ;;  %vm13239_vm2 = vmmov %vm13232_vm0 }
 0x4f5   :  { %3272 = vrot.lane.b32.xlu0 %v3254_v16, %s10422_s23  ;;  %3587 = vst.msk [vmem:[#allocation3 + $0x58] sm:$0xff] %vm13227_vm7, %v3580_v8  ;;  %v3573_v10 = vld [vmem:[#allocation2 + $0x1e0] ss:$2 sm:$0xff]  ;;  %v3574_v51 = vld [vmem:[#allocation2 + $0x1f0] ss:$2 sm:$0xff]  ;;  %v3255_v27 = vpack.c.bf16 %v3245_v28, %v3243_v47  ;;  %vm13240_vm6 = vmmov %vm13232_vm0 }
 0x4f6   :  { %3485 = vrot.lane.b32.xlu1 %v3467_v39, %s10422_s23  ;;  %3588 = vst.msk [vmem:[#allocation3 + $0x70] sm:$0xff] %vm13228_vm12, %v3581_v43  ;;  %v3582_v53 = vpack.c.bf16 %v3573_v10, %v3572_v17  ;;  %v3576_v46 = vld [vmem:[#allocation2 + $0x200] ss:$2 sm:$0xff]  ;;  %v3516_v16 = vld [vmem:[#allocation2 + $0x1d3] ss:$2 sm:$0xff]  ;;  %vm13241_vm7 = vmmov %vm13234_vm4 }
 0x4f7   :  { %v3583_v39 = vpack.c.bf16 %v3576_v46, %v3574_v51  ;;  %v3515_v60 = vld [vmem:[#allocation2 + $0x1c3] ss:$2 sm:$0xff]  ;;  %v3313_v62 = vld [vmem:[#allocation2 + $0x1b3] ss:$2 sm:$0xff]  ;;  %v3460_v1 = vld [vmem:[#allocation2 + $0x1e2] ss:$2 sm:$0xff] }
 0x4f8   :  { %3589 = vst.msk [vmem:[#allocation3 + $0x88] sm:$0xff] %vm13229_vm14, %v3582_v53  ;;  %v3525_v61 = vpack.c.bf16 %v3516_v16, %v3515_v60  ;;  %v3325_v15 = vpack.c.bf16 %v3315_v49, %v3313_v62  ;;  %v3403_v3 = vld [vmem:[#allocation2 + $0x1e1] ss:$2 sm:$0xff]  ;;  %v3405_v11 = vld [vmem:[#allocation2 + $0x1f1] ss:$2 sm:$0xff]  ;;  %vm13242_vm12 = vmmov %vm13234_vm4 }
 0x4f9   :  { %3342 = vrot.lane.b32.xlu0 %v3324_v24, %s10420_s22  ;;  %3590 = vst.msk [vmem:[#allocation3 + $0xa0] sm:$0xff] %vm13230_vm8, %v3583_v39  ;;  %v3179_v7 = vld [vmem:[#allocation2 + $0x1e1] ss:$2 sm:$0xff]  ;;  %v3177_v23 = vld [vmem:[#allocation2 + $0x1d1] ss:$2 sm:$0xff]  ;;  %v3412_v52 = vpack.c.bf16 %v3405_v11, %v3403_v3  ;;  %vm13243_vm14 = vmmov %vm13232_vm0 }
 0x4fa   :  { %3542 = vrot.lane.b32.xlu1 %v3524_v14, %s10420_s22  ;;  %v3186_v56 = vpack.c.bf16 %v3179_v7, %v3177_v23  ;;  %v3462_v22 = vld [vmem:[#allocation2 + $0x1f2] ss:$2 sm:$0xff]  ;;  %v3249_v58 = vld [vmem:[#allocation2 + $0x1e2] ss:$2 sm:$0xff]  ;;  %v3517_v32 = vld [vmem:[#allocation2 + $0x1e3] ss:$2 sm:$0xff] }
 0x4fb   :  { %v3247_v42 = vld [vmem:[#allocation2 + $0x1d2] ss:$2 sm:$0xff]  ;;  %v3469_v13 = vpack.c.bf16 %v3462_v22, %v3460_v1  ;;  %v3519_v59 = vld [vmem:[#allocation2 + $0x1f3] ss:$2 sm:$0xff]  ;;  %v3319_v45 = vld [vmem:[#allocation2 + $0x1e3] ss:$2 sm:$0xff] }
 0x4fc   :  { %v3256_v35 = vpack.c.bf16 %v3249_v58, %v3247_v42  ;;  %v3317_v19 = vld [vmem:[#allocation2 + $0x1d3] ss:$2 sm:$0xff]  ;;  %v3526_v14 = vpack.c.bf16 %v3519_v59, %v3517_v32  ;;  %v3649_v4 = vld [vmem:[#allocation2 + $0x142] ss:$2 sm:$0xff]  ;;  %v3648_v2 = vld [vmem:[#allocation2 + $0x132] ss:$2 sm:$0xff] }
 0x4fd   :  { %3204 = vrot.lane.b32.xlu0 %v3185_v57, %s10423_s14  ;;  %v3326_v24 = vpack.c.bf16 %v3319_v45, %v3317_v19  ;;  %v3592_v38 = vld [vmem:[#allocation2 + $0x141] ss:$2 sm:$0xff]  ;;  %v3591_v31 = vld [vmem:[#allocation2 + $0x131] ss:$2 sm:$0xff]  ;;  %v3663_v26 = vpack.c.bf16 %v3649_v4, %v3648_v2  ;;  %v3651_v63 = vld [vmem:[#allocation2 + $0x162] ss:$2 sm:$0xff] }
 0x4fe   :  { %3430 = vrot.lane.b32.xlu1 %v3411_v33, %s10423_s14  ;;  %v3606_v50 = vpack.c.bf16 %v3592_v38, %v3591_v31  ;;  %v3706_v18 = vld [vmem:[#allocation2 + $0x143] ss:$2 sm:$0xff]  ;;  %v3705_v55 = vld [vmem:[#allocation2 + $0x133] ss:$2 sm:$0xff]  ;;  %v3650_v8 = vld [vmem:[#allocation2 + $0x152] ss:$2 sm:$0xff] }
 0x4ff   :  { %v3594_v6 = vld [vmem:[#allocation2 + $0x161] ss:$2 sm:$0xff]  ;;  %v3593_v54 = vld [vmem:[#allocation2 + $0x151] ss:$2 sm:$0xff]  ;;  %v3720_v9 = vpack.c.bf16 %v3706_v18, %v3705_v55  ;;  %v3664_v33 = vpack.c.bf16 %v3651_v63, %v3650_v8  ;;  %v3653_v48 = vld [vmem:[#allocation2 + $0x182] ss:$2 sm:$0xff] }
 0x500   :  { %v3607_v40 = vpack.c.bf16 %v3594_v6, %v3593_v54  ;;  %v3708_v0 = vld [vmem:[#allocation2 + $0x163] ss:$2 sm:$0xff]  ;;  %v3707_v43 = vld [vmem:[#allocation2 + $0x153] ss:$2 sm:$0xff]  ;;  %v3652_v17 = vld [vmem:[#allocation2 + $0x172] ss:$2 sm:$0xff] }
 0x501   :  { %3274 = vrot.lane.b32.xlu0 %v3255_v27, %s10422_s23  ;;  %v3721_v57 = vpack.c.bf16 %v3708_v0, %v3707_v43  ;;  %v3596_v25 = vld [vmem:[#allocation2 + $0x181] ss:$2 sm:$0xff]  ;;  %v3595_v28 = vld [vmem:[#allocation2 + $0x171] ss:$2 sm:$0xff]  ;;  %v3665_v51 = vpack.c.bf16 %v3653_v48, %v3652_v17  ;;  %v3655_v16 = vld [vmem:[#allocation2 + $0x1a2] ss:$2 sm:$0xff] }
 0x502   :  { %3487 = vrot.lane.b32.xlu1 %v3468_v36, %s10422_s23  ;;  %v3608_v10 = vpack.c.bf16 %v3596_v25, %v3595_v28  ;;  %v3710_v47 = vld [vmem:[#allocation2 + $0x183] ss:$2 sm:$0xff]  ;;  %v3709_v46 = vld [vmem:[#allocation2 + $0x173] ss:$2 sm:$0xff]  ;;  %v3654_v60 = vld [vmem:[#allocation2 + $0x192] ss:$2 sm:$0xff] }
 0x503   :  { %v3598_v53 = vld [vmem:[#allocation2 + $0x1a1] ss:$2 sm:$0xff]  ;;  %v3597_v36 = vld [vmem:[#allocation2 + $0x191] ss:$2 sm:$0xff]  ;;  %v3722_v27 = vpack.c.bf16 %v3710_v47, %v3709_v46  ;;  %v3657_v11 = vld [vmem:[#allocation2 + $0x1c2] ss:$2 sm:$0xff] }
 0x504   :  { %v3609_v39 = vpack.c.bf16 %v3598_v53, %v3597_v36  ;;  %v3712_v49 = vld [vmem:[#allocation2 + $0x1a3] ss:$2 sm:$0xff]  ;;  %v3711_v62 = vld [vmem:[#allocation2 + $0x193] ss:$2 sm:$0xff]  ;;  %v3656_v23 = vld [vmem:[#allocation2 + $0x1b2] ss:$2 sm:$0xff] }
 0x505   :  { %3344 = vrot.lane.b32.xlu0 %v3325_v15, %s10420_s22  ;;  %v3723_v15 = vpack.c.bf16 %v3712_v49, %v3711_v62  ;;  %v3600_v3 = vld [vmem:[#allocation2 + $0x1c1] ss:$2 sm:$0xff]  ;;  %v3599_v7 = vld [vmem:[#allocation2 + $0x1b1] ss:$2 sm:$0xff]  ;;  %vm13244_vm8 = vmmov %vm13232_vm0 }
 0x506   :  { %3544 = vrot.lane.b32.xlu1 %v3525_v61, %s10420_s22  ;;  %v3666_v61 = vpack.c.bf16 %v3655_v16, %v3654_v60  ;;  %v3714_v1 = vld [vmem:[#allocation2 + $0x1c3] ss:$2 sm:$0xff]  ;;  %v3713_v22 = vld [vmem:[#allocation2 + $0x1b3] ss:$2 sm:$0xff] }
 0x507   :  { %v3724_v58 = vpack.c.bf16 %v3714_v1, %v3713_v22  ;;  %v10186_v6 = vld [vmem:[%s13081_s3 + $0x90] sm:$0xff]   ;;  %v10188_v43 = vld [vmem:[%s13081_s3 + $0xa0] sm:$0xff]   ;;  %v10189_v25 = vld [vmem:[%s13081_s3 + $0xa8] sm:$0xff]  }
 0x508   :  { %v10190_v17 = vld [vmem:[%s13081_s3 + $0xb0] sm:$0xff]   ;;  %v10191_v46 = vld [vmem:[%s13081_s3 + $0xb8] sm:$0xff]  }
 0x509   :  { %3206 = vrot.lane.b32.xlu0 %v3186_v56, %s10423_s14  ;;  %v3667_v56 = vpack.c.bf16 %v3657_v11, %v3656_v23 }
 0x50a   :  { %3432 = vrot.lane.b32.xlu1 %v3412_v52, %s10423_s14  ;;  %v3610_v52 = vpack.c.bf16 %v3600_v3, %v3599_v7 }
 0x50d   :  { %3276 = vrot.lane.b32.xlu0 %v3256_v35, %s10422_s23 }
 0x50e   :  { %3489 = vrot.lane.b32.xlu1 %v3469_v13, %s10422_s23 }
 0x511   :  { %3346 = vrot.lane.b32.xlu0 %v3326_v24, %s10420_s22  ;;  %v10184_v24 = vld [vmem:[%s13081_s3 + $0x80] sm:$0xff]  }
 0x512   :  { %3546 = vrot.lane.b32.xlu1 %v3526_v14, %s10420_s22 }
 0x515   :  { %3677 = vrot.lane.b32.xlu0 %v3663_v26, %s10422_s23 }
 0x516   :  { %3620 = vrot.lane.b32.xlu1 %v3606_v50, %s10423_s14  ;;  %v10185_v50 = vld [vmem:[%s13081_s3 + $0x88] sm:$0xff]  }
 0x519   :  { %3622 = vrot.lane.b32.xlu0 %v3607_v40, %s10423_s14 }
 0x51a   :  { %3734 = vrot.lane.b32.xlu1 %v3720_v9, %s10420_s22  ;;  %v10187_v9 = vld [vmem:[%s13081_s3 + $0x98] sm:$0xff]  }
 0x51d   :  { %3736 = vrot.lane.b32.xlu0 %v3721_v57, %s10420_s22 }
 0x51e   :  { %3679 = vrot.lane.b32.xlu1 %v3664_v33, %s10422_s23 }
 0x521   :  { %3681 = vrot.lane.b32.xlu0 %v3665_v51, %s10422_s23 }
 0x522   :  { %3624 = vrot.lane.b32.xlu1 %v3608_v10, %s10423_s14 }
 0x525   :  { %3626 = vrot.lane.b32.xlu0 %v3609_v39, %s10423_s14 }
 0x526   :  { %3738 = vrot.lane.b32.xlu1 %v3722_v27, %s10420_s22 }
 0x529   :  { %3740 = vrot.lane.b32.xlu0 %v3723_v15, %s10420_s22 }
 0x52a   :  { %3683 = vrot.lane.b32.xlu1 %v3666_v61, %s10422_s23 }
 0x52d   :  { %3685 = vrot.lane.b32.xlu0 %v3667_v56, %s10422_s23 }
 0x52e   :  { %3628 = vrot.lane.b32.xlu1 %v3610_v52, %s10423_s14 }
 0x531   :  { %2265 = vrot.lane.b32.xlu0 %v11325_v21, %s10422_s23 }
 0x532   :  { %3742 = vrot.lane.b32.xlu1 %v3724_v58, %s10420_s22 }
 0x533   :  { %v3195_v13 = vpop.permute.xlu0 %3194 }
 0x534   :  { %v3421_v42 = vpop.permute.xlu1 %3420  ;;  %3215 = vst.msk [vmem:[#allocation3] sm:$0xff] %vm13232_vm0, %v3195_v13  ;;  %vm13246_vm0 = vmmov %vm13234_vm4 }
 0x535   :  { %3441 = vst.msk [vmem:[#allocation3 + $0x8] sm:$0xff] %vm13231_vm15, %v3421_v42  ;;  %vm13245_vm15 = vmmov %vm13234_vm4 }
 0x536   :  { %2267 = vrot.lane.b32.xlu1 %v11327_v20, %s10422_s23 }
 0x537   :  { %v3265_v32 = vpop.permute.xlu0 %3264 }
 0x538   :  { %v3478_v35 = vpop.permute.xlu1 %3477  ;;  %3285 = vst.msk [vmem:[#allocation3] sm:$0xff] %vm13234_vm4, %v3265_v32  ;;  %vm13248_vm4 = vmmov %vm13239_vm2 }
 0x539   :  { %3498 = vst.msk [vmem:[#allocation3 + $0x8] sm:$0xff] %vm13233_vm9, %v3478_v35  ;;  %vm13247_vm9 = vmmov %vm13239_vm2 }
 0x53b   :  { %v3335_v45 = vpop.permute.xlu0 %3334 }
 0x53c   :  { %v3535_v59 = vpop.permute.xlu1 %3534  ;;  %3355 = vst.msk [vmem:[#allocation3] sm:$0xff] %vm1448_vm1, %v3335_v45 }
 0x53d   :  { %3555 = vst.msk [vmem:[#allocation3 + $0x8] sm:$0xff] %vm1448_vm1, %v3535_v59 }
 0x53f   :  { %v3197_v14 = vpop.permute.xlu0 %3196 }
 0x540   :  { %v3423_v19 = vpop.permute.xlu1 %3422  ;;  %3216 = vst.msk [vmem:[#allocation3 + $0x18] sm:$0xff] %vm13236_vm13, %v3197_v14  ;;  %vm13250_vm13 = vmmov %vm13246_vm0 }
 0x541   :  { %3442 = vst.msk [vmem:[#allocation3 + $0x20] sm:$0xff] %vm13235_vm5, %v3423_v19  ;;  %vm13249_vm5 = vmmov %vm13246_vm0 }
 0x543   :  { %v3267_v4 = vpop.permute.xlu0 %3266  ;;  %v3762_v2 = vld [vmem:[#allocation3] sm:$0xff] }
 0x544   :  { %v3480_v38 = vpop.permute.xlu1 %3479  ;;  %v3763_v31 = vld [vmem:[#allocation3 + $0x8] sm:$0xff]  ;;  %3286 = vst.msk [vmem:[#allocation3 + $0x18] sm:$0xff] %vm13238_vm11, %v3267_v4  ;;  %vm13252_vm11 = vmmov %vm13239_vm2 }
 0x545   :  { %3499 = vst.msk [vmem:[#allocation3 + $0x20] sm:$0xff] %vm13237_vm10, %v3480_v38  ;;  %4007 = vmatprep.mubr.bf16.mxu1 %v3763_v31  ;;  %vm13251_vm10 = vmmov %vm13239_vm2 }
 0x546   :  { %4008 = vmatmul.mubr.bf16.vlgmr.msra.gmra.mrb[112].mxu1 %v3762_v2 }
 0x547   :  { %9261 = vmatpush3.bf16.msra.mxu1 %v10184_v24  ;;  %v3337_v18 = vpop.permute.xlu0 %3336 }
 0x548   :  { %v3537_v26 = vpop.permute.xlu1 %3536  ;;  %9262 = vmatprep.subr.bf16.mxu1 %v13191_v5  ;;  %3356 = vst.msk [vmem:[#allocation3 + $0x18] sm:$0xff] %vm1448_vm1, %v3337_v18 }
 0x549   :  { %3556 = vst.msk [vmem:[#allocation3 + $0x20] sm:$0xff] %vm1448_vm1, %v3537_v26 }
 0x54b   :  { %9263 = vmatpush3.bf16.msra.mxu1 %v10185_v50  ;;  %v3199_v54 = vpop.permute.xlu0 %3198 }
 0x54c   :  { %v3425_v55 = vpop.permute.xlu1 %3424  ;;  %9264 = vmatprep.subr.bf16.mxu1 %v13191_v5  ;;  %3217 = vst.msk [vmem:[#allocation3 + $0x30] sm:$0xff] %vm13240_vm6, %v3199_v54  ;;  %vm13254_vm6 = vmmov %vm13246_vm0 }
 0x54d   :  { %3443 = vst.msk [vmem:[#allocation3 + $0x38] sm:$0xff] %vm13239_vm2, %v3425_v55  ;;  %vm13253_vm2 = vmmov %vm13246_vm0 }
 0x54f   :  { %9265 = vmatpush3.bf16.msra.mxu1 %v10186_v6  ;;  %v3269_v63 = vpop.permute.xlu0 %3268  ;;  %v3765_v8 = vld [vmem:[#allocation3 + $0x18] sm:$0xff] }
 0x550   :  { %v3482_v40 = vpop.permute.xlu1 %3481  ;;  %v3766_v0 = vld [vmem:[#allocation3 + $0x20] sm:$0xff]  ;;  %9266 = vmatprep.subr.bf16.mxu1 %v13191_v5  ;;  %3287 = vst.msk [vmem:[#allocation3 + $0x30] sm:$0xff] %vm13242_vm12, %v3269_v63  ;;  %vm13256_vm12 = vmmov %vm13248_vm4 }
 0x551   :  { %3500 = vst.msk [vmem:[#allocation3 + $0x38] sm:$0xff] %vm13241_vm7, %v3482_v40  ;;  %4015 = vmatprep.mubr.bf16.mxu1 %v3766_v0  ;;  %vm13255_vm7 = vmmov %vm13248_vm4 }
 0x552   :  { %4016 = vmatmul.mubr.bf16.gmra.mrb[116].mxu1 %v3765_v8 }
 0x553   :  { %9267 = vmatpush3.bf16.msra.mxu1 %v10187_v9  ;;  %v3339_v57 = vpop.permute.xlu0 %3338 }
 0x554   :  { %v3539_v33 = vpop.permute.xlu1 %3538  ;;  %9268 = vmatprep.subr.bf16.mxu1 %v13191_v5  ;;  %3357 = vst.msk [vmem:[#allocation3 + $0x30] sm:$0xff] %vm1448_vm1, %v3339_v57 }
 0x555   :  { %3557 = vst.msk [vmem:[#allocation3 + $0x38] sm:$0xff] %vm1448_vm1, %v3539_v33 }
 0x557   :  { %9269 = vmatpush3.bf16.msra.mxu1 %v10188_v43  ;;  %v3201_v28 = vpop.permute.xlu0 %3200 }
 0x558   :  { %v3427_v48 = vpop.permute.xlu1 %3426  ;;  %9270 = vmatprep.subr.bf16.mxu1 %v13191_v5  ;;  %3218 = vst.msk [vmem:[#allocation3 + $0x48] sm:$0xff] %vm13244_vm8, %v3201_v28  ;;  %vm13258_vm8 = vmmov %vm13246_vm0 }
 0x559   :  { %3444 = vst.msk [vmem:[#allocation3 + $0x50] sm:$0xff] %vm13243_vm14, %v3427_v48  ;;  %vm13257_vm14 = vmmov %vm13246_vm0 }
 0x55b   :  { %9271 = vmatpush3.bf16.msra.mxu1 %v10189_v25  ;;  %v3271_v51 = vpop.permute.xlu0 %3270  ;;  %v3768_v53 = vld [vmem:[#allocation3 + $0x30] sm:$0xff] }
 0x55c   :  { %v3484_v10 = vpop.permute.xlu1 %3483  ;;  %v3769_v47 = vld [vmem:[#allocation3 + $0x38] sm:$0xff]  ;;  %9272 = vmatprep.subr.bf16.mxu1 %v13191_v5  ;;  %3288 = vst.msk [vmem:[#allocation3 + $0x48] sm:$0xff] %vm13246_vm0, %v3271_v51  ;;  %v11923_v51 = vld [vmem:[%s13082_s4] ss:$0 sm:$0xff] }
 0x55d   :  { %3501 = vst.msk [vmem:[#allocation3 + $0x50] sm:$0xff] %vm13245_vm15, %v3484_v10  ;;  %4023 = vmatprep.mubr.bf16.mxu1 %v3769_v47  ;;  %vm13259_vm15 = vmmov %vm13248_vm4 }
 0x55e   :  { %4024 = vmatmul.mubr.bf16.gmra.mrb[120].mxu1 %v3768_v53 }
 0x55f   :  { %9273 = vmatpush3.bf16.msra.mxu1 %v10190_v17  ;;  %v3341_v27 = vpop.permute.xlu0 %3340 }
 0x560   :  { %v3541_v36 = vpop.permute.xlu1 %3540  ;;  %9274 = vmatprep.subr.bf16.mxu1 %v13191_v5  ;;  %3358 = vst.msk [vmem:[#allocation3 + $0x48] sm:$0xff] %vm1448_vm1, %v3341_v27 }
 0x561   :  { %3558 = vst.msk [vmem:[#allocation3 + $0x50] sm:$0xff] %vm1448_vm1, %v3541_v36 }
 0x563   :  { %9275 = vmatpush3.bf16.msra.mxu1 %v10191_v46  ;;  %v3203_v16 = vpop.permute.xlu0 %3202 }
 0x564   :  { %v3429_v39 = vpop.permute.xlu1 %3428  ;;  %9304 = vmatprep.subr.bf16.mxu1 %v13191_v5  ;;  %3219 = vst.msk [vmem:[#allocation3 + $0x60] sm:$0xff] %vm13248_vm4, %v3203_v16 }
 0x565   :  { %3445 = vst.msk [vmem:[#allocation3 + $0x68] sm:$0xff] %vm13247_vm9, %v3429_v39  ;;  %vm13260_vm9 = vmmov %vm13248_vm4 }
 0x566   :  { %vm13261_vm4 = vmmov %vm13246_vm0 }
 0x567   :  { %v3273_v60 = vpop.permute.xlu0 %3272  ;;  %v3771_v61 = vld [vmem:[#allocation3 + $0x48] sm:$0xff] }
 0x568   :  { %v3486_v49 = vpop.permute.xlu1 %3485  ;;  %v3772_v62 = vld [vmem:[#allocation3 + $0x50] sm:$0xff]  ;;  %3289 = vst.msk [vmem:[#allocation3 + $0x60] sm:$0xff] %vm13250_vm13, %v3273_v60  ;;  %vm13263_vm13 = vmmov %vm13246_vm0 }
 0x569   :  { %3502 = vst.msk [vmem:[#allocation3 + $0x68] sm:$0xff] %vm13249_vm5, %v3486_v49  ;;  %4031 = vmatprep.mubr.bf16.mxu1 %v3772_v62  ;;  %vm13262_vm5 = vmmov %vm13255_vm7 }
 0x56a   :  { %4032 = vmatmul.mubr.bf16.gmra.mrb[124].mxu1 %v3771_v61 }
 0x56b   :  { %v3343_v3 = vpop.permute.xlu0 %3342 }
 0x56c   :  { %v3543_v15 = vpop.permute.xlu1 %3542  ;;  %3359 = vst.msk [vmem:[#allocation3 + $0x60] sm:$0xff] %vm1448_vm1, %v3343_v3 }
 0x56d   :  { %3559 = vst.msk [vmem:[#allocation3 + $0x68] sm:$0xff] %vm1448_vm1, %v3543_v15 }
 0x56f   :  { %v3205_v7 = vpop.permute.xlu0 %3204 }
 0x570   :  { %v3431_v11 = vpop.permute.xlu1 %3430  ;;  %3220 = vst.msk [vmem:[#allocation3 + $0x78] sm:$0xff] %vm13252_vm11, %v3205_v7  ;;  %vm13265_vm11 = vmmov %vm13246_vm0 }
 0x571   :  { %3446 = vst.msk [vmem:[#allocation3 + $0x80] sm:$0xff] %vm13251_vm10, %v3431_v11  ;;  %vm13264_vm10 = vmmov %vm13262_vm5 }
 0x573   :  { %v3275_v52 = vpop.permute.xlu0 %3274  ;;  %v3774_v1 = vld [vmem:[#allocation3 + $0x60] sm:$0xff] }
 0x574   :  { %v3488_v23 = vpop.permute.xlu1 %3487  ;;  %v3775_v56 = vld [vmem:[#allocation3 + $0x68] sm:$0xff]  ;;  %3290 = vst.msk [vmem:[#allocation3 + $0x78] sm:$0xff] %vm13254_vm6, %v3275_v52  ;;  %vm13267_vm6 = vmmov %vm13246_vm0 }
 0x575   :  { %3503 = vst.msk [vmem:[#allocation3 + $0x80] sm:$0xff] %vm13253_vm2, %v3488_v23  ;;  %4039 = vmatprep.mubr.bf16.mxu1 %v3775_v56  ;;  %vm13266_vm2 = vmmov %vm13262_vm5 }
 0x576   :  { %4040 = vmatmul.mubr.bf16.gmra.mrb[128].mxu1 %v3774_v1 }
 0x577   :  { %v3345_v58 = vpop.permute.xlu0 %3344 }
 0x578   :  { %v3545_v22 = vpop.permute.xlu1 %3544  ;;  %3360 = vst.msk [vmem:[#allocation3 + $0x78] sm:$0xff] %vm1448_vm1, %v3345_v58 }
 0x579   :  { %3560 = vst.msk [vmem:[#allocation3 + $0x80] sm:$0xff] %vm1448_vm1, %v3545_v22 }
 0x57b   :  { %v3207_v13 = vpop.permute.xlu0 %3206 }
 0x57c   :  { %v3433_v42 = vpop.permute.xlu1 %3432  ;;  %3221 = vst.msk [vmem:[#allocation3 + $0x90] sm:$0xff] %vm13256_vm12, %v3207_v13  ;;  %vm13269_vm12 = vmmov %vm13266_vm2 }
 0x57d   :  { %3447 = vst.msk [vmem:[#allocation3 + $0x98] sm:$0xff] %vm13255_vm7, %v3433_v42  ;;  %vm2327_vm7 = vcmask 523264  }
 0x57f   :  { %v3277_v32 = vpop.permute.xlu0 %3276  ;;  %v3777_v45 = vld [vmem:[#allocation3 + $0x78] sm:$0xff] }
 0x580   :  { %v3490_v35 = vpop.permute.xlu1 %3489  ;;  %v3778_v59 = vld [vmem:[#allocation3 + $0x80] sm:$0xff]  ;;  %3291 = vst.msk [vmem:[#allocation3 + $0x90] sm:$0xff] %vm13258_vm8, %v3277_v32  ;;  %vm13271_vm8 = vmmov %vm13266_vm2 }
 0x581   :  { %3504 = vst.msk [vmem:[#allocation3 + $0x98] sm:$0xff] %vm13257_vm14, %v3490_v35  ;;  %4047 = vmatprep.mubr.bf16.mxu1 %v3778_v59  ;;  %vm13270_vm14 = vmmov %vm13246_vm0 }
 0x582   :  { %4048 = vmatmul.mubr.bf16.gmra.mrb[132].mxu1 %v3777_v45 }
 0x583   :  { %v3347_v14 = vpop.permute.xlu0 %3346 }
 0x584   :  { %v3547_v19 = vpop.permute.xlu1 %3546  ;;  %3361 = vst.msk [vmem:[#allocation3 + $0x90] sm:$0xff] %vm1448_vm1, %v3347_v14 }
 0x585   :  { %3561 = vst.msk [vmem:[#allocation3 + $0x98] sm:$0xff] %vm1448_vm1, %v3547_v19 }
 0x587   :  { %v3678_v38 = vpop.permute.xlu0 %3677 }
 0x588   :  { %v3621_v24 = vpop.permute.xlu1 %3620 }
 0x589   :  { %3641 = vst.msk [vmem:[#allocation3 + $0x10] sm:$0xff] %vm13259_vm15, %v3621_v24  ;;  %vm13272_vm15 = vmmov %vm13246_vm0 }
 0x58a   :  { %3698 = vst.msk [vmem:[#allocation3 + $0x10] sm:$0xff] %vm13246_vm0, %v3678_v38 }
 0x58b   :  { %v3623_v31 = vpop.permute.xlu0 %3622  ;;  %v3780_v50 = vld [vmem:[#allocation3 + $0x90] sm:$0xff] }
 0x58c   :  { %v3735_v4 = vpop.permute.xlu1 %3734  ;;  %v3781_v2 = vld [vmem:[#allocation3 + $0x98] sm:$0xff]  ;;  %3642 = vst.msk [vmem:[#allocation3 + $0x28] sm:$0xff] %vm13260_vm9, %v3623_v31 }
 0x58d   :  { %3755 = vst.msk [vmem:[#allocation3 + $0x10] sm:$0xff] %vm1448_vm1, %v3735_v4  ;;  %4055 = vmatprep.mubr.bf16.mxu1 %v3781_v2 }
 0x58e   :  { %4056 = vmatmul.mubr.bf16.gmra.mrb[136].mxu1 %v3780_v50 }
 0x58f   :  { %9276 = vmatprep.mubr.msk.bf16.mxu1 %vm13151_vm3, %v13191_v5  ;;  %v3737_v18 = vpop.permute.xlu0 %3736 }
 0x590   :  { %v3680_v26 = vpop.permute.xlu1 %3679 }
 0x591   :  { %3699 = vst.msk [vmem:[#allocation3 + $0x28] sm:$0xff] %vm13261_vm4, %v3680_v26 }
 0x592   :  { %3756 = vst.msk [vmem:[#allocation3 + $0x28] sm:$0xff] %vm1448_vm1, %v3737_v18 }
 0x593   :  { %v3682_v55 = vpop.permute.xlu0 %3681 }
 0x594   :  { %v3625_v6 = vpop.permute.xlu1 %3624  ;;  %v3764_v54 = vld [vmem:[#allocation3 + $0x10] sm:$0xff] }
 0x595   :  { %3643 = vst.msk [vmem:[#allocation3 + $0x40] sm:$0xff] %vm13262_vm5, %v3625_v6 }
 0x596   :  { %3700 = vst.msk [vmem:[#allocation3 + $0x40] sm:$0xff] %vm13263_vm13, %v3682_v55  ;;  %9277 = vmatmul.mubr.bf16.vlgmr.msra.gmra.mrb[140].mxu1 %v3764_v54 }
 0x597   :  { %9280 = vmatprep.mubr.msk.bf16.mxu1 %vm13151_vm3, %v13191_v5  ;;  %v3627_v40 = vpop.permute.xlu0 %3626 }
 0x598   :  { %v3739_v9 = vpop.permute.xlu1 %3738  ;;  %3644 = vst.msk [vmem:[#allocation3 + $0x58] sm:$0xff] %vm13264_vm10, %v3627_v40 }
 0x599   :  { %3757 = vst.msk [vmem:[#allocation3 + $0x40] sm:$0xff] %vm1448_vm1, %v3739_v9  ;;  %v3767_v8 = vld [vmem:[#allocation3 + $0x28] sm:$0xff] }
 0x59b   :  { %v3741_v0 = vpop.permute.xlu0 %3740 }
 0x59c   :  { %v3684_v63 = vpop.permute.xlu1 %3683 }
 0x59d   :  { %3701 = vst.msk [vmem:[#allocation3 + $0x58] sm:$0xff] %vm13265_vm11, %v3684_v63 }
 0x59e   :  { %3758 = vst.msk [vmem:[#allocation3 + $0x58] sm:$0xff] %vm1448_vm1, %v3741_v0  ;;  %9281 = vmatmul.mubr.bf16.gmra.mrb[144].mxu1 %v3767_v8 }
 0x59f   :  { %9284 = vmatprep.mubr.msk.bf16.mxu1 %vm13151_vm3, %v13191_v5  ;;  %v3686_v33 = vpop.permute.xlu0 %3685 }
 0x5a0   :  { %v3629_v43 = vpop.permute.xlu1 %3628  ;;  %v3770_v25 = vld [vmem:[#allocation3 + $0x40] sm:$0xff] }
 0x5a1   :  { %3645 = vst.msk [vmem:[#allocation3 + $0x70] sm:$0xff] %vm13266_vm2, %v3629_v43 }
 0x5a2   :  { %3702 = vst.msk [vmem:[#allocation3 + $0x70] sm:$0xff] %vm13267_vm6, %v3686_v33 }
 0x5a3   :  { %v2266_v48 = vpop.permute.xlu0 %2265 }
 0x5a4   :  { %v3743_v57 = vpop.permute.xlu1 %3742  ;;  %v2305_v17 = vmax.f32 %v11325_v21, %v2266_v48 }
 0x5a5   :  { %3759 = vst.msk [vmem:[#allocation3 + $0x70] sm:$0xff] %vm1448_vm1, %v3743_v57  ;;  %v3773_v46 = vld [vmem:[#allocation3 + $0x58] sm:$0xff] }
 0x5a6   :  { %9285 = vmatmul.mubr.bf16.gmra.mrb[148].mxu1 %v3770_v25 }
 0x5a7   :  { %9288 = vmatprep.mubr.msk.bf16.mxu1 %vm13151_vm3, %v13191_v5 }
 0x5a8   :  { %v2268_v28 = vpop.permute.xlu1 %2267 }
 0x5a9   :  { %v2306_v10 = vmax.f32 %v11327_v20, %v2268_v28 }
 0x5ab   :  { %v2329_v47 = vmax.f32 %v2305_v17, %v2306_v10  ;;  %v10192_v10 = vld [vmem:[%s13083_s5 + $0x1a0] sm:$0xff]  }
 0x5ac   :  { %v3776_v21 = vld [vmem:[#allocation3 + $0x70] sm:$0xff]  ;;  %9461 = vmatpush3.bf16.msra.mxu0 %v10192_v10 }
 0x5ad   :  { %v2337_v53 = vadd.f32 %v11923_v51, %v2329_v47  ;;  %9462 = vmatprep.subr.bf16.mxu0 %v13191_v5 }
 0x5ae   :  { %9289 = vmatmul.mubr.bf16.gmra.mrb[152].mxu1 %v3773_v46 }
 0x5af   :  { %v2338_v36 = vmax.f32 %v2337_v53, 0.0  ;;  %9292 = vmatprep.mubr.msk.bf16.mxu1 %vm13151_vm3, %v13191_v5 }
 0x5b1   :  { %2339 = vst.msk [vmem:[#allocation4 + $0x8] sm:$0xff] %vm2327_vm7, %v2338_v36 }
 0x5b6   :  { %9293 = vmatmul.mubr.bf16.gmra.mrb[156].mxu1 %v3776_v21 }
 0x5b7   :  { %9296 = vmatprep.mubr.msk.bf16.mxu1 %vm13151_vm3, %v13191_v5 }
 0x619   :  { %v8837_v20 = vpop.f32.mrb[112].mxu1 }
 0x61a   :  { %v8838_v27 = vpop.f32.mrb[113].mxu1 }
 0x61b   :  { %v8839_v39 = vadd.f32 %v8838_v27, %v8837_v20  ;;  %v8840_v16 = vpop.f32.mrb[114].mxu1  ;;  %v10193_v20 = vld [vmem:[%s13083_s5 + $0x1a8] sm:$0xff]  }
 0x61c   :  { %v8841_v49 = vpop.f32.mrb[115].mxu1  ;;  %9463 = vmatpush3.bf16.msra.mxu0 %v10193_v20 }
 0x61d   :  { %v8842_v60 = vadd.f32 %v8841_v49, %v8840_v16  ;;  %9464 = vmatprep.subr.bf16.mxu0 %v13191_v5 }
 0x625   :  { %v8843_v62 = vpop.f32.mrb[116].mxu1 }
 0x626   :  { %v8844_v61 = vpop.f32.mrb[117].mxu1 }
 0x627   :  { %v8845_v15 = vadd.f32 %v8844_v61, %v8843_v62  ;;  %v8846_v3 = vpop.f32.mrb[118].mxu1  ;;  %v3602_v62 = vld [vmem:[#allocation2 + $0x1e1] ss:$2 sm:$0xff]  ;;  %v10195_v61 = vld [vmem:[%s13083_s5 + $0x1b8] sm:$0xff]  }
 0x628   :  { %v8847_v11 = vpop.f32.mrb[119].mxu1 }
 0x629   :  { %v8848_v7 = vadd.f32 %v8847_v11, %v8846_v3  ;;  %v3601_v11 = vld [vmem:[#allocation2 + $0x1d1] ss:$2 sm:$0xff] }
 0x631   :  { %v8849_v23 = vpop.f32.mrb[120].mxu1 }
 0x632   :  { %v8850_v52 = vpop.f32.mrb[121].mxu1 }
 0x633   :  { %v8851_v56 = vadd.f32 %v8850_v52, %v8849_v23  ;;  %v8852_v1 = vpop.f32.mrb[122].mxu1  ;;  %v3611_v23 = vpack.c.bf16 %v3602_v62, %v3601_v11  ;;  %v3658_v52 = vld [vmem:[#allocation2 + $0x1d2] ss:$2 sm:$0xff] }
 0x634   :  { %v8853_v22 = vpop.f32.mrb[123].mxu1 }
 0x635   :  { %v8854_v58 = vadd.f32 %v8853_v22, %v8852_v1 }
 0x63d   :  { %v8855_v42 = vpop.f32.mrb[124].mxu1 }
 0x63e   :  { %v8856_v13 = vpop.f32.mrb[125].mxu1 }
 0x63f   :  { %v11931_v35 = vadd.f32 %v8856_v13, %v8855_v42  ;;  %v8858_v32 = vpop.f32.mrb[126].mxu1 }
 0x640   :  { %v8859_v59 = vpop.f32.mrb[127].mxu1 }
 0x641   :  { %v11933_v45 = vadd.f32 %v8859_v59, %v8858_v32 }
 0x649   :  { %v8861_v19 = vpop.f32.mrb[128].mxu1 }
 0x64a   :  { %v8862_v14 = vpop.f32.mrb[129].mxu1 }
 0x64b   :  { %v11935_v24 = vadd.f32 %v8862_v14, %v8861_v19  ;;  %v8864_v38 = vpop.f32.mrb[130].mxu1 }
 0x64c   :  { %v8865_v4 = vpop.f32.mrb[131].mxu1 }
 0x64d   :  { %v11937_v31 = vadd.f32 %v8865_v4, %v8864_v38  ;;  %v3605_v4 = vld [vmem:[#allocation2 + $0x201] ss:$2 sm:$0xff] }
 0x655   :  { %v8867_v2 = vpop.f32.mrb[132].mxu1 }
 0x656   :  { %v8868_v50 = vpop.f32.mrb[133].mxu1 }
 0x657   :  { %v11939_v26 = vadd.f32 %v8868_v50, %v8867_v2  ;;  %v8870_v18 = vpop.f32.mrb[134].mxu1 }
 0x658   :  { %v8871_v6 = vpop.f32.mrb[135].mxu1 }
 0x659   :  { %v11941_v55 = vadd.f32 %v8871_v6, %v8870_v18  ;;  %v3660_v18 = vld [vmem:[#allocation2 + $0x1f2] ss:$2 sm:$0xff]  ;;  %v3662_v6 = vld [vmem:[#allocation2 + $0x202] ss:$2 sm:$0xff] }
 0x661   :  { %v8873_v54 = vpop.f32.mrb[136].mxu1 }
 0x662   :  { %v8874_v9 = vpop.f32.mrb[137].mxu1 }
 0x663   :  { %v11943_v40 = vadd.f32 %v8874_v9, %v8873_v54  ;;  %v8876_v63 = vpop.f32.mrb[138].mxu1 }
 0x664   :  { %v8877_v0 = vpop.f32.mrb[139].mxu1 }
 0x665   :  { %v11945_v8 = vadd.f32 %v8877_v0, %v8876_v63  ;;  %v3717_v0 = vld [vmem:[#allocation2 + $0x1f3] ss:$2 sm:$0xff] }
 0x669   :  { %v4098_v43 = vpop.f32.mrb[140].mxu1 }
 0x66a   :  { %v11947_v33 = vadd.f32 %v8839_v39, %v4098_v43  ;;  %v9278_v57 = vpop.f32.mrb[141].mxu1  ;;  %v10194_v39 = vld [vmem:[%s13083_s5 + $0x1b0] sm:$0xff]  }
 0x66b   :  { %v4101_v25 = vpop.f32.mrb[142].mxu1  ;;  %9465 = vmatpush3.bf16.msra.mxu0 %v10194_v39  ;;  %v3719_v43 = vld [vmem:[#allocation2 + $0x203] ss:$2 sm:$0xff] }
 0x66c   :  { %v11949_v48 = vadd.f32 %v8842_v60, %v4101_v25  ;;  %v9279_v28 = vpop.f32.mrb[143].mxu1  ;;  %9466 = vmatprep.subr.bf16.mxu0 %v13191_v5  ;;  %v3726_v57 = vpack.c.bf16 %v3719_v43, %v3717_v0  ;;  %v10199_v0 = vld [vmem:[%s13083_s5 + $0x1d8] sm:$0xff]  }
 0x66f   :  { %9467 = vmatpush3.bf16.msra.mxu0 %v10195_v61 }
 0x670   :  { %9472 = vmatprep.subr.bf16.mxu0 %v13191_v5 }
 0x671   :  { %v4106_v17 = vpop.f32.mrb[144].mxu1 }
 0x672   :  { %v11954_v47 = vadd.f32 %v8845_v15, %v4106_v17  ;;  %v9282_v53 = vpop.f32.mrb[145].mxu1 }
 0x673   :  { %v4109_v46 = vpop.f32.mrb[146].mxu1 }
 0x674   :  { %v11956_v36 = vadd.f32 %v8848_v7, %v4109_v46  ;;  %v9283_v21 = vpop.f32.mrb[147].mxu1  ;;  %4171 = vrot.lane.b32.xlu0 %v11954_v47, %s10422_s23  ;;  %v3659_v7 = vld [vmem:[#allocation2 + $0x1e2] ss:$2 sm:$0xff] }
 0x675   :  { %v3668_v1 = vpack.c.bf16 %v3659_v7, %v3658_v52 }
 0x676   :  { %4173 = vrot.lane.b32.xlu1 %v11956_v36, %s10422_s23 }
 0x678   :  { %2269 = vrot.lane.b32.xlu0 %v11329_v12, %s10422_s23 }
 0x679   :  { %v4114_v27 = vpop.f32.mrb[148].mxu1 }
 0x67a   :  { %v11972_v16 = vadd.f32 %v8851_v56, %v4114_v27  ;;  %v9286_v49 = vpop.f32.mrb[149].mxu1  ;;  %2271 = vrot.lane.b32.xlu1 %v11331_v29, %s10422_s23  ;;  %v3716_v56 = vld [vmem:[#allocation2 + $0x1e3] ss:$2 sm:$0xff] }
 0x67b   :  { %v4117_v60 = vpop.f32.mrb[150].mxu1 }
 0x67c   :  { %v11979_v15 = vadd.f32 %v8854_v58, %v4117_v60  ;;  %v9287_v3 = vpop.f32.mrb[151].mxu1  ;;  %4175 = vrot.lane.b32.xlu0 %v11972_v16, %s10422_s23  ;;  %v3715_v58 = vld [vmem:[#allocation2 + $0x1d3] ss:$2 sm:$0xff] }
 0x67d   :  { %v3725_v32 = vpack.c.bf16 %v3716_v56, %v3715_v58 }
 0x67e   :  { %4177 = vrot.lane.b32.xlu1 %v11979_v15, %s10422_s23 }
 0x680   :  { %3630 = vrot.lane.b32.xlu0 %v3611_v23, %s10423_s14 }
 0x681   :  { %v4122_v22 = vpop.f32.mrb[152].mxu1 }
 0x682   :  { %v11989_v42 = vadd.f32 %v11931_v35, %v4122_v22  ;;  %v9290_v13 = vpop.f32.mrb[153].mxu1  ;;  %3687 = vrot.lane.b32.xlu1 %v3668_v1, %s10422_s23  ;;  %v3603_v35 = vld [vmem:[#allocation2 + $0x1f1] ss:$2 sm:$0xff] }
 0x683   :  { %v4125_v59 = vpop.f32.mrb[154].mxu1  ;;  %v3612_v63 = vpack.c.bf16 %v3605_v4, %v3603_v35 }
 0x684   :  { %v11993_v19 = vadd.f32 %v11933_v45, %v4125_v59  ;;  %v9291_v14 = vpop.f32.mrb[155].mxu1  ;;  %3744 = vrot.lane.b32.xlu0 %v3725_v32, %s10420_s22 }
 0x685   :  { %v10197_v14 = vld [vmem:[%s13083_s5 + $0x1c8] sm:$0xff]  }
 0x686   :  { %2273 = vrot.lane.b32.xlu1 %v11333_v30, %s10422_s23 }
 0x688   :  { %2275 = vrot.lane.b32.xlu0 %v11335_v44, %s10422_s23 }
 0x689   :  { %v4130_v38 = vpop.f32.mrb[156].mxu1 }
 0x68a   :  { %v12001_v2 = vadd.f32 %v11935_v24, %v4130_v38  ;;  %v9294_v50 = vpop.f32.mrb[157].mxu1  ;;  %4179 = vrot.lane.b32.xlu1 %v11989_v42, %s10422_s23  ;;  %v3669_v24 = vpack.c.bf16 %v3662_v6, %v3660_v18  ;;  %v10198_v18 = vld [vmem:[%s13083_s5 + $0x1d0] sm:$0xff]  }
 0x68b   :  { %v4133_v45 = vpop.f32.mrb[158].mxu1 }
 0x68c   :  { %v12006_v54 = vadd.f32 %v11937_v31, %v4133_v45  ;;  %v9295_v9 = vpop.f32.mrb[159].mxu1  ;;  %4181 = vrot.lane.b32.xlu0 %v11993_v19, %s10422_s23  ;;  %v13268_v31 = vld [vmem:[#allocation10_spill] sm:$0xff] }
 0x68e   :  { %3632 = vrot.lane.b32.xlu1 %v3612_v63, %s10423_s14 }
 0x690   :  { %3689 = vrot.lane.b32.xlu0 %v3669_v24, %s10422_s23 }
 0x692   :  { %3746 = vrot.lane.b32.xlu1 %v3726_v57, %s10420_s22  ;;  %s10425_s22 = smov [#allocation5]  }
 0x693   :  { %s8297_s14 = sshll.u32 %s10425_s22, 4  ;;  %s8298_s14 = int_to_ptr.vmem [resolvable:$true] %s8297_s14 }
 0x694   :  { %2277 = vrot.lane.b32.xlu0 %v11337_v34, %s10422_s23  ;;  %p10401_p1 = scmp.lt.s32.totalorder %s8298_s14, %s8298_s14 }
 0x696   :  { %2279 = vrot.lane.b32.xlu1 %v11339_v37, %s10422_s23 }
 0x698   :  { %4183 = vrot.lane.b32.xlu0 %v12001_v2, %s10422_s23 }
 0x69a   :  { %4185 = vrot.lane.b32.xlu1 %v12006_v54, %s10422_s23 }
 0x69c   :  { %2281 = vrot.lane.b32.xlu0 %v11341_v41, %s10422_s23 }
 0x69e   :  { %2283 = vrot.lane.b32.xlu1 %v13268_v31, %s10422_s23 }
 0x6e6   :  { %v4172_v25 = vpop.permute.xlu0 %4171 }
 0x6e7   :  { %v4211_v17 = vmax.f32 %v11954_v47, %v4172_v25 }
 0x6e8   :  { %v4174_v28 = vpop.permute.xlu1 %4173 }
 0x6e9   :  { %v4212_v10 = vmax.f32 %v11956_v36, %v4174_v28  ;;  %v10200_v28 = vld [vmem:[%s13083_s5 + $0x1e0] sm:$0xff]  }
 0x6ea   :  { %v2270_v53 = vpop.permute.xlu0 %2269 }
 0x6eb   :  { %v4234_v46 = vmax.f32 %v4211_v17, %v4212_v10  ;;  %v2307_v27 = vmax.f32 %v11329_v12, %v2270_v53 }
 0x6ec   :  { %v2272_v21 = vpop.permute.xlu1 %2271 }
 0x6ed   :  { %v4242_v20 = vadd.f32 %v11923_v51, %v4234_v46  ;;  %v2308_v39 = vmax.f32 %v11331_v29, %v2272_v21 }
 0x6ee   :  { %v4176_v49 = vpop.permute.xlu0 %4175 }
 0x6ef   :  { %v4243_v60 = vmax.f32 %v4242_v20, 0.0  ;;  %v2340_v62 = vmax.f32 %v2307_v27, %v2308_v39  ;;  %v4213_v47 = vmax.f32 %v11972_v16, %v4176_v49  ;;  %v10201_v39 = vld [vmem:[%s13083_s5 + $0x1e8] sm:$0xff]  }
 0x6f0   :  { %v4178_v61 = vpop.permute.xlu1 %4177 }
 0x6f1   :  { %4244 = vst.msk [vmem:[#allocation4 + $0x40] sm:$0xff] %vm2327_vm7, %v4243_v60  ;;  %v2348_v3 = vadd.f32 %v11923_v51, %v2340_v62  ;;  %v4214_v36 = vmax.f32 %v11979_v15, %v4178_v61  ;;  %v10196_v15 = vld [vmem:[%s13083_s5 + $0x1c0] sm:$0xff]  }
 0x6f2   :  { %v3631_v11 = vpop.permute.xlu0 %3630 }
 0x6f3   :  { %v2349_v7 = vmax.f32 %v2348_v3, 0.0  ;;  %v4245_v23 = vmax.f32 %v4213_v47, %v4214_v36  ;;  %3646 = vst.msk [vmem:[#allocation3 + $0x88] sm:$0xff] %vm13269_vm12, %v3631_v11  ;;  %v10202_v47 = vld [vmem:[%s13083_s5 + $0x1f0] sm:$0xff]  }
 0x6f4   :  { %v3688_v12 = vpop.permute.xlu1 %3687 }
 0x6f5   :  { %2350 = vst.msk [vmem:[#allocation4 + $0x10] sm:$0xff] %vm2327_vm7, %v2349_v7  ;;  %v4253_v29 = vadd.f32 %v11923_v51, %v4245_v23  ;;  %v10203_v23 = vld [vmem:[%s13083_s5 + $0x1f8] sm:$0xff]  }
 0x6f6   :  { %3703 = vst.msk [vmem:[#allocation3 + $0x88] sm:$0xff] %vm13270_vm14, %v3688_v12  ;;  %v3745_v52 = vpop.permute.xlu0 %3744 }
 0x6f7   :  { %v4254_v56 = vmax.f32 %v4253_v29, 0.0  ;;  %3760 = vst.msk [vmem:[#allocation3 + $0x88] sm:$0xff] %vm1448_vm1, %v3745_v52 }
 0x6f8   :  { %v2274_v1 = vpop.permute.xlu1 %2273  ;;  %v5334_v16 = vld [vmem:[#allocation4 + $0xe] ss:$56 sm:$0x3] }
 0x6f9   :  { %4255 = vst.msk [vmem:[#allocation4 + $0x48] sm:$0xff] %vm2327_vm7, %v4254_v56  ;;  %v5335_v22 = vpack.c.bf16 %v5334_v16, %v5334_v16  ;;  %v2309_v13 = vmax.f32 %v11333_v30, %v2274_v1  ;;  %v10206_v56 = vld [vmem:[%s13083_s5 + $0x210] sm:$0xff]   ;;  %v10207_v1 = vld [vmem:[%s13083_s5 + $0x218] sm:$0xff]  }
 0x6fa   :  { %v2276_v58 = vpop.permute.xlu0 %2275 }
 0x6fb   :  { %v2310_v32 = vmax.f32 %v11335_v44, %v2276_v58  ;;  %9469 = vmatmul.mubr.msk.bf16.vlgmr.msra.gmra.mrb[0].mxu0 %vm2327_vm7, %v5335_v22  ;;  %v10209_v58 = vld [vmem:[%s13083_s5 + $0x228] sm:$0xff]  }
 0x6fc   :  { %9473 = vmatpush3.bf16.msra.mxu0 %v10196_v15  ;;  %v4180_v59 = vpop.permute.xlu1 %4179  ;;  %9480 = vmatprep.mubr.msk.bf16.mxu0 %vm13151_vm3, %v13191_v5  ;;  %v10208_v15 = vld [vmem:[%s13083_s5 + $0x220] sm:$0xff]  }
 0x6fd   :  { %v2351_v38 = vmax.f32 %v2309_v13, %v2310_v32  ;;  %9474 = vmatprep.subr.bf16.mxu0 %v13191_v5  ;;  %v4215_v44 = vmax.f32 %v11989_v42, %v4180_v59  ;;  %v10210_v13 = vld [vmem:[%s13083_s5 + $0x230] sm:$0xff]   ;;  %v10211_v32 = vld [vmem:[%s13083_s5 + $0x238] sm:$0xff]  }
 0x6fe   :  { %v4182_v35 = vpop.permute.xlu0 %4181  ;;  %v3779_v4 = vld [vmem:[#allocation3 + $0x88] sm:$0xff] }
 0x6ff   :  { %v2359_v30 = vadd.f32 %v11923_v51, %v2351_v38  ;;  %v4216_v50 = vmax.f32 %v11993_v19, %v4182_v35  ;;  %9297 = vmatmul.mubr.bf16.gmra.mrb[160].mxu1 %v3779_v4  ;;  %v10213_v35 = vld [vmem:[%s13083_s5 + $0x248] sm:$0xff]   ;;  %v10214_v4 = vld [vmem:[%s13083_s5 + $0x250] sm:$0xff]  }
 0x700   :  { %9475 = vmatpush3.bf16.msra.mxu0 %v10197_v14  ;;  %v3633_v45 = vpop.permute.xlu1 %3632  ;;  %9300 = vmatprep.mubr.msk.bf16.mxu1 %vm13151_vm3, %v13191_v5  ;;  %v5413_v57 = vld [vmem:[#allocation4 + $0x10] ss:$56 sm:$0x3]  ;;  %v5492_v29 = vld [vmem:[#allocation4 + $0x11] ss:$56 sm:$0x3] }
 0x701   :  { %v2360_v6 = vmax.f32 %v2359_v30, 0.0  ;;  %v4256_v9 = vmax.f32 %v4215_v44, %v4216_v50  ;;  %3647 = vst.msk [vmem:[#allocation3 + $0xa0] sm:$0xff] %vm13271_vm8, %v3633_v45  ;;  %9476 = vmatprep.subr.bf16.mxu0 %v13191_v5  ;;  %v5414_v53 = vpack.c.bf16 %v5413_v57, %v5413_v57  ;;  %v5571_v16 = vld [vmem:[#allocation4 + $0x12] ss:$56 sm:$0x3]  ;;  %v10212_v14 = vld [vmem:[%s13083_s5 + $0x240] sm:$0xff]  }
 0x702   :  { %v3690_v63 = vpop.permute.xlu0 %3689  ;;  %v5572_v22 = vpack.c.bf16 %v5571_v16, %v5571_v16  ;;  %v5650_v59 = vld [vmem:[#allocation4 + $0x13] ss:$56 sm:$0x3]  ;;  %v5729_v44 = vld [vmem:[#allocation4 + $0x14] ss:$56 sm:$0x3] }
 0x703   :  { %2361 = vst.msk [vmem:[#allocation4 + $0x18] sm:$0xff] %vm2327_vm7, %v2360_v6  ;;  %v4264_v42 = vadd.f32 %v11923_v51, %v4256_v9  ;;  %v5651_v38 = vpack.c.bf16 %v5650_v59, %v5650_v59  ;;  %v10215_v30 = vld [vmem:[%s13083_s5 + $0x258] sm:$0xff]   ;;  %v10216_v50 = vld [vmem:[%s13083_s5 + $0x260] sm:$0xff]   ;;  %v5730_v45 = vpack.c.bf16 %v5729_v44, %v5729_v44  ;;  %v10218_v6 = vld [vmem:[%s13083_s5 + $0x270] sm:$0xff]  }
 0x704   :  { %3704 = vst.msk [vmem:[#allocation3 + $0xa0] sm:$0xff] %vm13272_vm15, %v3690_v63  ;;  %9477 = vmatpush3.bf16.msra.mxu0 %v10198_v18  ;;  %v3747_v19 = vpop.permute.xlu1 %3746  ;;  %v10217_v18 = vld [vmem:[%s13083_s5 + $0x268] sm:$0xff]   ;;  %v10219_v9 = vld [vmem:[%s13083_s5 + $0x278] sm:$0xff]   ;;  %v10248_v59 = vld [vmem:[%s13083_s5 + $0x360] sm:$0xff]  }
 0x705   :  { %v4265_v43 = vmax.f32 %v4264_v42, 0.0  ;;  %3761 = vst.msk [vmem:[#allocation3 + $0xa0] sm:$0xff] %vm1448_vm1, %v3747_v19  ;;  %9478 = vmatprep.subr.bf16.mxu0 %v13191_v5  ;;  %v5808_v63 = vld [vmem:[#allocation4 + $0x15] ss:$56 sm:$0x3]  ;;  %v10220_v42 = vld [vmem:[%s13083_s5 + $0x280] sm:$0xff]  }
 0x706   :  { %v2278_v24 = vpop.permute.xlu0 %2277  ;;  %v5809_v19 = vpack.c.bf16 %v5808_v63, %v5808_v63  ;;  %v5887_v57 = vld [vmem:[#allocation4 + $0x16] ss:$56 sm:$0x3] }
 0x707   :  { %4266 = vst.msk [vmem:[#allocation4 + $0x50] sm:$0xff] %vm2327_vm7, %v4265_v43  ;;  %v2311_v17 = vmax.f32 %v11337_v34, %v2278_v24  ;;  %v10222_v43 = vld [vmem:[%s13083_s5 + $0x290] sm:$0xff]   ;;  %v10223_v24 = vld [vmem:[%s13083_s5 + $0x298] sm:$0xff]  }
 0x708   :  { %9479 = vmatpush3.bf16.msra.mxu0 %v10199_v0  ;;  %v2280_v25 = vpop.permute.xlu1 %2279  ;;  %v10221_v0 = vld [vmem:[%s13083_s5 + $0x288] sm:$0xff]   ;;  %v13273_v63 = vld [vmem:[#allocation8_spill] sm:$0xff] }
 0x709   :  { %v2312_v10 = vmax.f32 %v11339_v37, %v2280_v25  ;;  %9484 = vmatprep.subr.bf16.mxu0 %v13191_v5  ;;  %v10224_v25 = vld [vmem:[%s13083_s5 + $0x2a0] sm:$0xff]  }
 0x70a   :  { %v4184_v46 = vpop.permute.xlu0 %4183 }
 0x70b   :  { %v2362_v21 = vmax.f32 %v2311_v17, %v2312_v10  ;;  %9481 = vmatmul.mubr.msk.bf16.vlgmr.msra.gmra.mrb[0].mxu0 %vm2327_vm7, %v5414_v53  ;;  %v4217_v37 = vmax.f32 %v12001_v2, %v4184_v46  ;;  %v10225_v17 = vld [vmem:[%s13083_s5 + $0x2a8] sm:$0xff]   ;;  %v10226_v10 = vld [vmem:[%s13083_s5 + $0x2b0] sm:$0xff]   ;;  %v10227_v53 = vld [vmem:[%s13083_s5 + $0x2b8] sm:$0xff]  }
 0x70c   :  { %9485 = vmatpush3.bf16.msra.mxu0 %v10200_v28  ;;  %v4186_v20 = vpop.permute.xlu1 %4185  ;;  %v3782_v27 = vld [vmem:[#allocation3 + $0xa0] sm:$0xff]  ;;  %9492 = vmatprep.mubr.msk.bf16.mxu0 %vm13151_vm3, %v13191_v5  ;;  %v5888_v28 = vpack.c.bf16 %v5887_v57, %v5887_v57 }
 0x70d   :  { %v2370_v34 = vadd.f32 %v11923_v51, %v2362_v21  ;;  %v4218_v49 = vmax.f32 %v12006_v54, %v4186_v20  ;;  %9301 = vmatmul.mubr.bf16.gmra.mrb[164].mxu1 %v3782_v27  ;;  %9486 = vmatprep.subr.bf16.mxu0 %v13191_v5  ;;  %v10228_v21 = vld [vmem:[%s13083_s5 + $0x2c0] sm:$0xff]   ;;  %v10229_v27 = vld [vmem:[%s13083_s5 + $0x2c8] sm:$0xff]  }
 0x70e   :  { %v2282_v60 = vpop.permute.xlu0 %2281  ;;  %9312 = vmatprep.mubr.msk.bf16.mxu1 %vm13151_vm3, %v13191_v5  ;;  %v5966_v46 = vld [vmem:[#allocation4 + $0x18] ss:$56 sm:$0x3] }
 0x70f   :  { %v2371_v62 = vmax.f32 %v2370_v34, 0.0  ;;  %v4267_v61 = vmax.f32 %v4217_v37, %v4218_v49  ;;  %v2313_v54 = vmax.f32 %v11341_v41, %v2282_v60  ;;  %v10204_v41 = vld [vmem:[%s13083_s5 + $0x200] sm:$0xff]   ;;  %v5967_v20 = vpack.c.bf16 %v5966_v46, %v5966_v46  ;;  %v10231_v34 = vld [vmem:[%s13083_s5 + $0x2d8] sm:$0xff]  }
 0x710   :  { %9487 = vmatpush3.bf16.msra.mxu0 %v10201_v39  ;;  %v2284_v3 = vpop.permute.xlu1 %2283  ;;  %v10230_v39 = vld [vmem:[%s13083_s5 + $0x2d0] sm:$0xff]   ;;  %v6045_v37 = vld [vmem:[#allocation4 + $0x19] ss:$56 sm:$0x3] }
 0x711   :  { %2372 = vst.msk [vmem:[#allocation4 + $0x20] sm:$0xff] %vm2327_vm7, %v2371_v62  ;;  %v4275_v2 = vadd.f32 %v11923_v51, %v4267_v61  ;;  %v2314_v36 = vmax.f32 %v13268_v31, %v2284_v3  ;;  %9488 = vmatprep.subr.bf16.mxu0 %v13191_v5  ;;  %v5493_v31 = vpack.c.bf16 %v5492_v29, %v5492_v29  ;;  %v10232_v49 = vld [vmem:[%s13083_s5 + $0x2e0] sm:$0xff]   ;;  %v10233_v62 = vld [vmem:[%s13083_s5 + $0x2e8] sm:$0xff]   ;;  %v10234_v61 = vld [vmem:[%s13083_s5 + $0x2f0] sm:$0xff]  }
 0x712   :  { %v6046_v60 = vpack.c.bf16 %v6045_v37, %v6045_v37  ;;  %v10235_v3 = vld [vmem:[%s13083_s5 + $0x2f8] sm:$0xff]  }
 0x713   :  { %v4276_v11 = vmax.f32 %v4275_v2, 0.0  ;;  %v2373_v7 = vmax.f32 %v2313_v54, %v2314_v36  ;;  %v10236_v2 = vld [vmem:[%s13083_s5 + $0x300] sm:$0xff]   ;;  %v10237_v36 = vld [vmem:[%s13083_s5 + $0x308] sm:$0xff]   ;;  %v10259_v37 = vld [vmem:[%s13083_s5 + $0x3b8] sm:$0xff]  }
 0x714   :  { %9489 = vmatpush3.bf16.msra.mxu0 %v10202_v47  ;;  %v6124_v47 = vld [vmem:[#allocation4 + $0x1a] ss:$56 sm:$0x3] }
 0x715   :  { %4277 = vst.msk [vmem:[#allocation4 + $0x58] sm:$0xff] %vm2327_vm7, %v4276_v11  ;;  %v2381_v12 = vadd.f32 %v11923_v51, %v2373_v7  ;;  %9490 = vmatprep.subr.bf16.mxu0 %v13191_v5  ;;  %v10205_v51 = vld [vmem:[%s13083_s5 + $0x208] sm:$0xff]   ;;  %v6125_v54 = vpack.c.bf16 %v6124_v47, %v6124_v47  ;;  %v10238_v11 = vld [vmem:[%s13083_s5 + $0x310] sm:$0xff]   ;;  %v10239_v7 = vld [vmem:[%s13083_s5 + $0x318] sm:$0xff]  }
 0x716   :  { %v10263_v47 = vld [vmem:[%s13083_s5 + $0x3d8] sm:$0xff]  }
 0x717   :  { %v2382_v52 = vmax.f32 %v2381_v12, 0.0  ;;  %v10240_v12 = vld [vmem:[%s13083_s5 + $0x320] sm:$0xff]  }
 0x718   :  { %9491 = vmatpush3.bf16.msra.mxu0 %v10203_v23  ;;  %v6203_v23 = vld [vmem:[#allocation4 + $0x1b] ss:$56 sm:$0x3] }
 0x719   :  { %2383 = vst.msk [vmem:[#allocation4 + $0x28] sm:$0xff] %vm2327_vm7, %v2382_v52  ;;  %9496 = vmatprep.subr.bf16.mxu0 %v13191_v5  ;;  %v6204_v29 = vpack.c.bf16 %v6203_v23, %v6203_v23  ;;  %v10241_v52 = vld [vmem:[%s13083_s5 + $0x328] sm:$0xff]   ;;  %v10267_v23 = vld [vmem:[%s13083_s5 + $0x3f8] sm:$0xff]  }
 0x71b   :  { %9493 = vmatmul.mubr.msk.bf16.vlgmr.msra.gmra.mrb[0].mxu0 %vm2327_vm7, %v5493_v31  ;;  %v10274_v31 = vld [vmem:[%s13083_s5] sm:$0xff]  }
 0x71c   :  { %9497 = vmatpush3.bf16.msra.mxu0 %v10204_v41  ;;  %9504 = vmatprep.mubr.msk.bf16.mxu0 %vm13151_vm3, %v13191_v5  ;;  %v10242_v41 = vld [vmem:[%s13083_s5 + $0x330] sm:$0xff]  }
 0x71d   :  { %9498 = vmatprep.subr.bf16.mxu0 %v13191_v5  ;;  %9305 = vmatpush3.bf16.msra.mxu1 %v10274_v31  ;;  %v10270_v31 = vld [vmem:[%s13083_s5 + $0x410] sm:$0xff]  }
 0x71e   :  { %9306 = vmatprep.subr.bf16.mxu1 %v13191_v5 }
 0x720   :  { %9499 = vmatpush3.bf16.msra.mxu0 %v10205_v51  ;;  %v10243_v51 = vld [vmem:[%s13083_s5 + $0x338] sm:$0xff]  }
 0x721   :  { %9500 = vmatprep.subr.bf16.mxu0 %v13191_v5 }
 0x724   :  { %9501 = vmatpush3.bf16.msra.mxu0 %v10206_v56  ;;  %v6282_v56 = vld [vmem:[#allocation4 + $0x1c] ss:$56 sm:$0x3] }
 0x725   :  { %9502 = vmatprep.subr.bf16.mxu0 %v13191_v5  ;;  %v6283_v16 = vpack.c.bf16 %v6282_v56, %v6282_v56  ;;  %v6835_v56 = vld [vmem:[#allocation4 + $0x24] ss:$56 sm:$0x3] }
 0x728   :  { %9503 = vmatpush3.bf16.msra.mxu0 %v10207_v1  ;;  %v10244_v1 = vld [vmem:[%s13083_s5 + $0x340] sm:$0xff]  }
 0x729   :  { %9508 = vmatprep.subr.bf16.mxu0 %v13191_v5 }
 0x72b   :  { %9505 = vmatmul.mubr.msk.bf16.vlgmr.msra.gmra.mrb[0].mxu0 %vm2327_vm7, %v5572_v22  ;;  %v10246_v22 = vld [vmem:[%s13083_s5 + $0x350] sm:$0xff]  }
 0x72c   :  { %9509 = vmatpush3.bf16.msra.mxu0 %v10208_v15  ;;  %9516 = vmatprep.mubr.msk.bf16.mxu0 %vm13151_vm3, %v13191_v5  ;;  %v10245_v15 = vld [vmem:[%s13083_s5 + $0x348] sm:$0xff]  }
 0x72d   :  { %9510 = vmatprep.subr.bf16.mxu0 %v13191_v5 }
 0x730   :  { %9511 = vmatpush3.bf16.msra.mxu0 %v10209_v58  ;;  %v10279_v58 = vld [vmem:[%s13083_s5 + $0x8] sm:$0xff]  }
 0x731   :  { %9512 = vmatprep.subr.bf16.mxu0 %v13191_v5  ;;  %9307 = vmatpush3.bf16.msra.mxu1 %v10279_v58  ;;  %v10276_v58 = vld [vmem:[%s13083_s5 + $0x438] sm:$0xff]  }
 0x732   :  { %9308 = vmatprep.subr.bf16.mxu1 %v13191_v5 }
 0x734   :  { %9513 = vmatpush3.bf16.msra.mxu0 %v10210_v13  ;;  %v10247_v13 = vld [vmem:[%s13083_s5 + $0x358] sm:$0xff]  }
 0x735   :  { %9514 = vmatprep.subr.bf16.mxu0 %v13191_v5 }
 0x738   :  { %9515 = vmatpush3.bf16.msra.mxu0 %v10211_v32  ;;  %v6361_v32 = vld [vmem:[#allocation4 + $0x1d] ss:$56 sm:$0x3] }
 0x739   :  { %9520 = vmatprep.subr.bf16.mxu0 %v13191_v5 }
 0x73b   :  { %9517 = vmatmul.mubr.msk.bf16.vlgmr.msra.gmra.mrb[0].mxu0 %vm2327_vm7, %v5651_v38  ;;  %v10249_v38 = vld [vmem:[%s13083_s5 + $0x368] sm:$0xff]  }
 0x73c   :  { %9521 = vmatpush3.bf16.msra.mxu0 %v10212_v14  ;;  %9528 = vmatprep.mubr.msk.bf16.mxu0 %vm13151_vm3, %v13191_v5  ;;  %v6362_v14 = vpack.c.bf16 %v6361_v32, %v6361_v32  ;;  %v10277_v32 = vld [vmem:[%s13083_s5 + $0x440] sm:$0xff]  }
 0x73d   :  { %9522 = vmatprep.subr.bf16.mxu0 %v13191_v5 }
 0x740   :  { %9523 = vmatpush3.bf16.msra.mxu0 %v10213_v35  ;;  %v10250_v35 = vld [vmem:[%s13083_s5 + $0x370] sm:$0xff]  }
 0x741   :  { %9524 = vmatprep.subr.bf16.mxu0 %v13191_v5 }
 0x744   :  { %9525 = vmatpush3.bf16.msra.mxu0 %v10214_v4 }
 0x745   :  { %9526 = vmatprep.subr.bf16.mxu0 %v13191_v5 }
 0x748   :  { %9527 = vmatpush3.bf16.msra.mxu0 %v10215_v30 }
 0x749   :  { %9532 = vmatprep.subr.bf16.mxu0 %v13191_v5 }
 0x74b   :  { %9529 = vmatmul.mubr.msk.bf16.vlgmr.msra.gmra.mrb[0].mxu0 %vm2327_vm7, %v5730_v45  ;;  %v10251_v45 = vld [vmem:[%s13083_s5 + $0x378] sm:$0xff]  }
 0x74c   :  { %9533 = vmatpush3.bf16.msra.mxu0 %v10216_v50  ;;  %9540 = vmatprep.mubr.msk.bf16.mxu0 %vm13151_vm3, %v13191_v5 }
 0x74d   :  { %9534 = vmatprep.subr.bf16.mxu0 %v13191_v5 }
 0x750   :  { %9535 = vmatpush3.bf16.msra.mxu0 %v10217_v18 }
 0x751   :  { %9536 = vmatprep.subr.bf16.mxu0 %v13191_v5 }
 0x754   :  { %9537 = vmatpush3.bf16.msra.mxu0 %v10218_v6 }
 0x755   :  { %9538 = vmatprep.subr.bf16.mxu0 %v13191_v5 }
 0x758   :  { %9539 = vmatpush3.bf16.msra.mxu0 %v10219_v9  ;;  %v6440_v9 = vld [vmem:[#allocation4 + $0x1e] ss:$56 sm:$0x3] }
 0x759   :  { %9544 = vmatprep.subr.bf16.mxu0 %v13191_v5 }
 0x75b   :  { %9541 = vmatmul.mubr.msk.bf16.vlgmr.msra.gmra.mrb[0].mxu0 %vm2327_vm7, %v5809_v19  ;;  %v13274_v19 = vld [vmem:[#allocation9_spill] sm:$0xff] }
 0x75c   :  { %9545 = vmatpush3.bf16.msra.mxu0 %v10220_v42  ;;  %9552 = vmatprep.mubr.msk.bf16.mxu0 %vm13151_vm3, %v13191_v5  ;;  %v6441_v42 = vpack.c.bf16 %v6440_v9, %v6440_v9 }
 0x75d   :  { %9546 = vmatprep.subr.bf16.mxu0 %v13191_v5 }
 0x760   :  { %9547 = vmatpush3.bf16.msra.mxu0 %v10221_v0  ;;  %v10253_v0 = vld [vmem:[%s13083_s5 + $0x388] sm:$0xff]  }
 0x761   :  { %9548 = vmatprep.subr.bf16.mxu0 %v13191_v5 }
 0x764   :  { %9549 = vmatpush3.bf16.msra.mxu0 %v10222_v43 }
 0x765   :  { %9550 = vmatprep.subr.bf16.mxu0 %v13191_v5 }
 0x768   :  { %9551 = vmatpush3.bf16.msra.mxu0 %v10223_v24  ;;  %v10254_v24 = vld [vmem:[%s13083_s5 + $0x390] sm:$0xff]  }
 0x769   :  { %9556 = vmatprep.subr.bf16.mxu0 %v13191_v5 }
 0x76b   :  { %9553 = vmatmul.mubr.msk.bf16.vlgmr.msra.gmra.mrb[0].mxu0 %vm2327_vm7, %v5888_v28  ;;  %v13275_v28 = vld [vmem:[#allocation11_spill] sm:$0xff] }
 0x76c   :  { %9557 = vmatpush3.bf16.msra.mxu0 %v10224_v25  ;;  %9564 = vmatprep.mubr.msk.bf16.mxu0 %vm13151_vm3, %v13191_v5 }
 0x76d   :  { %9558 = vmatprep.subr.bf16.mxu0 %v13191_v5 }
 0x770   :  { %9559 = vmatpush3.bf16.msra.mxu0 %v10225_v17 }
 0x771   :  { %9560 = vmatprep.subr.bf16.mxu0 %v13191_v5 }
 0x774   :  { %9561 = vmatpush3.bf16.msra.mxu0 %v10226_v10  ;;  %v10287_v10 = vld [vmem:[%s13083_s5 + $0x18] sm:$0xff]  }
 0x775   :  { %9562 = vmatprep.subr.bf16.mxu0 %v13191_v5 }
 0x778   :  { %9563 = vmatpush3.bf16.msra.mxu0 %v10227_v53 }
 0x779   :  { %9568 = vmatprep.subr.bf16.mxu0 %v13191_v5 }
 0x77b   :  { %9565 = vmatmul.mubr.msk.bf16.vlgmr.msra.gmra.mrb[0].mxu0 %vm2327_vm7, %v5967_v20  ;;  %v6519_v20 = vld [vmem:[#allocation4 + $0x20] ss:$56 sm:$0x3] }
 0x77c   :  { %9569 = vmatpush3.bf16.msra.mxu0 %v10228_v21  ;;  %9576 = vmatprep.mubr.msk.bf16.mxu0 %vm13151_vm3, %v13191_v5  ;;  %v13276_v21 = vld [vmem:[#allocation12_spill] sm:$0xff] }
 0x77d   :  { %9570 = vmatprep.subr.bf16.mxu0 %v13191_v5 }
 0x780   :  { %9571 = vmatpush3.bf16.msra.mxu0 %v10229_v27  ;;  %v6520_v27 = vpack.c.bf16 %v6519_v20, %v6519_v20 }
 0x781   :  { %9572 = vmatprep.subr.bf16.mxu0 %v13191_v5 }
 0x784   :  { %9573 = vmatpush3.bf16.msra.mxu0 %v10230_v39  ;;  %v10257_v39 = vld [vmem:[%s13083_s5 + $0x3a8] sm:$0xff]  }
 0x785   :  { %9574 = vmatprep.subr.bf16.mxu0 %v13191_v5 }
 0x788   :  { %9575 = vmatpush3.bf16.msra.mxu0 %v10231_v34  ;;  %v10258_v34 = vld [vmem:[%s13083_s5 + $0x3b0] sm:$0xff]  }
 0x789   :  { %9580 = vmatprep.subr.bf16.mxu0 %v13191_v5 }
 0x78b   :  { %9577 = vmatmul.mubr.msk.bf16.vlgmr.msra.gmra.mrb[0].mxu0 %vm2327_vm7, %v6046_v60  ;;  %v10260_v60 = vld [vmem:[%s13083_s5 + $0x3c0] sm:$0xff]  }
 0x78c   :  { %9581 = vmatpush3.bf16.msra.mxu0 %v10232_v49  ;;  %9588 = vmatprep.mubr.msk.bf16.mxu0 %vm13151_vm3, %v13191_v5  ;;  %v6598_v49 = vld [vmem:[#allocation4 + $0x21] ss:$56 sm:$0x3] }
 0x78d   :  { %9582 = vmatprep.subr.bf16.mxu0 %v13191_v5 }
 0x790   :  { %9583 = vmatpush3.bf16.msra.mxu0 %v10233_v62  ;;  %v6599_v62 = vpack.c.bf16 %v6598_v49, %v6598_v49 }
 0x791   :  { %9584 = vmatprep.subr.bf16.mxu0 %v13191_v5 }
 0x794   :  { %9585 = vmatpush3.bf16.msra.mxu0 %v10234_v61  ;;  %v10261_v61 = vld [vmem:[%s13083_s5 + $0x3c8] sm:$0xff]  }
 0x795   :  { %9586 = vmatprep.subr.bf16.mxu0 %v13191_v5 }
 0x798   :  { %9587 = vmatpush3.bf16.msra.mxu0 %v10235_v3  ;;  %v10262_v3 = vld [vmem:[%s13083_s5 + $0x3d0] sm:$0xff]  }
 0x799   :  { %9592 = vmatprep.subr.bf16.mxu0 %v13191_v5 }
 0x79b   :  { %9589 = vmatmul.mubr.msk.bf16.vlgmr.msra.gmra.mrb[0].mxu0 %vm2327_vm7, %v6125_v54  ;;  %v10264_v54 = vld [vmem:[%s13083_s5 + $0x3e0] sm:$0xff]  }
 0x79c   :  { %9593 = vmatpush3.bf16.msra.mxu0 %v10236_v2  ;;  %9600 = vmatprep.mubr.msk.bf16.mxu0 %vm13151_vm3, %v13191_v5  ;;  %v6677_v2 = vld [vmem:[#allocation4 + $0x22] ss:$56 sm:$0x3] }
 0x79d   :  { %9594 = vmatprep.subr.bf16.mxu0 %v13191_v5 }
 0x7a0   :  { %9595 = vmatpush3.bf16.msra.mxu0 %v10237_v36  ;;  %v6678_v36 = vpack.c.bf16 %v6677_v2, %v6677_v2 }
 0x7a1   :  { %9596 = vmatprep.subr.bf16.mxu0 %v13191_v5 }
 0x7a4   :  { %9597 = vmatpush3.bf16.msra.mxu0 %v10238_v11  ;;  %v10265_v11 = vld [vmem:[%s13083_s5 + $0x3e8] sm:$0xff]  }
 0x7a5   :  { %9598 = vmatprep.subr.bf16.mxu0 %v13191_v5 }
 0x7a8   :  { %9599 = vmatpush3.bf16.msra.mxu0 %v10239_v7  ;;  %v10266_v7 = vld [vmem:[%s13083_s5 + $0x3f0] sm:$0xff]  }
 0x7a9   :  { %9604 = vmatprep.subr.bf16.mxu0 %v13191_v5 }
 0x7ab   :  { %9601 = vmatmul.mubr.msk.bf16.vlgmr.msra.gmra.mrb[0].mxu0 %vm2327_vm7, %v6204_v29  ;;  %v10268_v29 = vld [vmem:[%s13083_s5 + $0x400] sm:$0xff]  }
 0x7ac   :  { %9605 = vmatpush3.bf16.msra.mxu0 %v10240_v12  ;;  %9612 = vmatprep.mubr.msk.bf16.mxu0 %vm13151_vm3, %v13191_v5  ;;  %v6756_v12 = vld [vmem:[#allocation4 + $0x23] ss:$56 sm:$0x3] }
 0x7ad   :  { %9606 = vmatprep.subr.bf16.mxu0 %v13191_v5 }
 0x7b0   :  { %9607 = vmatpush3.bf16.msra.mxu0 %v10241_v52  ;;  %v6757_v52 = vpack.c.bf16 %v6756_v12, %v6756_v12  ;;  %v10289_v12 = vld [vmem:[%s13083_s5 + $0x488] sm:$0xff]  }
 0x7b1   :  { %9608 = vmatprep.subr.bf16.mxu0 %v13191_v5 }
 0x7b4   :  { %9609 = vmatpush3.bf16.msra.mxu0 %v10242_v41  ;;  %v10269_v41 = vld [vmem:[%s13083_s5 + $0x408] sm:$0xff]  }
 0x7b5   :  { %9610 = vmatprep.subr.bf16.mxu0 %v13191_v5 }
 0x7b8   :  { %9611 = vmatpush3.bf16.msra.mxu0 %v10243_v51  ;;  %v10271_v51 = vld [vmem:[%s13083_s5 + $0x418] sm:$0xff]  }
 0x7b9   :  { %9616 = vmatprep.subr.bf16.mxu0 %v13191_v5 }
 0x7bb   :  { %9613 = vmatmul.mubr.msk.bf16.vlgmr.msra.gmra.mrb[0].mxu0 %vm2327_vm7, %v6283_v16  ;;  %v6836_v16 = vpack.c.bf16 %v6835_v56, %v6835_v56  ;;  %v10293_v56 = vld [vmem:[%s13083_s5 + $0x498] sm:$0xff]  }
 0x7bc   :  { %9617 = vmatpush3.bf16.msra.mxu0 %v10244_v1  ;;  %9624 = vmatprep.mubr.msk.bf16.mxu0 %vm13151_vm3, %v13191_v5  ;;  %v10272_v1 = vld [vmem:[%s13083_s5 + $0x420] sm:$0xff]  }
 0x7bd   :  { %9618 = vmatprep.subr.bf16.mxu0 %v13191_v5 }
 0x7c0   :  { %9619 = vmatpush3.bf16.msra.mxu0 %v10245_v15  ;;  %v10273_v15 = vld [vmem:[%s13083_s5 + $0x428] sm:$0xff]  }
 0x7c1   :  { %9620 = vmatprep.subr.bf16.mxu0 %v13191_v5 }
 0x7c4   :  { %9621 = vmatpush3.bf16.msra.mxu0 %v10246_v22  ;;  %v10275_v22 = vld [vmem:[%s13083_s5 + $0x430] sm:$0xff]  }
 0x7c5   :  { %9622 = vmatprep.subr.bf16.mxu0 %v13191_v5 }
 0x7c8   :  { %9623 = vmatpush3.bf16.msra.mxu0 %v10247_v13  ;;  %v6914_v13 = vld [vmem:[#allocation4 + $0x25] ss:$56 sm:$0x3] }
 0x7c9   :  { %9628 = vmatprep.subr.bf16.mxu0 %v13191_v5 }
 0x7cb   :  { %9625 = vmatmul.mubr.msk.bf16.vlgmr.msra.gmra.mrb[0].mxu0 %vm2327_vm7, %v6362_v14  ;;  %v10278_v14 = vld [vmem:[%s13083_s5 + $0x448] sm:$0xff]  }
 0x7cc   :  { %9629 = vmatpush3.bf16.msra.mxu0 %v10248_v59  ;;  %9636 = vmatprep.mubr.msk.bf16.mxu0 %vm13151_vm3, %v13191_v5  ;;  %v6915_v59 = vpack.c.bf16 %v6914_v13, %v6914_v13  ;;  %v10297_v13 = vld [vmem:[%s13083_s5 + $0x4a8] sm:$0xff]  }
 0x7cd   :  { %9630 = vmatprep.subr.bf16.mxu0 %v13191_v5 }
 0x7d0   :  { %9631 = vmatpush3.bf16.msra.mxu0 %v10249_v38  ;;  %v10280_v38 = vld [vmem:[%s13083_s5 + $0x450] sm:$0xff]  }
 0x7d1   :  { %9632 = vmatprep.subr.bf16.mxu0 %v13191_v5 }
 0x7d2   :  { %v4138_v4 = vpop.f32.mrb[160].mxu1 }
 0x7d3   :  { %v12337_v30 = vadd.f32 %v11939_v26, %v4138_v4  ;;  %v9298_v44 = vpop.f32.mrb[161].mxu1  ;;  %v10283_v26 = vld [vmem:[%s13083_s5 + $0x10] sm:$0xff]   ;;  %v6993_v4 = vld [vmem:[#allocation4 + $0x26] ss:$56 sm:$0x3] }
 0x7d4   :  { %9633 = vmatpush3.bf16.msra.mxu0 %v10250_v35  ;;  %v4141_v50 = vpop.f32.mrb[162].mxu1  ;;  %9309 = vmatpush3.bf16.msra.mxu1 %v10283_v26  ;;  %v10281_v35 = vld [vmem:[%s13083_s5 + $0x458] sm:$0xff]  }
 0x7d5   :  { %v12343_v18 = vadd.f32 %v11941_v55, %v4141_v50  ;;  %4187 = vrot.lane.b32.xlu0 %v12337_v30, %s10422_s23  ;;  %v9299_v6 = vpop.f32.mrb[163].mxu1  ;;  %9634 = vmatprep.subr.bf16.mxu0 %v13191_v5  ;;  %v10252_v55 = vld [vmem:[%s13083_s5 + $0x380] sm:$0xff]  }
 0x7d6   :  { %9310 = vmatprep.subr.bf16.mxu1 %v13191_v5  ;;  %v10282_v50 = vld [vmem:[%s13083_s5 + $0x460] sm:$0xff]   ;;  %v6994_v6 = vpack.c.bf16 %v6993_v4, %v6993_v4  ;;  %v10301_v4 = vld [vmem:[%s13083_s5 + $0x4b8] sm:$0xff]  }
 0x7d7   :  { %4189 = vrot.lane.b32.xlu1 %v12343_v18, %s10422_s23 }
 0x7d8   :  { %9635 = vmatpush3.bf16.msra.mxu0 %v10251_v45  ;;  %9311 = vmatpush3.bf16.msra.mxu1 %v10287_v10 }
 0x7d9   :  { %2261 = vrot.lane.b32.xlu0 %v13273_v63, %s10422_s23  ;;  %9640 = vmatprep.subr.bf16.mxu0 %v13191_v5 }
 0x7da   :  { %9316 = vmatprep.subr.bf16.mxu1 %v13191_v5 }
 0x7db   :  { %9637 = vmatmul.mubr.msk.bf16.vlgmr.msra.gmra.mrb[0].mxu0 %vm2327_vm7, %v6441_v42  ;;  %2263 = vrot.lane.b32.xlu1 %v13274_v19, %s10422_s23 }
 0x7dc   :  { %9641 = vmatpush3.bf16.msra.mxu0 %v10252_v55  ;;  %9648 = vmatprep.mubr.msk.bf16.mxu0 %vm13151_vm3, %v13191_v5  ;;  %v8457_v55 = vld [vmem:[%s13082_s4] ss:$0 sm:$0xff] }
 0x7dd   :  { %4167 = vrot.lane.b32.xlu0 %v11947_v33, %s10422_s23  ;;  %9642 = vmatprep.subr.bf16.mxu0 %v13191_v5 }
 0x7df   :  { %4169 = vrot.lane.b32.xlu1 %v11949_v48, %s10422_s23 }
 0x7e0   :  { %9643 = vmatpush3.bf16.msra.mxu0 %v10253_v0  ;;  %v4146_v43 = vpop.f32.mrb[164].mxu1 }
 0x7e1   :  { %v12377_v57 = vadd.f32 %v11943_v40, %v4146_v43  ;;  %v9302_v25 = vpop.f32.mrb[165].mxu1  ;;  %2285 = vrot.lane.b32.xlu0 %v13275_v28, %s10422_s23  ;;  %9644 = vmatprep.subr.bf16.mxu0 %v13191_v5  ;;  %v10255_v40 = vld [vmem:[%s13083_s5 + $0x398] sm:$0xff]   ;;  %v10284_v43 = vld [vmem:[%s13083_s5 + $0x468] sm:$0xff]  }
 0x7e2   :  { %v4149_v17 = vpop.f32.mrb[166].mxu1 }
 0x7e3   :  { %v12386_v53 = vadd.f32 %v11945_v8, %v4149_v17  ;;  %v9303_v46 = vpop.f32.mrb[167].mxu1  ;;  %2287 = vrot.lane.b32.xlu1 %v13276_v21, %s10422_s23  ;;  %v10256_v8 = vld [vmem:[%s13083_s5 + $0x3a0] sm:$0xff]  }
 0x7e4   :  { %9645 = vmatpush3.bf16.msra.mxu0 %v10254_v24 }
 0x7e5   :  { %4191 = vrot.lane.b32.xlu0 %v12377_v57, %s10422_s23  ;;  %9646 = vmatprep.subr.bf16.mxu0 %v13191_v5 }
 0x7e7   :  { %4193 = vrot.lane.b32.xlu1 %v12386_v53, %s10422_s23 }
 0x7e8   :  { %9647 = vmatpush3.bf16.msra.mxu0 %v10255_v40  ;;  %v10285_v40 = vld [vmem:[%s13083_s5 + $0x470] sm:$0xff]  }
 0x7e9   :  { %9652 = vmatprep.subr.bf16.mxu0 %v13191_v5 }
 0x7eb   :  { %9649 = vmatmul.mubr.msk.bf16.vlgmr.msra.gmra.mrb[0].mxu0 %vm2327_vm7, %v6520_v27 }
 0x7ec   :  { %9653 = vmatpush3.bf16.msra.mxu0 %v10256_v8  ;;  %9660 = vmatprep.mubr.msk.bf16.mxu0 %vm13151_vm3, %v13191_v5 }
 0x7ed   :  { %9654 = vmatprep.subr.bf16.mxu0 %v13191_v5 }
 0x7f0   :  { %9655 = vmatpush3.bf16.msra.mxu0 %v10257_v39 }
 0x7f1   :  { %9656 = vmatprep.subr.bf16.mxu0 %v13191_v5 }
 0x7f4   :  { %9657 = vmatpush3.bf16.msra.mxu0 %v10258_v34 }
 0x7f5   :  { %9658 = vmatprep.subr.bf16.mxu0 %v13191_v5 }
 0x7f8   :  { %9659 = vmatpush3.bf16.msra.mxu0 %v10259_v37  ;;  %v10286_v37 = vld [vmem:[%s13083_s5 + $0x478] sm:$0xff]  }
 0x7f9   :  { %9664 = vmatprep.subr.bf16.mxu0 %v13191_v5 }
 0x7fb   :  { %9661 = vmatmul.mubr.msk.bf16.vlgmr.msra.gmra.mrb[0].mxu0 %vm2327_vm7, %v6599_v62 }
 0x7fc   :  { %9665 = vmatpush3.bf16.msra.mxu0 %v10260_v60  ;;  %9672 = vmatprep.mubr.msk.bf16.mxu0 %vm13151_vm3, %v13191_v5 }
 0x7fd   :  { %9666 = vmatprep.subr.bf16.mxu0 %v13191_v5 }
 0x800   :  { %9667 = vmatpush3.bf16.msra.mxu0 %v10261_v61 }
 0x801   :  { %9668 = vmatprep.subr.bf16.mxu0 %v13191_v5 }
 0x804   :  { %9669 = vmatpush3.bf16.msra.mxu0 %v10262_v3 }
 0x805   :  { %9670 = vmatprep.subr.bf16.mxu0 %v13191_v5 }
 0x808   :  { %9671 = vmatpush3.bf16.msra.mxu0 %v10263_v47 }
 0x809   :  { %9676 = vmatprep.subr.bf16.mxu0 %v13191_v5 }
 0x80b   :  { %9673 = vmatmul.mubr.msk.bf16.vlgmr.msra.gmra.mrb[0].mxu0 %vm2327_vm7, %v6678_v36 }
 0x80c   :  { %9677 = vmatpush3.bf16.msra.mxu0 %v10264_v54  ;;  %9684 = vmatprep.mubr.msk.bf16.mxu0 %vm13151_vm3, %v13191_v5  ;;  %v10288_v54 = vld [vmem:[%s13083_s5 + $0x480] sm:$0xff]  }
 0x80d   :  { %9678 = vmatprep.subr.bf16.mxu0 %v13191_v5 }
 0x810   :  { %9679 = vmatpush3.bf16.msra.mxu0 %v10265_v11 }
 0x811   :  { %9680 = vmatprep.subr.bf16.mxu0 %v13191_v5 }
 0x814   :  { %9681 = vmatpush3.bf16.msra.mxu0 %v10266_v7 }
 0x815   :  { %9682 = vmatprep.subr.bf16.mxu0 %v13191_v5 }
 0x818   :  { %9683 = vmatpush3.bf16.msra.mxu0 %v10267_v23 }
 0x819   :  { %9688 = vmatprep.subr.bf16.mxu0 %v13191_v5 }
 0x81b   :  { %9685 = vmatmul.mubr.msk.bf16.vlgmr.msra.gmra.mrb[0].mxu0 %vm2327_vm7, %v6757_v52  ;;  %v10290_v52 = vld [vmem:[%s13083_s5 + $0x20] sm:$0xff]  }
 0x81c   :  { %9689 = vmatpush3.bf16.msra.mxu0 %v10268_v29  ;;  %9696 = vmatprep.mubr.msk.bf16.mxu0 %vm13151_vm3, %v13191_v5 }
 0x81d   :  { %9690 = vmatprep.subr.bf16.mxu0 %v13191_v5 }
 0x820   :  { %9691 = vmatpush3.bf16.msra.mxu0 %v10269_v41  ;;  %v10291_v41 = vld [vmem:[%s13083_s5 + $0x490] sm:$0xff]  }
 0x821   :  { %9692 = vmatprep.subr.bf16.mxu0 %v13191_v5 }
 0x824   :  { %9693 = vmatpush3.bf16.msra.mxu0 %v10270_v31 }
 0x825   :  { %9694 = vmatprep.subr.bf16.mxu0 %v13191_v5 }
 0x828   :  { %9695 = vmatpush3.bf16.msra.mxu0 %v10271_v51  ;;  %v10292_v51 = vld [vmem:[%s13083_s5 + $0x28] sm:$0xff]  }
 0x829   :  { %9700 = vmatprep.subr.bf16.mxu0 %v13191_v5 }
 0x82b   :  { %9697 = vmatmul.mubr.msk.bf16.vlgmr.msra.gmra.mrb[0].mxu0 %vm2327_vm7, %v6836_v16  ;;  %v10294_v16 = vld [vmem:[%s13083_s5 + $0x30] sm:$0xff]  }
 0x82c   :  { %9701 = vmatpush3.bf16.msra.mxu0 %v10272_v1  ;;  %9708 = vmatprep.mubr.msk.bf16.mxu0 %vm13151_vm3, %v13191_v5 }
 0x82d   :  { %9702 = vmatprep.subr.bf16.mxu0 %v13191_v5 }
 0x830   :  { %9703 = vmatpush3.bf16.msra.mxu0 %v10273_v15  ;;  %v10295_v15 = vld [vmem:[%s13083_s5 + $0x4a0] sm:$0xff]  }
 0x831   :  { %9704 = vmatprep.subr.bf16.mxu0 %v13191_v5 }
 0x834   :  { %9705 = vmatpush3.bf16.msra.mxu0 %v10275_v22 }
 0x835   :  { %9706 = vmatprep.subr.bf16.mxu0 %v13191_v5 }
 0x838   :  { %9707 = vmatpush3.bf16.msra.mxu0 %v10276_v58  ;;  %v10296_v58 = vld [vmem:[%s13083_s5 + $0x38] sm:$0xff]  }
 0x839   :  { %9712 = vmatprep.subr.bf16.mxu0 %v13191_v5 }
 0x83b   :  { %9709 = vmatmul.mubr.msk.bf16.vlgmr.msra.gmra.mrb[0].mxu0 %vm2327_vm7, %v6915_v59  ;;  %v10298_v59 = vld [vmem:[%s13083_s5 + $0x40] sm:$0xff]  }
 0x83c   :  { %9713 = vmatpush3.bf16.msra.mxu0 %v10277_v32  ;;  %9720 = vmatprep.mubr.msk.bf16.mxu0 %vm13151_vm3, %v13191_v5 }
 0x83d   :  { %9714 = vmatprep.subr.bf16.mxu0 %v13191_v5 }
 0x840   :  { %9715 = vmatpush3.bf16.msra.mxu0 %v10278_v14  ;;  %v10299_v14 = vld [vmem:[%s13083_s5 + $0x4b0] sm:$0xff]  }
 0x841   :  { %9716 = vmatprep.subr.bf16.mxu0 %v13191_v5 }
 0x844   :  { %9717 = vmatpush3.bf16.msra.mxu0 %v10280_v38 }
 0x845   :  { %9718 = vmatprep.subr.bf16.mxu0 %v13191_v5 }
 0x847   :  { %v4188_v44 = vpop.permute.xlu0 %4187 }
 0x848   :  { %9719 = vmatpush3.bf16.msra.mxu0 %v10281_v35  ;;  %v4219_v9 = vmax.f32 %v12337_v30, %v4188_v44  ;;  %v10300_v35 = vld [vmem:[%s13083_s5 + $0x48] sm:$0xff]  }
 0x849   :  { %v4190_v45 = vpop.permute.xlu1 %4189  ;;  %9724 = vmatprep.subr.bf16.mxu0 %v13191_v5 }
 0x84a   :  { %v4220_v26 = vmax.f32 %v12343_v18, %v4190_v45  ;;  %v10303_v45 = vld [vmem:[%s13083_s5 + $0x4c0] sm:$0xff]  }
 0x84b   :  { %9721 = vmatmul.mubr.msk.bf16.vlgmr.msra.gmra.mrb[0].mxu0 %vm2327_vm7, %v6994_v6  ;;  %v2262_v42 = vpop.permute.xlu0 %2261 }
 0x84c   :  { %v4278_v0 = vmax.f32 %v4219_v9, %v4220_v26  ;;  %9725 = vmatpush3.bf16.msra.mxu0 %v10282_v50  ;;  %9732 = vmatprep.mubr.msk.bf16.mxu0 %vm13151_vm3, %v13191_v5  ;;  %v2303_v18 = vmax.f32 %v13273_v63, %v2262_v42  ;;  %v10302_v50 = vld [vmem:[%s13083_s5 + $0x50] sm:$0xff]   ;;  %v10304_v9 = vld [vmem:[%s13083_s5 + $0x58] sm:$0xff]   ;;  %v10305_v26 = vld [vmem:[%s13083_s5 + $0x4c8] sm:$0xff]  }
 0x84d   :  { %v2264_v24 = vpop.permute.xlu1 %2263  ;;  %9726 = vmatprep.subr.bf16.mxu0 %v13191_v5  ;;  %v10306_v42 = vld [vmem:[%s13083_s5 + $0x60] sm:$0xff]  }
 0x84e   :  { %v4286_v30 = vadd.f32 %v8457_v55, %v4278_v0  ;;  %v2304_v25 = vmax.f32 %v13274_v19, %v2264_v24  ;;  %v10307_v0 = vld [vmem:[%s13083_s5 + $0x4d0] sm:$0xff]   ;;  %v10308_v24 = vld [vmem:[%s13083_s5 + $0x68] sm:$0xff]  }
 0x84f   :  { %v4168_v17 = vpop.permute.xlu0 %4167 }
 0x850   :  { %v4287_v10 = vmax.f32 %v4286_v30, 0.0  ;;  %v2317_v46 = vmax.f32 %v2303_v18, %v2304_v25  ;;  %9727 = vmatpush3.bf16.msra.mxu0 %v10284_v43  ;;  %v4209_v27 = vmax.f32 %v11947_v33, %v4168_v17  ;;  %v10309_v30 = vld [vmem:[%s13083_s5 + $0x4d8] sm:$0xff]   ;;  %v10310_v25 = vld [vmem:[%s13083_s5 + $0x70] sm:$0xff]   ;;  %v10311_v17 = vld [vmem:[%s13083_s5 + $0x4e0] sm:$0xff]  }
 0x851   :  { %v4170_v20 = vpop.permute.xlu1 %4169  ;;  %9728 = vmatprep.subr.bf16.mxu0 %v13191_v5 }
 0x852   :  { %4288 = vst.msk [vmem:[#allocation4 + $0x60] sm:$0xff] %vm2327_vm7, %v4287_v10  ;;  %v2325_v8 = vadd.f32 %v8457_v55, %v2317_v46  ;;  %v4210_v63 = vmax.f32 %v11949_v48, %v4170_v20  ;;  %v10312_v46 = vld [vmem:[%s13083_s5 + $0x78] sm:$0xff]  }
 0x853   :  { %v2286_v39 = vpop.permute.xlu0 %2285 }
 0x854   :  { %v2326_v19 = vmax.f32 %v2325_v8, 0.0  ;;  %v4223_v34 = vmax.f32 %v4209_v27, %v4210_v63  ;;  %9729 = vmatpush3.bf16.msra.mxu0 %v10285_v40  ;;  %v2315_v62 = vmax.f32 %v13275_v28, %v2286_v39  ;;  %v10313_v40 = vld [vmem:[%s13083_s5 + $0x4e8] sm:$0xff]   ;;  %v10314_v8 = vld [vmem:[%s13083_s5 + $0x80] sm:$0xff]   ;;  %v10315_v27 = vld [vmem:[%s13083_s5 + $0x4f0] sm:$0xff]  }
 0x855   :  { %v2288_v49 = vpop.permute.xlu1 %2287  ;;  %9730 = vmatprep.subr.bf16.mxu0 %v13191_v5  ;;  %v10316_v39 = vld [vmem:[%s13083_s5 + $0x88] sm:$0xff]  }
 0x856   :  { %2328 = vst.msk [vmem:[#allocation4] sm:$0xff] %vm2327_vm7, %v2326_v19  ;;  %v4231_v60 = vadd.f32 %v8457_v55, %v4223_v34  ;;  %v2316_v33 = vmax.f32 %v13276_v21, %v2288_v49  ;;  %v10317_v19 = vld [vmem:[%s13083_s5 + $0x4f8] sm:$0xff]   ;;  %v10319_v49 = vld [vmem:[%s13083_s5 + $0x500] sm:$0xff]  }
 0x857   :  { %v4192_v61 = vpop.permute.xlu0 %4191 }
 0x858   :  { %v4232_v48 = vmax.f32 %v4231_v60, 0.0  ;;  %v2384_v3 = vmax.f32 %v2315_v62, %v2316_v33  ;;  %9731 = vmatpush3.bf16.msra.mxu0 %v10286_v37  ;;  %v4221_v11 = vmax.f32 %v12377_v57, %v4192_v61  ;;  %v10318_v37 = vld [vmem:[%s13083_s5 + $0x90] sm:$0xff]   ;;  %v10320_v62 = vld [vmem:[%s13083_s5 + $0x98] sm:$0xff]   ;;  %v10321_v33 = vld [vmem:[%s13083_s5 + $0x508] sm:$0xff]  }
 0x859   :  { %v4194_v47 = vpop.permute.xlu1 %4193  ;;  %9736 = vmatprep.subr.bf16.mxu0 %v13191_v5  ;;  %v7072_v2 = vld [vmem:[#allocation4 + $0x28] ss:$56 sm:$0x3]  ;;  %v7151_v1 = vld [vmem:[#allocation4 + $0x29] ss:$56 sm:$0x3] }
 0x85a   :  { %4233 = vst.msk [vmem:[#allocation4 + $0x38] sm:$0xff] %vm2327_vm7, %v4232_v48  ;;  %v2392_v36 = vadd.f32 %v8457_v55, %v2384_v3  ;;  %v4222_v28 = vmax.f32 %v12386_v53, %v4194_v47  ;;  %v7073_v21 = vpack.c.bf16 %v7072_v2, %v7072_v2  ;;  %v7152_v22 = vpack.c.bf16 %v7151_v1, %v7151_v1  ;;  %v7230_v44 = vld [vmem:[#allocation4 + $0x2a] ss:$56 sm:$0x3]  ;;  %v10322_v48 = vld [vmem:[%s13083_s5 + $0xa0] sm:$0xff]  }
 0x85b   :  { %v7231_v6 = vpack.c.bf16 %v7230_v44, %v7230_v44  ;;  %v7309_v18 = vld [vmem:[#allocation4 + $0x2b] ss:$56 sm:$0x3]  ;;  %v7388_v34 = vld [vmem:[#allocation4 + $0x2c] ss:$56 sm:$0x3] }
 0x85c   :  { %v2393_v7 = vmax.f32 %v2392_v36, 0.0  ;;  %v4289_v23 = vmax.f32 %v4221_v11, %v4222_v28  ;;  %9733 = vmatmul.mubr.msk.bf16.vlgmr.msra.gmra.mrb[0].mxu0 %vm2327_vm7, %v7073_v21  ;;  %v7310_v10 = vpack.c.bf16 %v7309_v18, %v7309_v18  ;;  %v7389_v60 = vpack.c.bf16 %v7388_v34, %v7388_v34  ;;  %v10323_v3 = vld [vmem:[%s13083_s5 + $0x510] sm:$0xff]   ;;  %v10324_v2 = vld [vmem:[%s13083_s5 + $0xa8] sm:$0xff]   ;;  %v10327_v28 = vld [vmem:[%s13083_s5 + $0x520] sm:$0xff]  }
 0x85d   :  { %9737 = vmatpush3.bf16.msra.mxu0 %v10288_v54  ;;  %9744 = vmatprep.mubr.msk.bf16.mxu0 %vm13151_vm3, %v13191_v5  ;;  %v10325_v54 = vld [vmem:[%s13083_s5 + $0x518] sm:$0xff]   ;;  %v7467_v36 = vld [vmem:[#allocation4 + $0x2d] ss:$56 sm:$0x3] }
 0x85e   :  { %2394 = vst.msk [vmem:[#allocation4 + $0x30] sm:$0xff] %vm2327_vm7, %v2393_v7  ;;  %v4297_v29 = vadd.f32 %v8457_v55, %v4289_v23  ;;  %9738 = vmatprep.subr.bf16.mxu0 %v13191_v5  ;;  %v10326_v11 = vld [vmem:[%s13083_s5 + $0xb0] sm:$0xff]   ;;  %v7468_v21 = vpack.c.bf16 %v7467_v36, %v7467_v36  ;;  %v10328_v7 = vld [vmem:[%s13083_s5 + $0xb8] sm:$0xff]   ;;  %v10329_v23 = vld [vmem:[%s13083_s5 + $0x528] sm:$0xff]  }
 0x860   :  { %v4298_v57 = vmax.f32 %v4297_v29, 0.0  ;;  %v10330_v29 = vld [vmem:[%s13083_s5 + $0xc0] sm:$0xff]  }
 0x861   :  { %9739 = vmatpush3.bf16.msra.mxu0 %v10289_v12  ;;  %v4307_v53 = vld [vmem:[#allocation4] ss:$56 sm:$0x3]  ;;  %v4386_v32 = vld [vmem:[#allocation4 + $0x1] ss:$56 sm:$0x3] }
 0x862   :  { %4299 = vst.msk [vmem:[#allocation4 + $0x68] sm:$0xff] %vm2327_vm7, %v4298_v57  ;;  %9740 = vmatprep.subr.bf16.mxu0 %v13191_v5  ;;  %v4308_v31 = vpack.c.bf16 %v4307_v53, %v4307_v53  ;;  %v4387_v38 = vpack.c.bf16 %v4386_v32, %v4386_v32  ;;  %v4465_v55 = vld [vmem:[#allocation4 + $0x2] ss:$56 sm:$0x3]  ;;  %v10331_v57 = vld [vmem:[%s13083_s5 + $0x530] sm:$0xff]  }
 0x863   :  { %v4466_v43 = vpack.c.bf16 %v4465_v55, %v4465_v55  ;;  %v4544_v20 = vld [vmem:[#allocation4 + $0x3] ss:$56 sm:$0x3]  ;;  %v4623_v61 = vld [vmem:[#allocation4 + $0x4] ss:$56 sm:$0x3] }
 0x864   :  { %9313 = vmatmul.mubr.msk.bf16.vlgmr.msra.gmra.mrb[168].mxu1 %vm2327_vm7, %v4308_v31  ;;  %v4545_v63 = vpack.c.bf16 %v4544_v20, %v4544_v20  ;;  %v4624_v47 = vpack.c.bf16 %v4623_v61, %v4623_v61  ;;  %v4702_v12 = vld [vmem:[#allocation4 + $0x5] ss:$56 sm:$0x3]  ;;  %v7546_v31 = vld [vmem:[#allocation4 + $0x2e] ss:$56 sm:$0x3] }
 0x865   :  { %9317 = vmatpush3.bf16.msra.mxu1 %v10290_v52  ;;  %9741 = vmatpush3.bf16.msra.mxu0 %v10291_v41  ;;  %v4703_v53 = vpack.c.bf16 %v4702_v12, %v4702_v12  ;;  %v10332_v52 = vld [vmem:[%s13083_s5 + $0xc8] sm:$0xff]   ;;  %v10333_v41 = vld [vmem:[%s13083_s5 + $0x538] sm:$0xff]   ;;  %v7547_v1 = vpack.c.bf16 %v7546_v31, %v7546_v31 }
 0x866   :  { %9318 = vmatprep.subr.bf16.mxu1 %v13191_v5  ;;  %9742 = vmatprep.subr.bf16.mxu0 %v13191_v5 }
 0x867   :  { %9324 = vmatprep.mubr.msk.bf16.mxu1 %vm13151_vm3, %v13191_v5 }
 0x869   :  { %9319 = vmatpush3.bf16.msra.mxu1 %v10292_v51  ;;  %9743 = vmatpush3.bf16.msra.mxu0 %v10293_v56  ;;  %v10334_v51 = vld [vmem:[%s13083_s5 + $0xd0] sm:$0xff]   ;;  %v10335_v56 = vld [vmem:[%s13083_s5 + $0x540] sm:$0xff]  }
 0x86a   :  { %9320 = vmatprep.subr.bf16.mxu1 %v13191_v5  ;;  %9748 = vmatprep.subr.bf16.mxu0 %v13191_v5 }
 0x86c   :  { %9745 = vmatmul.mubr.msk.bf16.vlgmr.msra.gmra.mrb[0].mxu0 %vm2327_vm7, %v7152_v22  ;;  %v4781_v22 = vld [vmem:[#allocation4 + $0x6] ss:$56 sm:$0x3] }
 0x86d   :  { %9321 = vmatpush3.bf16.msra.mxu1 %v10294_v16  ;;  %9749 = vmatpush3.bf16.msra.mxu0 %v10295_v15  ;;  %v10336_v16 = vld [vmem:[%s13083_s5 + $0xd8] sm:$0xff]   ;;  %v10337_v15 = vld [vmem:[%s13083_s5 + $0x548] sm:$0xff]   ;;  %v4782_v32 = vpack.c.bf16 %v4781_v22, %v4781_v22 }
 0x86e   :  { %9322 = vmatprep.subr.bf16.mxu1 %v13191_v5  ;;  %9750 = vmatprep.subr.bf16.mxu0 %v13191_v5 }
 0x86f   :  { %9756 = vmatprep.mubr.msk.bf16.mxu0 %vm13151_vm3, %v13191_v5 }
 0x871   :  { %9323 = vmatpush3.bf16.msra.mxu1 %v10296_v58  ;;  %9751 = vmatpush3.bf16.msra.mxu0 %v10297_v13  ;;  %v10338_v58 = vld [vmem:[%s13083_s5 + $0xe0] sm:$0xff]   ;;  %v10339_v13 = vld [vmem:[%s13083_s5 + $0x550] sm:$0xff]  }
 0x872   :  { %9328 = vmatprep.subr.bf16.mxu1 %v13191_v5  ;;  %9752 = vmatprep.subr.bf16.mxu0 %v13191_v5 }
 0x874   :  { %9325 = vmatmul.mubr.msk.bf16.vlgmr.msra.gmra.mrb[168].mxu1 %vm2327_vm7, %v4387_v38  ;;  %v7625_v38 = vld [vmem:[#allocation4 + $0x30] ss:$56 sm:$0x3] }
 0x875   :  { %9329 = vmatpush3.bf16.msra.mxu1 %v10298_v59  ;;  %9753 = vmatpush3.bf16.msra.mxu0 %v10299_v14  ;;  %v10340_v59 = vld [vmem:[%s13083_s5 + $0xe8] sm:$0xff]   ;;  %v10341_v14 = vld [vmem:[%s13083_s5 + $0x558] sm:$0xff]   ;;  %v7626_v44 = vpack.c.bf16 %v7625_v38, %v7625_v38 }
 0x876   :  { %9330 = vmatprep.subr.bf16.mxu1 %v13191_v5  ;;  %9754 = vmatprep.subr.bf16.mxu0 %v13191_v5 }
 0x877   :  { %9336 = vmatprep.mubr.msk.bf16.mxu1 %vm13151_vm3, %v13191_v5 }
 0x879   :  { %9331 = vmatpush3.bf16.msra.mxu1 %v10300_v35  ;;  %9755 = vmatpush3.bf16.msra.mxu0 %v10301_v4  ;;  %v10342_v35 = vld [vmem:[%s13083_s5 + $0xf0] sm:$0xff]   ;;  %v10343_v4 = vld [vmem:[%s13083_s5 + $0x560] sm:$0xff]  }
 0x87a   :  { %9332 = vmatprep.subr.bf16.mxu1 %v13191_v5  ;;  %9760 = vmatprep.subr.bf16.mxu0 %v13191_v5 }
 0x87c   :  { %9757 = vmatmul.mubr.msk.bf16.vlgmr.msra.gmra.mrb[0].mxu0 %vm2327_vm7, %v7231_v6  ;;  %v4860_v6 = vld [vmem:[#allocation4 + $0x8] ss:$56 sm:$0x3] }
 0x87d   :  { %9333 = vmatpush3.bf16.msra.mxu1 %v10302_v50  ;;  %9761 = vmatpush3.bf16.msra.mxu0 %v10303_v45  ;;  %v10344_v50 = vld [vmem:[%s13083_s5 + $0xf8] sm:$0xff]   ;;  %v10345_v45 = vld [vmem:[%s13083_s5 + $0x568] sm:$0xff]   ;;  %v4861_v55 = vpack.c.bf16 %v4860_v6, %v4860_v6 }
 0x87e   :  { %9334 = vmatprep.subr.bf16.mxu1 %v13191_v5  ;;  %9762 = vmatprep.subr.bf16.mxu0 %v13191_v5 }
 0x87f   :  { %9768 = vmatprep.mubr.msk.bf16.mxu0 %vm13151_vm3, %v13191_v5 }
 0x881   :  { %9335 = vmatpush3.bf16.msra.mxu1 %v10304_v9  ;;  %9763 = vmatpush3.bf16.msra.mxu0 %v10305_v26  ;;  %v10346_v9 = vld [vmem:[%s13083_s5 + $0x100] sm:$0xff]   ;;  %v10347_v26 = vld [vmem:[%s13083_s5 + $0x570] sm:$0xff]  }
 0x882   :  { %9340 = vmatprep.subr.bf16.mxu1 %v13191_v5  ;;  %9764 = vmatprep.subr.bf16.mxu0 %v13191_v5 }
 0x884   :  { %9337 = vmatmul.mubr.msk.bf16.vlgmr.msra.gmra.mrb[168].mxu1 %vm2327_vm7, %v4466_v43  ;;  %v7704_v43 = vld [vmem:[#allocation4 + $0x31] ss:$56 sm:$0x3] }
 0x885   :  { %9341 = vmatpush3.bf16.msra.mxu1 %v10306_v42  ;;  %9765 = vmatpush3.bf16.msra.mxu0 %v10307_v0  ;;  %v10348_v42 = vld [vmem:[%s13083_s5 + $0x108] sm:$0xff]   ;;  %v10349_v0 = vld [vmem:[%s13083_s5 + $0x578] sm:$0xff]   ;;  %v7705_v18 = vpack.c.bf16 %v7704_v43, %v7704_v43 }
 0x886   :  { %9342 = vmatprep.subr.bf16.mxu1 %v13191_v5  ;;  %9766 = vmatprep.subr.bf16.mxu0 %v13191_v5  ;;  %v10391_v43 = vld [vmem:[%s13085_s7 + $0x18] sm:$0xff]  }
 0x887   :  { %9348 = vmatprep.mubr.msk.bf16.mxu1 %vm13151_vm3, %v13191_v5 }
 0x889   :  { %9343 = vmatpush3.bf16.msra.mxu1 %v10308_v24  ;;  %9767 = vmatpush3.bf16.msra.mxu0 %v10309_v30  ;;  %v10350_v24 = vld [vmem:[%s13083_s5 + $0x110] sm:$0xff]   ;;  %v10351_v30 = vld [vmem:[%s13083_s5 + $0x580] sm:$0xff]  }
 0x88a   :  { %9344 = vmatprep.subr.bf16.mxu1 %v13191_v5  ;;  %9772 = vmatprep.subr.bf16.mxu0 %v13191_v5 }
 0x88c   :  { %9769 = vmatmul.mubr.msk.bf16.vlgmr.msra.gmra.mrb[0].mxu0 %vm2327_vm7, %v7310_v10  ;;  %v4939_v10 = vld [vmem:[#allocation4 + $0x9] ss:$56 sm:$0x3] }
 0x88d   :  { %9345 = vmatpush3.bf16.msra.mxu1 %v10310_v25  ;;  %9773 = vmatpush3.bf16.msra.mxu0 %v10311_v17  ;;  %v10352_v25 = vld [vmem:[%s13083_s5 + $0x118] sm:$0xff]   ;;  %v10353_v17 = vld [vmem:[%s13083_s5 + $0x588] sm:$0xff]   ;;  %v4940_v20 = vpack.c.bf16 %v4939_v10, %v4939_v10 }
 0x88e   :  { %9346 = vmatprep.subr.bf16.mxu1 %v13191_v5  ;;  %9774 = vmatprep.subr.bf16.mxu0 %v13191_v5 }
 0x88f   :  { %9780 = vmatprep.mubr.msk.bf16.mxu0 %vm13151_vm3, %v13191_v5 }
 0x891   :  { %9347 = vmatpush3.bf16.msra.mxu1 %v10312_v46  ;;  %9775 = vmatpush3.bf16.msra.mxu0 %v10313_v40  ;;  %v10354_v46 = vld [vmem:[%s13083_s5 + $0x120] sm:$0xff]   ;;  %v10355_v40 = vld [vmem:[%s13083_s5 + $0x590] sm:$0xff]  }
 0x892   :  { %9352 = vmatprep.subr.bf16.mxu1 %v13191_v5  ;;  %9776 = vmatprep.subr.bf16.mxu0 %v13191_v5 }
 0x894   :  { %9349 = vmatmul.mubr.msk.bf16.vlgmr.msra.gmra.mrb[168].mxu1 %vm2327_vm7, %v4545_v63  ;;  %v7783_v63 = vld [vmem:[#allocation4 + $0x32] ss:$56 sm:$0x3] }
 0x895   :  { %9353 = vmatpush3.bf16.msra.mxu1 %v10314_v8  ;;  %9777 = vmatpush3.bf16.msra.mxu0 %v10315_v27  ;;  %v10356_v8 = vld [vmem:[%s13083_s5 + $0x128] sm:$0xff]   ;;  %v10357_v27 = vld [vmem:[%s13083_s5 + $0x598] sm:$0xff]   ;;  %v7784_v34 = vpack.c.bf16 %v7783_v63, %v7783_v63 }
 0x896   :  { %9354 = vmatprep.subr.bf16.mxu1 %v13191_v5  ;;  %9778 = vmatprep.subr.bf16.mxu0 %v13191_v5 }
 0x897   :  { %9360 = vmatprep.mubr.msk.bf16.mxu1 %vm13151_vm3, %v13191_v5 }
 0x899   :  { %9355 = vmatpush3.bf16.msra.mxu1 %v10316_v39  ;;  %9779 = vmatpush3.bf16.msra.mxu0 %v10317_v19  ;;  %v10358_v39 = vld [vmem:[%s13083_s5 + $0x130] sm:$0xff]   ;;  %v10359_v19 = vld [vmem:[%s13083_s5 + $0x5a0] sm:$0xff]  }
 0x89a   :  { %9356 = vmatprep.subr.bf16.mxu1 %v13191_v5  ;;  %9784 = vmatprep.subr.bf16.mxu0 %v13191_v5 }
 0x89c   :  { %9781 = vmatmul.mubr.msk.bf16.vlgmr.msra.gmra.mrb[0].mxu0 %vm2327_vm7, %v7389_v60  ;;  %v5018_v60 = vld [vmem:[#allocation4 + $0xa] ss:$56 sm:$0x3] }
 0x89d   :  { %9357 = vmatpush3.bf16.msra.mxu1 %v10318_v37  ;;  %9785 = vmatpush3.bf16.msra.mxu0 %v10319_v49  ;;  %v10360_v37 = vld [vmem:[%s13083_s5 + $0x138] sm:$0xff]   ;;  %v10361_v49 = vld [vmem:[%s13083_s5 + $0x5a8] sm:$0xff]   ;;  %v5019_v61 = vpack.c.bf16 %v5018_v60, %v5018_v60 }
 0x89e   :  { %9358 = vmatprep.subr.bf16.mxu1 %v13191_v5  ;;  %9786 = vmatprep.subr.bf16.mxu0 %v13191_v5 }
 0x89f   :  { %9792 = vmatprep.mubr.msk.bf16.mxu0 %vm13151_vm3, %v13191_v5 }
 0x8a1   :  { %9359 = vmatpush3.bf16.msra.mxu1 %v10320_v62  ;;  %9787 = vmatpush3.bf16.msra.mxu0 %v10321_v33  ;;  %v10362_v62 = vld [vmem:[%s13083_s5 + $0x140] sm:$0xff]   ;;  %v10363_v33 = vld [vmem:[%s13083_s5 + $0x5b0] sm:$0xff]  }
 0x8a2   :  { %9364 = vmatprep.subr.bf16.mxu1 %v13191_v5  ;;  %9788 = vmatprep.subr.bf16.mxu0 %v13191_v5 }
 0x8a4   :  { %9361 = vmatmul.mubr.msk.bf16.vlgmr.msra.gmra.mrb[168].mxu1 %vm2327_vm7, %v4624_v47  ;;  %v7862_v47 = vld [vmem:[#allocation4 + $0x33] ss:$56 sm:$0x3] }
 0x8a5   :  { %9365 = vmatpush3.bf16.msra.mxu1 %v10322_v48  ;;  %9789 = vmatpush3.bf16.msra.mxu0 %v10323_v3  ;;  %v10364_v48 = vld [vmem:[%s13083_s5 + $0x148] sm:$0xff]   ;;  %v10365_v3 = vld [vmem:[%s13083_s5 + $0x5b8] sm:$0xff]   ;;  %v7863_v36 = vpack.c.bf16 %v7862_v47, %v7862_v47 }
 0x8a6   :  { %9366 = vmatprep.subr.bf16.mxu1 %v13191_v5  ;;  %9790 = vmatprep.subr.bf16.mxu0 %v13191_v5 }
 0x8a7   :  { %9372 = vmatprep.mubr.msk.bf16.mxu1 %vm13151_vm3, %v13191_v5 }
 0x8a9   :  { %9367 = vmatpush3.bf16.msra.mxu1 %v10324_v2  ;;  %9791 = vmatpush3.bf16.msra.mxu0 %v10325_v54  ;;  %v10366_v2 = vld [vmem:[%s13083_s5 + $0x150] sm:$0xff]   ;;  %v10367_v54 = vld [vmem:[%s13083_s5 + $0x5c0] sm:$0xff]  }
 0x8aa   :  { %9368 = vmatprep.subr.bf16.mxu1 %v13191_v5  ;;  %9796 = vmatprep.subr.bf16.mxu0 %v13191_v5 }
 0x8ac   :  { %9793 = vmatmul.mubr.msk.bf16.vlgmr.msra.gmra.mrb[0].mxu0 %vm2327_vm7, %v7468_v21  ;;  %v5097_v21 = vld [vmem:[#allocation4 + $0xb] ss:$56 sm:$0x3] }
 0x8ad   :  { %9369 = vmatpush3.bf16.msra.mxu1 %v10326_v11  ;;  %9797 = vmatpush3.bf16.msra.mxu0 %v10327_v28  ;;  %v10368_v11 = vld [vmem:[%s13083_s5 + $0x158] sm:$0xff]   ;;  %v10369_v28 = vld [vmem:[%s13083_s5 + $0x5c8] sm:$0xff]   ;;  %v5098_v12 = vpack.c.bf16 %v5097_v21, %v5097_v21 }
 0x8ae   :  { %9370 = vmatprep.subr.bf16.mxu1 %v13191_v5  ;;  %9798 = vmatprep.subr.bf16.mxu0 %v13191_v5 }
 0x8af   :  { %9804 = vmatprep.mubr.msk.bf16.mxu0 %vm13151_vm3, %v13191_v5 }
 0x8b1   :  { %9371 = vmatpush3.bf16.msra.mxu1 %v10328_v7  ;;  %9799 = vmatpush3.bf16.msra.mxu0 %v10329_v23  ;;  %v10370_v7 = vld [vmem:[%s13083_s5 + $0x160] sm:$0xff]   ;;  %v10371_v23 = vld [vmem:[%s13083_s5 + $0x5d0] sm:$0xff]  }
 0x8b2   :  { %9376 = vmatprep.subr.bf16.mxu1 %v13191_v5  ;;  %9800 = vmatprep.subr.bf16.mxu0 %v13191_v5 }
 0x8b4   :  { %9373 = vmatmul.mubr.msk.bf16.vlgmr.msra.gmra.mrb[168].mxu1 %vm2327_vm7, %v4703_v53  ;;  %v7941_v53 = vld [vmem:[#allocation4 + $0x34] ss:$56 sm:$0x3] }
 0x8b5   :  { %9377 = vmatpush3.bf16.msra.mxu1 %v10330_v29  ;;  %9801 = vmatpush3.bf16.msra.mxu0 %v10331_v57  ;;  %v10372_v29 = vld [vmem:[%s13083_s5 + $0x168] sm:$0xff]   ;;  %v10373_v57 = vld [vmem:[%s13083_s5 + $0x5d8] sm:$0xff]   ;;  %v7942_v31 = vpack.c.bf16 %v7941_v53, %v7941_v53 }
 0x8b6   :  { %9378 = vmatprep.subr.bf16.mxu1 %v13191_v5  ;;  %9802 = vmatprep.subr.bf16.mxu0 %v13191_v5 }
 0x8b7   :  { %9384 = vmatprep.mubr.msk.bf16.mxu1 %vm13151_vm3, %v13191_v5 }
 0x8b9   :  { %9379 = vmatpush3.bf16.msra.mxu1 %v10332_v52  ;;  %9803 = vmatpush3.bf16.msra.mxu0 %v10333_v41  ;;  %v10374_v52 = vld [vmem:[%s13083_s5 + $0x170] sm:$0xff]   ;;  %v10375_v41 = vld [vmem:[%s13083_s5 + $0x5e0] sm:$0xff]  }
 0x8ba   :  { %9380 = vmatprep.subr.bf16.mxu1 %v13191_v5  ;;  %9808 = vmatprep.subr.bf16.mxu0 %v13191_v5 }
 0x8bc   :  { %9805 = vmatmul.mubr.msk.bf16.vlgmr.msra.gmra.mrb[0].mxu0 %vm2327_vm7, %v7547_v1  ;;  %v5176_v1 = vld [vmem:[#allocation4 + $0xc] ss:$56 sm:$0x3] }
 0x8bd   :  { %9381 = vmatpush3.bf16.msra.mxu1 %v10334_v51  ;;  %9809 = vmatpush3.bf16.msra.mxu0 %v10335_v56  ;;  %v10376_v51 = vld [vmem:[%s13083_s5 + $0x178] sm:$0xff]   ;;  %v10377_v56 = vld [vmem:[%s13083_s5 + $0x5e8] sm:$0xff]   ;;  %v5177_v22 = vpack.c.bf16 %v5176_v1, %v5176_v1 }
 0x8be   :  { %9382 = vmatprep.subr.bf16.mxu1 %v13191_v5  ;;  %9810 = vmatprep.subr.bf16.mxu0 %v13191_v5 }
 0x8bf   :  { %9816 = vmatprep.mubr.msk.bf16.mxu0 %vm13151_vm3, %v13191_v5 }
 0x8c1   :  { %9383 = vmatpush3.bf16.msra.mxu1 %v10336_v16  ;;  %9811 = vmatpush3.bf16.msra.mxu0 %v10337_v15  ;;  %v10378_v16 = vld [vmem:[%s13083_s5 + $0x180] sm:$0xff]   ;;  %v10379_v15 = vld [vmem:[%s13083_s5 + $0x5f0] sm:$0xff]  }
 0x8c2   :  { %9388 = vmatprep.subr.bf16.mxu1 %v13191_v5  ;;  %9812 = vmatprep.subr.bf16.mxu0 %v13191_v5 }
 0x8c4   :  { %9385 = vmatmul.mubr.msk.bf16.vlgmr.msra.gmra.mrb[168].mxu1 %vm2327_vm7, %v4782_v32  ;;  %v8020_v32 = vld [vmem:[#allocation4 + $0x35] ss:$56 sm:$0x3] }
 0x8c5   :  { %9389 = vmatpush3.bf16.msra.mxu1 %v10338_v58  ;;  %9813 = vmatpush3.bf16.msra.mxu0 %v10339_v13  ;;  %v10380_v58 = vld [vmem:[%s13083_s5 + $0x188] sm:$0xff]   ;;  %v10381_v13 = vld [vmem:[%s13083_s5 + $0x5f8] sm:$0xff]   ;;  %v8021_v38 = vpack.c.bf16 %v8020_v32, %v8020_v32 }
 0x8c6   :  { %9390 = vmatprep.subr.bf16.mxu1 %v13191_v5  ;;  %9814 = vmatprep.subr.bf16.mxu0 %v13191_v5 }
 0x8c7   :  { %9396 = vmatprep.mubr.msk.bf16.mxu1 %vm13151_vm3, %v13191_v5 }
 0x8c9   :  { %9391 = vmatpush3.bf16.msra.mxu1 %v10340_v59  ;;  %9815 = vmatpush3.bf16.msra.mxu0 %v10341_v14  ;;  %v10382_v59 = vld [vmem:[%s13083_s5 + $0x190] sm:$0xff]   ;;  %v10383_v14 = vld [vmem:[%s13083_s5 + $0x600] sm:$0xff]  }
 0x8ca   :  { %9392 = vmatprep.subr.bf16.mxu1 %v13191_v5  ;;  %9820 = vmatprep.subr.bf16.mxu0 %v13191_v5 }
 0x8cc   :  { %9817 = vmatmul.mubr.msk.bf16.vlgmr.msra.gmra.mrb[0].mxu0 %vm2327_vm7, %v7626_v44  ;;  %v5255_v44 = vld [vmem:[#allocation4 + $0xd] ss:$56 sm:$0x3] }
 0x8cd   :  { %9393 = vmatpush3.bf16.msra.mxu1 %v10342_v35  ;;  %9821 = vmatpush3.bf16.msra.mxu0 %v10343_v4  ;;  %v10384_v35 = vld [vmem:[%s13083_s5 + $0x198] sm:$0xff]   ;;  %v10385_v4 = vld [vmem:[%s13083_s5 + $0x608] sm:$0xff]   ;;  %v5256_v6 = vpack.c.bf16 %v5255_v44, %v5255_v44 }
 0x8ce   :  { %9394 = vmatprep.subr.bf16.mxu1 %v13191_v5  ;;  %9822 = vmatprep.subr.bf16.mxu0 %v13191_v5 }
 0x8cf   :  { %9828 = vmatprep.mubr.msk.bf16.mxu0 %vm13151_vm3, %v13191_v5 }
 0x8d1   :  { %9395 = vmatpush3.bf16.msra.mxu1 %v10344_v50  ;;  %9823 = vmatpush3.bf16.msra.mxu0 %v10345_v45  ;;  %v10386_v50 = vld [vmem:[%s13083_s5 + $0x610] sm:$0xff]   ;;  %v10388_v45 = vld [vmem:[%s13085_s7] sm:$0xff]  }
 0x8d2   :  { %9400 = vmatprep.subr.bf16.mxu1 %v13191_v5  ;;  %9824 = vmatprep.subr.bf16.mxu0 %v13191_v5 }
 0x8d4   :  { %9397 = vmatmul.mubr.msk.bf16.vlgmr.msra.gmra.mrb[168].mxu1 %vm2327_vm7, %v4861_v55  ;;  %v8099_v55 = vld [vmem:[#allocation4 + $0x36] ss:$56 sm:$0x3] }
 0x8d5   :  { %9401 = vmatpush3.bf16.msra.mxu1 %v10346_v9  ;;  %9825 = vmatpush3.bf16.msra.mxu0 %v10347_v26  ;;  %v10387_v9 = vld [vmem:[%s13083_s5 + $0x618] sm:$0xff]   ;;  %v10389_v26 = vld [vmem:[%s13085_s7 + $0x8] sm:$0xff]  }
 0x8d6   :  { %9402 = vmatprep.subr.bf16.mxu1 %v13191_v5  ;;  %9826 = vmatprep.subr.bf16.mxu0 %v13191_v5 }
 0x8d7   :  { %9408 = vmatprep.mubr.msk.bf16.mxu1 %vm13151_vm3, %v13191_v5 }
 0x8d9   :  { %9403 = vmatpush3.bf16.msra.mxu1 %v10348_v42  ;;  %9827 = vmatpush3.bf16.msra.mxu0 %v10349_v0  ;;  %v10390_v42 = vld [vmem:[%s13085_s7 + $0x10] sm:$0xff]   ;;  %v8100_v0 = vpack.c.bf16 %v8099_v55, %v8099_v55 }
 0x8da   :  { %9404 = vmatprep.subr.bf16.mxu1 %v13191_v5  ;;  %9832 = vmatprep.subr.bf16.mxu0 %v13191_v5 }
 0x8dc   :  { %9829 = vmatmul.mubr.msk.bf16.vlgmr.msra.gmra.mrb[0].mxu0 %vm2327_vm7, %v7705_v18  ;;  %v10394_v18 = vld [vmem:[%s13085_s7 + $0x30] sm:$0xff]  }
 0x8dd   :  { %9405 = vmatpush3.bf16.msra.mxu1 %v10350_v24  ;;  %9833 = vmatpush3.bf16.msra.mxu0 %v10351_v30  ;;  %v10392_v24 = vld [vmem:[%s13085_s7 + $0x20] sm:$0xff]   ;;  %v10393_v30 = vld [vmem:[%s13085_s7 + $0x28] sm:$0xff]  }
 0x8de   :  { %9406 = vmatprep.subr.bf16.mxu1 %v13191_v5  ;;  %9834 = vmatprep.subr.bf16.mxu0 %v13191_v5 }
 0x8df   :  { %9840 = vmatprep.mubr.msk.bf16.mxu0 %vm13151_vm3, %v13191_v5 }
 0x8e1   :  { %9407 = vmatpush3.bf16.msra.mxu1 %v10352_v25  ;;  %9835 = vmatpush3.bf16.msra.mxu0 %v10353_v17  ;;  %v10395_v25 = vld [vmem:[%s13085_s7 + $0x38] sm:$0xff]  }
 0x8e2   :  { %9412 = vmatprep.subr.bf16.mxu1 %v13191_v5  ;;  %9836 = vmatprep.subr.bf16.mxu0 %v13191_v5 }
 0x8e4   :  { %9409 = vmatmul.mubr.msk.bf16.vlgmr.msra.gmra.mrb[168].mxu1 %vm2327_vm7, %v4940_v20  ;;  %v8459_v20 = vld [vmem:[%s13084_s6] ss:$0 sm:$0xff]  ;;  %s10396_s6 = scalar_lea.vmem %s8298_s14, 32 }
 0x8e5   :  { %9413 = vmatpush3.bf16.msra.mxu1 %v10354_v46  ;;  %9837 = vmatpush3.bf16.msra.mxu0 %v10355_v40  ;;  %p10397_p0 = scmp.ne.s32.totalorder %s8298_s14, %s10396_s6  ;;  %p10402_p2 = scmp.lt.s32.totalorder %s10396_s6, %s10396_s6 }
 0x8e6   :  { %9414 = vmatprep.subr.bf16.mxu1 %v13191_v5  ;;  %9838 = vmatprep.subr.bf16.mxu0 %v13191_v5 }
 0x8e7   :  { %9420 = vmatprep.mubr.msk.bf16.mxu1 %vm13151_vm3, %v13191_v5  ;;  %p10403_p3 = por %p10402_p2, %p10401_p1 }
 0x8e9   :  { %9415 = vmatpush3.bf16.msra.mxu1 %v10356_v8  ;;  %9839 = vmatpush3.bf16.msra.mxu0 %v10357_v27  ;;  %p10404_p4 = pnand %p10403_p3, %p10397_p0 }
 0x8ea   :  { %9416 = vmatprep.subr.bf16.mxu1 %v13191_v5  ;;  %9844 = vmatprep.subr.bf16.mxu0 %v13191_v5 }
 0x8ec   :  { %9841 = vmatmul.mubr.msk.bf16.vlgmr.msra.gmra.mrb[0].mxu0 %vm2327_vm7, %v7784_v34 }
 0x8ed   :  { %9417 = vmatpush3.bf16.msra.mxu1 %v10358_v39  ;;  %9845 = vmatpush3.bf16.msra.mxu0 %v10359_v19 }
 0x8ee   :  { %9418 = vmatprep.subr.bf16.mxu1 %v13191_v5  ;;  %9846 = vmatprep.subr.bf16.mxu0 %v13191_v5 }
 0x8ef   :  { %9852 = vmatprep.mubr.msk.bf16.mxu0 %vm13151_vm3, %v13191_v5 }
 0x8f1   :  { %9419 = vmatpush3.bf16.msra.mxu1 %v10360_v37  ;;  %9847 = vmatpush3.bf16.msra.mxu0 %v10361_v49 }
 0x8f2   :  { %9424 = vmatprep.subr.bf16.mxu1 %v13191_v5  ;;  %9848 = vmatprep.subr.bf16.mxu0 %v13191_v5 }
 0x8f4   :  { %9421 = vmatmul.mubr.msk.bf16.vlgmr.msra.gmra.mrb[168].mxu1 %vm2327_vm7, %v5019_v61 }
 0x8f5   :  { %9425 = vmatpush3.bf16.msra.mxu1 %v10362_v62  ;;  %9849 = vmatpush3.bf16.msra.mxu0 %v10363_v33 }
 0x8f6   :  { %9426 = vmatprep.subr.bf16.mxu1 %v13191_v5  ;;  %9850 = vmatprep.subr.bf16.mxu0 %v13191_v5 }
 0x8f7   :  { %9432 = vmatprep.mubr.msk.bf16.mxu1 %vm13151_vm3, %v13191_v5 }
 0x8f9   :  { %9427 = vmatpush3.bf16.msra.mxu1 %v10364_v48  ;;  %9851 = vmatpush3.bf16.msra.mxu0 %v10365_v3 }
 0x8fa   :  { %9428 = vmatprep.subr.bf16.mxu1 %v13191_v5  ;;  %9856 = vmatprep.subr.bf16.mxu0 %v13191_v5 }
 0x8fc   :  { %9853 = vmatmul.mubr.msk.bf16.vlgmr.msra.gmra.mrb[0].mxu0 %vm2327_vm7, %v7863_v36 }
 0x8fd   :  { %9429 = vmatpush3.bf16.msra.mxu1 %v10366_v2  ;;  %9857 = vmatpush3.bf16.msra.mxu0 %v10367_v54 }
 0x8fe   :  { %9430 = vmatprep.subr.bf16.mxu1 %v13191_v5  ;;  %9858 = vmatprep.subr.bf16.mxu0 %v13191_v5 }
 0x8ff   :  { %9864 = vmatprep.mubr.msk.bf16.mxu0 %vm13151_vm3, %v13191_v5 }
 0x901   :  { %9431 = vmatpush3.bf16.msra.mxu1 %v10368_v11  ;;  %9859 = vmatpush3.bf16.msra.mxu0 %v10369_v28 }
 0x902   :  { %9436 = vmatprep.subr.bf16.mxu1 %v13191_v5  ;;  %9860 = vmatprep.subr.bf16.mxu0 %v13191_v5 }
 0x904   :  { %9433 = vmatmul.mubr.msk.bf16.vlgmr.msra.gmra.mrb[168].mxu1 %vm2327_vm7, %v5098_v12 }
 0x905   :  { %9437 = vmatpush3.bf16.msra.mxu1 %v10370_v7  ;;  %9861 = vmatpush3.bf16.msra.mxu0 %v10371_v23 }
 0x906   :  { %9438 = vmatprep.subr.bf16.mxu1 %v13191_v5  ;;  %9862 = vmatprep.subr.bf16.mxu0 %v13191_v5 }
 0x907   :  { %9444 = vmatprep.mubr.msk.bf16.mxu1 %vm13151_vm3, %v13191_v5 }
 0x909   :  { %9439 = vmatpush3.bf16.msra.mxu1 %v10372_v29  ;;  %9863 = vmatpush3.bf16.msra.mxu0 %v10373_v57 }
 0x90a   :  { %9440 = vmatprep.subr.bf16.mxu1 %v13191_v5  ;;  %9868 = vmatprep.subr.bf16.mxu0 %v13191_v5 }
 0x90c   :  { %9865 = vmatmul.mubr.msk.bf16.vlgmr.msra.gmra.mrb[0].mxu0 %vm2327_vm7, %v7942_v31 }
 0x90d   :  { %9441 = vmatpush3.bf16.msra.mxu1 %v10374_v52  ;;  %9869 = vmatpush3.bf16.msra.mxu0 %v10375_v41 }
 0x90e   :  { %9442 = vmatprep.subr.bf16.mxu1 %v13191_v5  ;;  %9870 = vmatprep.subr.bf16.mxu0 %v13191_v5 }
 0x90f   :  { %9876 = vmatprep.mubr.msk.bf16.mxu0 %vm13151_vm3, %v13191_v5 }
 0x911   :  { %9443 = vmatpush3.bf16.msra.mxu1 %v10376_v51  ;;  %9871 = vmatpush3.bf16.msra.mxu0 %v10377_v56 }
 0x912   :  { %9448 = vmatprep.subr.bf16.mxu1 %v13191_v5  ;;  %9872 = vmatprep.subr.bf16.mxu0 %v13191_v5 }
 0x914   :  { %9445 = vmatmul.mubr.msk.bf16.vlgmr.msra.gmra.mrb[168].mxu1 %vm2327_vm7, %v5177_v22 }
 0x915   :  { %9449 = vmatpush3.bf16.msra.mxu1 %v10378_v16  ;;  %9873 = vmatpush3.bf16.msra.mxu0 %v10379_v15 }
 0x916   :  { %9450 = vmatprep.subr.bf16.mxu1 %v13191_v5  ;;  %9874 = vmatprep.subr.bf16.mxu0 %v13191_v5 }
 0x917   :  { %9456 = vmatprep.mubr.msk.bf16.mxu1 %vm13151_vm3, %v13191_v5 }
 0x919   :  { %9451 = vmatpush3.bf16.msra.mxu1 %v10380_v58  ;;  %9875 = vmatpush3.bf16.msra.mxu0 %v10381_v13 }
 0x91a   :  { %9452 = vmatprep.subr.bf16.mxu1 %v13191_v5  ;;  %9880 = vmatprep.subr.bf16.mxu0 %v13191_v5 }
 0x91c   :  { %9877 = vmatmul.mubr.msk.bf16.vlgmr.msra.gmra.mrb[0].mxu0 %vm2327_vm7, %v8021_v38 }
 0x91d   :  { %9453 = vmatpush3.bf16.msra.mxu1 %v10382_v59  ;;  %9881 = vmatpush3.bf16.msra.mxu0 %v10383_v14 }
 0x91e   :  { %9454 = vmatprep.subr.bf16.mxu1 %v13191_v5  ;;  %9882 = vmatprep.subr.bf16.mxu0 %v13191_v5 }
 0x91f   :  { %9888 = vmatprep.mubr.msk.bf16.mxu0 %vm13151_vm3, %v13191_v5 }
 0x921   :  { %9455 = vmatpush3.bf16.msra.mxu1 %v10384_v35  ;;  %9883 = vmatpush3.bf16.msra.mxu0 %v10385_v4 }
 0x922   :  { %9884 = vmatprep.subr.bf16.mxu0 %v13191_v5  ;;  %9892 = vmatprep.subr.bf16.mxu1 %v13191_v5 }
 0x924   :  { %9457 = vmatmul.mubr.msk.bf16.vlgmr.msra.gmra.mrb[168].mxu1 %vm2327_vm7, %v5256_v6 }
 0x925   :  { %9885 = vmatpush3.bf16.msra.mxu0 %v10386_v50  ;;  %9893 = vmatpush3.bf16.msra.mxu1 %v10388_v45 }
 0x926   :  { %9886 = vmatprep.subr.bf16.mxu0 %v13191_v5  ;;  %9894 = vmatprep.subr.bf16.mxu1 %v13191_v5 }
 0x927   :  { %9908 = vmatprep.mubr.msk.bf16.mxu1 %vm13151_vm3, %v13191_v5 }
 0x929   :  { %9887 = vmatpush3.bf16.msra.mxu0 %v10387_v9  ;;  %9895 = vmatpush3.bf16.msra.mxu1 %v10389_v26 }
 0x92a   :  { %9896 = vmatprep.subr.bf16.mxu1 %v13191_v5 }
 0x92c   :  { %9889 = vmatmul.mubr.msk.bf16.vlgmr.msra.gmra.mrb[0].mxu0 %vm2327_vm7, %v8100_v0 }
 0x92d   :  { %9897 = vmatpush3.bf16.msra.mxu1 %v10390_v42 }
 0x92e   :  { %9898 = vmatprep.subr.bf16.mxu1 %v13191_v5 }
 0x931   :  { %9899 = vmatpush3.bf16.msra.mxu1 %v10391_v43 }
 0x932   :  { %9900 = vmatprep.subr.bf16.mxu1 %v13191_v5 }
 0x935   :  { %9901 = vmatpush3.bf16.msra.mxu1 %v10392_v24 }
 0x936   :  { %9902 = vmatprep.subr.bf16.mxu1 %v13191_v5 }
 0x939   :  { %9903 = vmatpush3.bf16.msra.mxu1 %v10393_v30 }
 0x93a   :  { %9904 = vmatprep.subr.bf16.mxu1 %v13191_v5 }
 0x93d   :  { %9905 = vmatpush3.bf16.msra.mxu1 %v10394_v18 }
 0x93e   :  { %9906 = vmatprep.subr.bf16.mxu1 %v13191_v5  ;;  %v8705_v5 = vld [vmem:[%s13086_s8] ss:$0 sm:$0xff] }
 0x941   :  { %9907 = vmatpush3.bf16.msra.mxu1 %v10395_v25 }
 0x9f7   :  { %v5326_v17 = vpop.f32.mrb[168].mxu1 }
 0x9f8   :  { %v9458_v10 = vpop.f32.mrb[169].mxu1  ;;  %v9912_v8 = vadd.f32 %v8459_v20, %v5326_v17 }
 0x9f9   :  { %v5329_v46 = vpop.f32.mrb[170].mxu1 }
 0x9fa   :  { %v9459_v40 = vpop.f32.mrb[171].mxu1 }
 0x9ff   :  { %v8170_v27 = vpop.f32.mrb[0].mxu0 }
 0xa00   :  { %v9913_v63 = vadd.f32 %v9912_v8, %v8170_v27  ;;  %v9890_v39 = vpop.f32.mrb[1].mxu0 }
 0xa01   :  { %v8173_v19 = vpop.f32.mrb[2].mxu0 }
 0xa02   :  { %v8177_v34 = vmax.f32 %v9913_v63, 0.0  ;;  %v9891_v37 = vpop.f32.mrb[3].mxu0 }
 0xa04   :  { %v8178_v49 = vpack.c.bf16 %v8177_v34, %v8177_v34 }
 0xa06   :  { %9909 = vmatmul.mubr.bf16.vlgmr.msra.gmra.mrb[172].mxu1 %v8178_v49 }
 0xad9   :  { %v8284_v60 = vpop.f32.mrb[172].mxu1 }
 0xada   :  { %v8285_v62 = vadd.f32 %v8705_v5, %v8284_v60  ;;  %v9910_v33 = vpop.f32.mrb[173].mxu1 }
 0xadb   :  { %v8287_v61 = vpop.f32.mrb[174].mxu1 }
 0xadc   :  { %8290 = vst [vmem:[#allocation5] sm:$0x3] %v8285_v62  ;;  %v9911_v48 = vpop.f32.mrb[175].mxu1 }
 0xadd   :  { %10407 = shalt.err (!%p10404_p4)
}
 0xade   :  { %s10408_s8 = scalar_lea.hbm %s13087_s9, 32 }
 0xadf   :  { %p10409_p5 = scmp.ne.s32.totalorder %s13087_s9, %s10408_s8  ;;  %p10412_p6 = scmp.lt.u32.totalorder %s10408_s8, %s13087_s9 }
 0xae1   :  { %p10414_p7 = pnand %p10412_p6, %p10409_p5 }
 0xae3   :  { %10417 = shalt.err (!%p10414_p7)
}
 0xae4   :  { %8300 = dma.vmem_to_hbm [thread:$0]  %s8298_s14, 32, %s13087_s9, [#allocation6]  }
 0xae5   :  { %10418 = dma.done.wait [#allocation6], 32  }
 0xae6   :  { %10419 = vsyncadd [#allocation6], 4294967264 }
 0xae7   :  { %8304 = vsyncpa [#allocation6], 1 }

</bundles_post_ra>
